<compile_context>
chip_gen: v7x
topology: tpu7x:2x2x1
jax: 0.10.0
libtpu: 0.0.40
codegen_flags: <defaults>
</compile_context>

<pallas_src>
import functools

import jax
import jax.numpy as jnp
from jax.experimental import pallas as pl
from jax.experimental.pallas import tpu as pltpu


# ----------------------------------------------------------------------------
# In-kernel helpers
# ----------------------------------------------------------------------------
def _silu(x):
    return x * jax.nn.sigmoid(x)


def _im2col(x_map, tap_masks, W):
    """Build the 3x3 im2col matrix for a lane-batched, same-padded map.

    x_map     : [Cin, L] f32, L = Nb * H*W (samples concatenated on lanes)
    tap_masks : [9, L]   f32, per-sample in-bounds masks (zero the roll wrap)
    W         : per-sample image width (static)
    Returns   : [9*Cin, L] f32 (tile-aligned: Cin is a multiple of 8)
    """
    L = x_map.shape[1]
    taps = []
    t = 0
    for dy in (-1, 0, 1):
        for dx in (-1, 0, 1):
            s = dy * W + dx
            shift = (-s) % L                      # value at p+s lands at p
            rolled = pltpu.roll(x_map, shift, axis=1) if shift else x_map
            if s == 0:
                taps.append(rolled)               # center mask is all ones
            else:
                taps.append(rolled * tap_masks[t:t + 1, :])
            t += 1
    return jnp.concatenate(taps, axis=0)


def _conv3x3(x_map, w_mat, bias, tap_masks, W, *, silu):
    """Same-padded 3x3 conv as ONE MXU contraction on the lane-batched map.

    x_map : [Cin, L] f32, w_mat : [Cout, 9*Cin] bf16,
    bias  : [Cout, 1] or [Cout, L] f32.  Returns [Cout, L] f32.
    """
    xcol = _im2col(x_map, tap_masks, W)
    acc = jnp.dot(w_mat, xcol.astype(jnp.bfloat16),
                  preferred_element_type=jnp.float32) + bias
    return _silu(acc) if silu else acc


# ----------------------------------------------------------------------------
# The fused UNet kernel (one grid step = a lane-batched block of Nb samples)
# ----------------------------------------------------------------------------
def _unet_kernel(x_ref, t_ref, wt_ref, bt_ref, b12_ref,
                 we1_ref, we2_ref, wbo_ref, bbo_ref,
                 wd1u_ref, wd1s_ref, bd1_ref, wou_ref, bou_ref,
                 pool_ref, up_ref, sel_f_ref, sel_h_ref, mf_ref, mh_ref,
                 o_ref, *, W):
    bf = jnp.bfloat16
    f32 = jnp.float32
    Wh = W // 2
    F = we1_ref.shape[0]

    x = x_ref[0]                       # [Cpad, L] f32
    m_full = mf_ref[...]               # [9, L]  f32
    m_half = mh_ref[...]               # [9, Lq] f32

    # Fused time-embedding MLP at [3F, Nb] (tiny), conv biases folded in,
    # then lane-expanded via selector matmuls (per-sample bias maps).
    pre = jnp.dot(wt_ref[...], t_ref[0], preferred_element_type=f32) + bt_ref[...]
    temb = _silu(pre) + b12_ref[...]                                   # [3F, Nb]
    b1_map = jnp.dot(temb[0:F, :].astype(bf), sel_f_ref[...],
                     preferred_element_type=f32)                       # [F, L]
    b2_map = jnp.dot(temb[F:, :].astype(bf), sel_h_ref[...],
                     preferred_element_type=f32)                       # [2F, Lq]

    # Encoder
    h1 = _conv3x3(x, we1_ref[...], b1_map, m_full, W, silu=True)       # [F, L]
    p1 = jnp.dot(h1.astype(bf), pool_ref[...],
                 preferred_element_type=f32)                           # [F, Lq]
    h2 = _conv3x3(p1, we2_ref[...], b2_map, m_half, Wh, silu=True)     # [2F, Lq]
    hb = _conv3x3(h2, wbo_ref[...], bbo_ref[...], m_half, Wh, silu=True)

    # Decoder: nearest upsample (matmul) + skip conv split across the concat.
    up = jnp.dot(hb.astype(bf), up_ref[...], preferred_element_type=f32)  # [2F, L]
    xcol_up = _im2col(up, m_full, W)                                   # [9*2F, L]
    xcol_sk = _im2col(h1, m_full, W)                                   # [9*F, L]
    d1 = jnp.dot(wd1u_ref[...], xcol_up.astype(bf), preferred_element_type=f32)
    d1 = d1 + jnp.dot(wd1s_ref[...], xcol_sk.astype(bf), preferred_element_type=f32)
    d1 = _silu(d1 + bd1_ref[...])                                      # [F, L]

    out = _conv3x3(d1, wou_ref[...], bou_ref[...], m_full, W, silu=False)  # [C, L]
    o_ref[0] = out.astype(o_ref.dtype)                                 # one lane-dense store


# ----------------------------------------------------------------------------
# Host-side constant operators (constant-folded under jit)
# ----------------------------------------------------------------------------
def _pool_matrices(H, W):
    HW, Wo = H * W, W // 2
    p = jnp.arange(HW)
    cell = (p // W // 2) * Wo + (p % W) // 2
    onehot = cell[:, None] == jnp.arange((H // 2) * (W // 2))[None, :]
    pool = onehot.astype(jnp.float32) * 0.25          # [HW, HW/4]  avg-pool operator
    up = onehot.T.astype(jnp.float32)                 # [HW/4, HW]  nearest-upsample operator
    return pool, up


def _tap_masks(H, W):
    HW = H * W
    p = jnp.arange(HW)
    h, w = p // W, p % W
    rows = []
    for dy in (-1, 0, 1):
        for dx in (-1, 0, 1):
            rows.append((h + dy >= 0) & (h + dy < H) & (w + dx >= 0) & (w + dx < W))
    return jnp.stack(rows, axis=0).astype(jnp.float32)  # [9, HW]


def _conv_weight_matrix(w):
    # [3, 3, Cin, Cout] -> [Cout, 9*Cin], column order ((dy+1)*3+(dx+1))*Cin + ci
    cout = w.shape[-1]
    return jnp.transpose(w, (3, 0, 1, 2)).reshape(cout, -1)


def _dual_tensorcore():
    # v7x has 2 TensorCores per chip; v5e/v6e have 1 (grid=(2,) would be a serial loop).
    try:
        kind = jax.devices()[0].device_kind.lower()
    except Exception:
        return False
    return ("v7" in kind) or ("7x" in kind)


# ----------------------------------------------------------------------------
# Parameters (deterministic, in-script)
# ----------------------------------------------------------------------------
def init_params(key, num_channels, time_embedding_size, base_channels):
    C, E, F = num_channels, time_embedding_size, base_channels

    def nrm(k, shape, fan_in):
        return jax.random.normal(k, shape, jnp.float32) / jnp.sqrt(float(fan_in))

    ks = jax.random.split(key, 7)
    p = {}
    p["t1_w"] = nrm(ks[0], (E, F), E);                     p["t1_b"] = jnp.zeros((F,), jnp.float32)
    p["t2_w"] = nrm(ks[1], (E, 2 * F), E);                 p["t2_b"] = jnp.zeros((2 * F,), jnp.float32)
    p["e1_w"] = nrm(ks[2], (3, 3, C, F), 9 * C);           p["e1_b"] = jnp.zeros((F,), jnp.float32)
    p["e2_w"] = nrm(ks[3], (3, 3, F, 2 * F), 9 * F);       p["e2_b"] = jnp.zeros((2 * F,), jnp.float32)
    p["bo_w"] = nrm(ks[4], (3, 3, 2 * F, 2 * F), 18 * F);  p["bo_b"] = jnp.zeros((2 * F,), jnp.float32)
    p["d1_w"] = nrm(ks[5], (3, 3, 3 * F, F), 27 * F);      p["d1_b"] = jnp.zeros((F,), jnp.float32)
    p["ou_w"] = nrm(ks[6], (3, 3, F, C), 9 * F);           p["ou_b"] = jnp.zeros((C,), jnp.float32)
    return p


# ----------------------------------------------------------------------------
# UNet forward: one fused pallas_call
# ----------------------------------------------------------------------------
def unet_forward(params, x_flat, t_vec, H, W):
    """x_flat: [N, C, H*W] f32, t_vec: [N, E] f32  ->  [N, C, H*W] f32."""
    N, C, HW = x_flat.shape
    E = t_vec.shape[-1]
    bf = jnp.bfloat16
    f32 = jnp.float32

    # Device-adaptive grid: 2 parallel blocks only on dual-TC chips.
    n_blocks = 2 if (_dual_tensorcore() and N >= 2 and N % 2 == 0) else 1
    Nb = N // n_blocks
    L = Nb * HW
    Hh, Wh = H // 2, W // 2
    HWq = Hh * Wh
    Lq = Nb * HWq

    # Channel-pad the input to the f32 sublane tile (8) so every im2col tap is aligned.
    Cpad = max(8, ((C + 7) // 8) * 8)
    F = params["e1_w"].shape[-1]
    F2 = params["e2_w"].shape[-1]      # 2F

    # ---- weight prep (tiny, constant-folded): bf16 MXU operands, f32 biases.
    e1_w_pad = jnp.pad(params["e1_w"], ((0, 0), (0, 0), (0, Cpad - C), (0, 0)))
    we1 = _conv_weight_matrix(e1_w_pad).astype(bf)                       # [F, 9*Cpad]
    we2 = _conv_weight_matrix(params["e2_w"]).astype(bf)                 # [2F, 9F]
    wbo = _conv_weight_matrix(params["bo_w"]).astype(bf)                 # [2F, 18F]
    wd1u = _conv_weight_matrix(params["d1_w"][:, :, :F2, :]).astype(bf)  # [F, 9*2F]
    wd1s = _conv_weight_matrix(params["d1_w"][:, :, F2:, :]).astype(bf)  # [F, 9*F]
    wou = _conv_weight_matrix(params["ou_w"]).astype(bf)                 # [C, 9F]

    wt = jnp.concatenate([params["t1_w"], params["t2_w"]], axis=1).T.astype(f32)   # [3F, E]
    bt = jnp.concatenate([params["t1_b"], params["t2_b"]])[:, None].astype(f32)    # [3F, 1]
    b12 = jnp.concatenate([params["e1_b"], params["e2_b"]])[:, None].astype(f32)   # [3F, 1]
    bbo = params["bo_b"][:, None].astype(f32)
    bd1 = params["d1_b"][:, None].astype(f32)
    bou = params["ou_b"][:, None].astype(f32)

    # ---- constant operators for the lane-batched layout.
    pool_m, up_m = _pool_matrices(H, W)
    eye = jnp.eye(Nb, dtype=f32)
    pool_kron = jnp.kron(eye, pool_m).astype(bf)                    # [L, Lq]
    up_kron = jnp.kron(eye, up_m).astype(bf)                        # [Lq, L]
    sel_full = jnp.kron(eye, jnp.ones((1, HW), f32)).astype(bf)     # [Nb, L]
    sel_half = jnp.kron(eye, jnp.ones((1, HWq), f32)).astype(bf)    # [Nb, Lq]
    m_full = jnp.tile(_tap_masks(H, W), (1, Nb))                    # [9, L]  f32
    m_half = jnp.tile(_tap_masks(Hh, Wh), (1, Nb))                  # [9, Lq] f32

    # ---- lane-batched input layouts (host-side reshapes under jit, tiny).
    x_pad = jnp.pad(x_flat.astype(f32), ((0, 0), (0, Cpad - C), (0, 0)))
    x_in = (x_pad.reshape(n_blocks, Nb, Cpad, HW)
                 .transpose(0, 2, 1, 3)
                 .reshape(n_blocks, Cpad, L))                       # [n_blocks, Cpad, L]
    t_in = (t_vec.astype(f32).reshape(n_blocks, Nb, E)
                 .transpose(0, 2, 1))                               # [n_blocks, E, Nb]

    blk_x = pl.BlockSpec((1, Cpad, L), lambda i: (i, 0, 0))
    blk_t = pl.BlockSpec((1, E, Nb), lambda i: (i, 0, 0))
    blk_o = pl.BlockSpec((1, C, L), lambda i: (i, 0, 0))
    whole = lambda a: pl.BlockSpec(a.shape, lambda i: (0,) * a.ndim)

    kernel = functools.partial(_unet_kernel, W=W)
    # TODO(synk): for much larger image_size/channels, tile HW spatially instead
    # of whole-image lane batches (v7x only has 64 MiB physical VMEM).
    out = pl.pallas_call(
        kernel,
        out_shape=jax.ShapeDtypeStruct((n_blocks, C, L), x_flat.dtype),
        grid_spec=pltpu.PrefetchScalarGridSpec(
            num_scalar_prefetch=0,
            grid=(n_blocks,),
            in_specs=[
                blk_x, blk_t,
                whole(wt), whole(bt), whole(b12),
                whole(we1), whole(we2), whole(wbo), whole(bbo),
                whole(wd1u), whole(wd1s), whole(bd1),
                whole(wou), whole(bou),
                whole(pool_kron), whole(up_kron),
                whole(sel_full), whole(sel_half),
                whole(m_full), whole(m_half),
            ],
            out_specs=blk_o,
        ),
        compiler_params=pltpu.CompilerParams(
            dimension_semantics=("parallel",),
            vmem_limit_bytes=32 * 1024 * 1024,
        ),
    )(x_in, t_in, wt, bt, b12, we1, we2, wbo, bbo,
      wd1u, wd1s, bd1, wou, bou, pool_kron, up_kron,
      sel_full, sel_half, m_full, m_half)

    # [n_blocks, C, Nb*HW] -> [N, C, HW]
    out = (out.reshape(n_blocks, C, Nb, HW)
              .transpose(0, 2, 1, 3)
              .reshape(N, C, HW))
    return out


def unet_residual_model_forward(params, x, t_embeddings_schedule, input_vector):
    """
    x:                      [B, T, num_channels, image_size, image_size]
    t_embeddings_schedule:  [T, time_embedding_size]
    input_vector:           [B, T, input_size]   (unused, as in the PyTorch module)
    returns:                [B, T, num_channels, image_size, image_size]
    """
    del input_vector  # "NOT PASSING INPUT TO UNET FOR NOW!!!"
    B, T, C, H, W = x.shape
    E = t_embeddings_schedule.shape[-1]

    # Broadcast the schedule over the batch dim -> [B, T, E] -> [B*T, E]
    t_full = jnp.broadcast_to(t_embeddings_schedule[None, :, :], (B, T, E)).reshape(B * T, E)

    # NCHW is already channels-on-sublanes / spatial-on-lanes friendly: just flatten.
    x_flat = x.reshape(B * T, C, H * W)

    out_flat = unet_forward(params, x_flat, t_full, H, W)
    return out_flat.reshape(B, T, C, H, W)


# ----------------------------------------------------------------------------
# Main
# ----------------------------------------------------------------------------
if __name__ == "__main__":
    B, T = 2, 3
    image_size = 16
    input_size = 4
    time_embedding_size = 8
    num_channels = 2
    base_channels = 8

    key = jax.random.PRNGKey(0)
    k_param, k_x, k_t, k_v = jax.random.split(key, 4)

    params = init_params(k_param, num_channels, time_embedding_size, base_channels)

    x = jax.random.normal(k_x, (B, T, num_channels, image_size, image_size), jnp.float32)
    t_embeddings_schedule = jax.random.normal(k_t, (T, time_embedding_size), jnp.float32)
    input_vector = jax.random.normal(k_v, (B, T, input_size), jnp.float32)

    fwd = jax.jit(functools.partial(unet_residual_model_forward, params))
    out = jax.block_until_ready(fwd(x, t_embeddings_schedule, input_vector))

    assert out.shape == (B, T, num_channels, image_size, image_size), out.shape
    assert bool(jnp.all(jnp.isfinite(out)))
    print("KERNEL_OK")
</pallas_src>

<mosaic_0001>
module attributes {stable_mosaic.version = 11 : i64} {
  func.func @_unet_kernel(%arg0: i32, %arg1: memref<1x8x1536xf32, #tpu.memory_space<vmem>>, %arg2: memref<1x8x6xf32, #tpu.memory_space<vmem>>, %arg3: memref<24x8xf32, #tpu.memory_space<vmem>>, %arg4: memref<24x1xf32, #tpu.memory_space<vmem>>, %arg5: memref<24x1xf32, #tpu.memory_space<vmem>>, %arg6: memref<8x72xbf16, #tpu.memory_space<vmem>>, %arg7: memref<16x72xbf16, #tpu.memory_space<vmem>>, %arg8: memref<16x144xbf16, #tpu.memory_space<vmem>>, %arg9: memref<16x1xf32, #tpu.memory_space<vmem>>, %arg10: memref<8x144xbf16, #tpu.memory_space<vmem>>, %arg11: memref<8x72xbf16, #tpu.memory_space<vmem>>, %arg12: memref<8x1xf32, #tpu.memory_space<vmem>>, %arg13: memref<2x72xbf16, #tpu.memory_space<vmem>>, %arg14: memref<2x1xf32, #tpu.memory_space<vmem>>, %arg15: memref<1536x384xbf16, #tpu.memory_space<vmem>>, %arg16: memref<384x1536xbf16, #tpu.memory_space<vmem>>, %arg17: memref<6x1536xbf16, #tpu.memory_space<vmem>>, %arg18: memref<6x384xbf16, #tpu.memory_space<vmem>>, %arg19: memref<9x1536xf32, #tpu.memory_space<vmem>>, %arg20: memref<9x384xf32, #tpu.memory_space<vmem>>, %arg21: memref<1x2x1536xf32, #tpu.memory_space<vmem>>) attributes {dimension_semantics = [#tpu.dimension_semantics<parallel>], iteration_bounds = array<i64: 1>, scalar_prefetch = 0 : i64, scratch_operands = 0 : i64, tpu.core_type = #tpu.core_type<tc>, window_params = [{transform_indices = @transform_0, window_bounds = array<i64: 1, 8, 1536>}, {transform_indices = @transform_1, window_bounds = array<i64: 1, 8, 6>}, {pipeline_mode = #tpu.pipeline_mode<synchronous>, transform_indices = @transform_2, window_bounds = array<i64: 24, 8>}, {pipeline_mode = #tpu.pipeline_mode<synchronous>, transform_indices = @transform_3, window_bounds = array<i64: 24, 1>}, {pipeline_mode = #tpu.pipeline_mode<synchronous>, transform_indices = @transform_4, window_bounds = array<i64: 24, 1>}, {pipeline_mode = #tpu.pipeline_mode<synchronous>, transform_indices = @transform_5, window_bounds = array<i64: 8, 72>}, {pipeline_mode = #tpu.pipeline_mode<synchronous>, transform_indices = @transform_6, window_bounds = array<i64: 16, 72>}, {pipeline_mode = #tpu.pipeline_mode<synchronous>, transform_indices = @transform_7, window_bounds = array<i64: 16, 144>}, {pipeline_mode = #tpu.pipeline_mode<synchronous>, transform_indices = @transform_8, window_bounds = array<i64: 16, 1>}, {pipeline_mode = #tpu.pipeline_mode<synchronous>, transform_indices = @transform_9, window_bounds = array<i64: 8, 144>}, {pipeline_mode = #tpu.pipeline_mode<synchronous>, transform_indices = @transform_10, window_bounds = array<i64: 8, 72>}, {pipeline_mode = #tpu.pipeline_mode<synchronous>, transform_indices = @transform_11, window_bounds = array<i64: 8, 1>}, {pipeline_mode = #tpu.pipeline_mode<synchronous>, transform_indices = @transform_12, window_bounds = array<i64: 2, 72>}, {pipeline_mode = #tpu.pipeline_mode<synchronous>, transform_indices = @transform_13, window_bounds = array<i64: 2, 1>}, {pipeline_mode = #tpu.pipeline_mode<synchronous>, transform_indices = @transform_14, window_bounds = array<i64: 1536, 384>}, {pipeline_mode = #tpu.pipeline_mode<synchronous>, transform_indices = @transform_15, window_bounds = array<i64: 384, 1536>}, {pipeline_mode = #tpu.pipeline_mode<synchronous>, transform_indices = @transform_16, window_bounds = array<i64: 6, 1536>}, {pipeline_mode = #tpu.pipeline_mode<synchronous>, transform_indices = @transform_17, window_bounds = array<i64: 6, 384>}, {pipeline_mode = #tpu.pipeline_mode<synchronous>, transform_indices = @transform_18, window_bounds = array<i64: 9, 1536>}, {pipeline_mode = #tpu.pipeline_mode<synchronous>, transform_indices = @transform_19, window_bounds = array<i64: 9, 384>}, {transform_indices = @transform_20, window_bounds = array<i64: 1, 2, 1536>}]} {
    %c0 = arith.constant 0 : index
    %c0_0 = arith.constant 0 : index
    %c0_1 = arith.constant 0 : index
    %0 = vector.load %arg1[%c0, %c0_0, %c0_1] : memref<1x8x1536xf32, #tpu.memory_space<vmem>>, vector<1x8x1536xf32>
    %1 = vector.shape_cast %0 : vector<1x8x1536xf32> to vector<8x1536xf32>
    %c0_2 = arith.constant 0 : index
    %c0_3 = arith.constant 0 : index
    %2 = vector.load %arg19[%c0_2, %c0_3] : memref<9x1536xf32, #tpu.memory_space<vmem>>, vector<9x1536xf32>
    %c0_4 = arith.constant 0 : index
    %c0_5 = arith.constant 0 : index
    %3 = vector.load %arg20[%c0_4, %c0_5] : memref<9x384xf32, #tpu.memory_space<vmem>>, vector<9x384xf32>
    %c0_6 = arith.constant 0 : index
    %c0_7 = arith.constant 0 : index
    %4 = vector.load %arg3[%c0_6, %c0_7] : memref<24x8xf32, #tpu.memory_space<vmem>>, vector<24x8xf32>
    %c0_8 = arith.constant 0 : index
    %c0_9 = arith.constant 0 : index
    %c0_10 = arith.constant 0 : index
    %5 = vector.load %arg2[%c0_8, %c0_9, %c0_10] : memref<1x8x6xf32, #tpu.memory_space<vmem>>, vector<1x8x6xf32>
    %6 = vector.shape_cast %5 : vector<1x8x6xf32> to vector<8x6xf32>
    %cst = arith.constant dense<0.000000e+00> : vector<24x6xf32>
    %7 = tpu.matmul %4, %6, %cst {dimension_numbers = #tpu.dot_dimension_numbers<[1], [0], [0], [1], [0, 0, 1, 1], [], []>} : vector<24x8xf32>, vector<8x6xf32>, vector<24x6xf32> -> vector<24x6xf32>
    %c0_11 = arith.constant 0 : index
    %c0_12 = arith.constant 0 : index
    %8 = vector.load %arg4[%c0_11, %c0_12] : memref<24x1xf32, #tpu.memory_space<vmem>>, vector<24x1xf32>
    %9 = vector.broadcast %8 : vector<24x1xf32> to vector<24x6xf32>
    %10 = arith.addf %7, %9 : vector<24x6xf32>
    %11 = arith.negf %10 : vector<24x6xf32>
    %12 = math.exp %11 : vector<24x6xf32>
    %cst_13 = arith.constant 1.000000e+00 : f32
    %13 = vector.broadcast %cst_13 : f32 to vector<24x6xf32>
    %14 = arith.addf %13, %12 : vector<24x6xf32>
    %15 = arith.divf %13, %14 : vector<24x6xf32>
    %16 = arith.mulf %10, %15 : vector<24x6xf32>
    %c0_14 = arith.constant 0 : index
    %c0_15 = arith.constant 0 : index
    %17 = vector.load %arg5[%c0_14, %c0_15] : memref<24x1xf32, #tpu.memory_space<vmem>>, vector<24x1xf32>
    %18 = vector.broadcast %17 : vector<24x1xf32> to vector<24x6xf32>
    %19 = arith.addf %16, %18 : vector<24x6xf32>
    %20 = vector.extract_strided_slice %19 {offsets = [0, 0], sizes = [8, 6], strides = [1, 1]} : vector<24x6xf32> to vector<8x6xf32>
    %21 = arith.truncf %20 : vector<8x6xf32> to vector<8x6xbf16>
    %c0_16 = arith.constant 0 : index
    %c0_17 = arith.constant 0 : index
    %22 = vector.load %arg17[%c0_16, %c0_17] : memref<6x1536xbf16, #tpu.memory_space<vmem>>, vector<6x1536xbf16>
    %cst_18 = arith.constant dense<0.000000e+00> : vector<8x1536xf32>
    %23 = tpu.matmul %21, %22, %cst_18 {dimension_numbers = #tpu.dot_dimension_numbers<[1], [0], [0], [1], [0, 0, 1, 1], [], []>} : vector<8x6xbf16>, vector<6x1536xbf16>, vector<8x1536xf32> -> vector<8x1536xf32>
    %24 = vector.extract_strided_slice %19 {offsets = [8, 0], sizes = [16, 6], strides = [1, 1]} : vector<24x6xf32> to vector<16x6xf32>
    %25 = arith.truncf %24 : vector<16x6xf32> to vector<16x6xbf16>
    %c0_19 = arith.constant 0 : index
    %c0_20 = arith.constant 0 : index
    %26 = vector.load %arg18[%c0_19, %c0_20] : memref<6x384xbf16, #tpu.memory_space<vmem>>, vector<6x384xbf16>
    %cst_21 = arith.constant dense<0.000000e+00> : vector<16x384xf32>
    %27 = tpu.matmul %25, %26, %cst_21 {dimension_numbers = #tpu.dot_dimension_numbers<[1], [0], [0], [1], [0, 0, 1, 1], [], []>} : vector<16x6xbf16>, vector<6x384xbf16>, vector<16x384xf32> -> vector<16x384xf32>
    %c0_22 = arith.constant 0 : index
    %c0_23 = arith.constant 0 : index
    %28 = vector.load %arg6[%c0_22, %c0_23] : memref<8x72xbf16, #tpu.memory_space<vmem>>, vector<8x72xbf16>
    %c17_i32 = arith.constant 17 : i32
    %29 = tpu.dynamic_rotate %1 by %c17_i32 dim 1 : vector<8x1536xf32>, i32 -> vector<8x1536xf32>
    %30 = vector.extract_strided_slice %2 {offsets = [0, 0], sizes = [1, 1536], strides = [1, 1]} : vector<9x1536xf32> to vector<1x1536xf32>
    %31 = vector.broadcast %30 : vector<1x1536xf32> to vector<8x1536xf32>
    %32 = arith.mulf %29, %31 : vector<8x1536xf32>
    %c16_i32 = arith.constant 16 : i32
    %33 = tpu.dynamic_rotate %1 by %c16_i32 dim 1 : vector<8x1536xf32>, i32 -> vector<8x1536xf32>
    %34 = vector.extract_strided_slice %2 {offsets = [1, 0], sizes = [1, 1536], strides = [1, 1]} : vector<9x1536xf32> to vector<1x1536xf32>
    %35 = vector.broadcast %34 : vector<1x1536xf32> to vector<8x1536xf32>
    %36 = arith.mulf %33, %35 : vector<8x1536xf32>
    %c15_i32 = arith.constant 15 : i32
    %37 = tpu.dynamic_rotate %1 by %c15_i32 dim 1 : vector<8x1536xf32>, i32 -> vector<8x1536xf32>
    %38 = vector.extract_strided_slice %2 {offsets = [2, 0], sizes = [1, 1536], strides = [1, 1]} : vector<9x1536xf32> to vector<1x1536xf32>
    %39 = vector.broadcast %38 : vector<1x1536xf32> to vector<8x1536xf32>
    %40 = arith.mulf %37, %39 : vector<8x1536xf32>
    %c1_i32 = arith.constant 1 : i32
    %41 = tpu.dynamic_rotate %1 by %c1_i32 dim 1 : vector<8x1536xf32>, i32 -> vector<8x1536xf32>
    %42 = vector.extract_strided_slice %2 {offsets = [3, 0], sizes = [1, 1536], strides = [1, 1]} : vector<9x1536xf32> to vector<1x1536xf32>
    %43 = vector.broadcast %42 : vector<1x1536xf32> to vector<8x1536xf32>
    %44 = arith.mulf %41, %43 : vector<8x1536xf32>
    %c1535_i32 = arith.constant 1535 : i32
    %45 = tpu.dynamic_rotate %1 by %c1535_i32 dim 1 : vector<8x1536xf32>, i32 -> vector<8x1536xf32>
    %46 = vector.extract_strided_slice %2 {offsets = [5, 0], sizes = [1, 1536], strides = [1, 1]} : vector<9x1536xf32> to vector<1x1536xf32>
    %47 = vector.broadcast %46 : vector<1x1536xf32> to vector<8x1536xf32>
    %48 = arith.mulf %45, %47 : vector<8x1536xf32>
    %c1521_i32 = arith.constant 1521 : i32
    %49 = tpu.dynamic_rotate %1 by %c1521_i32 dim 1 : vector<8x1536xf32>, i32 -> vector<8x1536xf32>
    %50 = vector.extract_strided_slice %2 {offsets = [6, 0], sizes = [1, 1536], strides = [1, 1]} : vector<9x1536xf32> to vector<1x1536xf32>
    %51 = vector.broadcast %50 : vector<1x1536xf32> to vector<8x1536xf32>
    %52 = arith.mulf %49, %51 : vector<8x1536xf32>
    %c1520_i32 = arith.constant 1520 : i32
    %53 = tpu.dynamic_rotate %1 by %c1520_i32 dim 1 : vector<8x1536xf32>, i32 -> vector<8x1536xf32>
    %54 = vector.extract_strided_slice %2 {offsets = [7, 0], sizes = [1, 1536], strides = [1, 1]} : vector<9x1536xf32> to vector<1x1536xf32>
    %55 = vector.broadcast %54 : vector<1x1536xf32> to vector<8x1536xf32>
    %56 = arith.mulf %53, %55 : vector<8x1536xf32>
    %c1519_i32 = arith.constant 1519 : i32
    %57 = tpu.dynamic_rotate %1 by %c1519_i32 dim 1 : vector<8x1536xf32>, i32 -> vector<8x1536xf32>
    %58 = vector.extract_strided_slice %2 {offsets = [8, 0], sizes = [1, 1536], strides = [1, 1]} : vector<9x1536xf32> to vector<1x1536xf32>
    %59 = vector.broadcast %58 : vector<1x1536xf32> to vector<8x1536xf32>
    %60 = arith.mulf %57, %59 : vector<8x1536xf32>
    %61 = tpu.concatenate %32, %36, %40, %44, %1, %48, %52, %56, %60 in 0 : vector<8x1536xf32>, vector<8x1536xf32>, vector<8x1536xf32>, vector<8x1536xf32>, vector<8x1536xf32>, vector<8x1536xf32>, vector<8x1536xf32>, vector<8x1536xf32>, vector<8x1536xf32> -> vector<72x1536xf32>
    %62 = arith.truncf %61 : vector<72x1536xf32> to vector<72x1536xbf16>
    %cst_24 = arith.constant dense<0.000000e+00> : vector<8x1536xf32>
    %63 = tpu.matmul %28, %62, %cst_24 {dimension_numbers = #tpu.dot_dimension_numbers<[1], [0], [0], [1], [0, 0, 1, 1], [], []>} : vector<8x72xbf16>, vector<72x1536xbf16>, vector<8x1536xf32> -> vector<8x1536xf32>
    %64 = arith.addf %63, %23 : vector<8x1536xf32>
    %65 = arith.negf %64 : vector<8x1536xf32>
    %66 = math.exp %65 : vector<8x1536xf32>
    %cst_25 = arith.constant 1.000000e+00 : f32
    %67 = vector.broadcast %cst_25 : f32 to vector<8x1536xf32>
    %68 = arith.addf %67, %66 : vector<8x1536xf32>
    %69 = arith.divf %67, %68 : vector<8x1536xf32>
    %70 = arith.mulf %64, %69 : vector<8x1536xf32>
    %71 = arith.truncf %70 : vector<8x1536xf32> to vector<8x1536xbf16>
    %c0_26 = arith.constant 0 : index
    %c0_27 = arith.constant 0 : index
    %72 = vector.load %arg15[%c0_26, %c0_27] : memref<1536x384xbf16, #tpu.memory_space<vmem>>, vector<1536x384xbf16>
    %cst_28 = arith.constant dense<0.000000e+00> : vector<8x384xf32>
    %73 = tpu.matmul %71, %72, %cst_28 {dimension_numbers = #tpu.dot_dimension_numbers<[1], [0], [0], [1], [0, 0, 1, 1], [], []>} : vector<8x1536xbf16>, vector<1536x384xbf16>, vector<8x384xf32> -> vector<8x384xf32>
    %c0_29 = arith.constant 0 : index
    %c0_30 = arith.constant 0 : index
    %74 = vector.load %arg7[%c0_29, %c0_30] : memref<16x72xbf16, #tpu.memory_space<vmem>>, vector<16x72xbf16>
    %c9_i32 = arith.constant 9 : i32
    %75 = tpu.dynamic_rotate %73 by %c9_i32 dim 1 : vector<8x384xf32>, i32 -> vector<8x384xf32>
    %76 = vector.extract_strided_slice %3 {offsets = [0, 0], sizes = [1, 384], strides = [1, 1]} : vector<9x384xf32> to vector<1x384xf32>
    %77 = vector.broadcast %76 : vector<1x384xf32> to vector<8x384xf32>
    %78 = arith.mulf %75, %77 : vector<8x384xf32>
    %c8_i32 = arith.constant 8 : i32
    %79 = tpu.dynamic_rotate %73 by %c8_i32 dim 1 : vector<8x384xf32>, i32 -> vector<8x384xf32>
    %80 = vector.extract_strided_slice %3 {offsets = [1, 0], sizes = [1, 384], strides = [1, 1]} : vector<9x384xf32> to vector<1x384xf32>
    %81 = vector.broadcast %80 : vector<1x384xf32> to vector<8x384xf32>
    %82 = arith.mulf %79, %81 : vector<8x384xf32>
    %c7_i32 = arith.constant 7 : i32
    %83 = tpu.dynamic_rotate %73 by %c7_i32 dim 1 : vector<8x384xf32>, i32 -> vector<8x384xf32>
    %84 = vector.extract_strided_slice %3 {offsets = [2, 0], sizes = [1, 384], strides = [1, 1]} : vector<9x384xf32> to vector<1x384xf32>
    %85 = vector.broadcast %84 : vector<1x384xf32> to vector<8x384xf32>
    %86 = arith.mulf %83, %85 : vector<8x384xf32>
    %c1_i32_31 = arith.constant 1 : i32
    %87 = tpu.dynamic_rotate %73 by %c1_i32_31 dim 1 : vector<8x384xf32>, i32 -> vector<8x384xf32>
    %88 = vector.extract_strided_slice %3 {offsets = [3, 0], sizes = [1, 384], strides = [1, 1]} : vector<9x384xf32> to vector<1x384xf32>
    %89 = vector.broadcast %88 : vector<1x384xf32> to vector<8x384xf32>
    %90 = arith.mulf %87, %89 : vector<8x384xf32>
    %c383_i32 = arith.constant 383 : i32
    %91 = tpu.dynamic_rotate %73 by %c383_i32 dim 1 : vector<8x384xf32>, i32 -> vector<8x384xf32>
    %92 = vector.extract_strided_slice %3 {offsets = [5, 0], sizes = [1, 384], strides = [1, 1]} : vector<9x384xf32> to vector<1x384xf32>
    %93 = vector.broadcast %92 : vector<1x384xf32> to vector<8x384xf32>
    %94 = arith.mulf %91, %93 : vector<8x384xf32>
    %c377_i32 = arith.constant 377 : i32
    %95 = tpu.dynamic_rotate %73 by %c377_i32 dim 1 : vector<8x384xf32>, i32 -> vector<8x384xf32>
    %96 = vector.extract_strided_slice %3 {offsets = [6, 0], sizes = [1, 384], strides = [1, 1]} : vector<9x384xf32> to vector<1x384xf32>
    %97 = vector.broadcast %96 : vector<1x384xf32> to vector<8x384xf32>
    %98 = arith.mulf %95, %97 : vector<8x384xf32>
    %c376_i32 = arith.constant 376 : i32
    %99 = tpu.dynamic_rotate %73 by %c376_i32 dim 1 : vector<8x384xf32>, i32 -> vector<8x384xf32>
    %100 = vector.extract_strided_slice %3 {offsets = [7, 0], sizes = [1, 384], strides = [1, 1]} : vector<9x384xf32> to vector<1x384xf32>
    %101 = vector.broadcast %100 : vector<1x384xf32> to vector<8x384xf32>
    %102 = arith.mulf %99, %101 : vector<8x384xf32>
    %c375_i32 = arith.constant 375 : i32
    %103 = tpu.dynamic_rotate %73 by %c375_i32 dim 1 : vector<8x384xf32>, i32 -> vector<8x384xf32>
    %104 = vector.extract_strided_slice %3 {offsets = [8, 0], sizes = [1, 384], strides = [1, 1]} : vector<9x384xf32> to vector<1x384xf32>
    %105 = vector.broadcast %104 : vector<1x384xf32> to vector<8x384xf32>
    %106 = arith.mulf %103, %105 : vector<8x384xf32>
    %107 = tpu.concatenate %78, %82, %86, %90, %73, %94, %98, %102, %106 in 0 : vector<8x384xf32>, vector<8x384xf32>, vector<8x384xf32>, vector<8x384xf32>, vector<8x384xf32>, vector<8x384xf32>, vector<8x384xf32>, vector<8x384xf32>, vector<8x384xf32> -> vector<72x384xf32>
    %108 = arith.truncf %107 : vector<72x384xf32> to vector<72x384xbf16>
    %cst_32 = arith.constant dense<0.000000e+00> : vector<16x384xf32>
    %109 = tpu.matmul %74, %108, %cst_32 {dimension_numbers = #tpu.dot_dimension_numbers<[1], [0], [0], [1], [0, 0, 1, 1], [], []>} : vector<16x72xbf16>, vector<72x384xbf16>, vector<16x384xf32> -> vector<16x384xf32>
    %110 = arith.addf %109, %27 : vector<16x384xf32>
    %111 = arith.negf %110 : vector<16x384xf32>
    %112 = math.exp %111 : vector<16x384xf32>
    %cst_33 = arith.constant 1.000000e+00 : f32
    %113 = vector.broadcast %cst_33 : f32 to vector<16x384xf32>
    %114 = arith.addf %113, %112 : vector<16x384xf32>
    %115 = arith.divf %113, %114 : vector<16x384xf32>
    %116 = arith.mulf %110, %115 : vector<16x384xf32>
    %c0_34 = arith.constant 0 : index
    %c0_35 = arith.constant 0 : index
    %117 = vector.load %arg8[%c0_34, %c0_35] : memref<16x144xbf16, #tpu.memory_space<vmem>>, vector<16x144xbf16>
    %c0_36 = arith.constant 0 : index
    %c0_37 = arith.constant 0 : index
    %118 = vector.load %arg9[%c0_36, %c0_37] : memref<16x1xf32, #tpu.memory_space<vmem>>, vector<16x1xf32>
    %c9_i32_38 = arith.constant 9 : i32
    %119 = tpu.dynamic_rotate %116 by %c9_i32_38 dim 1 : vector<16x384xf32>, i32 -> vector<16x384xf32>
    %120 = vector.extract_strided_slice %3 {offsets = [0, 0], sizes = [1, 384], strides = [1, 1]} : vector<9x384xf32> to vector<1x384xf32>
    %121 = vector.broadcast %120 : vector<1x384xf32> to vector<16x384xf32>
    %122 = arith.mulf %119, %121 : vector<16x384xf32>
    %c8_i32_39 = arith.constant 8 : i32
    %123 = tpu.dynamic_rotate %116 by %c8_i32_39 dim 1 : vector<16x384xf32>, i32 -> vector<16x384xf32>
    %124 = vector.extract_strided_slice %3 {offsets = [1, 0], sizes = [1, 384], strides = [1, 1]} : vector<9x384xf32> to vector<1x384xf32>
    %125 = vector.broadcast %124 : vector<1x384xf32> to vector<16x384xf32>
    %126 = arith.mulf %123, %125 : vector<16x384xf32>
    %c7_i32_40 = arith.constant 7 : i32
    %127 = tpu.dynamic_rotate %116 by %c7_i32_40 dim 1 : vector<16x384xf32>, i32 -> vector<16x384xf32>
    %128 = vector.extract_strided_slice %3 {offsets = [2, 0], sizes = [1, 384], strides = [1, 1]} : vector<9x384xf32> to vector<1x384xf32>
    %129 = vector.broadcast %128 : vector<1x384xf32> to vector<16x384xf32>
    %130 = arith.mulf %127, %129 : vector<16x384xf32>
    %c1_i32_41 = arith.constant 1 : i32
    %131 = tpu.dynamic_rotate %116 by %c1_i32_41 dim 1 : vector<16x384xf32>, i32 -> vector<16x384xf32>
    %132 = vector.extract_strided_slice %3 {offsets = [3, 0], sizes = [1, 384], strides = [1, 1]} : vector<9x384xf32> to vector<1x384xf32>
    %133 = vector.broadcast %132 : vector<1x384xf32> to vector<16x384xf32>
    %134 = arith.mulf %131, %133 : vector<16x384xf32>
    %c383_i32_42 = arith.constant 383 : i32
    %135 = tpu.dynamic_rotate %116 by %c383_i32_42 dim 1 : vector<16x384xf32>, i32 -> vector<16x384xf32>
    %136 = vector.extract_strided_slice %3 {offsets = [5, 0], sizes = [1, 384], strides = [1, 1]} : vector<9x384xf32> to vector<1x384xf32>
    %137 = vector.broadcast %136 : vector<1x384xf32> to vector<16x384xf32>
    %138 = arith.mulf %135, %137 : vector<16x384xf32>
    %c377_i32_43 = arith.constant 377 : i32
    %139 = tpu.dynamic_rotate %116 by %c377_i32_43 dim 1 : vector<16x384xf32>, i32 -> vector<16x384xf32>
    %140 = vector.extract_strided_slice %3 {offsets = [6, 0], sizes = [1, 384], strides = [1, 1]} : vector<9x384xf32> to vector<1x384xf32>
    %141 = vector.broadcast %140 : vector<1x384xf32> to vector<16x384xf32>
    %142 = arith.mulf %139, %141 : vector<16x384xf32>
    %c376_i32_44 = arith.constant 376 : i32
    %143 = tpu.dynamic_rotate %116 by %c376_i32_44 dim 1 : vector<16x384xf32>, i32 -> vector<16x384xf32>
    %144 = vector.extract_strided_slice %3 {offsets = [7, 0], sizes = [1, 384], strides = [1, 1]} : vector<9x384xf32> to vector<1x384xf32>
    %145 = vector.broadcast %144 : vector<1x384xf32> to vector<16x384xf32>
    %146 = arith.mulf %143, %145 : vector<16x384xf32>
    %c375_i32_45 = arith.constant 375 : i32
    %147 = tpu.dynamic_rotate %116 by %c375_i32_45 dim 1 : vector<16x384xf32>, i32 -> vector<16x384xf32>
    %148 = vector.extract_strided_slice %3 {offsets = [8, 0], sizes = [1, 384], strides = [1, 1]} : vector<9x384xf32> to vector<1x384xf32>
    %149 = vector.broadcast %148 : vector<1x384xf32> to vector<16x384xf32>
    %150 = arith.mulf %147, %149 : vector<16x384xf32>
    %151 = tpu.concatenate %122, %126, %130, %134, %116, %138, %142, %146, %150 in 0 : vector<16x384xf32>, vector<16x384xf32>, vector<16x384xf32>, vector<16x384xf32>, vector<16x384xf32>, vector<16x384xf32>, vector<16x384xf32>, vector<16x384xf32>, vector<16x384xf32> -> vector<144x384xf32>
    %152 = arith.truncf %151 : vector<144x384xf32> to vector<144x384xbf16>
    %cst_46 = arith.constant dense<0.000000e+00> : vector<16x384xf32>
    %153 = tpu.matmul %117, %152, %cst_46 {dimension_numbers = #tpu.dot_dimension_numbers<[1], [0], [0], [1], [0, 0, 1, 1], [], []>} : vector<16x144xbf16>, vector<144x384xbf16>, vector<16x384xf32> -> vector<16x384xf32>
    %154 = vector.broadcast %118 : vector<16x1xf32> to vector<16x384xf32>
    %155 = arith.addf %153, %154 : vector<16x384xf32>
    %156 = arith.negf %155 : vector<16x384xf32>
    %157 = math.exp %156 : vector<16x384xf32>
    %cst_47 = arith.constant 1.000000e+00 : f32
    %158 = vector.broadcast %cst_47 : f32 to vector<16x384xf32>
    %159 = arith.addf %158, %157 : vector<16x384xf32>
    %160 = arith.divf %158, %159 : vector<16x384xf32>
    %161 = arith.mulf %155, %160 : vector<16x384xf32>
    %162 = arith.truncf %161 : vector<16x384xf32> to vector<16x384xbf16>
    %c0_48 = arith.constant 0 : index
    %c0_49 = arith.constant 0 : index
    %163 = vector.load %arg16[%c0_48, %c0_49] : memref<384x1536xbf16, #tpu.memory_space<vmem>>, vector<384x1536xbf16>
    %cst_50 = arith.constant dense<0.000000e+00> : vector<16x1536xf32>
    %164 = tpu.matmul %162, %163, %cst_50 {dimension_numbers = #tpu.dot_dimension_numbers<[1], [0], [0], [1], [0, 0, 1, 1], [], []>} : vector<16x384xbf16>, vector<384x1536xbf16>, vector<16x1536xf32> -> vector<16x1536xf32>
    %c17_i32_51 = arith.constant 17 : i32
    %165 = tpu.dynamic_rotate %164 by %c17_i32_51 dim 1 : vector<16x1536xf32>, i32 -> vector<16x1536xf32>
    %166 = vector.extract_strided_slice %2 {offsets = [0, 0], sizes = [1, 1536], strides = [1, 1]} : vector<9x1536xf32> to vector<1x1536xf32>
    %167 = vector.broadcast %166 : vector<1x1536xf32> to vector<16x1536xf32>
    %168 = arith.mulf %165, %167 : vector<16x1536xf32>
    %c16_i32_52 = arith.constant 16 : i32
    %169 = tpu.dynamic_rotate %164 by %c16_i32_52 dim 1 : vector<16x1536xf32>, i32 -> vector<16x1536xf32>
    %170 = vector.extract_strided_slice %2 {offsets = [1, 0], sizes = [1, 1536], strides = [1, 1]} : vector<9x1536xf32> to vector<1x1536xf32>
    %171 = vector.broadcast %170 : vector<1x1536xf32> to vector<16x1536xf32>
    %172 = arith.mulf %169, %171 : vector<16x1536xf32>
    %c15_i32_53 = arith.constant 15 : i32
    %173 = tpu.dynamic_rotate %164 by %c15_i32_53 dim 1 : vector<16x1536xf32>, i32 -> vector<16x1536xf32>
    %174 = vector.extract_strided_slice %2 {offsets = [2, 0], sizes = [1, 1536], strides = [1, 1]} : vector<9x1536xf32> to vector<1x1536xf32>
    %175 = vector.broadcast %174 : vector<1x1536xf32> to vector<16x1536xf32>
    %176 = arith.mulf %173, %175 : vector<16x1536xf32>
    %c1_i32_54 = arith.constant 1 : i32
    %177 = tpu.dynamic_rotate %164 by %c1_i32_54 dim 1 : vector<16x1536xf32>, i32 -> vector<16x1536xf32>
    %178 = vector.extract_strided_slice %2 {offsets = [3, 0], sizes = [1, 1536], strides = [1, 1]} : vector<9x1536xf32> to vector<1x1536xf32>
    %179 = vector.broadcast %178 : vector<1x1536xf32> to vector<16x1536xf32>
    %180 = arith.mulf %177, %179 : vector<16x1536xf32>
    %c1535_i32_55 = arith.constant 1535 : i32
    %181 = tpu.dynamic_rotate %164 by %c1535_i32_55 dim 1 : vector<16x1536xf32>, i32 -> vector<16x1536xf32>
    %182 = vector.extract_strided_slice %2 {offsets = [5, 0], sizes = [1, 1536], strides = [1, 1]} : vector<9x1536xf32> to vector<1x1536xf32>
    %183 = vector.broadcast %182 : vector<1x1536xf32> to vector<16x1536xf32>
    %184 = arith.mulf %181, %183 : vector<16x1536xf32>
    %c1521_i32_56 = arith.constant 1521 : i32
    %185 = tpu.dynamic_rotate %164 by %c1521_i32_56 dim 1 : vector<16x1536xf32>, i32 -> vector<16x1536xf32>
    %186 = vector.extract_strided_slice %2 {offsets = [6, 0], sizes = [1, 1536], strides = [1, 1]} : vector<9x1536xf32> to vector<1x1536xf32>
    %187 = vector.broadcast %186 : vector<1x1536xf32> to vector<16x1536xf32>
    %188 = arith.mulf %185, %187 : vector<16x1536xf32>
    %c1520_i32_57 = arith.constant 1520 : i32
    %189 = tpu.dynamic_rotate %164 by %c1520_i32_57 dim 1 : vector<16x1536xf32>, i32 -> vector<16x1536xf32>
    %190 = vector.extract_strided_slice %2 {offsets = [7, 0], sizes = [1, 1536], strides = [1, 1]} : vector<9x1536xf32> to vector<1x1536xf32>
    %191 = vector.broadcast %190 : vector<1x1536xf32> to vector<16x1536xf32>
    %192 = arith.mulf %189, %191 : vector<16x1536xf32>
    %c1519_i32_58 = arith.constant 1519 : i32
    %193 = tpu.dynamic_rotate %164 by %c1519_i32_58 dim 1 : vector<16x1536xf32>, i32 -> vector<16x1536xf32>
    %194 = vector.extract_strided_slice %2 {offsets = [8, 0], sizes = [1, 1536], strides = [1, 1]} : vector<9x1536xf32> to vector<1x1536xf32>
    %195 = vector.broadcast %194 : vector<1x1536xf32> to vector<16x1536xf32>
    %196 = arith.mulf %193, %195 : vector<16x1536xf32>
    %197 = tpu.concatenate %168, %172, %176, %180, %164, %184, %188, %192, %196 in 0 : vector<16x1536xf32>, vector<16x1536xf32>, vector<16x1536xf32>, vector<16x1536xf32>, vector<16x1536xf32>, vector<16x1536xf32>, vector<16x1536xf32>, vector<16x1536xf32>, vector<16x1536xf32> -> vector<144x1536xf32>
    %c17_i32_59 = arith.constant 17 : i32
    %198 = tpu.dynamic_rotate %70 by %c17_i32_59 dim 1 : vector<8x1536xf32>, i32 -> vector<8x1536xf32>
    %199 = vector.extract_strided_slice %2 {offsets = [0, 0], sizes = [1, 1536], strides = [1, 1]} : vector<9x1536xf32> to vector<1x1536xf32>
    %200 = vector.broadcast %199 : vector<1x1536xf32> to vector<8x1536xf32>
    %201 = arith.mulf %198, %200 : vector<8x1536xf32>
    %c16_i32_60 = arith.constant 16 : i32
    %202 = tpu.dynamic_rotate %70 by %c16_i32_60 dim 1 : vector<8x1536xf32>, i32 -> vector<8x1536xf32>
    %203 = vector.extract_strided_slice %2 {offsets = [1, 0], sizes = [1, 1536], strides = [1, 1]} : vector<9x1536xf32> to vector<1x1536xf32>
    %204 = vector.broadcast %203 : vector<1x1536xf32> to vector<8x1536xf32>
    %205 = arith.mulf %202, %204 : vector<8x1536xf32>
    %c15_i32_61 = arith.constant 15 : i32
    %206 = tpu.dynamic_rotate %70 by %c15_i32_61 dim 1 : vector<8x1536xf32>, i32 -> vector<8x1536xf32>
    %207 = vector.extract_strided_slice %2 {offsets = [2, 0], sizes = [1, 1536], strides = [1, 1]} : vector<9x1536xf32> to vector<1x1536xf32>
    %208 = vector.broadcast %207 : vector<1x1536xf32> to vector<8x1536xf32>
    %209 = arith.mulf %206, %208 : vector<8x1536xf32>
    %c1_i32_62 = arith.constant 1 : i32
    %210 = tpu.dynamic_rotate %70 by %c1_i32_62 dim 1 : vector<8x1536xf32>, i32 -> vector<8x1536xf32>
    %211 = vector.extract_strided_slice %2 {offsets = [3, 0], sizes = [1, 1536], strides = [1, 1]} : vector<9x1536xf32> to vector<1x1536xf32>
    %212 = vector.broadcast %211 : vector<1x1536xf32> to vector<8x1536xf32>
    %213 = arith.mulf %210, %212 : vector<8x1536xf32>
    %c1535_i32_63 = arith.constant 1535 : i32
    %214 = tpu.dynamic_rotate %70 by %c1535_i32_63 dim 1 : vector<8x1536xf32>, i32 -> vector<8x1536xf32>
    %215 = vector.extract_strided_slice %2 {offsets = [5, 0], sizes = [1, 1536], strides = [1, 1]} : vector<9x1536xf32> to vector<1x1536xf32>
    %216 = vector.broadcast %215 : vector<1x1536xf32> to vector<8x1536xf32>
    %217 = arith.mulf %214, %216 : vector<8x1536xf32>
    %c1521_i32_64 = arith.constant 1521 : i32
    %218 = tpu.dynamic_rotate %70 by %c1521_i32_64 dim 1 : vector<8x1536xf32>, i32 -> vector<8x1536xf32>
    %219 = vector.extract_strided_slice %2 {offsets = [6, 0], sizes = [1, 1536], strides = [1, 1]} : vector<9x1536xf32> to vector<1x1536xf32>
    %220 = vector.broadcast %219 : vector<1x1536xf32> to vector<8x1536xf32>
    %221 = arith.mulf %218, %220 : vector<8x1536xf32>
    %c1520_i32_65 = arith.constant 1520 : i32
    %222 = tpu.dynamic_rotate %70 by %c1520_i32_65 dim 1 : vector<8x1536xf32>, i32 -> vector<8x1536xf32>
    %223 = vector.extract_strided_slice %2 {offsets = [7, 0], sizes = [1, 1536], strides = [1, 1]} : vector<9x1536xf32> to vector<1x1536xf32>
    %224 = vector.broadcast %223 : vector<1x1536xf32> to vector<8x1536xf32>
    %225 = arith.mulf %222, %224 : vector<8x1536xf32>
    %c1519_i32_66 = arith.constant 1519 : i32
    %226 = tpu.dynamic_rotate %70 by %c1519_i32_66 dim 1 : vector<8x1536xf32>, i32 -> vector<8x1536xf32>
    %227 = vector.extract_strided_slice %2 {offsets = [8, 0], sizes = [1, 1536], strides = [1, 1]} : vector<9x1536xf32> to vector<1x1536xf32>
    %228 = vector.broadcast %227 : vector<1x1536xf32> to vector<8x1536xf32>
    %229 = arith.mulf %226, %228 : vector<8x1536xf32>
    %230 = tpu.concatenate %201, %205, %209, %213, %70, %217, %221, %225, %229 in 0 : vector<8x1536xf32>, vector<8x1536xf32>, vector<8x1536xf32>, vector<8x1536xf32>, vector<8x1536xf32>, vector<8x1536xf32>, vector<8x1536xf32>, vector<8x1536xf32>, vector<8x1536xf32> -> vector<72x1536xf32>
    %c0_67 = arith.constant 0 : index
    %c0_68 = arith.constant 0 : index
    %231 = vector.load %arg10[%c0_67, %c0_68] : memref<8x144xbf16, #tpu.memory_space<vmem>>, vector<8x144xbf16>
    %232 = arith.truncf %197 : vector<144x1536xf32> to vector<144x1536xbf16>
    %cst_69 = arith.constant dense<0.000000e+00> : vector<8x1536xf32>
    %233 = tpu.matmul %231, %232, %cst_69 {dimension_numbers = #tpu.dot_dimension_numbers<[1], [0], [0], [1], [0, 0, 1, 1], [], []>} : vector<8x144xbf16>, vector<144x1536xbf16>, vector<8x1536xf32> -> vector<8x1536xf32>
    %c0_70 = arith.constant 0 : index
    %c0_71 = arith.constant 0 : index
    %234 = vector.load %arg11[%c0_70, %c0_71] : memref<8x72xbf16, #tpu.memory_space<vmem>>, vector<8x72xbf16>
    %235 = arith.truncf %230 : vector<72x1536xf32> to vector<72x1536xbf16>
    %cst_72 = arith.constant dense<0.000000e+00> : vector<8x1536xf32>
    %236 = tpu.matmul %234, %235, %cst_72 {dimension_numbers = #tpu.dot_dimension_numbers<[1], [0], [0], [1], [0, 0, 1, 1], [], []>} : vector<8x72xbf16>, vector<72x1536xbf16>, vector<8x1536xf32> -> vector<8x1536xf32>
    %237 = arith.addf %233, %236 : vector<8x1536xf32>
    %c0_73 = arith.constant 0 : index
    %c0_74 = arith.constant 0 : index
    %238 = vector.load %arg12[%c0_73, %c0_74] : memref<8x1xf32, #tpu.memory_space<vmem>>, vector<8x1xf32>
    %239 = vector.broadcast %238 : vector<8x1xf32> to vector<8x1536xf32>
    %240 = arith.addf %237, %239 : vector<8x1536xf32>
    %241 = arith.negf %240 : vector<8x1536xf32>
    %242 = math.exp %241 : vector<8x1536xf32>
    %cst_75 = arith.constant 1.000000e+00 : f32
    %243 = vector.broadcast %cst_75 : f32 to vector<8x1536xf32>
    %244 = arith.addf %243, %242 : vector<8x1536xf32>
    %245 = arith.divf %243, %244 : vector<8x1536xf32>
    %246 = arith.mulf %240, %245 : vector<8x1536xf32>
    %c0_76 = arith.constant 0 : index
    %c0_77 = arith.constant 0 : index
    %247 = vector.load %arg13[%c0_76, %c0_77] : memref<2x72xbf16, #tpu.memory_space<vmem>>, vector<2x72xbf16>
    %c0_78 = arith.constant 0 : index
    %c0_79 = arith.constant 0 : index
    %248 = vector.load %arg14[%c0_78, %c0_79] : memref<2x1xf32, #tpu.memory_space<vmem>>, vector<2x1xf32>
    %c17_i32_80 = arith.constant 17 : i32
    %249 = tpu.dynamic_rotate %246 by %c17_i32_80 dim 1 : vector<8x1536xf32>, i32 -> vector<8x1536xf32>
    %250 = vector.extract_strided_slice %2 {offsets = [0, 0], sizes = [1, 1536], strides = [1, 1]} : vector<9x1536xf32> to vector<1x1536xf32>
    %251 = vector.broadcast %250 : vector<1x1536xf32> to vector<8x1536xf32>
    %252 = arith.mulf %249, %251 : vector<8x1536xf32>
    %c16_i32_81 = arith.constant 16 : i32
    %253 = tpu.dynamic_rotate %246 by %c16_i32_81 dim 1 : vector<8x1536xf32>, i32 -> vector<8x1536xf32>
    %254 = vector.extract_strided_slice %2 {offsets = [1, 0], sizes = [1, 1536], strides = [1, 1]} : vector<9x1536xf32> to vector<1x1536xf32>
    %255 = vector.broadcast %254 : vector<1x1536xf32> to vector<8x1536xf32>
    %256 = arith.mulf %253, %255 : vector<8x1536xf32>
    %c15_i32_82 = arith.constant 15 : i32
    %257 = tpu.dynamic_rotate %246 by %c15_i32_82 dim 1 : vector<8x1536xf32>, i32 -> vector<8x1536xf32>
    %258 = vector.extract_strided_slice %2 {offsets = [2, 0], sizes = [1, 1536], strides = [1, 1]} : vector<9x1536xf32> to vector<1x1536xf32>
    %259 = vector.broadcast %258 : vector<1x1536xf32> to vector<8x1536xf32>
    %260 = arith.mulf %257, %259 : vector<8x1536xf32>
    %c1_i32_83 = arith.constant 1 : i32
    %261 = tpu.dynamic_rotate %246 by %c1_i32_83 dim 1 : vector<8x1536xf32>, i32 -> vector<8x1536xf32>
    %262 = vector.extract_strided_slice %2 {offsets = [3, 0], sizes = [1, 1536], strides = [1, 1]} : vector<9x1536xf32> to vector<1x1536xf32>
    %263 = vector.broadcast %262 : vector<1x1536xf32> to vector<8x1536xf32>
    %264 = arith.mulf %261, %263 : vector<8x1536xf32>
    %c1535_i32_84 = arith.constant 1535 : i32
    %265 = tpu.dynamic_rotate %246 by %c1535_i32_84 dim 1 : vector<8x1536xf32>, i32 -> vector<8x1536xf32>
    %266 = vector.extract_strided_slice %2 {offsets = [5, 0], sizes = [1, 1536], strides = [1, 1]} : vector<9x1536xf32> to vector<1x1536xf32>
    %267 = vector.broadcast %266 : vector<1x1536xf32> to vector<8x1536xf32>
    %268 = arith.mulf %265, %267 : vector<8x1536xf32>
    %c1521_i32_85 = arith.constant 1521 : i32
    %269 = tpu.dynamic_rotate %246 by %c1521_i32_85 dim 1 : vector<8x1536xf32>, i32 -> vector<8x1536xf32>
    %270 = vector.extract_strided_slice %2 {offsets = [6, 0], sizes = [1, 1536], strides = [1, 1]} : vector<9x1536xf32> to vector<1x1536xf32>
    %271 = vector.broadcast %270 : vector<1x1536xf32> to vector<8x1536xf32>
    %272 = arith.mulf %269, %271 : vector<8x1536xf32>
    %c1520_i32_86 = arith.constant 1520 : i32
    %273 = tpu.dynamic_rotate %246 by %c1520_i32_86 dim 1 : vector<8x1536xf32>, i32 -> vector<8x1536xf32>
    %274 = vector.extract_strided_slice %2 {offsets = [7, 0], sizes = [1, 1536], strides = [1, 1]} : vector<9x1536xf32> to vector<1x1536xf32>
    %275 = vector.broadcast %274 : vector<1x1536xf32> to vector<8x1536xf32>
    %276 = arith.mulf %273, %275 : vector<8x1536xf32>
    %c1519_i32_87 = arith.constant 1519 : i32
    %277 = tpu.dynamic_rotate %246 by %c1519_i32_87 dim 1 : vector<8x1536xf32>, i32 -> vector<8x1536xf32>
    %278 = vector.extract_strided_slice %2 {offsets = [8, 0], sizes = [1, 1536], strides = [1, 1]} : vector<9x1536xf32> to vector<1x1536xf32>
    %279 = vector.broadcast %278 : vector<1x1536xf32> to vector<8x1536xf32>
    %280 = arith.mulf %277, %279 : vector<8x1536xf32>
    %281 = tpu.concatenate %252, %256, %260, %264, %246, %268, %272, %276, %280 in 0 : vector<8x1536xf32>, vector<8x1536xf32>, vector<8x1536xf32>, vector<8x1536xf32>, vector<8x1536xf32>, vector<8x1536xf32>, vector<8x1536xf32>, vector<8x1536xf32>, vector<8x1536xf32> -> vector<72x1536xf32>
    %282 = arith.truncf %281 : vector<72x1536xf32> to vector<72x1536xbf16>
    %cst_88 = arith.constant dense<0.000000e+00> : vector<2x1536xf32>
    %283 = tpu.matmul %247, %282, %cst_88 {dimension_numbers = #tpu.dot_dimension_numbers<[1], [0], [0], [1], [0, 0, 1, 1], [], []>} : vector<2x72xbf16>, vector<72x1536xbf16>, vector<2x1536xf32> -> vector<2x1536xf32>
    %284 = vector.broadcast %248 : vector<2x1xf32> to vector<2x1536xf32>
    %285 = arith.addf %283, %284 : vector<2x1536xf32>
    %c0_89 = arith.constant 0 : index
    %c0_90 = arith.constant 0 : index
    %c0_91 = arith.constant 0 : index
    %286 = vector.load %arg21[%c0_89, %c0_90, %c0_91] : memref<1x2x1536xf32, #tpu.memory_space<vmem>>, vector<1x2x1536xf32>
    %287 = vector.shape_cast %286 : vector<1x2x1536xf32> to vector<2x1536xf32>
    %288 = vector.shape_cast %285 : vector<2x1536xf32> to vector<1x2x1536xf32>
    tpu.vector_store %arg21[%c0_89, %c0_90, %c0_91], %288 {strides = array<i32>} : memref<1x2x1536xf32, #tpu.memory_space<vmem>>, vector<1x2x1536xf32>,
    return
  }
  func.func @transform_0(%arg0: i32) -> (i32, i32, i32) {
    %c0_i32 = arith.constant 0 : i32
    %c0_i32_0 = arith.constant 0 : i32
    %c0_i32_1 = arith.constant 0 : i32
    return %arg0, %c0_i32, %c0_i32_0 : i32, i32, i32
  }
  func.func @transform_1(%arg0: i32) -> (i32, i32, i32) {
    %c0_i32 = arith.constant 0 : i32
    %c0_i32_0 = arith.constant 0 : i32
    %c0_i32_1 = arith.constant 0 : i32
    return %arg0, %c0_i32, %c0_i32_0 : i32, i32, i32
  }
  func.func @transform_2(%arg0: i32) -> (i32, i32) {
    %c0_i32 = arith.constant 0 : i32
    %c0_i32_0 = arith.constant 0 : i32
    %c0_i32_1 = arith.constant 0 : i32
    return %c0_i32, %c0_i32_0 : i32, i32
  }
  func.func @transform_3(%arg0: i32) -> (i32, i32) {
    %c0_i32 = arith.constant 0 : i32
    %c0_i32_0 = arith.constant 0 : i32
    %c0_i32_1 = arith.constant 0 : i32
    return %c0_i32, %c0_i32_0 : i32, i32
  }
  func.func @transform_4(%arg0: i32) -> (i32, i32) {
    %c0_i32 = arith.constant 0 : i32
    %c0_i32_0 = arith.constant 0 : i32
    %c0_i32_1 = arith.constant 0 : i32
    return %c0_i32, %c0_i32_0 : i32, i32
  }
  func.func @transform_5(%arg0: i32) -> (i32, i32) {
    %c0_i32 = arith.constant 0 : i32
    %c0_i32_0 = arith.constant 0 : i32
    %c0_i32_1 = arith.constant 0 : i32
    return %c0_i32, %c0_i32_0 : i32, i32
  }
  func.func @transform_6(%arg0: i32) -> (i32, i32) {
    %c0_i32 = arith.constant 0 : i32
    %c0_i32_0 = arith.constant 0 : i32
    %c0_i32_1 = arith.constant 0 : i32
    return %c0_i32, %c0_i32_0 : i32, i32
  }
  func.func @transform_7(%arg0: i32) -> (i32, i32) {
    %c0_i32 = arith.constant 0 : i32
    %c0_i32_0 = arith.constant 0 : i32
    %c0_i32_1 = arith.constant 0 : i32
    return %c0_i32, %c0_i32_0 : i32, i32
  }
  func.func @transform_8(%arg0: i32) -> (i32, i32) {
    %c0_i32 = arith.constant 0 : i32
    %c0_i32_0 = arith.constant 0 : i32
    %c0_i32_1 = arith.constant 0 : i32
    return %c0_i32, %c0_i32_0 : i32, i32
  }
  func.func @transform_9(%arg0: i32) -> (i32, i32) {
    %c0_i32 = arith.constant 0 : i32
    %c0_i32_0 = arith.constant 0 : i32
    %c0_i32_1 = arith.constant 0 : i32
    return %c0_i32, %c0_i32_0 : i32, i32
  }
  func.func @transform_10(%arg0: i32) -> (i32, i32) {
    %c0_i32 = arith.constant 0 : i32
    %c0_i32_0 = arith.constant 0 : i32
    %c0_i32_1 = arith.constant 0 : i32
    return %c0_i32, %c0_i32_0 : i32, i32
  }
  func.func @transform_11(%arg0: i32) -> (i32, i32) {
    %c0_i32 = arith.constant 0 : i32
    %c0_i32_0 = arith.constant 0 : i32
    %c0_i32_1 = arith.constant 0 : i32
    return %c0_i32, %c0_i32_0 : i32, i32
  }
  func.func @transform_12(%arg0: i32) -> (i32, i32) {
    %c0_i32 = arith.constant 0 : i32
    %c0_i32_0 = arith.constant 0 : i32
    %c0_i32_1 = arith.constant 0 : i32
    return %c0_i32, %c0_i32_0 : i32, i32
  }
  func.func @transform_13(%arg0: i32) -> (i32, i32) {
    %c0_i32 = arith.constant 0 : i32
    %c0_i32_0 = arith.constant 0 : i32
    %c0_i32_1 = arith.constant 0 : i32
    return %c0_i32, %c0_i32_0 : i32, i32
  }
  func.func @transform_14(%arg0: i32) -> (i32, i32) {
    %c0_i32 = arith.constant 0 : i32
    %c0_i32_0 = arith.constant 0 : i32
    %c0_i32_1 = arith.constant 0 : i32
    return %c0_i32, %c0_i32_0 : i32, i32
  }
  func.func @transform_15(%arg0: i32) -> (i32, i32) {
    %c0_i32 = arith.constant 0 : i32
    %c0_i32_0 = arith.constant 0 : i32
    %c0_i32_1 = arith.constant 0 : i32
    return %c0_i32, %c0_i32_0 : i32, i32
  }
  func.func @transform_16(%arg0: i32) -> (i32, i32) {
    %c0_i32 = arith.constant 0 : i32
    %c0_i32_0 = arith.constant 0 : i32
    %c0_i32_1 = arith.constant 0 : i32
    return %c0_i32, %c0_i32_0 : i32, i32
  }
  func.func @transform_17(%arg0: i32) -> (i32, i32) {
    %c0_i32 = arith.constant 0 : i32
    %c0_i32_0 = arith.constant 0 : i32
    %c0_i32_1 = arith.constant 0 : i32
    return %c0_i32, %c0_i32_0 : i32, i32
  }
  func.func @transform_18(%arg0: i32) -> (i32, i32) {
    %c0_i32 = arith.constant 0 : i32
    %c0_i32_0 = arith.constant 0 : i32
    %c0_i32_1 = arith.constant 0 : i32
    return %c0_i32, %c0_i32_0 : i32, i32
  }
  func.func @transform_19(%arg0: i32) -> (i32, i32) {
    %c0_i32 = arith.constant 0 : i32
    %c0_i32_0 = arith.constant 0 : i32
    %c0_i32_1 = arith.constant 0 : i32
    return %c0_i32, %c0_i32_0 : i32, i32
  }
  func.func @transform_20(%arg0: i32) -> (i32, i32, i32) {
    %c0_i32 = arith.constant 0 : i32
    %c0_i32_0 = arith.constant 0 : i32
    %c0_i32_1 = arith.constant 0 : i32
    return %arg0, %c0_i32, %c0_i32_0 : i32, i32, i32
  }
}

</mosaic_0001>

<bundles_post_ra>
// kernel: tile.19
= control target key start
LH: loop header
LB: loop body
LE: loop exit
PB: predicated region body
PF: predicated region fallthrough
CT: control target
= control target key end

     0   :  { %s73_s6 = smov 3  ;;  %vm77_vm0 = vcmask 1045506   ;;  %vm82_vm1 = vcmask 1047558   ;;  %vm49_vm2 = vcmask 1047556   ;;  %s80_s11 = smov 192  ;;  %vm59_vm3 = vcmask 1044481   ;;  %s248_s0 = inlined_call_operand.vmem [shape: f32[9,6,64], index: 0, kind: input, shape index: {}]   ;;  %s249_s1 = inlined_call_operand.vmem [shape: f32[9,384], index: 1, kind: output, shape index: {}]  }
   0x1   :  { %v121_v0 = vld [vmem:[%s248_s0 + $0x45] ss:$-10 sm:%s73_s6]   ;;  %vm63_vm4 = vcmask 1047557   ;;  %s129_s18 = smov 64   ;;  %v116_v8 = vld [vmem:[%s248_s0 + $0x43] sm:$0x1]  }
   0x2   :  { %v122_v1 = vld [vmem:[%s248_s0 - $0xb] ss:$8 sm:$0x3c]   ;;  %v114_v4 = vld [vmem:[%s248_s0 + $0x1] ss:$8 sm:$0xf]  }
   0x3   :  { %v78_v2 = vsel %vm77_vm0, %v122_v1, %v121_v0  ;;  %v123_v3 = vld [vmem:[%s248_s0 - $0xb] ss:$8 sm:%s80_s11]   ;;  %v115_v6 = vld [vmem:[%s248_s0 + $0x1] ss:$8 sm:$0xf0]   ;;  %vm3_vm5 = vcmask 523264  }
   0x4   :  { %v83_v5 = vsel %vm82_vm1, %v123_v3, %v78_v2  ;;  %v50_v7 = vsel %vm49_vm2, %v115_v6, %v114_v4  ;;  %v117_v9 = vld [vmem:[%s248_s0 - $0x5] ss:$8 sm:$0x1e]   ;;  %v126_v10 = vld.sshfl [vmem:[%s248_s0 + $0x35] sm:$0xff pattern:$0xcccccc80]  }
   0x5   :  { %84 = vrot.lane.b32.xlu1 %v83_v5, %s129_s18  ;;  %51 = vrot.lane.b32.xlu0 %v50_v7, %s129_s18  ;;  %v60_v11 = vsel %vm59_vm3, %v117_v9, %v116_v8  ;;  %v118_v12 = vld [vmem:[%s248_s0 - $0x5] ss:$8 sm:$0xe0]   ;;  %v2_v14 = vld [vmem:[%s248_s0] ss:$2 sm:$0x7]  }
   0x6   :  { %v64_v13 = vsel %vm63_vm4, %v118_v12, %v60_v11  ;;  %v98_v15 = vld [vmem:[%s248_s0 + $0x8] ss:$2 sm:$0x7]   ;;  %4 = vst.msk [vmem:[%s249_s1] ss:$8 sm:$0x7] %vm3_vm5, %v2_v14  }
   0x7   :  { %99 = vst.msk [vmem:[%s249_s1 + $0x1] ss:$8 sm:$0x7] %vm3_vm5, %v98_v15   ;;  %v100_v16 = vld [vmem:[%s248_s0 + $0x10] ss:$2 sm:$0x7]  }
   0x8   :  { %v102_v17 = vld [vmem:[%s248_s0 + $0x18] ss:$2 sm:$0x7]   ;;  %101 = vst.msk [vmem:[%s249_s1 + $0x2] ss:$8 sm:$0x7] %vm3_vm5, %v100_v16  }
   0x9   :  { %93 = vrot.lane.b32.xlu1 %v126_v10, %s129_s18  ;;  %103 = vst.msk [vmem:[%s249_s1 + $0x3] ss:$8 sm:$0x7] %vm3_vm5, %v102_v17   ;;  %v104_v18 = vld [vmem:[%s248_s0 + $0x20] ss:$2 sm:$0x7]   ;;  %65 = vrot.lane.b32.xlu0 %v64_v13, %s129_s18 }
   0xa   :  { %v106_v19 = vld [vmem:[%s248_s0 + $0x28] ss:$2 sm:$0x7]   ;;  %105 = vst.msk [vmem:[%s249_s1 + $0x4] ss:$8 sm:$0x7] %vm3_vm5, %v104_v18  }
   0xb   :  { %107 = vst.msk [vmem:[%s249_s1 + $0x5] ss:$8 sm:$0x7] %vm3_vm5, %v106_v19   ;;  %v110_v20 = vld [vmem:[%s248_s0 + $0x38] ss:$2 sm:$0x7]  }
   0xc   :  { %v112_v21 = vld [vmem:[%s248_s0 + $0x40] ss:$2 sm:$0x7]   ;;  %111 = vst.msk [vmem:[%s249_s1 + $0x7] ss:$8 sm:$0x7] %vm3_vm5, %v110_v20  }
   0xd   :  { %113 = vst.msk [vmem:[%s249_s1 + $0x18] ss:$8 sm:$0x7] %vm3_vm5, %v112_v21   ;;  %v108_v22 = vld [vmem:[%s248_s0 + $0x30] ss:$2 sm:$0x7]  }
   0xe   :  { %109 = vst.msk [vmem:[%s249_s1 + $0x6] ss:$8 sm:$0x7] %vm3_vm5, %v108_v22   ;;  %vm53_vm6 = vcmask 1048064  }
  0x77   :  { %v85_v23 = vpop.permute.xlu1 %84   ;;  %v52_v24 = vpop.permute.xlu0 %51  }
  0x78   :  { %124 = vst.msk [vmem:[%s249_s1 + $0x28] ss:$-25 sm:$0x3] %vm53_vm6, %v85_v23   ;;  %125 = vst.msk [vmem:[%s249_s1 + $0xe] sm:$0xfc] %vm53_vm6, %v85_v23  }
  0x79   :  { %54 = vst.msk [vmem:[%s249_s1] sm:$0xff] %vm53_vm6, %v52_v24  }
  0x7b   :  { %v94_v25 = vpop.permute.xlu1 %93   ;;  %v66_v26 = vpop.permute.xlu0 %65  }
  0x7c   :  { %127 = vst.msk [vmem:[%s249_s1 + $0x16] sm:$0x7] %vm53_vm6, %v94_v25   ;;  %119 = vst.msk [vmem:[%s249_s1 + $0x20] ss:$-24 sm:$0x3] %vm53_vm6, %v66_v26  }
  0x7d   :  { %120 = vst.msk [vmem:[%s249_s1 + $0x7] sm:$0xfc] %vm53_vm6, %v66_v26  }

// kernel: unet_residual_model_forward.1
= control target key start
LH: loop header
LB: loop body
LE: loop exit
PB: predicated region body
PF: predicated region fallthrough
CT: control target
= control target key end

     0   :  { %v19971_v0 = vmov 0.0   ;;  %v19973_v1 = vmov 0   ;;  %vm12101_vm0 = vmmov 0   ;;  %vm130_vm1 = vcmask 64512   ;;  %s12105_s25 = smov 1   ;;  %s19969_s27 = smov 113   ;;  %s19942_s3 = inlined_call_operand.vmem [shape: f32[24,1], index: 3, kind: input, shape index: {}, may-alias: {3,4}]   ;;  %s19943_s1 = inlined_call_operand.vmem [shape: f32[1,8,6], index: 1, kind: input, shape index: {}]   ;;  %s19944_s2 = inlined_call_operand.vmem [shape: f32[24,8], index: 2, kind: input, shape index: {}]   ;;  %s19945_s4 = inlined_call_operand.vmem [shape: f32[24,1], index: 4, kind: input, shape index: {}, may-alias: {3,4}]   ;;  %s19946_s0 = inlined_call_operand.vmem [shape: f32[1,8,1536], index: 0, kind: input, shape index: {}]   ;;  %s19947_s16 = inlined_call_operand.vmem [shape: bf16[6,1536], index: 16, kind: input, shape index: {}]   ;;  %s19948_s17 = inlined_call_operand.vmem [shape: bf16[6,384], index: 17, kind: input, shape index: {}]   ;;  %s19949_s18 = inlined_call_operand.vmem [shape: f32[9,1536], index: 18, kind: input, shape index: {}]   ;;  %s19950_s14 = inlined_call_operand.vmem [shape: bf16[1536,384], index: 14, kind: input, shape index: {}]   ;;  %s19951_s5 = inlined_call_operand.vmem [shape: bf16[8,72], index: 5, kind: input, shape index: {}]   ;;  %s19952_s6 = inlined_call_operand.vmem [shape: bf16[16,72], index: 6, kind: input, shape index: {}]   ;;  %s19953_s19 = inlined_call_operand.vmem [shape: f32[9,384], index: 19, kind: input, shape index: {}]   ;;  %s19954_s7 = inlined_call_operand.vmem [shape: bf16[16,144], index: 7, kind: input, shape index: {}]   ;;  %s19955_s8 = inlined_call_operand.vmem [shape: f32[16,1], index: 8, kind: input, shape index: {}]   ;;  %s19956_s15 = inlined_call_operand.vmem [shape: bf16[384,1536], index: 15, kind: input, shape index: {}]   ;;  %s19957_s10 = inlined_call_operand.vmem [shape: bf16[8,72], index: 10, kind: input, shape index: {}]   ;;  %s19958_s9 = inlined_call_operand.vmem [shape: bf16[8,144], index: 9, kind: input, shape index: {}]   ;;  %s19959_s11 = inlined_call_operand.vmem [shape: f32[8,1], index: 11, kind: input, shape index: {}]   ;;  %s19960_s13 = inlined_call_operand.vmem [shape: f32[2,1], index: 13, kind: input, shape index: {}]   ;;  %s19961_s12 = inlined_call_operand.vmem [shape: bf16[2,72], index: 12, kind: input, shape index: {}]   ;;  %s19962_s20 = inlined_call_operand.vmem [shape: f32[1,2,1536], index: 20, kind: output, shape index: {}]  }
   0x1   :  { %20507 = sst [smem:[#allocation205_spill]] %s19942_s3  ;;  %10930 = vmatprep.subr.mxu0 %v19971_v0  ;;  %11056 = vset.pattern.permute.xlu1 %v19973_v1  ;;  %s19967_s28 = smov 112   ;;  %v263_v20 = vld [vmem:[%s19947_s16] sm:$0x77]  ;;  %v265_v21 = vld [vmem:[%s19947_s16 + $0x10] sm:$0x77] }
   0x2   :  { %20508 = sst [smem:[#allocation206_spill]] %s19943_s1  ;;  %s20512_s23 = sld [smem:[#allocation205_spill]]  ;;  %11055 = vset.pattern.permute.xlu0 %v19973_v1  ;;  %10932 = vmatprep.mubr.msk.f32.mxu0 %vm12101_vm0, %v19971_v0  ;;  %v10078_v22 = vcombine.high %v263_v20, %v263_v20  ;;  %v10077_v23 = vcombine.low %v263_v20, %v263_v20  ;;  %v10082_v24 = vcombine.high %v265_v21, %v265_v21  ;;  %vm303_vm2 = vcmask 1042432   ;;  %v12397_v30 = vld [vmem:[%s19947_s16 + $0x8] sm:$0x77] }
   0x3   :  { %20509 = sst [smem:[#allocation207_spill]] %s19944_s2  ;;  %s20513_s26 = sld [smem:[#allocation206_spill]]  ;;  %372 = vmatprep.mubr.bf16.mxu1 %v19973_v1  ;;  %v10081_v25 = vcombine.low %v265_v21, %v265_v21  ;;  %v12402_v31 = vld [vmem:[%s19947_s16 + $0x20] sm:$0x77]  ;;  %v10080_v32 = vcombine.high %v12397_v30, %v12397_v30  ;;  %vm299_vm5 = vcmask 48128   ;;  %vm1536_vm12 = vcmask 1043456  }
   0x4   :  { %20510 = sst [smem:[#allocation208_spill]] %s19945_s4  ;;  %s12104_s2 = smov 15   ;;  %v305_v26 = vsel %vm303_vm2, %v10077_v23, 0  ;;  %10089 = vmatprep.subr.msk.bf16.mxu1 %vm303_vm2, %v10078_v22  ;;  %v10086_v33 = vcombine.high %v12402_v31, %v12402_v31  ;;  %vm20181_vm13 = vcmask 588800  }
   0x5   :  { %20511 = sst [smem:[#allocation209_spill]] %s19946_s0  ;;  %s20514_s0 = sld [smem:[#allocation207_spill]]  ;;  %v317_v27 = vsel %vm303_vm2, %v10081_v25, 0  ;;  %341 = vmatpush1.bf16.msra.mxu1 %v305_v26 }
   0x6   :  { %s20515_s1 = sld [smem:[#allocation208_spill]]  ;;  %s20516_s30 = sld [smem:[#allocation209_spill]]  ;;  %10091 = vmatprep.subr.msk.bf16.mxu1 %vm303_vm2, %v10080_v32 }
   0x7   :  { %s20121_s29 = smov 111   ;;  %s20523_s22 = smov 113  }
   0x8   :  { %v113_v2 = vld [vmem:[%s20512_s23 + $0x8] sm:$0xff]  ;;  %v112_v3 = vld [vmem:[%s20512_s23] sm:$0xff]  ;;  %v114_v6 = vld [vmem:[%s20512_s23 + $0x10] sm:$0xff]  ;;  %s20526_s24 = smov 112   ;;  %s12112_s23 = smov 7  }
   0x9   :  { %v111_v4 = vld [vmem:[%s20513_s26] sm:$0xff]  ;;  %122 = vperm.xlu1 %11056, %v113_v2   ;;  %117 = vperm.xlu0 %11055, %v112_v3   ;;  %s12106_s26 = smov 127   ;;  %s12113_s4 = smov 121  }
   0xa   :  { %10931 = vmatpush3.msra.mxu0 %v111_v4 }
   0xb   :  { %v108_v5 = vld [vmem:[%s20514_s0] sm:$0xff]  ;;  %v109_v8 = vld [vmem:[%s20514_s0 + $0x8] sm:$0xff]  ;;  %v110_v11 = vld [vmem:[%s20514_s0 + $0x10] sm:$0xff]  ;;  %s12103_s0 = smov 16   ;;  %10093 = vmatprep.subr.msk.bf16.mxu0 %vm303_vm2, %v10082_v24 }
   0xc   :  { %v241_v7 = vld [vmem:[%s20515_s1] sm:$0xff]  ;;  %10933 = vmatmul.mubr.msk.f32.vlgmr.msra.gmra.mrb[0].mxu0 %vm130_vm1, %v108_v5  ;;  %v243_v9 = vld [vmem:[%s20515_s1 + $0x10] sm:$0xff]  ;;  %v242_v10 = vld [vmem:[%s20515_s1 + $0x8] sm:$0xff]  ;;  %s12102_s1 = smov 17  }
   0xd   :  { %10935 = vmatprep.mubr.msk.f32.mxu0 %vm12101_vm0, %v19971_v0  ;;  %127 = vperm.xlu1 %11056, %v114_v6   ;;  %v67_v12 = vld [vmem:[%s20516_s30 + $0x8] sm:$0xff]  ;;  %v66_v13 = vld [vmem:[%s20516_s30] sm:$0xff]  ;;  %v12279_v14 = vld [vmem:[%s20516_s30 + $0x58] sm:$0xff] }
   0xe   :  { %246 = vperm.xlu0 %11055, %v241_v7   ;;  %v68_v15 = vld [vmem:[%s20516_s30 + $0x10] sm:$0xff]  ;;  %v69_v16 = vld [vmem:[%s20516_s30 + $0x18] sm:$0xff]  ;;  %v12322_v17 = vld [vmem:[%s20516_s30 + $0x20] sm:$0xff]  ;;  %423 = vmatpush1.bf16.msra.mxu0 %v317_v27 }
   0xf   :  { %20517 = vst [vmem:[#allocation2_spill] sm:$0xff] %v12322_v17  ;;  %v12339_v18 = vld [vmem:[%s20516_s30 + $0x28] sm:$0xff]  ;;  %v12360_v19 = vld [vmem:[%s20516_s30 + $0x30] sm:$0xff]  ;;  %v74_v29 = vld [vmem:[%s20516_s30 + $0x40] sm:$0xff]  ;;  %10097 = vmatprep.subr.msk.bf16.mxu0 %vm303_vm2, %v10086_v33 }
  0x10   :  { %10936 = vmatmul.mubr.msk.f32.gmra.mrb[2].mxu0 %vm130_vm1, %v109_v8  ;;  %20518 = vst [vmem:[#allocation3_spill] sm:$0xff] %v12339_v18  ;;  %v75_v28 = vld [vmem:[%s20516_s30 + $0x48] sm:$0xff]  ;;  %v73_v36 = vld [vmem:[%s20516_s30 + $0x38] sm:$0xff]  ;;  %v76_v45 = vld [vmem:[%s20516_s30 + $0x50] sm:$0xff] }
  0x11   :  { %10938 = vmatprep.mubr.msk.f32.mxu0 %vm12101_vm0, %v19971_v0  ;;  %256 = vperm.xlu1 %11056, %v243_v9  }
  0x12   :  { %251 = vperm.xlu0 %11055, %v242_v10  }
  0x14   :  { %10939 = vmatmul.mubr.msk.f32.gmra.mrb[4].mxu0 %vm130_vm1, %v110_v11 }
  0x15   :  { %454 = vmatprep.mubr.bf16.mxu0 %v19973_v1  ;;  %696 = vrot.lane.b32.xlu1 %v67_v12, %s12102_s1 }
  0x16   :  { %694 = vrot.lane.b32.xlu0 %v66_v13, %s12102_s1 }
  0x19   :  { %795 = vrot.lane.b32.xlu1 %v67_v12, %s12103_s0 }
  0x1a   :  { %793 = vrot.lane.b32.xlu0 %v66_v13, %s12103_s0 }
  0x1d   :  { %815 = vrot.lane.b32.xlu1 %v12279_v14, %s12103_s0 }
  0x1e   :  { %716 = vrot.lane.b32.xlu0 %v12279_v14, %s12102_s1 }
  0x21   :  { %892 = vrot.lane.b32.xlu1 %v67_v12, %s12104_s2 }
  0x22   :  { %890 = vrot.lane.b32.xlu0 %v66_v13, %s12104_s2 }
  0x25   :  { %989 = vrot.lane.b32.xlu1 %v67_v12, %s12105_s25 }
  0x26   :  { %987 = vrot.lane.b32.xlu0 %v66_v13, %s12105_s25 }
  0x29   :  { %1009 = vrot.lane.b32.xlu1 %v12279_v14, %s12105_s25 }
  0x2a   :  { %912 = vrot.lane.b32.xlu0 %v12279_v14, %s12104_s2 }
  0x2d   :  { %1088 = vrot.lane.b32.xlu1 %v68_v15, %s12106_s26 }
  0x2e   :  { %1086 = vrot.lane.b32.xlu0 %v67_v12, %s12106_s26 }
  0x31   :  { %1183 = vrot.lane.b32.xlu1 %v67_v12, %s19969_s27 }
  0x32   :  { %1084 = vrot.lane.b32.xlu0 %v66_v13, %s12106_s26 }
  0x35   :  { %1280 = vrot.lane.b32.xlu1 %v67_v12, %s19967_s28 }
  0x36   :  { %1185 = vrot.lane.b32.xlu0 %v68_v15, %s19969_s27 }
  0x39   :  { %1181 = vrot.lane.b32.xlu1 %v66_v13, %s19969_s27 }
  0x3a   :  { %1282 = vrot.lane.b32.xlu0 %v68_v15, %s19967_s28 }
  0x3d   :  { %1375 = vrot.lane.b32.xlu1 %v66_v13, %s20121_s29 }
  0x3e   :  { %1278 = vrot.lane.b32.xlu0 %v66_v13, %s19967_s28 }
  0x41   :  { %1379 = vrot.lane.b32.xlu1 %v68_v15, %s20121_s29 }
  0x42   :  { %1377 = vrot.lane.b32.xlu0 %v67_v12, %s20121_s29 }
  0x45   :  { %700 = vrot.lane.b32.xlu1 %v69_v16, %s12102_s1 }
  0x46   :  { %698 = vrot.lane.b32.xlu0 %v68_v15, %s12102_s1 }
  0x49   :  { %799 = vrot.lane.b32.xlu1 %v69_v16, %s12103_s0 }
  0x4a   :  { %797 = vrot.lane.b32.xlu0 %v68_v15, %s12103_s0 }
  0x4d   :  { %896 = vrot.lane.b32.xlu1 %v69_v16, %s12104_s2 }
  0x4e   :  { %894 = vrot.lane.b32.xlu0 %v68_v15, %s12104_s2 }
  0x51   :  { %993 = vrot.lane.b32.xlu1 %v69_v16, %s12105_s25 }
  0x52   :  { %991 = vrot.lane.b32.xlu0 %v68_v15, %s12105_s25 }
  0x55   :  { %1092 = vrot.lane.b32.xlu1 %v12322_v17, %s12106_s26 }
  0x56   :  { %1090 = vrot.lane.b32.xlu0 %v69_v16, %s12106_s26 }
  0x59   :  { %1189 = vrot.lane.b32.xlu1 %v12322_v17, %s19969_s27 }
  0x5a   :  { %1187 = vrot.lane.b32.xlu0 %v69_v16, %s19969_s27 }
  0x5d   :  { %1286 = vrot.lane.b32.xlu1 %v12322_v17, %s19967_s28 }
  0x5e   :  { %1284 = vrot.lane.b32.xlu0 %v69_v16, %s19967_s28 }
  0x61   :  { %1383 = vrot.lane.b32.xlu1 %v12322_v17, %s20121_s29 }
  0x62   :  { %1381 = vrot.lane.b32.xlu0 %v69_v16, %s20121_s29 }
  0x65   :  { %704 = vrot.lane.b32.xlu1 %v12339_v18, %s12102_s1 }
  0x66   :  { %702 = vrot.lane.b32.xlu0 %v12322_v17, %s12102_s1 }
  0x69   :  { %803 = vrot.lane.b32.xlu1 %v12339_v18, %s12103_s0 }
  0x6a   :  { %801 = vrot.lane.b32.xlu0 %v12322_v17, %s12103_s0 }
  0x6d   :  { %900 = vrot.lane.b32.xlu1 %v12339_v18, %s12104_s2 }
  0x6e   :  { %898 = vrot.lane.b32.xlu0 %v12322_v17, %s12104_s2 }
  0x71   :  { %997 = vrot.lane.b32.xlu1 %v12339_v18, %s12105_s25 }
  0x72   :  { %995 = vrot.lane.b32.xlu0 %v12322_v17, %s12105_s25  ;;  %v12682_v17 = vld [vmem:[%s19947_s16 + $0x18] sm:$0x77] }
  0x75   :  { %1096 = vrot.lane.b32.xlu1 %v12360_v19, %s12106_s26 }
  0x76   :  { %1094 = vrot.lane.b32.xlu0 %v12339_v18, %s12106_s26 }
  0x79   :  { %1193 = vrot.lane.b32.xlu1 %v12360_v19, %s19969_s27 }
  0x7a   :  { %1191 = vrot.lane.b32.xlu0 %v12339_v18, %s19969_s27  ;;  %s12114_s27 = smov 120  }
  0x7d   :  { %1290 = vrot.lane.b32.xlu1 %v12360_v19, %s19967_s28 }
  0x7e   :  { %1288 = vrot.lane.b32.xlu0 %v12339_v18, %s19967_s28  ;;  %s12115_s28 = smov 119  }
  0x81   :  { %1387 = vrot.lane.b32.xlu1 %v12360_v19, %s20121_s29 }
  0x82   :  { %1385 = vrot.lane.b32.xlu0 %v12339_v18, %s20121_s29  ;;  %v12816_v18 = vld [vmem:[%s19949_s18 + $0x48] sm:$0xff] }
  0x85   :  { %712 = vrot.lane.b32.xlu1 %v75_v28, %s12102_s1 }
  0x86   :  { %710 = vrot.lane.b32.xlu0 %v74_v29, %s12102_s1 }
  0x88   :  { %v12412_v34 = vpop.permute.xlu1 %122  ;;  %v12414_v35 = vpop.permute.xlu0 %117 }
  0x89   :  { %811 = vrot.lane.b32.xlu1 %v75_v28, %s12103_s0 }
  0x8a   :  { %809 = vrot.lane.b32.xlu0 %v74_v29, %s12103_s0 }
  0x8c   :  { %v12421_v37 = vpop.permute.xlu1 %127 }
  0x8d   :  { %v12423_v38 = vpop.permute.xlu0 %246  ;;  %807 = vrot.lane.b32.xlu1 %v73_v36, %s12103_s0 }
  0x8e   :  { %708 = vrot.lane.b32.xlu0 %v73_v36, %s12102_s1 }
  0x90   :  { %v12427_v39 = vpop.permute.xlu1 %256 }
  0x91   :  { %v12429_v40 = vpop.permute.xlu0 %251  ;;  %908 = vrot.lane.b32.xlu1 %v75_v28, %s12104_s2 }
  0x92   :  { %906 = vrot.lane.b32.xlu0 %v74_v29, %s12104_s2 }
  0x94   :  { %v12433_v41 = vpop.permute.xlu1 %696 }
  0x95   :  { %v12435_v42 = vpop.permute.xlu0 %694  ;;  %1005 = vrot.lane.b32.xlu1 %v75_v28, %s12105_s25 }
  0x96   :  { %1003 = vrot.lane.b32.xlu0 %v74_v29, %s12105_s25 }
  0x98   :  { %v12439_v43 = vpop.permute.xlu1 %795 }
  0x99   :  { %v12441_v44 = vpop.permute.xlu0 %793  ;;  %1001 = vrot.lane.b32.xlu1 %v73_v36, %s12105_s25 }
  0x9a   :  { %904 = vrot.lane.b32.xlu0 %v73_v36, %s12104_s2 }
  0x9c   :  { %v12448_v46 = vpop.permute.xlu1 %815 }
  0x9d   :  { %20519 = vst [vmem:[#allocation4_spill] sm:$0xff] %v12448_v46  ;;  %v12450_v47 = vpop.permute.xlu0 %716  ;;  %1104 = vrot.lane.b32.xlu1 %v76_v45, %s12106_s26 }
  0x9e   :  { %20520 = vst [vmem:[#allocation5_spill] sm:$0xff] %v12450_v47  ;;  %1102 = vrot.lane.b32.xlu0 %v75_v28, %s12106_s26 }
  0xa0   :  { %v12454_v48 = vpop.permute.xlu1 %892 }
  0xa1   :  { %20521 = vst [vmem:[#allocation6_spill] sm:$0xff] %v12454_v48  ;;  %v12456_v49 = vpop.permute.xlu0 %890  ;;  %1199 = vrot.lane.b32.xlu1 %v75_v28, %s20523_s22 }
  0xa2   :  { %20522 = vst [vmem:[#allocation7_spill] sm:$0xff] %v12456_v49  ;;  %1100 = vrot.lane.b32.xlu0 %v74_v29, %s12106_s26 }
  0xa4   :  { %v12460_v50 = vpop.permute.xlu1 %989 }
  0xa5   :  { %20524 = vst [vmem:[#allocation8_spill] sm:$0xff] %v12460_v50  ;;  %v12462_v51 = vpop.permute.xlu0 %987  ;;  %1296 = vrot.lane.b32.xlu1 %v75_v28, %s20526_s24 }
  0xa6   :  { %20525 = vst [vmem:[#allocation9_spill] sm:$0xff] %v12462_v51  ;;  %1201 = vrot.lane.b32.xlu0 %v76_v45, %s20523_s22 }
  0xa8   :  { %v12466_v52 = vpop.permute.xlu1 %1009 }
  0xa9   :  { %20527 = vst [vmem:[#allocation10_spill] sm:$0xff] %v12466_v52  ;;  %v12468_v53 = vpop.permute.xlu0 %912  ;;  %706 = vrot.lane.b32.xlu1 %v12360_v19, %s12102_s1 }
  0xaa   :  { %20528 = vst [vmem:[#allocation11_spill] sm:$0xff] %v12468_v53  ;;  %1298 = vrot.lane.b32.xlu0 %v76_v45, %s20526_s24 }
  0xac   :  { %v12473_v54 = vpop.permute.xlu1 %1088 }
  0xad   :  { %20529 = vst [vmem:[#allocation12_spill] sm:$0xff] %v12473_v54  ;;  %v12475_v55 = vpop.permute.xlu0 %1086  ;;  %1197 = vrot.lane.b32.xlu1 %v74_v29, %s20523_s22 }
  0xae   :  { %20530 = vst [vmem:[#allocation13_spill] sm:$0xff] %v12475_v55  ;;  %805 = vrot.lane.b32.xlu0 %v12360_v19, %s12103_s0 }
  0xb0   :  { %v12480_v56 = vpop.permute.xlu1 %1183 }
  0xb1   :  { %20531 = vst [vmem:[#allocation14_spill] sm:$0xff] %v12480_v56  ;;  %v12482_v57 = vpop.permute.xlu0 %1084  ;;  %1391 = vrot.lane.b32.xlu1 %v74_v29, %s20121_s29 }
  0xb2   :  { %20532 = vst [vmem:[#allocation15_spill] sm:$0xff] %v12482_v57  ;;  %1294 = vrot.lane.b32.xlu0 %v74_v29, %s20526_s24 }
  0xb4   :  { %v12486_v58 = vpop.permute.xlu1 %1280 }
  0xb5   :  { %20533 = vst [vmem:[#allocation16_spill] sm:$0xff] %v12486_v58  ;;  %v12488_v59 = vpop.permute.xlu0 %1185  ;;  %1395 = vrot.lane.b32.xlu1 %v76_v45, %s20121_s29 }
  0xb6   :  { %20534 = vst [vmem:[#allocation17_spill] sm:$0xff] %v12488_v59  ;;  %1393 = vrot.lane.b32.xlu0 %v75_v28, %s20121_s29 }
  0xb8   :  { %v12492_v60 = vpop.permute.xlu1 %1181 }
  0xb9   :  { %20535 = vst [vmem:[#allocation18_spill] sm:$0xff] %v12492_v60  ;;  %v12494_v61 = vpop.permute.xlu0 %1282  ;;  %999 = vrot.lane.b32.xlu1 %v12360_v19, %s12105_s25 }
  0xba   :  { %20536 = vst [vmem:[#allocation19_spill] sm:$0xff] %v12494_v61  ;;  %902 = vrot.lane.b32.xlu0 %v12360_v19, %s12104_s2 }
  0xbc   :  { %v12500_v62 = vpop.permute.xlu1 %1375 }
  0xbd   :  { %20537 = vst [vmem:[#allocation20_spill] sm:$0xff] %v12500_v62  ;;  %v12502_v63 = vpop.permute.xlu0 %1278  ;;  %1195 = vrot.lane.b32.xlu1 %v73_v36, %s20523_s22 }
  0xbe   :  { %20538 = vst [vmem:[#allocation21_spill] sm:$0xff] %v12502_v63  ;;  %1098 = vrot.lane.b32.xlu0 %v73_v36, %s12106_s26 }
  0xc0   :  { %v12506_v2 = vpop.permute.xlu1 %1379 }
  0xc1   :  { %20539 = vst [vmem:[#allocation22_spill] sm:$0xff] %v12506_v2  ;;  %v12508_v3 = vpop.permute.xlu0 %1377  ;;  %1389 = vrot.lane.b32.xlu1 %v73_v36, %s20121_s29 }
  0xc2   :  { %20540 = vst [vmem:[#allocation23_spill] sm:$0xff] %v12508_v3  ;;  %1292 = vrot.lane.b32.xlu0 %v73_v36, %s20526_s24 }
  0xc4   :  { %v12512_v4 = vpop.permute.xlu1 %700 }
  0xc5   :  { %20541 = vst [vmem:[#allocation24_spill] sm:$0xff] %v12512_v4  ;;  %v12514_v5 = vpop.permute.xlu0 %698  ;;  %813 = vrot.lane.b32.xlu1 %v76_v45, %s12103_s0 }
  0xc6   :  { %20542 = vst [vmem:[#allocation25_spill] sm:$0xff] %v12514_v5  ;;  %714 = vrot.lane.b32.xlu0 %v76_v45, %s12102_s1 }
  0xc8   :  { %v12518_v6 = vpop.permute.xlu1 %799 }
  0xc9   :  { %20543 = vst [vmem:[#allocation26_spill] sm:$0xff] %v12518_v6  ;;  %v12520_v7 = vpop.permute.xlu0 %797  ;;  %1007 = vrot.lane.b32.xlu1 %v76_v45, %s12105_s25 }
  0xca   :  { %20544 = vst [vmem:[#allocation27_spill] sm:$0xff] %v12520_v7  ;;  %910 = vrot.lane.b32.xlu0 %v76_v45, %s12104_s2 }
  0xcc   :  { %v12524_v8 = vpop.permute.xlu1 %896 }
  0xcd   :  { %v12526_v9 = vpop.permute.xlu0 %894  ;;  %1203 = vrot.lane.b32.xlu1 %v12279_v14, %s20523_s22 }
  0xce   :  { %20545 = vst [vmem:[#allocation28_spill] sm:$0xff] %v12526_v9  ;;  %1106 = vrot.lane.b32.xlu0 %v12279_v14, %s12106_s26 }
  0xd0   :  { %v12532_v10 = vpop.permute.xlu1 %993 }
  0xd1   :  { %v12534_v11 = vpop.permute.xlu0 %991  ;;  %1397 = vrot.lane.b32.xlu1 %v12279_v14, %s20121_s29 }
  0xd2   :  { %20546 = vst [vmem:[#allocation29_spill] sm:$0xff] %v12534_v11  ;;  %1300 = vrot.lane.b32.xlu0 %v12279_v14, %s20526_s24 }
  0xd4   :  { %v12540_v12 = vpop.permute.xlu1 %1092 }
  0xd5   :  { %20547 = vst [vmem:[#allocation30_spill] sm:$0xff] %v12540_v12  ;;  %v12542_v13 = vpop.permute.xlu0 %1090 }
  0xd6   :  { %20548 = vst [vmem:[#allocation31_spill] sm:$0xff] %v12542_v13 }
  0xd8   :  { %v12544_v15 = vpop.permute.xlu1 %1189 }
  0xd9   :  { %20549 = vst [vmem:[#allocation32_spill] sm:$0xff] %v12544_v15  ;;  %v12546_v16 = vpop.permute.xlu0 %1187 }
  0xda   :  { %20550 = vst [vmem:[#allocation33_spill] sm:$0xff] %v12546_v16  ;;  %v79_v16 = vld [vmem:[%s19949_s18 + $0x8] sm:$0xff] }
  0xdc   :  { %v12548_v19 = vpop.permute.xlu1 %1286 }
  0xdd   :  { %20551 = vst [vmem:[#allocation34_spill] sm:$0xff] %v12548_v19  ;;  %v12550_v20 = vpop.permute.xlu0 %1284 }
  0xde   :  { %20552 = vst [vmem:[#allocation35_spill] sm:$0xff] %v12550_v20 }
  0xdf   :  { %v206_v21 = vpop.f32.mrb[0].mxu0 }
  0xe0   :  { %v12553_v22 = vadd.f32 %v206_v21, %v12414_v35  ;;  %v10934_v23 = vpop.f32.mrb[1].mxu0  ;;  %v12555_v24 = vpop.permute.xlu1 %1383 }
  0xe1   :  { %20553 = vst [vmem:[#allocation36_spill] sm:$0xff] %v12555_v24  ;;  %v12557_v14 = vpop.permute.xlu0 %1381 }
  0xe2   :  { %20554 = vst [vmem:[#allocation37_spill] sm:$0xff] %v12557_v14  ;;  %v10074_v25 = vmul.f32 -1.442695, %v12553_v22 }
  0xe3   :  { %v211_v26 = vpop.f32.mrb[2].mxu0 }
  0xe4   :  { %11894 = vpow2.f32 %v10074_v25  ;;  %v12561_v27 = vadd.f32 %v211_v26, %v12412_v34  ;;  %v10937_v28 = vpop.f32.mrb[3].mxu0  ;;  %v12563_v29 = vpop.permute.xlu1 %704  ;;  %v718_v25 = vlaneseq }
  0xe5   :  { %20555 = vst [vmem:[#allocation38_spill] sm:$0xff] %v12563_v29  ;;  %v12565_v32 = vpop.permute.xlu0 %702 }
  0xe6   :  { %v10075_v33 = vmul.f32 -1.442695, %v12561_v27  ;;  %v12580_v14 = vshrl.u32 %v718_v25, 7 }
  0xe7   :  { %v216_v35 = vpop.f32.mrb[4].mxu0 }
  0xe8   :  { %11896 = vpow2.f32 %v10075_v33  ;;  %v12569_v36 = vadd.f32 %v216_v35, %v12421_v37  ;;  %v10940_v45 = vpop.f32.mrb[5].mxu0  ;;  %v12571_v21 = vpop.permute.xlu1 %803  ;;  %20558 = vst [vmem:[#allocation41_spill] sm:$0xff] %v12580_v14  ;;  %v12587_v20 = vsub.s32 0, %v12580_v14  ;;  %v12601_v13 = vsub.s32 2, %v12580_v14 }
  0xe9   :  { %20556 = vst [vmem:[#allocation39_spill] sm:$0xff] %v12571_v21  ;;  %v12573_v23 = vpop.permute.xlu0 %801  ;;  %v12641_v61 = vsub.s32 5, %v12580_v14  ;;  %v12654_v55 = vsub.s32 6, %v12580_v14  ;;  %v12657_v54 = vsub.s32 7, %v12580_v14 }
  0xea   :  { %v10076_v34 = vmul.f32 -1.442695, %v12569_v36  ;;  %20560 = vst [vmem:[#allocation43_spill] sm:$0xff] %v12587_v20  ;;  %v12635_v63 = vrot.slane %v79_v16, %v12601_v13 }
  0xeb   :  { %20575 = vst [vmem:[#allocation58_spill] sm:$0xff] %v12654_v55  ;;  %v12691_v52 = vrot.slane %v79_v16, %v12657_v54 }
  0xec   :  { %11898 = vpow2.f32 %v10076_v34  ;;  %v12576_v26 = vpop.permute.xlu1 %900  ;;  %v12590_v34 = vsub.s32 1, %v12580_v14  ;;  %20570 = vst [vmem:[#allocation53_spill] sm:$0xff] %v12635_v63  ;;  %v10085_v63 = vcombine.low %v12402_v31, %v12402_v31 }
  0xed   :  { %20557 = vst [vmem:[#allocation40_spill] sm:$0xff] %v12576_v26  ;;  %v12578_v28 = vpop.permute.xlu0 %898  ;;  %20580 = vst [vmem:[#allocation63_spill] sm:$0xff] %v12691_v52 }
  0xee   :  { %v11895_v0 = vpop.eup %11894  ;;  %20561 = vst [vmem:[#allocation44_spill] sm:$0xff] %v12590_v34  ;;  %v12614_v62 = vrot.slane %v79_v16, %v12590_v34 }
  0xef   :  { %v229_v1 = vadd.f32 1.0, %v11895_v0  ;;  %v12595_v0 = vand.u32 127, %v718_v25  ;;  %v12611_v25 = vrot.slane %v79_v16, %v12587_v20 }
  0xf0   :  { %v12582_v37 = vpop.permute.xlu1 %997  ;;  %20565 = vst [vmem:[#allocation48_spill] sm:$0xff] %v12614_v62 }
  0xf1   :  { %11900 = vrcp.f32 %v229_v1  ;;  %20559 = vst [vmem:[#allocation42_spill] sm:$0xff] %v12582_v37  ;;  %v12584_v33 = vpop.permute.xlu0 %995  ;;  %v78_v1 = vld [vmem:[%s19949_s18] sm:$0xff]  ;;  %20564 = vst [vmem:[#allocation47_spill] sm:$0xff] %v12611_v25  ;;  %vm720_vm3 = vcmp.lt.s32.totalorder %v12595_v0, 17  ;;  %vm817_vm4 = vcmp.lt.s32.totalorder %v12595_v0, 16  ;;  %vm914_vm6 = vcmp.lt.s32.totalorder %v12595_v0, 15 }
  0xf2   :  { %v11897_v35 = vpop.eup %11896  ;;  %v12617_v3 = vrot.slane %v78_v1, %v12590_v34  ;;  %v12620_v2 = vrot.slane %v78_v1, %v12587_v20  ;;  %v12651_v57 = vrot.slane %v78_v1, %v12601_v13  ;;  %v12700_v31 = vrot.slane %v78_v1, %v12657_v54 }
  0xf3   :  { %v230_v45 = vadd.f32 1.0, %v11897_v35  ;;  %v12604_v35 = vsub.s32 3, %v12580_v14  ;;  %v10079_v14 = vcombine.low %v12397_v30, %v12397_v30  ;;  %v12697_v30 = vld [vmem:[%s19948_s17] sm:$0x77]  ;;  %vm1011_vm7 = vcmp.lt.s32.totalorder %v12595_v0, 1 }
  0xf4   :  { %v12606_v11 = vpop.permute.xlu1 %1096  ;;  %20566 = vst [vmem:[#allocation49_spill] sm:$0xff] %v12617_v3  ;;  %20567 = vst [vmem:[#allocation50_spill] sm:$0xff] %v12620_v2  ;;  %v10102_v49 = vcombine.high %v12697_v30, %v12697_v30  ;;  %v727_v2 = vsel %vm720_vm3, %v12565_v32, %v12563_v29  ;;  %v824_v3 = vsel %vm817_vm4, %v12573_v23, %v12571_v21  ;;  %v268_v29 = vld [vmem:[%s19947_s16 + $0x28] sm:$0x77]  ;;  %vm1108_vm8 = vcmp.lt.s32.totalorder %v12595_v0, 127  ;;  %s12111_s16 = smov 9  }
  0xf5   :  { %20562 = vst [vmem:[#allocation45_spill] sm:$0xff] %v12604_v35  ;;  %11902 = vrcp.f32 %v230_v45  ;;  %20563 = vst [vmem:[#allocation46_spill] sm:$0xff] %v12606_v11  ;;  %v12608_v9 = vpop.permute.xlu0 %1094  ;;  %v12625_v45 = vld [vmem:[%s19949_s18 + $0x10] sm:$0xff]  ;;  %v12638_v58 = vrot.slane %v79_v16, %v12604_v35  ;;  %v12648_v59 = vrot.slane %v78_v1, %v12604_v35  ;;  %v10101_v21 = vcombine.low %v12697_v30, %v12697_v30 }
  0xf6   :  { %v11899_v7 = vpop.eup %11898  ;;  %20568 = vst [vmem:[#allocation51_spill] sm:$0xff] %v12625_v45  ;;  %20574 = vst [vmem:[#allocation57_spill] sm:$0xff] %v12651_v57  ;;  %v12673_v57 = vld [vmem:[%s19949_s18 + $0x28] sm:$0xff]  ;;  %v12704_v50 = vrot.slane %v12625_v45, %v12587_v20  ;;  %vm1205_vm9 = vcmp.lt.s32.totalorder %v12595_v0, 113  ;;  %vm1302_vm10 = vcmp.lt.s32.totalorder %v12595_v0, 112  ;;  %vm1399_vm11 = vcmp.lt.s32.totalorder %v12595_v0, 111 }
  0xf7   :  { %v231_v5 = vadd.f32 1.0, %v11899_v7  ;;  %v12630_v7 = vld [vmem:[%s19949_s18 + $0x18] sm:$0xff]  ;;  %20571 = vst [vmem:[#allocation54_spill] sm:$0xff] %v12638_v58  ;;  %20573 = vst [vmem:[#allocation56_spill] sm:$0xff] %v12648_v59  ;;  %v12665_v58 = vrot.slane %v79_v16, %v12641_v61  ;;  %v12668_v59 = vrot.slane %v78_v1, %v12641_v61  ;;  %vm4354_vm14 = vcmp.lt.s32.totalorder %v12595_v0, 8 }
  0xf8   :  { %20569 = vst [vmem:[#allocation52_spill] sm:$0xff] %v12630_v7  ;;  %v12643_v60 = vpop.permute.xlu1 %1193  ;;  %20581 = vst [vmem:[#allocation64_spill] sm:$0xff] %v12700_v31  ;;  %v12729_v31 = vrot.slane %v12630_v7, %v12604_v35  ;;  %vm4329_vm15 = vcmp.lt.s32.totalorder %v12595_v0, 9  ;;  %vm4452_vm1 = vcmp.lt.s32.totalorder %v12595_v0, 121 }
  0xf9   :  { %11904 = vrcp.f32 %v231_v5  ;;  %20572 = vst [vmem:[#allocation55_spill] sm:$0xff] %v12643_v60  ;;  %v12645_v56 = vpop.permute.xlu0 %1191  ;;  %v12662_v5 = vld [vmem:[%s19949_s18 + $0x20] sm:$0xff]  ;;  %20576 = vst [vmem:[#allocation59_spill] sm:$0xff] %v12665_v58  ;;  %v12685_v58 = vrot.slane %v79_v16, %v12654_v55 }
  0xfa   :  { %20577 = vst [vmem:[#allocation60_spill] sm:$0xff] %v12668_v59  ;;  %v12688_v59 = vrot.slane %v78_v1, %v12654_v55  ;;  %20582 = vst [vmem:[#allocation65_spill] sm:$0xff] %v12704_v50  ;;  %v12724_v1 = vrot.slane %v12630_v7, %v12601_v13 }
  0xfb   :  { %v11901_v53 = vpop.eup %11900  ;;  %20578 = vst [vmem:[#allocation61_spill] sm:$0xff] %v12685_v58  ;;  %20588 = vst [vmem:[#allocation71_spill] sm:$0xff] %v12729_v31  ;;  %v12733_v58 = vrot.slane %v12662_v5, %v12587_v20  ;;  %v10084_v31 = vcombine.high %v12682_v17, %v12682_v17 }
  0xfc   :  { %20579 = vst [vmem:[#allocation62_spill] sm:$0xff] %v12688_v59  ;;  %v238_v51 = vmul.f32 %v11901_v53, %v12553_v22  ;;  %v12708_v59 = vrot.slane %v12630_v7, %v12587_v20  ;;  %v12710_v16 = vpop.permute.xlu1 %1290  ;;  %v12716_v53 = vrot.slane %v12625_v45, %v12590_v34  ;;  %v12720_v22 = vrot.slane %v12630_v7, %v12590_v34 }
  0xfd   :  { %20584 = vst [vmem:[#allocation67_spill] sm:$0xff] %v12710_v16  ;;  %v12712_v52 = vpop.permute.xlu0 %1288  ;;  %20587 = vst [vmem:[#allocation70_spill] sm:$0xff] %v12724_v1  ;;  %v329_v45 = vsel %vm303_vm2, %v10085_v63, 0  ;;  %v12756_v63 = vrot.slane %v12662_v5, %v12601_v13 }
  0xfe   :  { %20583 = vst [vmem:[#allocation66_spill] sm:$0xff] %v12708_v59  ;;  %20585 = vst [vmem:[#allocation68_spill] sm:$0xff] %v12716_v53  ;;  %v259_v50 = vadd.f32 %v12423_v38, %v238_v51  ;;  %v311_v53 = vsel %vm303_vm2, %v10079_v14, 0  ;;  %v12742_v38 = vrot.slane %v12673_v57, %v12587_v20  ;;  %v12746_v51 = vrot.slane %v12662_v5, %v12590_v34 }
  0xff   :  { %20586 = vst [vmem:[#allocation69_spill] sm:$0xff] %v12720_v22  ;;  %v11903_v59 = vpop.eup %11902  ;;  %20589 = vst [vmem:[#allocation72_spill] sm:$0xff] %v12733_v58  ;;  %v12752_v14 = vrot.slane %v12673_v57, %v12590_v34 }
 0x100   :  { %v12738_v22 = vpack.c.bf16 %v259_v50, %v259_v50  ;;  %20590 = vst [vmem:[#allocation73_spill] sm:$0xff] %v12742_v38  ;;  %20591 = vst [vmem:[#allocation74_spill] sm:$0xff] %v12746_v51  ;;  %v12760_v50 = vrot.slane %v12673_v57, %v12601_v13  ;;  %v12762_v1 = vpop.permute.xlu1 %1387  ;;  %v239_v48 = vmul.f32 %v11903_v59, %v12561_v27 }
 0x101   :  { %20592 = vst [vmem:[#allocation75_spill] sm:$0xff] %v12752_v14  ;;  %20593 = vst [vmem:[#allocation76_spill] sm:$0xff] %v12756_v63  ;;  %v12764_v7 = vpop.permute.xlu0 %1385  ;;  %v12784_v59 = vrot.slane %v12662_v5, %v12604_v35  ;;  %v10083_v27 = vcombine.low %v12682_v17, %v12682_v17  ;;  %v786_v17 = vmul.f32 %v12742_v38, %v727_v2 }
 0x102   :  { %20594 = vst [vmem:[#allocation77_spill] sm:$0xff] %v12760_v50  ;;  %20595 = vst [vmem:[#allocation78_spill] sm:$0xff] %v12762_v1  ;;  %10090 = vmatmul.mubr.msk.bf16.vlgmr.msra.gmra.mrb[0].mxu1 %vm299_vm5, %v12738_v22  ;;  %10094 = vmatmul.mubr.msk.bf16.vlgmr.msra.gmra.mrb[8].mxu0 %vm299_vm5, %v12738_v22  ;;  %v883_v30 = vmul.f32 %v12752_v14, %v824_v3  ;;  %v260_v2 = vadd.f32 %v12429_v40, %v239_v48 }
 0x103   :  { %20596 = vst [vmem:[#allocation79_spill] sm:$0xff] %v12764_v7  ;;  %v11905_v1 = vpop.eup %11904  ;;  %20597 = vst [vmem:[#allocation80_spill] sm:$0xff] %v12784_v59  ;;  %382 = vmatpush1.bf16.msra.mxu1 %v311_v53  ;;  %505 = vmatpush1.bf16.msra.mxu0 %v329_v45  ;;  %v12796_v7 = vrot.slane %v12673_v57, %v12604_v35  ;;  %v12800_v53 = vrot.slane %v12662_v5, %v12641_v61  ;;  %v20600_v45 = vmov 0   ;;  %v323_v40 = vsel %vm303_vm2, %v10083_v27, 0 }
 0x104   :  { %v240_v24 = vmul.f32 %v11905_v1, %v12569_v36  ;;  %413 = vmatprep.mubr.bf16.mxu1 %v20600_v45  ;;  %10095 = vmatprep.subr.msk.bf16.mxu1 %vm303_vm2, %v10084_v31  ;;  %v12809_v36 = vrot.slane %v12673_v57, %v12641_v61  ;;  %v12811_v1 = vpop.permute.xlu1 %712  ;;  %v12828_v31 = vrot.slane %v12662_v5, %v12654_v55 }
 0x105   :  { %20598 = vst [vmem:[#allocation81_spill] sm:$0xff] %v12796_v7  ;;  %20599 = vst [vmem:[#allocation82_spill] sm:$0xff] %v12800_v53  ;;  %v12818_v19 = vpop.permute.xlu0 %710  ;;  %536 = vmatprep.mubr.bf16.mxu0 %v20600_v45  ;;  %10104 = vmatprep.subr.msk.bf16.mxu0 %vm303_vm2, %v10102_v49  ;;  %v12832_v38 = vrot.slane %v12673_v57, %v12654_v55  ;;  %v728_v49 = vsel %vm720_vm3, %v12512_v4, %v12565_v32  ;;  %v12857_v32 = vld [vmem:[%s19949_s18 + $0x40] sm:$0xff] }
 0x106   :  { %20601 = vst [vmem:[#allocation83_spill] sm:$0xff] %v12809_v36  ;;  %v261_v3 = vadd.f32 %v12427_v39, %v240_v24  ;;  %20602 = vst [vmem:[#allocation84_spill] sm:$0xff] %v12828_v31  ;;  %v12840_v14 = vrot.slane %v12662_v5, %v12657_v54  ;;  %v601_v39 = vsel %vm303_vm2, %v10101_v21, 0  ;;  %v825_v24 = vsel %vm817_vm4, %v12518_v6, %v12573_v23 }
 0x107   :  { %20603 = vst [vmem:[#allocation85_spill] sm:$0xff] %v12832_v38  ;;  %v12852_v55 = vrot.slane %v12673_v57, %v12657_v54  ;;  %v10088_v5 = vcombine.high %v268_v29, %v268_v29  ;;  %v921_v21 = vsel %vm914_vm6, %v12578_v28, %v12576_v26  ;;  %v1018_v23 = vsel %vm1011_vm7, %v12584_v33, %v12582_v37 }
 0x108   :  { %20604 = vst [vmem:[#allocation86_spill] sm:$0xff] %v12840_v14  ;;  %v12844_v48 = vpack.c.bf16 %v261_v3, %v260_v2  ;;  %v12867_v27 = vpop.permute.xlu1 %811  ;;  %v1477_v2 = vpack.c.bf16 %v883_v30, %v786_v17  ;;  %v10087_v3 = vcombine.low %v268_v29, %v268_v29  ;;  %v731_v6 = vsel %vm720_vm3, %v12435_v42, %v12433_v41 }
 0x109   :  { %20605 = vst [vmem:[#allocation87_spill] sm:$0xff] %v12852_v55  ;;  %v12869_v57 = vpop.permute.xlu0 %809  ;;  %v785_v4 = vmul.f32 %v12733_v58, %v728_v49  ;;  %v12878_v26 = vrot.slane %v12816_v18, %v12587_v20  ;;  %v882_v29 = vmul.f32 %v12746_v51, %v825_v24  ;;  %v922_v17 = vsel %vm914_vm6, %v12524_v8, %v12578_v28 }
 0x10a   :  { %10092 = vmatmul.mubr.msk.bf16.vlgmr.msra.gmra.mrb[4].mxu1 %vm299_vm5, %v12738_v22  ;;  %10098 = vmatmul.mubr.msk.bf16.vlgmr.msra.gmra.mrb[12].mxu0 %vm299_vm5, %v12738_v22  ;;  %v1019_v30 = vsel %vm1011_vm7, %v12532_v10, %v12584_v33  ;;  %v980_v49 = vmul.f32 %v12760_v50, %v921_v21  ;;  %v1077_v58 = vmul.f32 %v12796_v7, %v1018_v23 }
 0x10b   :  { %20606 = vst [vmem:[#allocation88_spill] sm:$0xff] %v12878_v26  ;;  %464 = vmatpush1.bf16.msra.mxu1 %v323_v40  ;;  %610 = vmatpush1.bf16.msra.mxu0 %v601_v39  ;;  %v1114_v24 = vsel %vm1108_vm8, %v12608_v9, %v12606_v11  ;;  %v828_v28 = vsel %vm817_vm4, %v12441_v44, %v12439_v43 }
 0x10c   :  { %495 = vmatprep.mubr.bf16.mxu1 %v20600_v45  ;;  %10099 = vmatprep.subr.msk.bf16.mxu1 %vm303_vm2, %v10088_v5  ;;  %v12908_v33 = vrot.slane %v12816_v18, %v12590_v34  ;;  %v12912_v40 = vrot.slane %v12857_v32, %v12590_v34  ;;  %v12914_v39 = vpop.permute.xlu1 %807  ;;  %v335_v5 = vsel %vm303_vm2, %v10087_v3, 0  ;;  %v979_v23 = vmul.f32 %v12756_v63, %v922_v17  ;;  %v11071_v17 = vld [vmem:[%s19948_s17 + $0x8] ss:$0 sps:$4 sm:$0x77]  }
 0x10d   :  { %v12916_v21 = vpop.permute.xlu0 %708  ;;  %641 = vmatprep.mubr.bf16.mxu0 %v20600_v45  ;;  %1655 = vmatprep.subr.bf16.mxu0 %v1477_v2  ;;  %v1076_v50 = vmul.f32 %v12784_v59, %v1019_v30  ;;  %v12924_v7 = vrot.slane %v12857_v32, %v12587_v20  ;;  %v12928_v51 = vrot.slane %v12816_v18, %v12601_v13  ;;  %v20619_v20 = vld [vmem:[#allocation50_spill] sm:$0xff] }
 0x10e   :  { %20607 = vst [vmem:[#allocation89_spill] sm:$0xff] %v12908_v33  ;;  %20608 = vst [vmem:[#allocation90_spill] sm:$0xff] %v12912_v40  ;;  %v12931_v11 = vmul.f32 %v12611_v25, %v731_v6  ;;  %v1476_v37 = vpack.c.bf16 %v882_v29, %v785_v4  ;;  %v1115_v2 = vsel %vm1108_vm8, %v12540_v12, %v12608_v9  ;;  %v10111_v25 = vld [vmem:[%s19949_s18 + $0x80] ss:$0 sm:$0xff] }
 0x10f   :  { %20609 = vst [vmem:[#allocation91_spill] sm:$0xff] %v12924_v7  ;;  %20610 = vst [vmem:[#allocation92_spill] sm:$0xff] %v12928_v51  ;;  %v1174_v3 = vmul.f32 %v12809_v36, %v1114_v24  ;;  %v12942_v30 = vmul.f32 %v12614_v62, %v828_v28  ;;  %v1489_v63 = vpack.c.bf16 %v1077_v58, %v980_v49 }
 0x110   :  { %v12946_v6 = vrot.slane %v12816_v18, %v12604_v35  ;;  %v12950_v4 = vrot.slane %v12857_v32, %v12604_v35  ;;  %v829_v9 = vsel %vm817_vm4, %v12448_v46, %v12441_v44  ;;  %v1211_v29 = vsel %vm1205_vm9, %v12645_v56, %v12643_v60  ;;  %v12964_v49 = vpop.permute.xlu1 %908  ;;  %v20617_v60 = vld [vmem:[#allocation36_spill] sm:$0xff] }
 0x111   :  { %v1308_v58 = vsel %vm1302_vm10, %v12712_v52, %v12710_v16  ;;  %v12966_v24 = vpop.permute.xlu0 %906  ;;  %v12970_v28 = vrot.slane %v12857_v32, %v12601_v13  ;;  %v732_v44 = vsel %vm720_vm3, %v12450_v47, %v12435_v42  ;;  %v1488_v36 = vpack.c.bf16 %v1076_v50, %v979_v23  ;;  %v20614_v42 = vld [vmem:[#allocation34_spill] sm:$0xff]  ;;  %v10112_v23 = vld [vmem:[%s19949_s18 + $0x88] ss:$0 sm:$0xff] }
 0x112   :  { %20611 = vst [vmem:[#allocation93_spill] sm:$0xff] %v12946_v6  ;;  %20612 = vst [vmem:[#allocation94_spill] sm:$0xff] %v12950_v4  ;;  %v1173_v59 = vmul.f32 %v12800_v53, %v1115_v2  ;;  %10096 = vmatmul.mubr.msk.bf16.vlgmr.msra.gmra.mrb[8].mxu1 %vm299_vm5, %v12738_v22  ;;  %10105 = vmatmul.mubr.msk.bf16.vlgmr.msra.gmra.mrb[16].mxu0 %vm299_vm5, %v12844_v48  ;;  %v1212_v62 = vsel %vm1205_vm9, %v12544_v15, %v12645_v56  ;;  %v20615_v2 = vld [vmem:[#allocation3_spill] sm:$0xff] }
 0x113   :  { %20613 = vst [vmem:[#allocation95_spill] sm:$0xff] %v12970_v28  ;;  %v1309_v50 = vsel %vm1302_vm10, %v20614_v42, %v12712_v52  ;;  %546 = vmatpush1.bf16.msra.mxu1 %v335_v5  ;;  %1656 = vmatpush1.bf16.msra.mxu0 %v1476_v37  ;;  %v1501_v53 = vpack.c.bf16 %v1174_v3, %v20615_v2  ;;  %v20616_v16 = vld [vmem:[#allocation79_spill] sm:$0xff]  ;;  %v20618_v52 = vld [vmem:[#allocation49_spill] sm:$0xff]  ;;  %v20620_v37 = vld [vmem:[#allocation78_spill] sm:$0xff]  ;;  %v20621_v2 = vmov 0.0  }
 0x114   :  { %v1271_v47 = vmul.f32 %v12832_v38, %v1211_v29  ;;  %v1368_v46 = vmul.f32 %v12852_v55, %v1308_v58  ;;  %v1406_v56 = vsel %vm1399_vm11, %v20617_v60, %v20616_v16  ;;  %1657 = vmatprep.subr.bf16.mxu0 %v1489_v63  ;;  %577 = vmatprep.mubr.bf16.mxu1 %v20600_v45  ;;  %v13013_v29 = vpop.permute.xlu1 %1005  ;;  %v607_v63 = vsel %vm303_vm2, %v11071_v17, 0  ;;  %v20622_v38 = vld [vmem:[#allocation6_spill] sm:$0xff]  ;;  %v20624_v55 = vld [vmem:[#allocation8_spill] sm:$0xff] }
 0x115   :  { %v13004_v34 = vmul.f32 %v20618_v52, %v829_v9  ;;  %v13007_v5 = vmul.f32 %v20619_v20, %v732_v44  ;;  %v1405_v3 = vsel %vm1399_vm11, %v20616_v16, %v20620_v37  ;;  %v1004_v58 = vpop.permute.xlu0 %1003  ;;  %10941 = vmatprep.subr.bf16.mxu1 %v20621_v2  ;;  %1687 = vmatprep.mubr.bf16.mxu0 %v20600_v45  ;;  %v20623_v9 = vld [vmem:[#allocation7_spill] sm:$0xff]  ;;  %v20625_v20 = vld [vmem:[#allocation9_spill] sm:$0xff]  ;;  %v20626_v60 = vld [vmem:[#allocation10_spill] sm:$0xff]  ;;  %vm4477_vm2 = vcmp.lt.s32.totalorder %v12595_v0, 120 }
 0x116   :  { %v925_v44 = vsel %vm914_vm6, %v20623_v9, %v20622_v38  ;;  %v1022_v52 = vsel %vm1011_vm7, %v20625_v20, %v20624_v55  ;;  %v1270_v16 = vmul.f32 %v12828_v31, %v1212_v62  ;;  %v1367_v37 = vmul.f32 %v12840_v14, %v1309_v50  ;;  %v20627_v42 = vld [vmem:[#allocation2_spill] sm:$0xff] }
 0x117   :  { %v1023_v17 = vsel %vm1011_vm7, %v20626_v60, %v20625_v20  ;;  %v1500_v15 = vpack.c.bf16 %v1173_v59, %v20627_v42  ;;  %v1464_v35 = vmul.f32 %v10111_v25, %v1406_v56  ;;  %1658 = vmatpush1.bf16.msra.mxu0 %v1488_v36  ;;  %v1473_v38 = vpack.c.bf16 %v12942_v30, %v12931_v11  ;;  %v20628_v59 = vld [vmem:[#allocation53_spill] sm:$0xff]  ;;  %v20629_v11 = vld [vmem:[#allocation54_spill] sm:$0xff] }
 0x118   :  { %v1465_v12 = vmul.f32 %v10112_v23, %v1405_v3  ;;  %v723_v62 = vsel %vm720_vm3, %v12818_v19, %v12811_v1  ;;  %v820_v50 = vsel %vm817_vm4, %v12869_v57, %v12867_v27  ;;  %1659 = vmatprep.subr.bf16.mxu0 %v1501_v53  ;;  %v1513_v20 = vpack.c.bf16 %v1368_v46, %v1271_v47  ;;  %v13051_v42 = vpop.permute.xlu1 %1001  ;;  %v20631_v3 = vld [vmem:[#allocation56_spill] sm:$0xff]  ;;  %v20632_v46 = vld [vmem:[#allocation11_spill] sm:$0xff] }
 0x119   :  { %v1472_v25 = vpack.c.bf16 %v13004_v34, %v13007_v5  ;;  %v13046_v36 = vmul.f32 %v20628_v59, %v925_v44  ;;  %v13049_v30 = vmul.f32 %v20629_v11, %v1022_v52  ;;  %v13053_v23 = vpop.permute.xlu0 %904  ;;  %v13057_v56 = vrot.slane %v12816_v18, %v12641_v61  ;;  %v20633_v34 = vld [vmem:[#allocation12_spill] sm:$0xff]  ;;  %v20634_v5 = vld [vmem:[#allocation13_spill] sm:$0xff] }
 0x11a   :  { %v13060_v53 = vmul.f32 %v20631_v3, %v1023_v17  ;;  %v926_v47 = vsel %vm914_vm6, %v20632_v46, %v20623_v9  ;;  %v1118_v52 = vsel %vm1108_vm8, %v20634_v5, %v20633_v34  ;;  %v1512_v44 = vpack.c.bf16 %v1367_v37, %v1270_v16  ;;  %10100 = vmatmul.mubr.msk.bf16.vlgmr.msra.gmra.mrb[12].mxu1 %vm299_vm5, %v12738_v22  ;;  %v20636_v16 = vld [vmem:[#allocation59_spill] sm:$0xff] }
 0x11b   :  { %20630 = vst [vmem:[#allocation3_spill] sm:$0xff] %v13057_v56  ;;  %v1524_v31 = vpack.c.bf16 %v1464_v35, %v1464_v35  ;;  %v790_v14 = vmul.f32 %v12878_v26, %v723_v62  ;;  %v887_v17 = vmul.f32 %v12908_v33, %v820_v50  ;;  %10942 = vmatpush3.bf16.msra.mxu1 %v607_v63  ;;  %v20635_v35 = vld [vmem:[#allocation57_spill] sm:$0xff]  ;;  %v20639_v50 = vld [vmem:[#allocation58_spill] sm:$0xff] }
 0x11c   :  { %1660 = vmatpush1.bf16.msra.mxu0 %v1500_v15  ;;  %v1525_v59 = vpack.c.bf16 %v1465_v12, %v1465_v12  ;;  %v821_v9 = vsel %vm817_vm4, %v12914_v39, %v12869_v57  ;;  %v724_v37 = vsel %vm720_vm3, %v12916_v21, %v12818_v19  ;;  %1573 = vmatprep.subr.bf16.mxu1 %v1473_v38  ;;  %v13095_v57 = vpop.permute.xlu1 %1104 }
 0x11d   :  { %1661 = vmatprep.subr.bf16.mxu0 %v1513_v20  ;;  %v13083_v22 = vmul.f32 %v20635_v35, %v926_v47  ;;  %v13086_v63 = vmul.f32 %v20636_v16, %v1118_v52  ;;  %v917_v12 = vsel %vm914_vm6, %v12966_v24, %v12964_v49  ;;  %v1014_v15 = vsel %vm1011_vm7, %v1004_v58, %v13013_v29  ;;  %v1103_v19 = vpop.permute.xlu0 %1102 }
 0x11e   :  { %20637 = vst [vmem:[#allocation79_spill] sm:$0xff] %v13095_v57  ;;  %10943 = vmatprep.mubr.msk.bf16.mxu1 %vm12101_vm0, %v20621_v2  ;;  %v13101_v38 = vrot.slane %v12857_v32, %v12641_v61  ;;  %v1485_v62 = vpack.c.bf16 %v13049_v30, %v13046_v36  ;;  %v13107_v20 = vrot.slane %v12816_v18, %v20639_v50  ;;  %v1550_v26 = vsel %vm1536_vm12, %v1524_v31, 0  ;;  %v10107_v2 = vld [vmem:[%s19949_s18 + $0x60] ss:$0 sm:$0xff] }
 0x11f   :  { %v13111_v47 = vrot.slane %v12816_v18, %v12657_v54  ;;  %v886_v52 = vmul.f32 %v12912_v40, %v821_v9  ;;  %v789_v35 = vmul.f32 %v12924_v7, %v724_v37  ;;  %v1481_v16 = vpack.c.bf16 %v887_v17, %v790_v14  ;;  %v20642_v14 = vld [vmem:[#allocation15_spill] sm:$0xff]  ;;  %v20644_v37 = vld [vmem:[#allocation14_spill] sm:$0xff]  ;;  %v20647_v7 = vld [vmem:[#allocation16_spill] sm:$0xff] }
 0x120   :  { %20638 = vst [vmem:[#allocation7_spill] sm:$0xff] %v13101_v38  ;;  %20640 = vst [vmem:[#allocation8_spill] sm:$0xff] %v13107_v20  ;;  %1662 = vmatpush1.bf16.msra.mxu0 %v1512_v44  ;;  %v984_v3 = vmul.f32 %v12928_v51, %v917_v12  ;;  %v1081_v36 = vmul.f32 %v12946_v6, %v1014_v15  ;;  %v1015_v30 = vsel %vm1011_vm7, %v13051_v42, %v1004_v58  ;;  %v13135_v58 = vpop.permute.xlu1 %1199  ;;  %v20645_v12 = vld [vmem:[#allocation18_spill] sm:$0xff]  ;;  %v20646_v51 = vld [vmem:[#allocation19_spill] sm:$0xff] }
 0x121   :  { %20641 = vst [vmem:[#allocation9_spill] sm:$0xff] %v13111_v47  ;;  %v918_v18 = vsel %vm914_vm6, %v13053_v23, %v12966_v24  ;;  %10123 = vmatprep.subr.msk.bf16.mxu0 %vm1536_vm12, %v1525_v59  ;;  %v1484_v44 = vpack.c.bf16 %v13060_v53, %v13083_v22  ;;  %v1119_v31 = vsel %vm1108_vm8, %v20642_v14, %v20634_v5  ;;  %v13137_v9 = vpop.permute.xlu0 %1100  ;;  %v13142_v24 = vld [vmem:[%s19951_s5] sm:$0xf]  ;;  %v12050_v59 = vld [vmem:[%s20516_s30 + $0x8] sm:$0xff]  ;;  %v20643_v5 = vld [vmem:[#allocation17_spill] sm:$0xff] }
 0x122   :  { %v1110_v17 = vsel %vm1108_vm8, %v1103_v19, %v13095_v57  ;;  %v1497_v53 = vpack.c.bf16 %v13086_v63, %v12050_v59  ;;  %v1215_v22 = vsel %vm1205_vm9, %v20644_v37, %v20643_v5  ;;  %v1216_v15 = vsel %vm1205_vm9, %v20645_v12, %v20644_v37  ;;  %v20648_v40 = vld [vmem:[#allocation21_spill] sm:$0xff]  ;;  %10944 = vmatmul.mubr.msk.bf16.vlgmr.msra.gmra.mrb[16].mxu1 %vm299_vm5, %v12844_v48  ;;  %v10108_v59 = vld [vmem:[%s19949_s18 + $0x68] ss:$0 sm:$0xff] }
 0x123   :  { %v1312_v6 = vsel %vm1302_vm10, %v20647_v7, %v20646_v51  ;;  %v1313_v63 = vsel %vm1302_vm10, %v20648_v40, %v20647_v7  ;;  %v1480_v33 = vpack.c.bf16 %v886_v52, %v789_v35  ;;  %v1080_v37 = vmul.f32 %v12950_v4, %v1015_v30  ;;  %1574 = vmatpush1.bf16.msra.mxu1 %v1472_v25  ;;  %v20649_v52 = vld [vmem:[#allocation60_spill] sm:$0xff]  ;;  %v20650_v4 = vld [vmem:[#allocation61_spill] sm:$0xff]  ;;  %v20651_v25 = vld [vmem:[#allocation62_spill] sm:$0xff] }
 0x124   :  { %v983_v11 = vmul.f32 %v12970_v28, %v918_v18  ;;  %1664 = vmatpush1.bf16.msra.mxu0 %v1550_v26  ;;  %v1178_v7 = vmul.f32 %v13057_v56, %v1110_v17  ;;  %v1111_v48 = vsel %vm1108_vm8, %v13137_v9, %v1103_v19  ;;  %1575 = vmatprep.subr.bf16.mxu1 %v1485_v62  ;;  %v20652_v28 = vld [vmem:[#allocation22_spill] sm:$0xff]  ;;  %v20653_v12 = vld [vmem:[#allocation23_spill] sm:$0xff]  ;;  %v13185_v57 = vpop.permute.xlu1 %1296  ;;  %vm4502_vm5 = vcmp.lt.s32.totalorder %v12595_v0, 119 }
 0x125   :  { %1737 = vmatprep.subr.bf16.mxu0 %v1481_v16  ;;  %v1493_v35 = vpack.c.bf16 %v1081_v36, %v984_v3  ;;  %v1169_v30 = vmul.f32 %v20649_v52, %v1119_v31  ;;  %v1267_v18 = vmul.f32 %v20650_v4, %v1215_v22  ;;  %v1266_v26 = vmul.f32 %v20651_v25, %v1216_v15  ;;  %v13187_v17 = vpop.permute.xlu0 %1201  ;;  %v20654_v19 = vld [vmem:[#allocation63_spill] sm:$0xff]  ;;  %v20655_v3 = vld [vmem:[#allocation64_spill] sm:$0xff]  ;;  %v20658_v25 = vld [vmem:[#allocation25_spill] sm:$0xff] }
 0x126   :  { %v1409_v40 = vsel %vm1399_vm11, %v20653_v12, %v20652_v28  ;;  %1605 = vmatprep.mubr.bf16.mxu1 %v20600_v45  ;;  %v1364_v16 = vmul.f32 %v20654_v19, %v1312_v6  ;;  %v1363_v62 = vmul.f32 %v20655_v3, %v1313_v63  ;;  %v20656_v36 = vld [vmem:[#allocation20_spill] sm:$0xff]  ;;  %v1207_v22 = vsel %vm1205_vm9, %v13135_v58, %v13187_v17  ;;  %v20660_v19 = vld [vmem:[#allocation27_spill] sm:$0xff] }
 0x127   :  { %v1410_v31 = vsel %vm1399_vm11, %v20656_v36, %v20653_v12  ;;  %10124 = vmatmul.mubr.msk.bf16.vlgmr.msra.gmra.mrb[8].mxu0 %vm20181_vm13, %v13142_v24  ;;  %v20657_v15 = vld [vmem:[#allocation24_spill] sm:$0xff]  ;;  %v1492_v4 = vpack.c.bf16 %v1080_v37, %v983_v11  ;;  %v1177_v63 = vmul.f32 %v13101_v38, %v1111_v48  ;;  %1576 = vmatpush1.bf16.msra.mxu1 %v1484_v44  ;;  %v20659_v12 = vld [vmem:[#allocation26_spill] sm:$0xff]  ;;  %v12051_v52 = vld [vmem:[%s20516_s30 + $0x48] sm:$0xff] }
 0x128   :  { %v729_v6 = vsel %vm720_vm3, %v20658_v25, %v20657_v15  ;;  %1738 = vmatpush1.bf16.msra.mxu0 %v1480_v33  ;;  %v1461_v3 = vmul.f32 %v10108_v59, %v1409_v40  ;;  %v826_v56 = vsel %vm817_vm4, %v20660_v19, %v20659_v12  ;;  %1577 = vmatprep.subr.bf16.mxu1 %v1497_v53  ;;  %v12052_v11 = vld [vmem:[%s20516_s30] sm:$0xff]  ;;  %v13218_v40 = vpop.permute.xlu1 %706 }
 0x129   :  { %1739 = vmatprep.subr.bf16.mxu0 %v1493_v35  ;;  %v1505_v36 = vpack.c.bf16 %v1178_v7, %v12051_v52  ;;  %v1496_v37 = vpack.c.bf16 %v1169_v30, %v12052_v11  ;;  %v1460_v44 = vmul.f32 %v10107_v2, %v1410_v31  ;;  %v1275_v33 = vmul.f32 %v13107_v20, %v1207_v22  ;;  %v13220_v59 = vpop.permute.xlu0 %1298  ;;  %v20662_v7 = vld [vmem:[#allocation66_spill] sm:$0xff]  ;;  %v20663_v30 = vld [vmem:[#allocation69_spill] sm:$0xff] }
 0x12a   :  { %v13224_v53 = vrot.slane %v12857_v32, %v20639_v50  ;;  %1769 = vmatprep.mubr.bf16.mxu0 %v20600_v45  ;;  %v1508_v48 = vpack.c.bf16 %v1363_v62, %v1266_v26  ;;  %v784_v35 = vmul.f32 %v20662_v7, %v729_v6  ;;  %v1304_v2 = vsel %vm1302_vm10, %v13185_v57, %v13220_v59  ;;  %v12053_v22 = vld [vmem:[%s20516_s30 + $0x40] sm:$0xff]  ;;  %v20674_v7 = vld [vmem:[#allocation71_spill] sm:$0xff] }
 0x12b   :  { %v1509_v52 = vpack.c.bf16 %v1364_v16, %v1267_v18  ;;  %v881_v31 = vmul.f32 %v20663_v30, %v826_v56  ;;  %v1504_v15 = vpack.c.bf16 %v1177_v63, %v12053_v22  ;;  %1578 = vmatpush1.bf16.msra.mxu1 %v1496_v37  ;;  %v1372_v12 = vmul.f32 %v13111_v47, %v1304_v2  ;;  %v20664_v16 = vld [vmem:[#allocation28_spill] sm:$0xff]  ;;  %v20671_v37 = vld [vmem:[#allocation65_spill] sm:$0xff]  ;;  %v20673_v22 = vld [vmem:[#allocation70_spill] sm:$0xff] }
 0x12c   :  { %20661 = vst [vmem:[#allocation10_spill] sm:$0xff] %v13224_v53  ;;  %1740 = vmatpush1.bf16.msra.mxu0 %v1492_v4  ;;  %v1521_v26 = vpack.c.bf16 %v1461_v3, %v1461_v3  ;;  %v730_v62 = vsel %vm720_vm3, %v12433_v41, %v20658_v25  ;;  %v827_v56 = vsel %vm817_vm4, %v12439_v43, %v20660_v19  ;;  %v20665_v4 = vld [vmem:[#allocation29_spill] sm:$0xff]  ;;  %v13253_v63 = vpop.permute.xlu1 %1197  ;;  %v20666_v43 = vld [vmem:[#allocation51_spill] sm:$0xff]  ;;  %v20675_v20 = vld [vmem:[#allocation30_spill] sm:$0xff] }
 0x12d   :  { %1579 = vmatprep.subr.bf16.mxu1 %v1509_v52  ;;  %1741 = vmatprep.subr.bf16.mxu0 %v1505_v36  ;;  %v1520_v18 = vpack.c.bf16 %v1460_v44, %v1460_v44  ;;  %v923_v6 = vsel %vm914_vm6, %v20664_v16, %v12524_v8  ;;  %v1020_v3 = vsel %vm1011_vm7, %v20665_v4, %v12532_v10  ;;  %v13255_v41 = vpop.permute.xlu0 %805  ;;  %v20668_v36 = vld [vmem:[#allocation52_spill] sm:$0xff]  ;;  %v20676_v47 = vld [vmem:[#allocation31_spill] sm:$0xff] }
 0x12e   :  { %v1517_v25 = vpack.c.bf16 %v1372_v12, %v1275_v33  ;;  %v13259_v19 = vrot.slane %v20666_v43, %v12601_v13  ;;  %v13263_v11 = vrot.slane %v20668_v36, %v12641_v61  ;;  %v1208_v8 = vsel %vm1205_vm9, %v13253_v63, %v13135_v58  ;;  %v20672_v33 = vld [vmem:[#allocation68_spill] sm:$0xff] }
 0x12f   :  { %v13271_v10 = vrot.slane %v12857_v32, %v12657_v54  ;;  %v783_v44 = vmul.f32 %v20671_v37, %v730_v62  ;;  %v880_v2 = vmul.f32 %v20672_v33, %v827_v56  ;;  %1580 = vmatpush1.bf16.msra.mxu1 %v1508_v48  ;;  %v1475_v52 = vpack.c.bf16 %v881_v31, %v784_v35  ;;  %v20677_v32 = vld [vmem:[#allocation6_spill] sm:$0xff]  ;;  %v20678_v48 = vld [vmem:[#allocation45_spill] sm:$0xff]  ;;  %v20689_v33 = vld [vmem:[#allocation36_spill] sm:$0xff] }
 0x130   :  { %20667 = vst [vmem:[#allocation2_spill] sm:$0xff] %v13259_v19  ;;  %20669 = vst [vmem:[#allocation11_spill] sm:$0xff] %v13263_v11  ;;  %1742 = vmatpush1.bf16.msra.mxu0 %v1504_v15  ;;  %v978_v12 = vmul.f32 %v20673_v22, %v923_v6  ;;  %v1075_v30 = vmul.f32 %v20674_v7, %v1020_v3  ;;  %v1116_v58 = vsel %vm1108_vm8, %v20676_v47, %v20675_v20  ;;  %v13291_v15 = vpop.permute.xlu1 %1391  ;;  %v10115_v3 = vld [vmem:[%s19949_s18 + $0xa0] ss:$0 sm:$0xff]  ;;  %v12054_v22 = vld [vmem:[%s19949_s18 + $0x18] sm:$0xff] }
 0x131   :  { %20670 = vst [vmem:[#allocation12_spill] sm:$0xff] %v13271_v10  ;;  %10119 = vmatprep.subr.msk.bf16.mxu1 %vm1536_vm12, %v1521_v26  ;;  %1743 = vmatprep.subr.bf16.mxu0 %v1517_v25  ;;  %v924_v62 = vsel %vm914_vm6, %v20677_v32, %v20664_v16  ;;  %v13288_v35 = vrot.slane %v20666_v43, %v20678_v48  ;;  %v1538_v56 = vsel %vm1536_vm12, %v1520_v18, 0  ;;  %v13294_v6 = vpop.permute.xlu0 %1294  ;;  %v10109_v7 = vld [vmem:[%s19949_s18 + $0x70] ss:$0 sm:$0xff] }
 0x132   :  { %v1274_v31 = vmul.f32 %v13224_v53, %v1208_v8  ;;  %v1021_v20 = vsel %vm1011_vm7, %v20624_v55, %v20665_v4  ;;  %v13302_v26 = vrot.slane %v20666_v43, %v12641_v61  ;;  %v13306_v16 = vrot.slane %v20666_v43, %v20639_v50  ;;  %v10116_v55 = vld [vmem:[%s19949_s18 + $0xa8] ss:$0 sm:$0xff]  ;;  %v20690_v53 = vld [vmem:[#allocation37_spill] sm:$0xff] }
 0x133   :  { %20679 = vst [vmem:[#allocation13_spill] sm:$0xff] %v13288_v35  ;;  %v1305_v18 = vsel %vm1302_vm10, %v13294_v6, %v13185_v57  ;;  %v1117_v4 = vsel %vm1108_vm8, %v20633_v34, %v20676_v47  ;;  %v1172_v25 = vmul.f32 %v13263_v11, %v1116_v58  ;;  %v13325_v43 = vrot.slane %v20668_v36, %v20639_v50  ;;  %v20684_v58 = vld [vmem:[#allocation32_spill] sm:$0xff]  ;;  %v20685_v36 = vld [vmem:[#allocation33_spill] sm:$0xff] }
 0x134   :  { %20680 = vst [vmem:[#allocation58_spill] sm:$0xff] %v13302_v26  ;;  %20681 = vst [vmem:[#allocation15_spill] sm:$0xff] %v13306_v16  ;;  %1582 = vmatpush1.bf16.msra.mxu1 %v1538_v56  ;;  %v1371_v57 = vmul.f32 %v13271_v10, %v1305_v18  ;;  %v1474_v8 = vpack.c.bf16 %v880_v2, %v783_v44  ;;  %v977_v32 = vmul.f32 %v13259_v19, %v924_v62  ;;  %v20686_v18 = vld [vmem:[#allocation34_spill] sm:$0xff]  ;;  %v20687_v44 = vld [vmem:[#allocation35_spill] sm:$0xff]  ;;  %v13344_v11 = vpop.permute.xlu1 %1395 }
 0x135   :  { %20682 = vst [vmem:[#allocation17_spill] sm:$0xff] %v13325_v43  ;;  %v13333_v37 = vrot.slane %v12054_v22, %v12657_v54  ;;  %1614 = vmatprep.subr.bf16.mxu1 %v1475_v52  ;;  %v1487_v34 = vpack.c.bf16 %v1075_v30, %v978_v12  ;;  %v1074_v47 = vmul.f32 %v13288_v35, %v1021_v20  ;;  %v1394_v19 = vpop.permute.xlu0 %1393  ;;  %v12055_v30 = vld [vmem:[%s19949_s18 + $0x10] sm:$0xff]  ;;  %v10110_v12 = vld [vmem:[%s19949_s18 + $0x78] ss:$0 sm:$0xff] }
 0x136   :  { %v1213_v56 = vsel %vm1205_vm9, %v20685_v36, %v20684_v58  ;;  %v1310_v2 = vsel %vm1302_vm10, %v20687_v44, %v20686_v18  ;;  %v1516_v62 = vpack.c.bf16 %v1371_v57, %v1274_v31  ;;  %v1171_v22 = vmul.f32 %v13302_v26, %v1117_v4  ;;  %v13359_v31 = vld [vmem:[%s19949_s18 + $0x38] sm:$0xff] }
 0x137   :  { %20683 = vst [vmem:[#allocation14_spill] sm:$0xff] %v13333_v37  ;;  %v13351_v52 = vrot.slane %v12055_v30, %v12657_v54  ;;  %10120 = vmatmul.mubr.msk.bf16.vlgmr.msra.gmra.mrb[0].mxu1 %vm20181_vm13, %v13142_v24  ;;  %v1401_v20 = vsel %vm1399_vm11, %v1394_v19, %v13344_v11  ;;  %v1402_v4 = vsel %vm1399_vm11, %v13291_v15, %v1394_v19  ;;  %v12056_v18 = vld [vmem:[%s20516_s30 + $0x18] sm:$0xff] }
 0x138   :  { %1615 = vmatpush1.bf16.msra.mxu1 %v1474_v8  ;;  %v1468_v57 = vmul.f32 %v10115_v3, %v1402_v4  ;;  %v1469_v58 = vmul.f32 %v10116_v55, %v1401_v20  ;;  %1744 = vmatpush1.bf16.msra.mxu0 %v1516_v62  ;;  %v1499_v30 = vpack.c.bf16 %v1172_v25, %v12056_v18  ;;  %v11074_v3 = vld [vmem:[%s19950_s14 + $0x4] ss:$12 sps:$4 sm:$0xff]   ;;  %v11072_v4 = vld [vmem:[%s19950_s14] ss:$12 sps:$4 sm:$0xff]  }
 0x139   :  { %20688 = vst [vmem:[#allocation19_spill] sm:$0xff] %v13351_v52  ;;  %v1269_v26 = vmul.f32 %v13325_v43, %v1213_v56  ;;  %v1366_v35 = vmul.f32 %v13333_v37, %v1310_v2  ;;  %v1407_v19 = vsel %vm1399_vm11, %v20690_v53, %v20689_v33  ;;  %1616 = vmatprep.subr.bf16.mxu1 %v1487_v34  ;;  %v13392_v8 = vld [vmem:[%s19949_s18 + $0x30] sm:$0xff]  ;;  %v903_v34 = vpop.permute.xlu0 %902 }
 0x13a   :  { %1646 = vmatprep.mubr.bf16.mxu1 %v20600_v45  ;;  %v1486_v55 = vpack.c.bf16 %v1074_v47, %v977_v32  ;;  %v1214_v25 = vsel %vm1205_vm9, %v20643_v5, %v20685_v36  ;;  %v1528_v56 = vpack.c.bf16 %v1468_v57, %v1468_v57  ;;  %v1529_v33 = vpack.c.bf16 %v1469_v58, %v1469_v58  ;;  %v20691_v5 = vld [vmem:[#allocation43_spill] sm:$0xff]  ;;  %v20693_v62 = vld [vmem:[#allocation44_spill] sm:$0xff] }
 0x13b   :  { %v1311_v2 = vsel %vm1302_vm10, %v20646_v51, %v20687_v44  ;;  %v1408_v32 = vsel %vm1399_vm11, %v20652_v28, %v20690_v53  ;;  %v1463_v47 = vmul.f32 %v10110_v12, %v1407_v19  ;;  %v13404_v36 = vrot.slane %v13359_v31, %v20691_v5  ;;  %v12057_v51 = vld [vmem:[%s20516_s30 + $0x10] sm:$0xff]  ;;  %v1000_v53 = vpop.permute.xlu1 %999  ;;  %v11077_v58 = vld [vmem:[%s19950_s14 + $0x1c] ss:$12 sps:$4 sm:$0xff]  }
 0x13c   :  { %v13408_v20 = vrot.slane %v13359_v31, %v20693_v62  ;;  %1617 = vmatpush1.bf16.msra.mxu1 %v1486_v55  ;;  %v1498_v44 = vpack.c.bf16 %v1171_v22, %v12057_v51  ;;  %v1268_v28 = vmul.f32 %v13306_v16, %v1214_v25  ;;  %10127 = vmatprep.subr.msk.bf16.mxu0 %vm1536_vm12, %v1529_v33  ;;  %v1562_v12 = vsel %vm1536_vm12, %v1528_v56, 0  ;;  %v20697_v25 = vld [vmem:[#allocation38_spill] sm:$0xff] }
 0x13d   :  { %20692 = vst [vmem:[#allocation16_spill] sm:$0xff] %v13404_v36  ;;  %1618 = vmatprep.subr.bf16.mxu1 %v1499_v30  ;;  %v1511_v57 = vpack.c.bf16 %v1366_v35, %v1269_v26  ;;  %v1365_v18 = vmul.f32 %v13351_v52, %v1311_v2  ;;  %v1462_v19 = vmul.f32 %v10109_v7, %v1408_v32  ;;  %v1099_v7 = vpop.permute.xlu0 %1098  ;;  %v11075_v33 = vld [vmem:[%s19950_s14 + $0x18] ss:$12 sps:$4 sm:$0xff]   ;;  %v20700_v2 = vld [vmem:[#allocation39_spill] sm:$0xff] }
 0x13e   :  { %20694 = vst [vmem:[#allocation22_spill] sm:$0xff] %v13408_v20  ;;  %v725_v22 = vsel %vm720_vm3, %v13218_v40, %v12916_v21  ;;  %v822_v30 = vsel %vm817_vm4, %v13255_v41, %v12914_v39  ;;  %1746 = vmatpush1.bf16.msra.mxu0 %v1562_v12  ;;  %v13433_v35 = vrot.slane %v13392_v8, %v20691_v5 }
 0x13f   :  { %v13437_v26 = vrot.slane %v13392_v8, %v20693_v62  ;;  %3835 = vmatprep.subr.bf16.mxu0 %v11074_v3  ;;  %v1523_v55 = vpack.c.bf16 %v1463_v47, %v1463_v47  ;;  %v726_v21 = vsel %vm720_vm3, %v20697_v25, %v13218_v40  ;;  %v13445_v39 = vrot.slane %v13359_v31, %v20678_v48  ;;  %v11080_v47 = vld [vmem:[%s19950_s14 + $0x34] ss:$12 sps:$4 sm:$0xff]   ;;  %v11078_v25 = vld [vmem:[%s19950_s14 + $0x30] ss:$12 sps:$4 sm:$0xff]  }
 0x140   :  { %20695 = vst [vmem:[#allocation23_spill] sm:$0xff] %v13433_v35  ;;  %v13449_v56 = vrot.slane %v13359_v31, %v12601_v13  ;;  %1619 = vmatpush1.bf16.msra.mxu1 %v1498_v44  ;;  %v788_v3 = vmul.f32 %v13404_v36, %v725_v22  ;;  %v823_v40 = vsel %vm817_vm4, %v20700_v2, %v13255_v41 }
 0x141   :  { %20696 = vst [vmem:[#allocation24_spill] sm:$0xff] %v13437_v26  ;;  %20698 = vst [vmem:[#allocation25_spill] sm:$0xff] %v13445_v39  ;;  %v885_v32 = vmul.f32 %v13408_v20, %v822_v30  ;;  %10128 = vmatmul.mubr.msk.bf16.vlgmr.msra.gmra.mrb[12].mxu0 %vm20181_vm13, %v13142_v24  ;;  %1620 = vmatprep.subr.bf16.mxu1 %v1511_v57  ;;  %v1510_v51 = vpack.c.bf16 %v1365_v18, %v1268_v28  ;;  %v1196_v30 = vpop.permute.xlu1 %1195 }
 0x142   :  { %20699 = vst [vmem:[#allocation26_spill] sm:$0xff] %v13449_v56  ;;  %v1522_v44 = vpack.c.bf16 %v1462_v19, %v1462_v19  ;;  %v1016_v12 = vsel %vm1011_vm7, %v1000_v53, %v13051_v42  ;;  %v919_v41 = vsel %vm914_vm6, %v903_v34, %v13053_v23  ;;  %3836 = vmatpush1.bf16.msra.mxu0 %v11072_v4  ;;  %v20703_v42 = vld [vmem:[#allocation42_spill] sm:$0xff]  ;;  %v20704_v23 = vld [vmem:[#allocation40_spill] sm:$0xff] }
 0x143   :  { %v13473_v22 = vrot.slane %v13392_v8, %v20678_v48  ;;  %v13477_v57 = vrot.slane %v13392_v8, %v12601_v13  ;;  %3837 = vmatprep.subr.bf16.mxu0 %v11077_v58  ;;  %v787_v28 = vmul.f32 %v13433_v35, %v726_v21  ;;  %v884_v18 = vmul.f32 %v13437_v26, %v823_v40  ;;  %v1293_v40 = vpop.permute.xlu0 %1292 }
 0x144   :  { %v1017_v19 = vsel %vm1011_vm7, %v20703_v42, %v1000_v53  ;;  %v920_v4 = vsel %vm914_vm6, %v20704_v23, %v903_v34  ;;  %1621 = vmatpush1.bf16.msra.mxu1 %v1510_v51  ;;  %v1079_v2 = vmul.f32 %v13445_v39, %v1016_v12  ;;  %v982_v58 = vmul.f32 %v13449_v56, %v919_v41 }
 0x145   :  { %20701 = vst [vmem:[#allocation27_spill] sm:$0xff] %v13473_v22  ;;  %20702 = vst [vmem:[#allocation28_spill] sm:$0xff] %v13477_v57  ;;  %v13494_v21 = vrot.slane %v13359_v31, %v12641_v61  ;;  %10121 = vmatprep.subr.msk.bf16.mxu1 %vm1536_vm12, %v1523_v55  ;;  %v1479_v53 = vpack.c.bf16 %v885_v32, %v788_v3  ;;  %v1112_v34 = vsel %vm1108_vm8, %v1099_v7, %v13137_v9  ;;  %v20709_v32 = vld [vmem:[#allocation46_spill] sm:$0xff] }
 0x146   :  { %v1544_v51 = vsel %vm1536_vm12, %v1522_v44, 0  ;;  %3838 = vmatpush1.bf16.msra.mxu0 %v11075_v33  ;;  %v1078_v42 = vmul.f32 %v13473_v22, %v1017_v19  ;;  %v981_v12 = vmul.f32 %v13477_v57, %v920_v4  ;;  %v1478_v41 = vpack.c.bf16 %v884_v18, %v787_v28  ;;  %v11083_v33 = vld [vmem:[%s19950_s14 + $0x4c] ss:$12 sps:$4 sm:$0xff]   ;;  %v1390_v28 = vpop.permute.xlu1 %1389  ;;  %v10113_v19 = vld [vmem:[%s19949_s18 + $0x90] ss:$0 sm:$0xff] }
 0x147   :  { %20705 = vst [vmem:[#allocation29_spill] sm:$0xff] %v13494_v21  ;;  %3839 = vmatprep.subr.bf16.mxu0 %v11080_v47  ;;  %v13505_v23 = vrot.slane %v13359_v31, %v20639_v50  ;;  %v13509_v55 = vrot.slane %v13392_v8, %v12641_v61  ;;  %v13513_v9 = vrot.slane %v13359_v31, %v12657_v54  ;;  %v11081_v31 = vld [vmem:[%s19950_s14 + $0x48] ss:$12 sps:$4 sm:$0xff]  }
 0x148   :  { %1623 = vmatpush1.bf16.msra.mxu1 %v1544_v51  ;;  %v1209_v3 = vsel %vm1205_vm9, %v1196_v30, %v13253_v63  ;;  %v1113_v47 = vsel %vm1108_vm8, %v20709_v32, %v1099_v7  ;;  %v1176_v44 = vmul.f32 %v13494_v21, %v1112_v34  ;;  %v1491_v18 = vpack.c.bf16 %v1079_v2, %v982_v58  ;;  %v715_v58 = vpop.permute.xlu0 %714  ;;  %v10114_v51 = vld [vmem:[%s19949_s18 + $0x98] ss:$0 sm:$0xff] }
 0x149   :  { %20706 = vst [vmem:[#allocation51_spill] sm:$0xff] %v13505_v23  ;;  %20707 = vst [vmem:[#allocation52_spill] sm:$0xff] %v13509_v55  ;;  %1696 = vmatprep.subr.bf16.mxu1 %v1479_v53  ;;  %v1306_v63 = vsel %vm1302_vm10, %v1293_v40, %v13294_v6  ;;  %v1490_v4 = vpack.c.bf16 %v1078_v42, %v981_v12  ;;  %v13536_v7 = vrot.slane %v13392_v8, %v20639_v50  ;;  %v20712_v53 = vld [vmem:[#allocation55_spill] sm:$0xff]  ;;  %v20713_v42 = vld [vmem:[#allocation78_spill] sm:$0xff] }
 0x14a   :  { %20708 = vst [vmem:[#allocation30_spill] sm:$0xff] %v13513_v9  ;;  %3840 = vmatpush1.bf16.msra.mxu0 %v11078_v25  ;;  %v13540_v2 = vrot.slane %v13392_v8, %v12657_v54  ;;  %v1210_v34 = vsel %vm1205_vm9, %v20712_v53, %v1196_v30  ;;  %v1273_v6 = vmul.f32 %v13505_v23, %v1209_v3  ;;  %v20714_v12 = vld [vmem:[#allocation67_spill] sm:$0xff]  ;;  %v13562_v30 = vld [vmem:[%s19949_s18 + $0x50] sm:$0xff]  ;;  %v12058_v3 = vld [vmem:[%s20516_s30 + $0x38] sm:$0xff]  ;;  %v814_v53 = vpop.permute.xlu1 %813 }
 0x14b   :  { %20710 = vst [vmem:[#allocation31_spill] sm:$0xff] %v13536_v7  ;;  %10122 = vmatmul.mubr.msk.bf16.vlgmr.msra.gmra.mrb[4].mxu1 %vm20181_vm13, %v13142_v24  ;;  %v1175_v25 = vmul.f32 %v13509_v55, %v1113_v47  ;;  %v1404_v8 = vsel %vm1399_vm11, %v20713_v42, %v1390_v28  ;;  %v1307_v32 = vsel %vm1302_vm10, %v20714_v12, %v1293_v40  ;;  %v13574_v40 = vld [vmem:[%s19949_s18 + $0x58] sm:$0xff] }
 0x14c   :  { %20711 = vst [vmem:[#allocation6_spill] sm:$0xff] %v13540_v2  ;;  %1697 = vmatpush1.bf16.msra.mxu1 %v1478_v41  ;;  %v1370_v57 = vmul.f32 %v13513_v9, %v1306_v63  ;;  %v1503_v47 = vpack.c.bf16 %v1176_v44, %v12058_v3  ;;  %1728 = vmatprep.mubr.bf16.mxu1 %v20600_v45  ;;  %v12059_v44 = vld [vmem:[%s20516_s30 + $0x30] sm:$0xff] }
 0x14d   :  { %1698 = vmatprep.subr.bf16.mxu1 %v1491_v18  ;;  %v1403_v41 = vsel %vm1399_vm11, %v1390_v28, %v13291_v15  ;;  %3841 = vmatprep.subr.bf16.mxu0 %v11083_v33  ;;  %v1466_v63 = vmul.f32 %v10113_v19, %v1404_v8  ;;  %v1272_v18 = vmul.f32 %v13536_v7, %v1210_v34  ;;  %v911_v28 = vpop.permute.xlu0 %910  ;;  %v20720_v8 = vld [vmem:[#allocation5_spill] sm:$0xff] }
 0x14e   :  { %3842 = vmatpush1.bf16.msra.mxu0 %v11081_v31  ;;  %v1502_v42 = vpack.c.bf16 %v1175_v25, %v12059_v44  ;;  %v1369_v12 = vmul.f32 %v13540_v2, %v1307_v32  ;;  %v1467_v15 = vmul.f32 %v10114_v51, %v1403_v41  ;;  %v1515_v3 = vpack.c.bf16 %v1370_v57, %v1273_v6  ;;  %v20719_v51 = vld [vmem:[#allocation4_spill] sm:$0xff] }
 0x14f   :  { %v13583_v33 = vrot.slane %v13562_v30, %v20693_v62  ;;  %v1526_v19 = vpack.c.bf16 %v1466_v63, %v1466_v63  ;;  %v13587_v31 = vrot.slane %v13574_v40, %v20693_v62  ;;  %v13591_v34 = vrot.slane %v13562_v30, %v20691_v5  ;;  %v1008_v63 = vpop.permute.xlu1 %1007 }
 0x150   :  { %1699 = vmatpush1.bf16.msra.mxu1 %v1490_v4  ;;  %v13595_v4 = vrot.slane %v13574_v40, %v20691_v5  ;;  %v1514_v25 = vpack.c.bf16 %v1369_v12, %v1272_v18  ;;  %v818_v57 = vsel %vm817_vm4, %v814_v53, %v20719_v51  ;;  %v819_v6 = vsel %vm817_vm4, %v12867_v27, %v814_v53 }
 0x151   :  { %1700 = vmatprep.subr.bf16.mxu1 %v1503_v47  ;;  %20715 = vst [vmem:[#allocation45_spill] sm:$0xff] %v13583_v33  ;;  %20716 = vst [vmem:[#allocation32_spill] sm:$0xff] %v13587_v31  ;;  %v721_v32 = vsel %vm720_vm3, %v715_v58, %v20720_v8  ;;  %v1527_v47 = vpack.c.bf16 %v1467_v15, %v1467_v15  ;;  %v722_v41 = vsel %vm720_vm3, %v12811_v1, %v715_v58  ;;  %v1107_v12 = vpop.permute.xlu0 %1106 }
 0x152   :  { %20717 = vst [vmem:[#allocation33_spill] sm:$0xff] %v13591_v34  ;;  %20718 = vst [vmem:[#allocation34_spill] sm:$0xff] %v13595_v4  ;;  %v13611_v18 = vrot.slane %v13562_v30, %v20678_v48  ;;  %v13615_v44 = vrot.slane %v13574_v40, %v20678_v48  ;;  %v13619_v27 = vrot.slane %v13562_v30, %v12601_v13 }
 0x153   :  { %v888_v53 = vmul.f32 %v13583_v33, %v819_v6  ;;  %v792_v1 = vmul.f32 %v13595_v4, %v721_v32  ;;  %v13626_v58 = vrot.slane %v13574_v40, %v12601_v13  ;;  %v791_v15 = vmul.f32 %v13591_v34, %v722_v41 }
 0x154   :  { %1701 = vmatpush1.bf16.msra.mxu1 %v1502_v42  ;;  %20721 = vst [vmem:[#allocation35_spill] sm:$0xff] %v13611_v18  ;;  %20722 = vst [vmem:[#allocation36_spill] sm:$0xff] %v13615_v44  ;;  %v889_v42 = vmul.f32 %v13587_v31, %v818_v57  ;;  %v915_v51 = vsel %vm914_vm6, %v911_v28, %v20632_v46  ;;  %v1556_v57 = vsel %vm1536_vm12, %v1526_v19, 0 }
 0x155   :  { %1702 = vmatprep.subr.bf16.mxu1 %v1515_v3  ;;  %20723 = vst [vmem:[#allocation37_spill] sm:$0xff] %v13619_v27  ;;  %20724 = vst [vmem:[#allocation43_spill] sm:$0xff] %v13626_v58  ;;  %v1012_v3 = vsel %vm1011_vm7, %v1008_v63, %v20626_v60  ;;  %v1013_v6 = vsel %vm1011_vm7, %v13013_v29, %v1008_v63  ;;  %v916_v8 = vsel %vm914_vm6, %v12964_v49, %v911_v28 }
 0x156   :  { %v13645_v60 = vrot.slane %v13562_v30, %v12641_v61  ;;  %v1083_v32 = vmul.f32 %v13615_v44, %v1012_v3  ;;  %v986_v46 = vmul.f32 %v13626_v58, %v915_v51  ;;  %v13651_v19 = vrot.slane %v13574_v40, %v12641_v61  ;;  %v1301_v51 = vpop.permute.xlu0 %1300 }
 0x157   :  { %v1483_v29 = vpack.c.bf16 %v889_v42, %v792_v1  ;;  %v1482_v41 = vpack.c.bf16 %v888_v53, %v791_v15  ;;  %v1082_v63 = vmul.f32 %v13611_v18, %v1013_v6  ;;  %v985_v49 = vmul.f32 %v13619_v27, %v916_v8  ;;  %v20731_v6 = vld [vmem:[#allocation21_spill] sm:$0xff] }
 0x158   :  { %1703 = vmatpush1.bf16.msra.mxu1 %v1514_v25  ;;  %20725 = vst [vmem:[#allocation44_spill] sm:$0xff] %v13645_v60  ;;  %v1204_v25 = vpop.permute.xlu1 %1203  ;;  %20726 = vst [vmem:[#allocation38_spill] sm:$0xff] %v13651_v19  ;;  %v1120_v28 = vsel %vm1108_vm8, %v1107_v12, %v20642_v14  ;;  %v13663_v58 = vrot.slane %v13562_v30, %v20639_v50  ;;  %v13668_v42 = vrot.slane %v13562_v30, %v12657_v54 }
 0x159   :  { %10125 = vmatprep.subr.msk.bf16.mxu1 %vm1536_vm12, %v1527_v47  ;;  %v20727_v47 = vld [vmem:[#allocation79_spill] sm:$0xff]  ;;  %v1180_v53 = vmul.f32 %v13651_v19, %v1120_v28  ;;  %v13672_v14 = vrot.slane %v13574_v40, %v12657_v54  ;;  %v1495_v1 = vpack.c.bf16 %v1083_v32, %v986_v46  ;;  %v1314_v30 = vsel %vm1302_vm10, %v1301_v51, %v20731_v6 }
 0x15a   :  { %v1109_v3 = vsel %vm1108_vm8, %v20727_v47, %v1107_v12  ;;  %20728 = vst [vmem:[#allocation39_spill] sm:$0xff] %v13663_v58  ;;  %20729 = vst [vmem:[#allocation42_spill] sm:$0xff] %v13668_v42  ;;  %v1494_v12 = vpack.c.bf16 %v1082_v63, %v985_v49  ;;  %v13686_v8 = vrot.slane %v13574_v40, %v20639_v50  ;;  %v10118_v63 = vld [vmem:[%s19949_s18 + $0xb8] ss:$0 sm:$0xff] }
 0x15b   :  { %20730 = vst [vmem:[#allocation40_spill] sm:$0xff] %v13672_v14  ;;  %v1179_v15 = vmul.f32 %v13645_v60, %v1109_v3  ;;  %v1303_v46 = vsel %vm1302_vm10, %v13220_v59, %v1301_v51  ;;  %v12060_v49 = vld [vmem:[%s20516_s30 + $0x58] sm:$0xff]  ;;  %v20734_v3 = vld [vmem:[#allocation20_spill] sm:$0xff] }
 0x15c   :  { %1705 = vmatpush1.bf16.msra.mxu1 %v1556_v57  ;;  %v10117_v57 = vld [vmem:[%s19949_s18 + $0xb0] ss:$0 sm:$0xff]  ;;  %20732 = vst [vmem:[#allocation46_spill] sm:$0xff] %v13686_v8  ;;  %v1398_v32 = vpop.permute.xlu1 %1397  ;;  %v1507_v59 = vpack.c.bf16 %v1180_v53, %v12060_v49  ;;  %v11405_v60 = vld [vmem:[%s19950_s14 + $0x768] ss:$12 sps:$4 sm:$0xff]  }
 0x15d   :  { %1778 = vmatprep.subr.bf16.mxu1 %v1483_v29  ;;  %v20733_v29 = vld [vmem:[#allocation18_spill] sm:$0xff]  ;;  %v1400_v40 = vsel %vm1399_vm11, %v13344_v11, %v1398_v32  ;;  %v1411_v51 = vsel %vm1399_vm11, %v1398_v32, %v20734_v3  ;;  %v1373_v11 = vmul.f32 %v13668_v42, %v1303_v46  ;;  %v11089_v46 = vld [vmem:[%s19950_s14 + $0x7c] ss:$12 sps:$4 sm:$0xff]  }
 0x15e   :  { %v1470_v6 = vmul.f32 %v10117_v57, %v1400_v40  ;;  %v11086_v57 = vld [vmem:[%s19950_s14 + $0x64] ss:$12 sps:$4 sm:$0xff]   ;;  %v11084_v32 = vld [vmem:[%s19950_s14 + $0x60] ss:$12 sps:$4 sm:$0xff]   ;;  %v11100_v3 = vld [vmem:[%s19950_s14 + $0x8] ss:$12 sps:$4 sm:$0xff]  }
 0x15f   :  { %10126 = vmatmul.mubr.msk.bf16.vlgmr.msra.gmra.mrb[8].mxu1 %vm20181_vm13, %v13142_v24  ;;  %v1206_v24 = vsel %vm1205_vm9, %v13187_v17, %v1204_v25  ;;  %v1374_v17 = vmul.f32 %v13672_v14, %v1314_v30  ;;  %v1471_v30 = vmul.f32 %v10118_v63, %v1411_v51  ;;  %3843 = vmatprep.subr.bf16.mxu0 %v11086_v57  ;;  %v11092_v63 = vld [vmem:[%s19950_s14 + $0x94] ss:$12 sps:$4 sm:$0xff]   ;;  %v11090_v40 = vld [vmem:[%s19950_s14 + $0x90] ss:$12 sps:$4 sm:$0xff]  }
 0x160   :  { %1779 = vmatpush1.bf16.msra.mxu1 %v1482_v41  ;;  %1810 = vmatprep.mubr.bf16.mxu1 %v20600_v45  ;;  %v1217_v41 = vsel %vm1205_vm9, %v1204_v25, %v20733_v29  ;;  %v1276_v28 = vmul.f32 %v13663_v58, %v1206_v24  ;;  %v12061_v25 = vld [vmem:[%s20516_s30 + $0x50] sm:$0xff]  ;;  %v1530_v24 = vpack.c.bf16 %v1470_v6, %v1470_v6  ;;  %v11103_v51 = vld [vmem:[%s19950_s14 + $0xdc] ss:$12 sps:$4 sm:$0xff]   ;;  %v11105_v6 = vld [vmem:[%s19950_s14 + $0x20] ss:$12 sps:$4 sm:$0xff]  }
 0x161   :  { %1780 = vmatprep.subr.bf16.mxu1 %v1495_v1  ;;  %v1506_v47 = vpack.c.bf16 %v1179_v15, %v12061_v25  ;;  %v1277_v1 = vmul.f32 %v13686_v8, %v1217_v41  ;;  %v1531_v49 = vpack.c.bf16 %v1471_v30, %v1471_v30  ;;  %3844 = vmatpush1.bf16.msra.mxu0 %v11084_v32  ;;  %v11087_v41 = vld [vmem:[%s19950_s14 + $0x78] ss:$12 sps:$4 sm:$0xff]   ;;  %v11099_v25 = vld [vmem:[%s19950_s14 + $0xc8] ss:$12 sps:$4 sm:$0xff]   ;;  %v11115_v57 = vld [vmem:[%s19950_s14 + $0x50] ss:$12 sps:$4 sm:$0xff]  }
 0x162   :  { %v1518_v29 = vpack.c.bf16 %v1373_v11, %v1276_v28  ;;  %v1568_v15 = vsel %vm1536_vm12, %v1530_v24, 0  ;;  %3845 = vmatprep.subr.bf16.mxu0 %v11089_v46  ;;  %v11098_v28 = vld [vmem:[%s19950_s14 + $0xc4] ss:$12 sps:$4 sm:$0xff]   ;;  %v11104_v11 = vld [vmem:[%s19950_s14 + $0xe0] ss:$12 sps:$4 sm:$0xff]  }
 0x163   :  { %v1519_v53 = vpack.c.bf16 %v1374_v17, %v1277_v1  ;;  %v11095_v17 = vld [vmem:[%s19950_s14 + $0xac] ss:$12 sps:$4 sm:$0xff]   ;;  %v11108_v30 = vld [vmem:[%s19950_s14 + $0xf4] ss:$12 sps:$4 sm:$0xff]   ;;  %v11118_v32 = vld [vmem:[%s19950_s14 + $0x124] ss:$12 sps:$4 sm:$0xff]  }
 0x164   :  { %1781 = vmatpush1.bf16.msra.mxu1 %v1494_v12  ;;  %v12062_v12 = vld [vmem:[%s19951_s5] sm:$0xf]  ;;  %v11101_v1 = vld [vmem:[%s19950_s14 + $0xd8] ss:$12 sps:$4 sm:$0xff]   ;;  %v11119_v46 = vld [vmem:[%s19950_s14 + $0x128] ss:$12 sps:$4 sm:$0xff]  }
 0x165   :  { %1782 = vmatprep.subr.bf16.mxu1 %v1507_v59  ;;  %3846 = vmatpush1.bf16.msra.mxu0 %v11087_v41  ;;  %v11093_v59 = vld [vmem:[%s19950_s14 + $0xa8] ss:$12 sps:$4 sm:$0xff]   ;;  %v11110_v24 = vld [vmem:[%s19950_s14 + $0x38] ss:$12 sps:$4 sm:$0xff]   ;;  %v11116_v41 = vld [vmem:[%s19950_s14 + $0x120] ss:$12 sps:$4 sm:$0xff]  }
 0x166   :  { %3847 = vmatprep.subr.bf16.mxu0 %v11092_v63  ;;  %v11120_v63 = vld [vmem:[%s19950_s14 + $0x68] ss:$12 sps:$4 sm:$0xff]  }
 0x168   :  { %1783 = vmatpush1.bf16.msra.mxu1 %v1506_v47  ;;  %v11096_v47 = vld [vmem:[%s19950_s14 + $0xc0] ss:$12 sps:$4 sm:$0xff]  }
 0x169   :  { %1784 = vmatprep.subr.bf16.mxu1 %v1519_v53  ;;  %3848 = vmatpush1.bf16.msra.mxu0 %v11090_v40  ;;  %v11109_v53 = vld [vmem:[%s19950_s14 + $0xf8] ss:$12 sps:$4 sm:$0xff]   ;;  %v11123_v40 = vld [vmem:[%s19950_s14 + $0x13c] ss:$12 sps:$4 sm:$0xff]  }
 0x16a   :  { %3849 = vmatprep.subr.bf16.mxu0 %v11095_v17  ;;  %v11124_v17 = vld [vmem:[%s19950_s14 + $0x140] ss:$12 sps:$4 sm:$0xff]  }
 0x16c   :  { %1785 = vmatpush1.bf16.msra.mxu1 %v1518_v29  ;;  %v11106_v29 = vld [vmem:[%s19950_s14 + $0xf0] ss:$12 sps:$4 sm:$0xff]  }
 0x16d   :  { %10129 = vmatprep.subr.msk.bf16.mxu1 %vm1536_vm12, %v1531_v49  ;;  %3850 = vmatpush1.bf16.msra.mxu0 %v11093_v59  ;;  %v11113_v49 = vld [vmem:[%s19950_s14 + $0x10c] ss:$12 sps:$4 sm:$0xff]  }
 0x16e   :  { %3851 = vmatprep.subr.bf16.mxu0 %v11098_v28  ;;  %v11121_v59 = vld [vmem:[%s19950_s14 + $0x138] ss:$12 sps:$4 sm:$0xff]   ;;  %v11125_v28 = vld [vmem:[%s19950_s14 + $0x80] ss:$12 sps:$4 sm:$0xff]  }
 0x170   :  { %1787 = vmatpush1.bf16.msra.mxu1 %v1568_v15  ;;  %v11114_v15 = vld [vmem:[%s19950_s14 + $0x110] ss:$12 sps:$4 sm:$0xff]  }
 0x171   :  { %10792 = vmatprep.subr.bf16.mxu1 %v11099_v25  ;;  %3852 = vmatpush1.bf16.msra.mxu0 %v11096_v47  ;;  %v11128_v25 = vld [vmem:[%s19950_s14 + $0x154] ss:$12 sps:$4 sm:$0xff]   ;;  %v11129_v47 = vld [vmem:[%s19950_s14 + $0x158] ss:$12 sps:$4 sm:$0xff]  }
 0x172   :  { %3853 = vmatprep.subr.bf16.mxu0 %v11103_v51  ;;  %v11130_v51 = vld [vmem:[%s19950_s14 + $0x98] ss:$12 sps:$4 sm:$0xff]  }
 0x173   :  { %10130 = vmatmul.mubr.msk.bf16.vlgmr.msra.gmra.mrb[12].mxu1 %vm20181_vm13, %v12062_v12  ;;  %v11111_v12 = vld [vmem:[%s19950_s14 + $0x108] ss:$12 sps:$4 sm:$0xff]  }
 0x174   :  { %10793 = vmatpush3.bf16.msra.mxu1 %v11100_v3  ;;  %v11126_v3 = vld [vmem:[%s19950_s14 + $0x150] ss:$12 sps:$4 sm:$0xff]  }
 0x175   :  { %10794 = vmatprep.subr.bf16.mxu1 %v11104_v11  ;;  %3854 = vmatpush1.bf16.msra.mxu0 %v11101_v1  ;;  %v11133_v11 = vld [vmem:[%s19950_s14 + $0x16c] ss:$12 sps:$4 sm:$0xff]   ;;  %v11134_v1 = vld [vmem:[%s19950_s14 + $0x170] ss:$12 sps:$4 sm:$0xff]  }
 0x176   :  { %3855 = vmatprep.subr.bf16.mxu0 %v11108_v30  ;;  %v11135_v30 = vld [vmem:[%s19950_s14 + $0xb0] ss:$12 sps:$4 sm:$0xff]  }
 0x178   :  { %10795 = vmatpush3.bf16.msra.mxu1 %v11105_v6  ;;  %v11131_v6 = vld [vmem:[%s19950_s14 + $0x168] ss:$12 sps:$4 sm:$0xff]  }
 0x179   :  { %10796 = vmatprep.subr.bf16.mxu1 %v11109_v53  ;;  %3856 = vmatpush1.bf16.msra.mxu0 %v11106_v29  ;;  %v11138_v53 = vld [vmem:[%s19950_s14 + $0x184] ss:$12 sps:$4 sm:$0xff]   ;;  %v11139_v29 = vld [vmem:[%s19950_s14 + $0x248] ss:$12 sps:$4 sm:$0xff]  }
 0x17a   :  { %3857 = vmatprep.subr.bf16.mxu0 %v11113_v49 }
 0x17c   :  { %10797 = vmatpush3.bf16.msra.mxu1 %v11110_v24 }
 0x17d   :  { %10798 = vmatprep.subr.bf16.mxu1 %v11114_v15  ;;  %3858 = vmatpush1.bf16.msra.mxu0 %v11111_v12 }
 0x17e   :  { %3859 = vmatprep.subr.bf16.mxu0 %v11118_v32 }
 0x180   :  { %10799 = vmatpush3.bf16.msra.mxu1 %v11115_v57 }
 0x181   :  { %10800 = vmatprep.subr.bf16.mxu1 %v11119_v46  ;;  %3860 = vmatpush1.bf16.msra.mxu0 %v11116_v41 }
 0x182   :  { %3861 = vmatprep.subr.bf16.mxu0 %v11123_v40 }
 0x184   :  { %10801 = vmatpush3.bf16.msra.mxu1 %v11120_v63 }
 0x185   :  { %10802 = vmatprep.subr.bf16.mxu1 %v11124_v17  ;;  %3862 = vmatpush1.bf16.msra.mxu0 %v11121_v59 }
 0x186   :  { %3863 = vmatprep.subr.bf16.mxu0 %v11128_v25 }
 0x188   :  { %10803 = vmatpush3.bf16.msra.mxu1 %v11125_v28 }
 0x189   :  { %10804 = vmatprep.subr.bf16.mxu1 %v11129_v47  ;;  %3864 = vmatpush1.bf16.msra.mxu0 %v11126_v3 }
 0x18a   :  { %3865 = vmatprep.subr.bf16.mxu0 %v11133_v11 }
 0x18c   :  { %10805 = vmatpush3.bf16.msra.mxu1 %v11130_v51 }
 0x18d   :  { %10806 = vmatprep.subr.bf16.mxu1 %v11134_v1  ;;  %3866 = vmatpush1.bf16.msra.mxu0 %v11131_v6 }
 0x18e   :  { %3876 = vmatprep.subr.bf16.mxu0 %v11138_v53 }
 0x190   :  { %10807 = vmatpush3.bf16.msra.mxu1 %v11135_v30 }
 0x191   :  { %10814 = vmatprep.subr.bf16.mxu1 %v11139_v29 }
 0x1fa   :  { %v13848_v24 = vpop.f32.mrb[8].mxu0 }
 0x1fb   :  { %v13850_v49 = vpop.f32.mrb[9].mxu0 }
 0x1fc   :  { %v1693_v15 = vpop.f32.mrb[10].mxu0 }
 0x1fd   :  { %v1694_v12 = vpop.f32.mrb[11].mxu0 }
 0x20a   :  { %v1607_v57 = vpop.f32.mrb[0].mxu1 }
 0x20b   :  { %v10131_v32 = vmul.f32 -1.442695, %v1607_v57  ;;  %v1609_v46 = vpop.f32.mrb[1].mxu1 }
 0x20c   :  { %v10132_v41 = vmul.f32 -1.442695, %v1609_v46  ;;  %v1611_v63 = vpop.f32.mrb[2].mxu1 }
 0x20d   :  { %11906 = vpow2.f32 %v10131_v32  ;;  %v1612_v40 = vpop.f32.mrb[3].mxu1 }
 0x20e   :  { %11908 = vpow2.f32 %v10132_v41  ;;  %v10136_v41 = vmul.f32 -1.442695, %v13850_v49 }
 0x214   :  { %v13852_v17 = vpop.f32.mrb[12].mxu0 }
 0x215   :  { %v13854_v59 = vpop.f32.mrb[13].mxu0 }
 0x216   :  { %v1775_v28 = vpop.f32.mrb[14].mxu0  ;;  %v10140_v42 = vmul.f32 -1.442695, %v13854_v59 }
 0x217   :  { %v11907_v25 = vpop.eup %11906  ;;  %v1776_v47 = vpop.f32.mrb[15].mxu0 }
 0x218   :  { %v11909_v3 = vpop.eup %11908  ;;  %v1855_v51 = vadd.f32 1.0, %v11907_v25  ;;  %v11136_v25 = vld [vmem:[%s19950_s14 + $0x180] ss:$12 sps:$4 sm:$0xff]   ;;  %v11140_v47 = vld [vmem:[%s19950_s14 + $0x188] ss:$12 sps:$4 sm:$0xff]  }
 0x219   :  { %v1856_v11 = vadd.f32 1.0, %v11909_v3 }
 0x21a   :  { %11910 = vrcp.f32 %v1855_v51 }
 0x21b   :  { %11912 = vrcp.f32 %v1856_v11  ;;  %v11141_v11 = vld [vmem:[%s19950_s14 + $0x198] ss:$12 sps:$4 sm:$0xff]  }
 0x21e   :  { %v13856_v1 = vpop.f32.mrb[4].mxu1 }
 0x21f   :  { %v13858_v6 = vpop.f32.mrb[5].mxu1  ;;  %v10133_v15 = vmul.f32 -1.442695, %v13856_v1 }
 0x220   :  { %v10134_v30 = vmul.f32 -1.442695, %v13858_v6  ;;  %v1652_v53 = vpop.f32.mrb[6].mxu1 }
 0x221   :  { %v1653_v29 = vpop.f32.mrb[7].mxu1 }
 0x222   :  { %11914 = vpow2.f32 %v10134_v30  ;;  %v11145_v30 = vld [vmem:[%s19950_s14 + $0x1a0] ss:$12 sps:$4 sm:$0xff]  }
 0x223   :  { %11916 = vpow2.f32 %v10133_v15  ;;  %v11148_v29 = vld [vmem:[%s19950_s14 + $0x1b4] ss:$12 sps:$4 sm:$0xff]   ;;  %v11149_v15 = vld [vmem:[%s19950_s14 + $0x278] ss:$12 sps:$4 sm:$0xff]  }
 0x224   :  { %v11911_v12 = vpop.eup %11910  ;;  %11918 = vpow2.f32 %v10136_v41 }
 0x225   :  { %v11913_v32 = vpop.eup %11912  ;;  %v13863_v63 = vmul.f32 %v11911_v12, %v1607_v57  ;;  %v11143_v57 = vld [vmem:[%s19950_s14 + $0x19c] ss:$12 sps:$4 sm:$0xff]  }
 0x226   :  { %v13865_v40 = vmul.f32 %v11913_v32, %v1609_v46  ;;  %v11144_v46 = vld [vmem:[%s19950_s14 + $0x260] ss:$12 sps:$4 sm:$0xff]   ;;  %v11146_v12 = vld [vmem:[%s19950_s14 + $0x1b0] ss:$12 sps:$4 sm:$0xff]   ;;  %v11150_v32 = vld [vmem:[%s19950_s14 + $0x1b8] ss:$12 sps:$4 sm:$0xff]  }
 0x227   :  { %20735 = vst [vmem:[#allocation55_spill] sm:$0xff] %v13863_v63  ;;  %v1903_v3 = vpack.c.bf16 %v13863_v63, %v13863_v63 }
 0x228   :  { %20736 = vst [vmem:[#allocation78_spill] sm:$0xff] %v13865_v40  ;;  %v1904_v28 = vpack.c.bf16 %v13865_v40, %v13865_v40 }
 0x22a   :  { %3867 = vmatprep.mubr.bf16.mxu0 %v1904_v28  ;;  %4113 = vmatprep.mubr.bf16.mxu1 %v1904_v28  ;;  %v11153_v28 = vld [vmem:[%s19950_s14 + $0x1cc] ss:$12 sps:$4 sm:$0xff]  }
 0x22b   :  { %3868 = vmatmul.mubr.bf16.vlgmr.msra.gmra.mrb[20].mxu0 %v1903_v3  ;;  %4114 = vmatmul.mubr.bf16.vlgmr.msra.gmra.mrb[20].mxu1 %v1903_v3 }
 0x22c   :  { %v11915_v51 = vpop.eup %11914  ;;  %3877 = vmatpush1.bf16.msra.mxu0 %v11136_v25  ;;  %10815 = vmatpush3.bf16.msra.mxu1 %v11140_v47  ;;  %v11154_v25 = vld [vmem:[%s19950_s14 + $0x290] ss:$12 sps:$4 sm:$0xff]  }
 0x22d   :  { %v1858_v53 = vadd.f32 1.0, %v11915_v51  ;;  %3878 = vmatprep.subr.bf16.mxu0 %v11143_v57  ;;  %10816 = vmatprep.subr.bf16.mxu1 %v11144_v46  ;;  %v11917_v41 = vpop.eup %11916 }
 0x22e   :  { %v11919_v3 = vpop.eup %11918  ;;  %v1857_v46 = vadd.f32 1.0, %v11917_v41  ;;  %v11160_v41 = vld [vmem:[%s19950_s14 + $0x1e8] ss:$12 sps:$4 sm:$0xff]  }
 0x22f   :  { %11920 = vrcp.f32 %v1858_v53 }
 0x230   :  { %3879 = vmatpush1.bf16.msra.mxu0 %v11141_v11  ;;  %10817 = vmatpush3.bf16.msra.mxu1 %v11145_v30  ;;  %v11151_v11 = vld [vmem:[%s19950_s14 + $0x1c8] ss:$12 sps:$4 sm:$0xff]   ;;  %v11155_v30 = vld [vmem:[%s19950_s14 + $0x1d0] ss:$12 sps:$4 sm:$0xff]   ;;  %11922 = vrcp.f32 %v1857_v46 }
 0x231   :  { %3880 = vmatprep.subr.bf16.mxu0 %v11148_v29  ;;  %10818 = vmatprep.subr.bf16.mxu1 %v11149_v15  ;;  %v11158_v29 = vld [vmem:[%s19950_s14 + $0x1e4] ss:$12 sps:$4 sm:$0xff]   ;;  %v11159_v15 = vld [vmem:[%s19950_s14 + $0x2a8] ss:$12 sps:$4 sm:$0xff]  }
 0x232   :  { %v13907_v47 = vpop.f32.mrb[8].mxu1 }
 0x233   :  { %v13909_v57 = vpop.f32.mrb[9].mxu1 }
 0x234   :  { %3881 = vmatpush1.bf16.msra.mxu0 %v11146_v12  ;;  %10819 = vmatpush3.bf16.msra.mxu1 %v11150_v32  ;;  %v1734_v51 = vpop.f32.mrb[10].mxu1  ;;  %v1860_v12 = vadd.f32 1.0, %v11919_v3  ;;  %v11156_v32 = vld [vmem:[%s19950_s14 + $0x1e0] ss:$12 sps:$4 sm:$0xff]  }
 0x235   :  { %v1735_v53 = vpop.f32.mrb[11].mxu1  ;;  %3882 = vmatprep.subr.bf16.mxu0 %v11153_v28  ;;  %10820 = vmatprep.subr.bf16.mxu1 %v11154_v25  ;;  %v11163_v25 = vld [vmem:[%s19950_s14 + $0x1fc] ss:$12 sps:$4 sm:$0xff]   ;;  %v11164_v3 = vld [vmem:[%s19950_s14 + $0x2c0] ss:$12 sps:$4 sm:$0xff]  }
 0x236   :  { %11924 = vrcp.f32 %v1860_v12  ;;  %v11161_v51 = vld [vmem:[%s19950_s14 + $0x1f8] ss:$12 sps:$4 sm:$0xff]  }
 0x237   :  { %v11169_v53 = vld [vmem:[%s19950_s14 + $0x2d8] ss:$12 sps:$4 sm:$0xff]  }
 0x238   :  { %3883 = vmatpush1.bf16.msra.mxu0 %v11151_v11  ;;  %10821 = vmatpush3.bf16.msra.mxu1 %v11155_v30  ;;  %v11165_v30 = vld [vmem:[%s19950_s14 + $0x200] ss:$12 sps:$4 sm:$0xff]  }
 0x239   :  { %v11921_v28 = vpop.eup %11920  ;;  %3884 = vmatprep.subr.bf16.mxu0 %v11158_v29  ;;  %10822 = vmatprep.subr.bf16.mxu1 %v11159_v15  ;;  %v11166_v29 = vld [vmem:[%s19950_s14 + $0x210] ss:$12 sps:$4 sm:$0xff]   ;;  %v11170_v15 = vld [vmem:[%s19950_s14 + $0x218] ss:$12 sps:$4 sm:$0xff]  }
 0x23a   :  { %v13936_v46 = vmul.f32 %v11921_v28, %v13858_v6  ;;  %v11168_v6 = vld [vmem:[%s19950_s14 + $0x214] ss:$12 sps:$4 sm:$0xff]   ;;  %v11173_v12 = vld [vmem:[%s19950_s14 + $0x22c] ss:$12 sps:$4 sm:$0xff]   ;;  %v10135_v28 = vmul.f32 -1.442695, %v13848_v24 }
 0x23c   :  { %20737 = vst [vmem:[#allocation67_spill] sm:$0xff] %v13936_v46  ;;  %3885 = vmatpush1.bf16.msra.mxu0 %v11156_v32  ;;  %10823 = vmatpush3.bf16.msra.mxu1 %v11160_v41  ;;  %v1906_v11 = vpack.c.bf16 %v13936_v46, %v13936_v46  ;;  %v11174_v32 = vld [vmem:[%s19950_s14 + $0x2f0] ss:$12 sps:$4 sm:$0xff]   ;;  %v11923_v41 = vpop.eup %11922  ;;  %11926 = vpow2.f32 %v10135_v28 }
 0x23d   :  { %3886 = vmatprep.subr.bf16.mxu0 %v11163_v25  ;;  %10824 = vmatprep.subr.bf16.mxu1 %v11164_v3  ;;  %v11171_v3 = vld [vmem:[%s19950_s14 + $0x228] ss:$12 sps:$4 sm:$0xff]  }
 0x23e   :  { %3908 = vmatprep.mubr.bf16.mxu0 %v1906_v11  ;;  %4153 = vmatprep.mubr.bf16.mxu1 %v1906_v11  ;;  %v13972_v11 = vmul.f32 %v11923_v41, %v13856_v1  ;;  %v11180_v41 = vld [vmem:[%s19950_s14 + $0x308] ss:$12 sps:$4 sm:$0xff]  }
 0x23f   :  { %v11183_v28 = vld [vmem:[%s19950_s14 + $0x25c] ss:$12 sps:$4 sm:$0xff]  }
 0x240   :  { %3887 = vmatpush1.bf16.msra.mxu0 %v11161_v51  ;;  %10825 = vmatpush3.bf16.msra.mxu1 %v11165_v30  ;;  %v11925_v25 = vpop.eup %11924  ;;  %v11175_v51 = vld [vmem:[%s19950_s14 + $0x230] ss:$12 sps:$4 sm:$0xff]   ;;  %20738 = vst [vmem:[#allocation4_spill] sm:$0xff] %v13972_v11  ;;  %v10138_v30 = vmul.f32 -1.442695, %v13909_v57 }
 0x241   :  { %3888 = vmatprep.subr.bf16.mxu0 %v11168_v6  ;;  %10826 = vmatprep.subr.bf16.mxu1 %v11169_v53  ;;  %v11178_v6 = vld [vmem:[%s19950_s14 + $0x244] ss:$12 sps:$4 sm:$0xff]   ;;  %v11179_v53 = vld [vmem:[%s19950_s14 + $0x3c8] ss:$12 sps:$4 sm:$0xff]  }
 0x242   :  { %11928 = vpow2.f32 %v10138_v30  ;;  %v11188_v30 = vld [vmem:[%s19950_s14 + $0x274] ss:$12 sps:$4 sm:$0xff]  }
 0x244   :  { %3889 = vmatpush1.bf16.msra.mxu0 %v11166_v29  ;;  %10827 = vmatpush3.bf16.msra.mxu1 %v11170_v15  ;;  %v13984_v15 = vmul.f32 %v11925_v25, %v13850_v49  ;;  %v13996_v49 = vpack.c.bf16 %v13972_v11, %v13972_v11  ;;  %v11184_v25 = vld [vmem:[%s19950_s14 + $0x3e0] ss:$12 sps:$4 sm:$0xff]  }
 0x245   :  { %3890 = vmatprep.subr.bf16.mxu0 %v11173_v12  ;;  %10828 = vmatprep.subr.bf16.mxu1 %v11174_v32  ;;  %v11176_v32 = vld [vmem:[%s19950_s14 + $0x240] ss:$12 sps:$4 sm:$0xff]  }
 0x246   :  { %v13981_v29 = vpop.f32.mrb[12].mxu1  ;;  %20739 = vst [vmem:[#allocation5_spill] sm:$0xff] %v13984_v15 }
 0x247   :  { %v13986_v1 = vpop.f32.mrb[13].mxu1 }
 0x248   :  { %3891 = vmatpush1.bf16.msra.mxu0 %v11171_v3  ;;  %10829 = vmatpush3.bf16.msra.mxu1 %v11175_v51  ;;  %v1816_v12 = vpop.f32.mrb[14].mxu1  ;;  %v14007_v3 = vpack.c.bf16 %v13984_v15, %v13984_v15  ;;  %v11185_v51 = vld [vmem:[%s19950_s14 + $0x320] ss:$12 sps:$4 sm:$0xff]  }
 0x249   :  { %v1817_v58 = vpop.f32.mrb[15].mxu1  ;;  %3892 = vmatprep.subr.bf16.mxu0 %v11178_v6  ;;  %10836 = vmatprep.subr.bf16.mxu1 %v11179_v53  ;;  %v11189_v6 = vld [vmem:[%s19950_s14 + $0x3f8] ss:$12 sps:$4 sm:$0xff]   ;;  %v11186_v53 = vld [vmem:[%s19950_s14 + $0x270] ss:$12 sps:$4 sm:$0xff]  }
 0x24a   :  { %v11181_v58 = vld [vmem:[%s19950_s14 + $0x258] ss:$12 sps:$4 sm:$0xff]  }
 0x24b   :  { %4154 = vmatmul.mubr.bf16.vlgmr.msra.gmra.mrb[24].mxu1 %v13996_v49  ;;  %v11190_v12 = vld [vmem:[%s19950_s14 + $0x338] ss:$12 sps:$4 sm:$0xff]  }
 0x24c   :  { %3893 = vmatpush1.bf16.msra.mxu0 %v11176_v32  ;;  %10837 = vmatpush3.bf16.msra.mxu1 %v11180_v41  ;;  %v11927_v32 = vpop.eup %11926  ;;  %v11193_v41 = vld [vmem:[%s19950_s14 + $0x28c] ss:$12 sps:$4 sm:$0xff]  }
 0x24d   :  { %4193 = vmatprep.mubr.bf16.mxu1 %v14007_v3  ;;  %3894 = vmatprep.subr.bf16.mxu0 %v11183_v28  ;;  %v11194_v28 = vld [vmem:[%s19950_s14 + $0x410] ss:$12 sps:$4 sm:$0xff]  }
 0x24e   :  { %10838 = vmatprep.subr.bf16.mxu1 %v11184_v25  ;;  %v11929_v25 = vpop.eup %11928 }
 0x250   :  { %3895 = vmatpush1.bf16.msra.mxu0 %v11181_v58  ;;  %10839 = vmatpush3.bf16.msra.mxu1 %v11185_v51  ;;  %v1859_v58 = vadd.f32 1.0, %v11927_v32  ;;  %v11191_v51 = vld [vmem:[%s19950_s14 + $0x288] ss:$12 sps:$4 sm:$0xff]  }
 0x251   :  { %3896 = vmatprep.subr.bf16.mxu0 %v11188_v30  ;;  %10840 = vmatprep.subr.bf16.mxu1 %v11189_v6  ;;  %v11195_v30 = vld [vmem:[%s19950_s14 + $0x350] ss:$12 sps:$4 sm:$0xff]   ;;  %v11199_v32 = vld [vmem:[%s19950_s14 + $0x428] ss:$12 sps:$4 sm:$0xff]  }
 0x252   :  { %v11198_v6 = vld [vmem:[%s19950_s14 + $0x2a4] ss:$12 sps:$4 sm:$0xff]   ;;  %11930 = vrcp.f32 %v1859_v58 }
 0x253   :  { %v11201_v58 = vld [vmem:[%s19950_s14 + $0x2b8] ss:$12 sps:$4 sm:$0xff]  }
 0x254   :  { %3897 = vmatpush1.bf16.msra.mxu0 %v11186_v53  ;;  %10841 = vmatpush3.bf16.msra.mxu1 %v11190_v12  ;;  %v1862_v53 = vadd.f32 1.0, %v11929_v25  ;;  %v11196_v12 = vld [vmem:[%s19950_s14 + $0x2a0] ss:$12 sps:$4 sm:$0xff]  }
 0x255   :  { %3898 = vmatprep.subr.bf16.mxu0 %v11193_v41  ;;  %10842 = vmatprep.subr.bf16.mxu1 %v11194_v28  ;;  %v11200_v41 = vld [vmem:[%s19950_s14 + $0x368] ss:$12 sps:$4 sm:$0xff]   ;;  %v11204_v25 = vld [vmem:[%s19950_s14 + $0x440] ss:$12 sps:$4 sm:$0xff]  }
 0x256   :  { %v11203_v28 = vld [vmem:[%s19950_s14 + $0x2bc] ss:$12 sps:$4 sm:$0xff]   ;;  %11932 = vrcp.f32 %v1862_v53  ;;  %v11210_v53 = vld [vmem:[%s19950_s14 + $0x398] ss:$12 sps:$4 sm:$0xff]  }
 0x258   :  { %3899 = vmatpush1.bf16.msra.mxu0 %v11191_v51  ;;  %10843 = vmatpush3.bf16.msra.mxu1 %v11195_v30  ;;  %v11205_v51 = vld [vmem:[%s19950_s14 + $0x380] ss:$12 sps:$4 sm:$0xff]  }
 0x259   :  { %3900 = vmatprep.subr.bf16.mxu0 %v11198_v6  ;;  %10844 = vmatprep.subr.bf16.mxu1 %v11199_v32  ;;  %v11208_v30 = vld [vmem:[%s19950_s14 + $0x2d4] ss:$12 sps:$4 sm:$0xff]   ;;  %v11209_v6 = vld [vmem:[%s19950_s14 + $0x458] ss:$12 sps:$4 sm:$0xff]   ;;  %v11206_v32 = vld [vmem:[%s19950_s14 + $0x2d0] ss:$12 sps:$4 sm:$0xff]  }
 0x25c   :  { %3901 = vmatpush1.bf16.msra.mxu0 %v11196_v12  ;;  %10845 = vmatpush3.bf16.msra.mxu1 %v11200_v41  ;;  %v11213_v12 = vld [vmem:[%s19950_s14 + $0x2ec] ss:$12 sps:$4 sm:$0xff]   ;;  %v11214_v41 = vld [vmem:[%s19950_s14 + $0x470] ss:$12 sps:$4 sm:$0xff]  }
 0x25d   :  { %3902 = vmatprep.subr.bf16.mxu0 %v11203_v28  ;;  %10846 = vmatprep.subr.bf16.mxu1 %v11204_v25  ;;  %v11931_v28 = vpop.eup %11930 }
 0x260   :  { %3903 = vmatpush1.bf16.msra.mxu0 %v11201_v58  ;;  %10847 = vmatpush3.bf16.msra.mxu1 %v11205_v51  ;;  %v11933_v25 = vpop.eup %11932  ;;  %v10137_v58 = vmul.f32 -1.442695, %v13907_v47  ;;  %v11211_v51 = vld [vmem:[%s19950_s14 + $0x2e8] ss:$12 sps:$4 sm:$0xff]  }
 0x261   :  { %3904 = vmatprep.subr.bf16.mxu0 %v11208_v30  ;;  %10848 = vmatprep.subr.bf16.mxu1 %v11209_v6  ;;  %v11215_v30 = vld [vmem:[%s19950_s14 + $0x3b0] ss:$12 sps:$4 sm:$0xff]   ;;  %v14090_v6 = vmul.f32 %v11931_v28, %v13848_v24  ;;  %v14100_v8 = vmul.f32 %v11933_v25, %v13909_v57  ;;  %v11216_v24 = vld [vmem:[%s19950_s14 + $0x300] ss:$12 sps:$4 sm:$0xff]   ;;  %v11221_v25 = vld [vmem:[%s19950_s14 + $0x318] ss:$12 sps:$4 sm:$0xff]  }
 0x262   :  { %11934 = vpow2.f32 %v10137_v58  ;;  %v11223_v57 = vld [vmem:[%s19950_s14 + $0x31c] ss:$12 sps:$4 sm:$0xff]   ;;  %v11224_v28 = vld [vmem:[%s19950_s14 + $0x560] ss:$12 sps:$4 sm:$0xff]  }
 0x263   :  { %20740 = vst [vmem:[#allocation79_spill] sm:$0xff] %v14090_v6  ;;  %20741 = vst [vmem:[#allocation21_spill] sm:$0xff] %v14100_v8  ;;  %11936 = vpow2.f32 %v10140_v42  ;;  %v14122_v42 = vpack.c.bf16 %v14100_v8, %v14100_v8  ;;  %v11228_v58 = vld [vmem:[%s19950_s14 + $0x334] ss:$12 sps:$4 sm:$0xff]  }
 0x264   :  { %3905 = vmatpush1.bf16.msra.mxu0 %v11206_v32  ;;  %10849 = vmatpush3.bf16.msra.mxu1 %v11210_v53  ;;  %v11218_v32 = vld [vmem:[%s19950_s14 + $0x304] ss:$12 sps:$4 sm:$0xff]   ;;  %v11219_v53 = vld [vmem:[%s19950_s14 + $0x548] ss:$12 sps:$4 sm:$0xff]  }
 0x265   :  { %3906 = vmatprep.subr.bf16.mxu0 %v11213_v12  ;;  %10850 = vmatprep.subr.bf16.mxu1 %v11214_v41  ;;  %v14107_v12 = vpack.c.bf16 %v14090_v6, %v14090_v6  ;;  %v11220_v41 = vld [vmem:[%s19950_s14 + $0x488] ss:$12 sps:$4 sm:$0xff]  }
 0x268   :  { %3907 = vmatpush1.bf16.msra.mxu0 %v11211_v51  ;;  %10851 = vmatpush3.bf16.msra.mxu1 %v11215_v30  ;;  %v11226_v51 = vld [vmem:[%s19950_s14 + $0x330] ss:$12 sps:$4 sm:$0xff]   ;;  %v11230_v30 = vld [vmem:[%s19950_s14 + $0x4b8] ss:$12 sps:$4 sm:$0xff]  }
 0x269   :  { %3917 = vmatprep.subr.bf16.mxu0 %v11218_v32  ;;  %10858 = vmatprep.subr.bf16.mxu1 %v11219_v53  ;;  %v11233_v32 = vld [vmem:[%s19950_s14 + $0x34c] ss:$12 sps:$4 sm:$0xff]  }
 0x26b   :  { %3909 = vmatmul.mubr.bf16.vlgmr.msra.gmra.mrb[20].mxu0 %v13996_v49  ;;  %4194 = vmatmul.mubr.bf16.vlgmr.msra.gmra.mrb[28].mxu1 %v14107_v12  ;;  %v11225_v49 = vld [vmem:[%s19950_s14 + $0x4a0] ss:$12 sps:$4 sm:$0xff]  }
 0x26c   :  { %3918 = vmatpush1.bf16.msra.mxu0 %v11216_v24  ;;  %3949 = vmatprep.mubr.bf16.mxu0 %v14007_v3  ;;  %v11229_v3 = vld [vmem:[%s19950_s14 + $0x578] ss:$12 sps:$4 sm:$0xff]   ;;  %v11935_v53 = vpop.eup %11934  ;;  %v11234_v24 = vld [vmem:[%s19950_s14 + $0x590] ss:$12 sps:$4 sm:$0xff]  }
 0x26d   :  { %10859 = vmatpush3.bf16.msra.mxu1 %v11220_v41  ;;  %4233 = vmatprep.mubr.bf16.mxu1 %v14122_v42  ;;  %v11937_v41 = vpop.eup %11936 }
 0x26e   :  { %3919 = vmatprep.subr.bf16.mxu0 %v11223_v57  ;;  %10860 = vmatprep.subr.bf16.mxu1 %v11224_v28  ;;  %v11231_v57 = vld [vmem:[%s19950_s14 + $0x348] ss:$12 sps:$4 sm:$0xff]   ;;  %v1861_v28 = vadd.f32 1.0, %v11935_v53  ;;  %v11244_v53 = vld [vmem:[%s19950_s14 + $0x5c0] ss:$12 sps:$4 sm:$0xff]  }
 0x270   :  { %3920 = vmatpush1.bf16.msra.mxu0 %v11221_v25  ;;  %v11235_v25 = vld [vmem:[%s19950_s14 + $0x4d0] ss:$12 sps:$4 sm:$0xff]   ;;  %11938 = vrcp.f32 %v1861_v28  ;;  %v11249_v28 = vld [vmem:[%s19950_s14 + $0x5d8] ss:$12 sps:$4 sm:$0xff]  }
 0x271   :  { %10861 = vmatpush3.bf16.msra.mxu1 %v11225_v49  ;;  %3921 = vmatprep.subr.bf16.mxu0 %v11228_v58  ;;  %v11238_v49 = vld [vmem:[%s19950_s14 + $0x364] ss:$12 sps:$4 sm:$0xff]   ;;  %v1864_v58 = vadd.f32 1.0, %v11937_v41  ;;  %v11245_v41 = vld [vmem:[%s19950_s14 + $0x500] ss:$12 sps:$4 sm:$0xff]  }
 0x272   :  { %10862 = vmatprep.subr.bf16.mxu1 %v11229_v3  ;;  %v11239_v3 = vld [vmem:[%s19950_s14 + $0x5a8] ss:$12 sps:$4 sm:$0xff]  }
 0x273   :  { %11940 = vrcp.f32 %v1864_v58  ;;  %v11253_v58 = vld [vmem:[%s19950_s14 + $0x3ac] ss:$12 sps:$4 sm:$0xff]  }
 0x274   :  { %3922 = vmatpush1.bf16.msra.mxu0 %v11226_v51  ;;  %v11236_v51 = vld [vmem:[%s19950_s14 + $0x360] ss:$12 sps:$4 sm:$0xff]  }
 0x275   :  { %10863 = vmatpush3.bf16.msra.mxu1 %v11230_v30  ;;  %3923 = vmatprep.subr.bf16.mxu0 %v11233_v32  ;;  %v11240_v30 = vld [vmem:[%s19950_s14 + $0x4e8] ss:$12 sps:$4 sm:$0xff]  }
 0x276   :  { %10864 = vmatprep.subr.bf16.mxu1 %v11234_v24  ;;  %v11243_v32 = vld [vmem:[%s19950_s14 + $0x37c] ss:$12 sps:$4 sm:$0xff]   ;;  %v11241_v24 = vld [vmem:[%s19950_s14 + $0x378] ss:$12 sps:$4 sm:$0xff]  }
 0x278   :  { %3924 = vmatpush1.bf16.msra.mxu0 %v11231_v57  ;;  %v11248_v57 = vld [vmem:[%s19950_s14 + $0x394] ss:$12 sps:$4 sm:$0xff]  }
 0x279   :  { %10865 = vmatpush3.bf16.msra.mxu1 %v11235_v25  ;;  %3925 = vmatprep.subr.bf16.mxu0 %v11238_v49  ;;  %v11246_v25 = vld [vmem:[%s19950_s14 + $0x390] ss:$12 sps:$4 sm:$0xff]   ;;  %v11250_v49 = vld [vmem:[%s19950_s14 + $0x518] ss:$12 sps:$4 sm:$0xff]  }
 0x27a   :  { %10866 = vmatprep.subr.bf16.mxu1 %v11239_v3  ;;  %v11254_v3 = vld [vmem:[%s19950_s14 + $0x5f0] ss:$12 sps:$4 sm:$0xff]  }
 0x27c   :  { %3926 = vmatpush1.bf16.msra.mxu0 %v11236_v51  ;;  %v11939_v51 = vpop.eup %11938 }
 0x27d   :  { %10867 = vmatpush3.bf16.msra.mxu1 %v11240_v30  ;;  %3927 = vmatprep.subr.bf16.mxu0 %v11243_v32  ;;  %v11941_v30 = vpop.eup %11940  ;;  %v10139_v32 = vmul.f32 -1.442695, %v13852_v17 }
 0x27e   :  { %10868 = vmatprep.subr.bf16.mxu1 %v11244_v53  ;;  %v11251_v53 = vld [vmem:[%s19950_s14 + $0x3a8] ss:$12 sps:$4 sm:$0xff]  }
 0x27f   :  { %11942 = vpow2.f32 %v10139_v32  ;;  %v11261_v32 = vld [vmem:[%s19950_s14 + $0x3d8] ss:$12 sps:$4 sm:$0xff]  }
 0x280   :  { %3928 = vmatpush1.bf16.msra.mxu0 %v11241_v24  ;;  %v11255_v24 = vld [vmem:[%s19950_s14 + $0x530] ss:$12 sps:$4 sm:$0xff]  }
 0x281   :  { %10869 = vmatpush3.bf16.msra.mxu1 %v11245_v41  ;;  %3929 = vmatprep.subr.bf16.mxu0 %v11248_v57  ;;  %v11258_v41 = vld [vmem:[%s19950_s14 + $0x3c4] ss:$12 sps:$4 sm:$0xff]   ;;  %v14209_v57 = vmul.f32 %v11939_v51, %v13907_v47  ;;  %v11260_v47 = vld [vmem:[%s19950_s14 + $0x608] ss:$12 sps:$4 sm:$0xff]   ;;  %v11264_v51 = vld [vmem:[%s19950_s14 + $0x6e0] ss:$12 sps:$4 sm:$0xff]  }
 0x282   :  { %10870 = vmatprep.subr.bf16.mxu1 %v11249_v28  ;;  %v10142_v28 = vmul.f32 -1.442695, %v13986_v1 }
 0x283   :  { %20742 = vst [vmem:[#allocation18_spill] sm:$0xff] %v14209_v57 }
 0x284   :  { %3930 = vmatpush1.bf16.msra.mxu0 %v11246_v25  ;;  %v11259_v25 = vld [vmem:[%s19950_s14 + $0x6c8] ss:$12 sps:$4 sm:$0xff]   ;;  %11944 = vpow2.f32 %v10142_v28  ;;  %v11266_v28 = vld [vmem:[%s19950_s14 + $0x3f0] ss:$12 sps:$4 sm:$0xff]  }
 0x285   :  { %10871 = vmatpush3.bf16.msra.mxu1 %v11250_v49  ;;  %3931 = vmatprep.subr.bf16.mxu0 %v11253_v58  ;;  %v14216_v49 = vmul.f32 %v11941_v30, %v13854_v59  ;;  %v11256_v58 = vld [vmem:[%s19950_s14 + $0x3c0] ss:$12 sps:$4 sm:$0xff]   ;;  %v11263_v59 = vld [vmem:[%s19950_s14 + $0x3dc] ss:$12 sps:$4 sm:$0xff]  }
 0x286   :  { %10872 = vmatprep.subr.bf16.mxu1 %v11254_v3  ;;  %v14226_v3 = vpack.c.bf16 %v14209_v57, %v14209_v57 }
 0x287   :  { %20743 = vst [vmem:[#allocation20_spill] sm:$0xff] %v14216_v49  ;;  %v14236_v30 = vpack.c.bf16 %v14216_v49, %v14216_v49 }
 0x288   :  { %3932 = vmatpush1.bf16.msra.mxu0 %v11251_v53  ;;  %v11265_v53 = vld [vmem:[%s19950_s14 + $0x620] ss:$12 sps:$4 sm:$0xff]  }
 0x289   :  { %10873 = vmatpush3.bf16.msra.mxu1 %v11255_v24  ;;  %3933 = vmatprep.subr.bf16.mxu0 %v11258_v41  ;;  %v11268_v24 = vld [vmem:[%s19950_s14 + $0x3f4] ss:$12 sps:$4 sm:$0xff]   ;;  %v11269_v41 = vld [vmem:[%s19950_s14 + $0x6f8] ss:$12 sps:$4 sm:$0xff]  }
 0x28a   :  { %10880 = vmatprep.subr.bf16.mxu1 %v11259_v25  ;;  %v11270_v25 = vld [vmem:[%s19950_s14 + $0x638] ss:$12 sps:$4 sm:$0xff]  }
 0x28c   :  { %4234 = vmatmul.mubr.bf16.vlgmr.msra.gmra.mrb[32].mxu1 %v14226_v3  ;;  %3934 = vmatpush1.bf16.msra.mxu0 %v11256_v58  ;;  %v11273_v58 = vld [vmem:[%s19950_s14 + $0x40c] ss:$12 sps:$4 sm:$0xff]  }
 0x28d   :  { %10881 = vmatpush3.bf16.msra.mxu1 %v11260_v47  ;;  %4273 = vmatprep.mubr.bf16.mxu1 %v14236_v30  ;;  %v11943_v47 = vpop.eup %11942 }
 0x28e   :  { %3935 = vmatprep.subr.bf16.mxu0 %v11263_v59  ;;  %10882 = vmatprep.subr.bf16.mxu1 %v11264_v51  ;;  %v11274_v59 = vld [vmem:[%s19950_s14 + $0x710] ss:$12 sps:$4 sm:$0xff]   ;;  %v11945_v51 = vpop.eup %11944 }
 0x28f   :  { %v1866_v14 = vadd.f32 1.0, %v11945_v51  ;;  %v11281_v51 = vld [vmem:[%s19950_s14 + $0x438] ss:$12 sps:$4 sm:$0xff]  }
 0x290   :  { %3936 = vmatpush1.bf16.msra.mxu0 %v11261_v32  ;;  %v11271_v32 = vld [vmem:[%s19950_s14 + $0x408] ss:$12 sps:$4 sm:$0xff]  }
 0x291   :  { %10883 = vmatpush3.bf16.msra.mxu1 %v11265_v53  ;;  %3937 = vmatprep.subr.bf16.mxu0 %v11268_v24  ;;  %v1863_v53 = vadd.f32 1.0, %v11943_v47  ;;  %v11275_v24 = vld [vmem:[%s19950_s14 + $0x650] ss:$12 sps:$4 sm:$0xff]  }
 0x292   :  { %10884 = vmatprep.subr.bf16.mxu1 %v11269_v41  ;;  %v11278_v41 = vld [vmem:[%s19950_s14 + $0x424] ss:$12 sps:$4 sm:$0xff]   ;;  %v11283_v47 = vld [vmem:[%s19950_s14 + $0x43c] ss:$12 sps:$4 sm:$0xff]  }
 0x293   :  { %11946 = vrcp.f32 %v1863_v53  ;;  %v11288_v53 = vld [vmem:[%s19950_s14 + $0x454] ss:$12 sps:$4 sm:$0xff]  }
 0x294   :  { %3938 = vmatpush1.bf16.msra.mxu0 %v11266_v28  ;;  %v11279_v28 = vld [vmem:[%s19950_s14 + $0x728] ss:$12 sps:$4 sm:$0xff]   ;;  %11948 = vrcp.f32 %v1866_v14  ;;  %v11289_v14 = vld [vmem:[%s19950_s14 + $0x758] ss:$12 sps:$4 sm:$0xff]  }
 0x295   :  { %10885 = vmatpush3.bf16.msra.mxu1 %v11270_v25  ;;  %3939 = vmatprep.subr.bf16.mxu0 %v11273_v58  ;;  %v11276_v25 = vld [vmem:[%s19950_s14 + $0x420] ss:$12 sps:$4 sm:$0xff]   ;;  %v11280_v58 = vld [vmem:[%s19950_s14 + $0x668] ss:$12 sps:$4 sm:$0xff]  }
 0x296   :  { %10886 = vmatprep.subr.bf16.mxu1 %v11274_v59  ;;  %v11284_v59 = vld [vmem:[%s19950_s14 + $0x740] ss:$12 sps:$4 sm:$0xff]  }
 0x298   :  { %3940 = vmatpush1.bf16.msra.mxu0 %v11271_v32  ;;  %v11285_v32 = vld [vmem:[%s19950_s14 + $0x680] ss:$12 sps:$4 sm:$0xff]  }
 0x299   :  { %10887 = vmatpush3.bf16.msra.mxu1 %v11275_v24  ;;  %3941 = vmatprep.subr.bf16.mxu0 %v11278_v41  ;;  %v11286_v24 = vld [vmem:[%s19950_s14 + $0x450] ss:$12 sps:$4 sm:$0xff]   ;;  %v11290_v41 = vld [vmem:[%s19950_s14 + $0x698] ss:$12 sps:$4 sm:$0xff]  }
 0x29a   :  { %10888 = vmatprep.subr.bf16.mxu1 %v11279_v28  ;;  %v11293_v28 = vld [vmem:[%s19950_s14 + $0x46c] ss:$12 sps:$4 sm:$0xff]  }
 0x29c   :  { %3942 = vmatpush1.bf16.msra.mxu0 %v11276_v25  ;;  %v11294_v25 = vld [vmem:[%s19950_s14 + $0x770] ss:$12 sps:$4 sm:$0xff]  }
 0x29d   :  { %10889 = vmatpush3.bf16.msra.mxu1 %v11280_v58  ;;  %3943 = vmatprep.subr.bf16.mxu0 %v11283_v47  ;;  %v11947_v58 = vpop.eup %11946  ;;  %v10141_v47 = vmul.f32 -1.442695, %v13981_v29 }
 0x29e   :  { %10890 = vmatprep.subr.bf16.mxu1 %v11284_v59  ;;  %v11291_v59 = vld [vmem:[%s19950_s14 + $0x468] ss:$12 sps:$4 sm:$0xff]  }
 0x29f   :  { %11950 = vpow2.f32 %v10141_v47 }
 0x2a0   :  { %3944 = vmatpush1.bf16.msra.mxu0 %v11281_v51  ;;  %v11949_v51 = vpop.eup %11948 }
 0x2a1   :  { %10891 = vmatpush3.bf16.msra.mxu1 %v11285_v32  ;;  %3945 = vmatprep.subr.bf16.mxu0 %v11288_v53  ;;  %v11295_v32 = vld [vmem:[%s19950_s14 + $0x6b0] ss:$12 sps:$4 sm:$0xff]  }
 0x2a2   :  { %10892 = vmatprep.subr.bf16.mxu1 %v11289_v14  ;;  %v11298_v53 = vld [vmem:[%s19950_s14 + $0x484] ss:$12 sps:$4 sm:$0xff]   ;;  %v14323_v14 = vmul.f32 %v11947_v58, %v13852_v17  ;;  %v11300_v17 = vld [vmem:[%s19950_s14 + $0x788] ss:$12 sps:$4 sm:$0xff]   ;;  %v11304_v58 = vld [vmem:[%s19950_s14 + $0x860] ss:$12 sps:$4 sm:$0xff]  }
 0x2a4   :  { %3946 = vmatpush1.bf16.msra.mxu0 %v11286_v24  ;;  %20744 = vst [vmem:[#allocation96_spill] sm:$0xff] %v14323_v14  ;;  %v11299_v24 = vld [vmem:[%s19950_s14 + $0x848] ss:$12 sps:$4 sm:$0xff]  }
 0x2a5   :  { %10893 = vmatpush3.bf16.msra.mxu1 %v11290_v41  ;;  %3947 = vmatprep.subr.bf16.mxu0 %v11293_v28  ;;  %v14329_v41 = vmul.f32 %v11949_v51, %v13986_v1  ;;  %v11296_v28 = vld [vmem:[%s19950_s14 + $0x480] ss:$12 sps:$4 sm:$0xff]   ;;  %v11303_v1 = vld [vmem:[%s19950_s14 + $0x49c] ss:$12 sps:$4 sm:$0xff]  }
 0x2a6   :  { %10894 = vmatprep.subr.bf16.mxu1 %v11294_v25  ;;  %v14339_v25 = vpack.c.bf16 %v14323_v14, %v14323_v14  ;;  %v11308_v51 = vld [vmem:[%s19950_s14 + $0x4b4] ss:$12 sps:$4 sm:$0xff]  }
 0x2a7   :  { %20745 = vst [vmem:[#allocation97_spill] sm:$0xff] %v14329_v41  ;;  %v14351_v47 = vpack.c.bf16 %v14329_v41, %v14329_v41 }
 0x2a8   :  { %3948 = vmatpush1.bf16.msra.mxu0 %v11291_v59  ;;  %v11301_v59 = vld [vmem:[%s19950_s14 + $0x498] ss:$12 sps:$4 sm:$0xff]  }
 0x2a9   :  { %10895 = vmatpush3.bf16.msra.mxu1 %v11295_v32  ;;  %3958 = vmatprep.subr.bf16.mxu0 %v11298_v53  ;;  %v11309_v32 = vld [vmem:[%s19950_s14 + $0x878] ss:$12 sps:$4 sm:$0xff]  }
 0x2aa   :  { %10902 = vmatprep.subr.bf16.mxu1 %v11299_v24  ;;  %v11310_v53 = vld [vmem:[%s19950_s14 + $0x7b8] ss:$12 sps:$4 sm:$0xff]  }
 0x2ab   :  { %3950 = vmatmul.mubr.bf16.vlgmr.msra.gmra.mrb[20].mxu0 %v14107_v12  ;;  %v11305_v12 = vld [vmem:[%s19950_s14 + $0x7a0] ss:$12 sps:$4 sm:$0xff]  }
 0x2ac   :  { %4274 = vmatmul.mubr.bf16.vlgmr.msra.gmra.mrb[36].mxu1 %v14339_v25  ;;  %3959 = vmatpush1.bf16.msra.mxu0 %v11296_v28  ;;  %v11313_v24 = vld [vmem:[%s19950_s14 + $0x4cc] ss:$12 sps:$4 sm:$0xff]   ;;  %v11951_v28 = vpop.eup %11950 }
 0x2ad   :  { %3990 = vmatprep.mubr.bf16.mxu0 %v14122_v42  ;;  %10903 = vmatpush3.bf16.msra.mxu1 %v11300_v17  ;;  %v11306_v42 = vld [vmem:[%s19950_s14 + $0x4b0] ss:$12 sps:$4 sm:$0xff]  }
 0x2ae   :  { %4313 = vmatprep.mubr.bf16.mxu1 %v14351_v47  ;;  %3960 = vmatprep.subr.bf16.mxu0 %v11303_v1  ;;  %v11314_v17 = vld [vmem:[%s19950_s14 + $0x890] ss:$12 sps:$4 sm:$0xff]   ;;  %v11311_v1 = vld [vmem:[%s19950_s14 + $0x4c8] ss:$12 sps:$4 sm:$0xff]  }
 0x2af   :  { %10904 = vmatprep.subr.bf16.mxu1 %v11304_v58  ;;  %v1865_v58 = vadd.f32 1.0, %v11951_v28  ;;  %v11321_v28 = vld [vmem:[%s19950_s14 + $0x4f8] ss:$12 sps:$4 sm:$0xff]  }
 0x2b0   :  { %3961 = vmatpush1.bf16.msra.mxu0 %v11301_v59  ;;  %v11315_v59 = vld [vmem:[%s19950_s14 + $0x7d0] ss:$12 sps:$4 sm:$0xff]  }
 0x2b1   :  { %10905 = vmatpush3.bf16.msra.mxu1 %v11305_v12  ;;  %3962 = vmatprep.subr.bf16.mxu0 %v11308_v51  ;;  %v11318_v12 = vld [vmem:[%s19950_s14 + $0x4e4] ss:$12 sps:$4 sm:$0xff]   ;;  %v11319_v51 = vld [vmem:[%s19950_s14 + $0x8a8] ss:$12 sps:$4 sm:$0xff]   ;;  %11952 = vrcp.f32 %v1865_v58 }
 0x2b2   :  { %10906 = vmatprep.subr.bf16.mxu1 %v11309_v32  ;;  %v11316_v32 = vld [vmem:[%s19950_s14 + $0x4e0] ss:$12 sps:$4 sm:$0xff]   ;;  %v11329_v58 = vld [vmem:[%s19950_s14 + $0x8d8] ss:$12 sps:$4 sm:$0xff]  }
 0x2b4   :  { %3963 = vmatpush1.bf16.msra.mxu0 %v11306_v42  ;;  %v11320_v42 = vld [vmem:[%s19950_s14 + $0x7e8] ss:$12 sps:$4 sm:$0xff]  }
 0x2b5   :  { %10907 = vmatpush3.bf16.msra.mxu1 %v11310_v53  ;;  %3964 = vmatprep.subr.bf16.mxu0 %v11313_v24  ;;  %v11323_v53 = vld [vmem:[%s19950_s14 + $0x4fc] ss:$12 sps:$4 sm:$0xff]   ;;  %v11324_v24 = vld [vmem:[%s19950_s14 + $0x8c0] ss:$12 sps:$4 sm:$0xff]  }
 0x2b6   :  { %10908 = vmatprep.subr.bf16.mxu1 %v11314_v17  ;;  %v11325_v17 = vld [vmem:[%s19950_s14 + $0x800] ss:$12 sps:$4 sm:$0xff]  }
 0x2b8   :  { %3965 = vmatpush1.bf16.msra.mxu0 %v11311_v1  ;;  %v11328_v1 = vld [vmem:[%s19950_s14 + $0x514] ss:$12 sps:$4 sm:$0xff]  }
 0x2b9   :  { %10909 = vmatpush3.bf16.msra.mxu1 %v11315_v59  ;;  %3966 = vmatprep.subr.bf16.mxu0 %v11318_v12  ;;  %v11326_v59 = vld [vmem:[%s19950_s14 + $0x510] ss:$12 sps:$4 sm:$0xff]   ;;  %v11330_v12 = vld [vmem:[%s19950_s14 + $0x818] ss:$12 sps:$4 sm:$0xff]  }
 0x2ba   :  { %10910 = vmatprep.subr.bf16.mxu1 %v11319_v51  ;;  %v11333_v51 = vld [vmem:[%s19950_s14 + $0x52c] ss:$12 sps:$4 sm:$0xff]  }
 0x2bc   :  { %3967 = vmatpush1.bf16.msra.mxu0 %v11316_v32  ;;  %v11334_v32 = vld [vmem:[%s19950_s14 + $0x8f0] ss:$12 sps:$4 sm:$0xff]  }
 0x2bd   :  { %10911 = vmatpush3.bf16.msra.mxu1 %v11320_v42  ;;  %3968 = vmatprep.subr.bf16.mxu0 %v11323_v53  ;;  %v11953_v42 = vpop.eup %11952  ;;  %v11331_v53 = vld [vmem:[%s19950_s14 + $0x528] ss:$12 sps:$4 sm:$0xff]  }
 0x2be   :  { %10912 = vmatprep.subr.bf16.mxu1 %v11324_v24  ;;  %v11335_v24 = vld [vmem:[%s19950_s14 + $0x830] ss:$12 sps:$4 sm:$0xff]  }
 0x2c0   :  { %3969 = vmatpush1.bf16.msra.mxu0 %v11321_v28  ;;  %v11338_v28 = vld [vmem:[%s19950_s14 + $0x544] ss:$12 sps:$4 sm:$0xff]  }
 0x2c1   :  { %10913 = vmatpush3.bf16.msra.mxu1 %v11325_v17  ;;  %3970 = vmatprep.subr.bf16.mxu0 %v11328_v1  ;;  %v14437_v17 = vmul.f32 %v11953_v42, %v13981_v29  ;;  %v11336_v1 = vld [vmem:[%s19950_s14 + $0x540] ss:$12 sps:$4 sm:$0xff]   ;;  %v11339_v29 = vld [vmem:[%s19950_s14 + $0x558] ss:$12 sps:$4 sm:$0xff]  }
 0x2c2   :  { %10914 = vmatprep.subr.bf16.mxu1 %v11329_v58  ;;  %v11341_v58 = vld [vmem:[%s19950_s14 + $0x55c] ss:$12 sps:$4 sm:$0xff]   ;;  %v11347_v42 = vld [vmem:[%s19950_s14 + $0x58c] ss:$12 sps:$4 sm:$0xff]  }
 0x2c3   :  { %20746 = vst [vmem:[#allocation98_spill] sm:$0xff] %v14437_v17 }
 0x2c4   :  { %3971 = vmatpush1.bf16.msra.mxu0 %v11326_v59  ;;  %v14447_v59 = vpack.c.bf16 %v14437_v17, %v14437_v17 }
 0x2c5   :  { %10915 = vmatpush3.bf16.msra.mxu1 %v11330_v12  ;;  %3972 = vmatprep.subr.bf16.mxu0 %v11333_v51  ;;  %v20747_v12 = vmov 0.0   ;;  %v11344_v51 = vld [vmem:[%s19950_s14 + $0x574] ss:$12 sps:$4 sm:$0xff]  }
 0x2c6   :  { %10916 = vmatprep.subr.bf16.mxu1 %v11334_v32  ;;  %v11342_v32 = vld [vmem:[%s19950_s14 + $0x570] ss:$12 sps:$4 sm:$0xff]  }
 0x2c8   :  { %3973 = vmatpush1.bf16.msra.mxu0 %v11331_v53  ;;  %v11345_v53 = vld [vmem:[%s19950_s14 + $0x588] ss:$12 sps:$4 sm:$0xff]  }
 0x2c9   :  { %10917 = vmatpush3.bf16.msra.mxu1 %v11335_v24  ;;  %3974 = vmatprep.subr.bf16.mxu0 %v11338_v28  ;;  %v11350_v24 = vld [vmem:[%s19950_s14 + $0x5a4] ss:$12 sps:$4 sm:$0xff]   ;;  %v11348_v28 = vld [vmem:[%s19950_s14 + $0x5a0] ss:$12 sps:$4 sm:$0xff]  }
 0x2ca   :  { %10947 = vmatprep.subr.bf16.mxu1 %v20747_v12 }
 0x2cc   :  { %4314 = vmatmul.mubr.bf16.vlgmr.msra.gmra.mrb[40].mxu1 %v14447_v59  ;;  %3975 = vmatpush1.bf16.msra.mxu0 %v11336_v1  ;;  %v11353_v1 = vld [vmem:[%s19950_s14 + $0x5bc] ss:$12 sps:$4 sm:$0xff]  }
 0x2cd   :  { %3976 = vmatprep.subr.bf16.mxu0 %v11341_v58  ;;  %10957 = vmatprep.mubr.msk.bf16.mxu1 %vm12101_vm0, %v20747_v12  ;;  %v11351_v58 = vld [vmem:[%s19950_s14 + $0x5b8] ss:$12 sps:$4 sm:$0xff]   ;;  %vm4379_vm0 = vcmp.lt.s32.totalorder %v12595_v0, 7 }
 0x2d0   :  { %3977 = vmatpush1.bf16.msra.mxu0 %v11339_v29  ;;  %v11356_v29 = vld [vmem:[%s19950_s14 + $0x5d4] ss:$12 sps:$4 sm:$0xff]  }
 0x2d1   :  { %3978 = vmatprep.subr.bf16.mxu0 %v11344_v51  ;;  %v11354_v51 = vld [vmem:[%s19950_s14 + $0x5d0] ss:$12 sps:$4 sm:$0xff]  }
 0x2d4   :  { %3979 = vmatpush1.bf16.msra.mxu0 %v11342_v32  ;;  %v11359_v32 = vld [vmem:[%s19950_s14 + $0x5ec] ss:$12 sps:$4 sm:$0xff]  }
 0x2d5   :  { %3980 = vmatprep.subr.bf16.mxu0 %v11347_v42  ;;  %v11357_v42 = vld [vmem:[%s19950_s14 + $0x5e8] ss:$12 sps:$4 sm:$0xff]  }
 0x2d8   :  { %3981 = vmatpush1.bf16.msra.mxu0 %v11345_v53  ;;  %v11362_v53 = vld [vmem:[%s19950_s14 + $0x604] ss:$12 sps:$4 sm:$0xff]  }
 0x2d9   :  { %3982 = vmatprep.subr.bf16.mxu0 %v11350_v24  ;;  %v11360_v24 = vld [vmem:[%s19950_s14 + $0x600] ss:$12 sps:$4 sm:$0xff]  }
 0x2dc   :  { %3983 = vmatpush1.bf16.msra.mxu0 %v11348_v28  ;;  %v11365_v28 = vld [vmem:[%s19950_s14 + $0x61c] ss:$12 sps:$4 sm:$0xff]  }
 0x2dd   :  { %3984 = vmatprep.subr.bf16.mxu0 %v11353_v1  ;;  %v11363_v1 = vld [vmem:[%s19950_s14 + $0x618] ss:$12 sps:$4 sm:$0xff]  }
 0x2e0   :  { %3985 = vmatpush1.bf16.msra.mxu0 %v11351_v58  ;;  %v11368_v58 = vld [vmem:[%s19950_s14 + $0x634] ss:$12 sps:$4 sm:$0xff]  }
 0x2e1   :  { %3986 = vmatprep.subr.bf16.mxu0 %v11356_v29  ;;  %v11366_v29 = vld [vmem:[%s19950_s14 + $0x630] ss:$12 sps:$4 sm:$0xff]  }
 0x2e4   :  { %3987 = vmatpush1.bf16.msra.mxu0 %v11354_v51  ;;  %v11374_v51 = vld [vmem:[%s19950_s14 + $0x664] ss:$12 sps:$4 sm:$0xff]  }
 0x2e5   :  { %3988 = vmatprep.subr.bf16.mxu0 %v11359_v32  ;;  %v11372_v32 = vld [vmem:[%s19950_s14 + $0x660] ss:$12 sps:$4 sm:$0xff]  }
 0x2e8   :  { %3989 = vmatpush1.bf16.msra.mxu0 %v11357_v42  ;;  %v11377_v42 = vld [vmem:[%s19950_s14 + $0x67c] ss:$12 sps:$4 sm:$0xff]  }
 0x2e9   :  { %3999 = vmatprep.subr.bf16.mxu0 %v11362_v53  ;;  %v11375_v53 = vld [vmem:[%s19950_s14 + $0x678] ss:$12 sps:$4 sm:$0xff]  }
 0x2eb   :  { %3991 = vmatmul.mubr.bf16.vlgmr.msra.gmra.mrb[20].mxu0 %v14226_v3  ;;  %v11371_v3 = vld [vmem:[%s19950_s14 + $0x64c] ss:$12 sps:$4 sm:$0xff]  }
 0x2ec   :  { %4000 = vmatpush1.bf16.msra.mxu0 %v11360_v24  ;;  %4031 = vmatprep.mubr.bf16.mxu0 %v14236_v30  ;;  %v11369_v30 = vld [vmem:[%s19950_s14 + $0x648] ss:$12 sps:$4 sm:$0xff]  }
 0x2ed   :  { %4001 = vmatprep.subr.bf16.mxu0 %v11365_v28  ;;  %v11380_v24 = vld [vmem:[%s19950_s14 + $0x694] ss:$12 sps:$4 sm:$0xff]  }
 0x2f0   :  { %4002 = vmatpush1.bf16.msra.mxu0 %v11363_v1 }
 0x2f1   :  { %4003 = vmatprep.subr.bf16.mxu0 %v11368_v58 }
 0x2f4   :  { %4004 = vmatpush1.bf16.msra.mxu0 %v11366_v29 }
 0x2f5   :  { %4005 = vmatprep.subr.bf16.mxu0 %v11371_v3  ;;  %v11378_v3 = vld [vmem:[%s19950_s14 + $0x690] ss:$12 sps:$4 sm:$0xff]  }
 0x2f8   :  { %4006 = vmatpush1.bf16.msra.mxu0 %v11369_v30 }
 0x2f9   :  { %4007 = vmatprep.subr.bf16.mxu0 %v11374_v51  ;;  %v11383_v51 = vld [vmem:[%s19950_s14 + $0x6ac] ss:$12 sps:$4 sm:$0xff]  }
 0x2fc   :  { %4008 = vmatpush1.bf16.msra.mxu0 %v11372_v32  ;;  %v11381_v32 = vld [vmem:[%s19950_s14 + $0x6a8] ss:$12 sps:$4 sm:$0xff]  }
 0x2fd   :  { %4009 = vmatprep.subr.bf16.mxu0 %v11377_v42  ;;  %v11386_v42 = vld [vmem:[%s19950_s14 + $0x6c4] ss:$12 sps:$4 sm:$0xff]  }
 0x2fe   :  { %v10808_v28 = vpop.f32.mrb[20].mxu1 }
 0x2ff   :  { %v10809_v1 = vpop.f32.mrb[21].mxu1 }
 0x300   :  { %4010 = vmatpush1.bf16.msra.mxu0 %v11375_v53  ;;  %v10810_v58 = vadd.f32 %v10809_v1, %v10808_v28  ;;  %v10811_v29 = vpop.f32.mrb[22].mxu1  ;;  %v11384_v53 = vld [vmem:[%s19950_s14 + $0x6c0] ss:$12 sps:$4 sm:$0xff]   ;;  %v11387_v28 = vld [vmem:[%s19950_s14 + $0x6d8] ss:$12 sps:$4 sm:$0xff]  }
 0x301   :  { %v10812_v30 = vpop.f32.mrb[23].mxu1  ;;  %4011 = vmatprep.subr.bf16.mxu0 %v11380_v24  ;;  %v11389_v24 = vld [vmem:[%s19950_s14 + $0x6dc] ss:$12 sps:$4 sm:$0xff]   ;;  %v11392_v1 = vld [vmem:[%s19950_s14 + $0x6f4] ss:$12 sps:$4 sm:$0xff]  }
 0x302   :  { %v11390_v29 = vld [vmem:[%s19950_s14 + $0x6f0] ss:$12 sps:$4 sm:$0xff]   ;;  %v11393_v30 = vld [vmem:[%s19950_s14 + $0x708] ss:$12 sps:$4 sm:$0xff]  }
 0x304   :  { %4012 = vmatpush1.bf16.msra.mxu0 %v11378_v3  ;;  %v11395_v3 = vld [vmem:[%s19950_s14 + $0x70c] ss:$12 sps:$4 sm:$0xff]  }
 0x305   :  { %4013 = vmatprep.subr.bf16.mxu0 %v11383_v51  ;;  %v11398_v51 = vld [vmem:[%s19950_s14 + $0x724] ss:$12 sps:$4 sm:$0xff]  }
 0x308   :  { %4014 = vmatpush1.bf16.msra.mxu0 %v11381_v32  ;;  %v11396_v32 = vld [vmem:[%s19950_s14 + $0x720] ss:$12 sps:$4 sm:$0xff]  }
 0x309   :  { %4015 = vmatprep.subr.bf16.mxu0 %v11386_v42  ;;  %v11401_v42 = vld [vmem:[%s19950_s14 + $0x73c] ss:$12 sps:$4 sm:$0xff]  }
 0x30c   :  { %4016 = vmatpush1.bf16.msra.mxu0 %v11384_v53  ;;  %v11399_v53 = vld [vmem:[%s19950_s14 + $0x738] ss:$12 sps:$4 sm:$0xff]  }
 0x30d   :  { %4017 = vmatprep.subr.bf16.mxu0 %v11389_v24  ;;  %v11404_v24 = vld [vmem:[%s19950_s14 + $0x754] ss:$12 sps:$4 sm:$0xff]  }
 0x310   :  { %4018 = vmatpush1.bf16.msra.mxu0 %v11387_v28 }
 0x311   :  { %4019 = vmatprep.subr.bf16.mxu0 %v11392_v1 }
 0x314   :  { %4020 = vmatpush1.bf16.msra.mxu0 %v11390_v29 }
 0x315   :  { %4021 = vmatprep.subr.bf16.mxu0 %v11395_v3 }
 0x318   :  { %4022 = vmatpush1.bf16.msra.mxu0 %v11393_v30  ;;  %v11402_v30 = vld [vmem:[%s19950_s14 + $0x750] ss:$12 sps:$4 sm:$0xff]  }
 0x319   :  { %4023 = vmatprep.subr.bf16.mxu0 %v11398_v51 }
 0x31c   :  { %4024 = vmatpush1.bf16.msra.mxu0 %v11396_v32  ;;  %v11407_v32 = vld [vmem:[%s19950_s14 + $0x76c] ss:$12 sps:$4 sm:$0xff]  }
 0x31d   :  { %4025 = vmatprep.subr.bf16.mxu0 %v11401_v42 }
 0x31e   :  { %v10830_v28 = vpop.f32.mrb[24].mxu1 }
 0x31f   :  { %v10831_v1 = vpop.f32.mrb[25].mxu1 }
 0x320   :  { %v10832_v29 = vadd.f32 %v10831_v1, %v10830_v28  ;;  %4026 = vmatpush1.bf16.msra.mxu0 %v11399_v53  ;;  %v10833_v3 = vpop.f32.mrb[26].mxu1  ;;  %v11410_v53 = vld [vmem:[%s19950_s14 + $0x784] ss:$12 sps:$4 sm:$0xff]  }
 0x321   :  { %v10834_v51 = vpop.f32.mrb[27].mxu1  ;;  %4027 = vmatprep.subr.bf16.mxu0 %v11404_v24  ;;  %v11408_v24 = vld [vmem:[%s19950_s14 + $0x780] ss:$12 sps:$4 sm:$0xff]   ;;  %v11411_v28 = vld [vmem:[%s19950_s14 + $0x798] ss:$12 sps:$4 sm:$0xff]  }
 0x322   :  { %v4156_v42 = vadd.f32 %v10832_v29, %v10810_v58  ;;  %v11413_v58 = vld [vmem:[%s19950_s14 + $0x79c] ss:$12 sps:$4 sm:$0xff]   ;;  %v11422_v29 = vld [vmem:[%s19950_s14 + $0x7e4] ss:$12 sps:$4 sm:$0xff]   ;;  %v11420_v3 = vld [vmem:[%s19950_s14 + $0x7e0] ss:$12 sps:$4 sm:$0xff]  }
 0x323   :  { %v11414_v1 = vld [vmem:[%s19950_s14 + $0x7b0] ss:$12 sps:$4 sm:$0xff]   ;;  %v11423_v51 = vld [vmem:[%s19950_s14 + $0x7f8] ss:$12 sps:$4 sm:$0xff]  }
 0x324   :  { %4028 = vmatpush1.bf16.msra.mxu0 %v11402_v30  ;;  %v11425_v30 = vld [vmem:[%s19950_s14 + $0x7fc] ss:$12 sps:$4 sm:$0xff]  }
 0x325   :  { %4029 = vmatprep.subr.bf16.mxu0 %v11407_v32  ;;  %v11428_v32 = vld [vmem:[%s19950_s14 + $0x814] ss:$12 sps:$4 sm:$0xff]  }
 0x328   :  { %4030 = vmatpush1.bf16.msra.mxu0 %v11405_v60  ;;  %v11416_v60 = vld [vmem:[%s19950_s14 + $0x7b4] ss:$12 sps:$4 sm:$0xff]  }
 0x329   :  { %4040 = vmatprep.subr.bf16.mxu0 %v11410_v53 }
 0x32b   :  { %4032 = vmatmul.mubr.bf16.vlgmr.msra.gmra.mrb[20].mxu0 %v14339_v25  ;;  %v11419_v25 = vld [vmem:[%s19950_s14 + $0x7cc] ss:$12 sps:$4 sm:$0xff]  }
 0x32c   :  { %4041 = vmatpush1.bf16.msra.mxu0 %v11408_v24  ;;  %4072 = vmatprep.mubr.bf16.mxu0 %v14351_v47  ;;  %v11417_v47 = vld [vmem:[%s19950_s14 + $0x7c8] ss:$12 sps:$4 sm:$0xff]  }
 0x32d   :  { %4042 = vmatprep.subr.bf16.mxu0 %v11413_v58 }
 0x330   :  { %4043 = vmatpush1.bf16.msra.mxu0 %v11411_v28 }
 0x331   :  { %4044 = vmatprep.subr.bf16.mxu0 %v11416_v60  ;;  %v11426_v60 = vld [vmem:[%s19950_s14 + $0x810] ss:$12 sps:$4 sm:$0xff]  }
 0x334   :  { %4045 = vmatpush1.bf16.msra.mxu0 %v11414_v1 }
 0x335   :  { %4046 = vmatprep.subr.bf16.mxu0 %v11419_v25  ;;  %v11431_v25 = vld [vmem:[%s19950_s14 + $0x82c] ss:$12 sps:$4 sm:$0xff]  }
 0x338   :  { %4047 = vmatpush1.bf16.msra.mxu0 %v11417_v47 }
 0x339   :  { %4048 = vmatprep.subr.bf16.mxu0 %v11422_v29  ;;  %v11429_v29 = vld [vmem:[%s19950_s14 + $0x828] ss:$12 sps:$4 sm:$0xff]  }
 0x33c   :  { %4049 = vmatpush1.bf16.msra.mxu0 %v11420_v3  ;;  %v11434_v3 = vld [vmem:[%s19950_s14 + $0x844] ss:$12 sps:$4 sm:$0xff]  }
 0x33d   :  { %4050 = vmatprep.subr.bf16.mxu0 %v11425_v30  ;;  %v11432_v30 = vld [vmem:[%s19950_s14 + $0x840] ss:$12 sps:$4 sm:$0xff]  }
 0x33e   :  { %v10852_v53 = vpop.f32.mrb[28].mxu1 }
 0x33f   :  { %v10853_v24 = vpop.f32.mrb[29].mxu1 }
 0x340   :  { %v10854_v58 = vadd.f32 %v10853_v24, %v10852_v53  ;;  %4051 = vmatpush1.bf16.msra.mxu0 %v11423_v51  ;;  %v10855_v28 = vpop.f32.mrb[30].mxu1  ;;  %v11435_v51 = vld [vmem:[%s19950_s14 + $0x858] ss:$12 sps:$4 sm:$0xff]   ;;  %v11438_v53 = vld [vmem:[%s19950_s14 + $0x870] ss:$12 sps:$4 sm:$0xff]  }
 0x341   :  { %v10856_v1 = vpop.f32.mrb[31].mxu1  ;;  %4052 = vmatprep.subr.bf16.mxu0 %v11428_v32  ;;  %v11440_v32 = vld [vmem:[%s19950_s14 + $0x874] ss:$12 sps:$4 sm:$0xff]   ;;  %v11443_v24 = vld [vmem:[%s19950_s14 + $0x88c] ss:$12 sps:$4 sm:$0xff]  }
 0x342   :  { %v4196_v47 = vadd.f32 %v10854_v58, %v4156_v42  ;;  %v11437_v42 = vld [vmem:[%s19950_s14 + $0x85c] ss:$12 sps:$4 sm:$0xff]   ;;  %v11446_v28 = vld [vmem:[%s19950_s14 + $0x8a4] ss:$12 sps:$4 sm:$0xff]  }
 0x343   :  { %v11441_v58 = vld [vmem:[%s19950_s14 + $0x888] ss:$12 sps:$4 sm:$0xff]  }
 0x344   :  { %4053 = vmatpush1.bf16.msra.mxu0 %v11426_v60  ;;  %v11444_v60 = vld [vmem:[%s19950_s14 + $0x8a0] ss:$12 sps:$4 sm:$0xff]   ;;  %v11449_v1 = vld [vmem:[%s19950_s14 + $0x8bc] ss:$12 sps:$4 sm:$0xff]  }
 0x345   :  { %4054 = vmatprep.subr.bf16.mxu0 %v11431_v25  ;;  %v11447_v25 = vld [vmem:[%s19950_s14 + $0x8b8] ss:$12 sps:$4 sm:$0xff]  }
 0x348   :  { %4055 = vmatpush1.bf16.msra.mxu0 %v11429_v29  ;;  %v11452_v29 = vld [vmem:[%s19950_s14 + $0x8d4] ss:$12 sps:$4 sm:$0xff]  }
 0x349   :  { %4056 = vmatprep.subr.bf16.mxu0 %v11434_v3 }
 0x34c   :  { %4057 = vmatpush1.bf16.msra.mxu0 %v11432_v30 }
 0x34d   :  { %4058 = vmatprep.subr.bf16.mxu0 %v11437_v42  ;;  %v11450_v42 = vld [vmem:[%s19950_s14 + $0x8d0] ss:$12 sps:$4 sm:$0xff]  }
 0x350   :  { %4059 = vmatpush1.bf16.msra.mxu0 %v11435_v51 }
 0x351   :  { %4060 = vmatprep.subr.bf16.mxu0 %v11440_v32 }
 0x354   :  { %4061 = vmatpush1.bf16.msra.mxu0 %v11438_v53  ;;  %v11455_v53 = vld [vmem:[%s19950_s14 + $0x8ec] ss:$12 sps:$4 sm:$0xff]  }
 0x355   :  { %4062 = vmatprep.subr.bf16.mxu0 %v11443_v24 }
 0x358   :  { %4063 = vmatpush1.bf16.msra.mxu0 %v11441_v58 }
 0x359   :  { %4064 = vmatprep.subr.bf16.mxu0 %v11446_v28  ;;  %v11453_v28 = vld [vmem:[%s19950_s14 + $0x8e8] ss:$12 sps:$4 sm:$0xff]   ;;  %s12110_s14 = smov 8  }
 0x35c   :  { %4065 = vmatpush1.bf16.msra.mxu0 %v11444_v60 }
 0x35d   :  { %4066 = vmatprep.subr.bf16.mxu0 %v11449_v1 }
 0x35f   :  { %v10874_v3 = vpop.f32.mrb[32].mxu1 }
 0x360   :  { %v10875_v30 = vpop.f32.mrb[33].mxu1  ;;  %4067 = vmatpush1.bf16.msra.mxu0 %v11447_v25 }
 0x361   :  { %v10876_v51 = vadd.f32 %v10875_v30, %v10874_v3  ;;  %v10877_v32 = vpop.f32.mrb[34].mxu1  ;;  %4068 = vmatprep.subr.bf16.mxu0 %v11452_v29 }
 0x362   :  { %v10878_v24 = vpop.f32.mrb[35].mxu1 }
 0x363   :  { %v4236_v58 = vadd.f32 %v10876_v51, %v4196_v47 }
 0x364   :  { %4069 = vmatpush1.bf16.msra.mxu0 %v11450_v42 }
 0x365   :  { %4070 = vmatprep.subr.bf16.mxu0 %v11455_v53 }
 0x368   :  { %4071 = vmatpush1.bf16.msra.mxu0 %v11453_v28 }
 0x36b   :  { %4073 = vmatmul.mubr.bf16.vlgmr.msra.gmra.mrb[20].mxu0 %v14447_v59 }
 0x36c   :  { %4585 = vmatprep.mubr.bf16.mxu0 %v20600_v45 }
 0x37f   :  { %v10896_v60 = vpop.f32.mrb[36].mxu1 }
 0x380   :  { %v10897_v1 = vpop.f32.mrb[37].mxu1 }
 0x381   :  { %v10898_v25 = vadd.f32 %v10897_v1, %v10896_v60  ;;  %v10899_v29 = vpop.f32.mrb[38].mxu1 }
 0x382   :  { %v10900_v3 = vpop.f32.mrb[39].mxu1 }
 0x383   :  { %v4276_v30 = vadd.f32 %v10898_v25, %v4236_v58 }
 0x39f   :  { %v10918_v32 = vpop.f32.mrb[40].mxu1 }
 0x3a0   :  { %v10919_v24 = vpop.f32.mrb[41].mxu1 }
 0x3a1   :  { %v10920_v47 = vadd.f32 %v10919_v24, %v10918_v32  ;;  %v10921_v42 = vpop.f32.mrb[42].mxu1 }
 0x3a2   :  { %v10922_v51 = vpop.f32.mrb[43].mxu1  ;;  %v14755_v42 = vld [vmem:[%s19953_s19 + $0x8] sm:$0xff] }
 0x3a3   :  { %v14690_v27 = vadd.f32 %v10920_v47, %v4276_v30  ;;  %v14761_v51 = vld [vmem:[%s19953_s19 + $0x10] sm:$0xff]  ;;  %v14779_v44 = vrot.slane %v14755_v42, %v20691_v5  ;;  %v14785_v4 = vrot.slane %v14755_v42, %v20693_v62 }
 0x3a4   :  { %v14771_v18 = vrot.slane %v14761_v51, %v20691_v5  ;;  %v14789_v31 = vrot.slane %v14761_v51, %v20693_v62  ;;  %v14874_v43 = vrot.slane %v14761_v51, %v20639_v50 }
 0x3a5   :  { %4352 = vrot.lane.b32.xlu1 %v14690_v27, %s12110_s14  ;;  %4327 = vrot.lane.b32.xlu0 %v14690_v27, %s12111_s16 }
 0x3a6   :  { %20748 = vst [vmem:[#allocation99_spill] sm:$0xff] %v14771_v18  ;;  %20749 = vst [vmem:[#allocation100_spill] sm:$0xff] %v14789_v31 }
 0x3a7   :  { %20753 = vst [vmem:[#allocation104_spill] sm:$0xff] %v14874_v43 }
 0x3a9   :  { %4402 = vrot.lane.b32.xlu1 %v14690_v27, %s12105_s25  ;;  %4377 = vrot.lane.b32.xlu0 %v14690_v27, %s12112_s23 }
 0x3ad   :  { %4426 = vrot.lane.b32.xlu1 %v14690_v27, %s12106_s26  ;;  %4450 = vrot.lane.b32.xlu0 %v14690_v27, %s12113_s4 }
 0x3b1   :  { %4475 = vrot.lane.b32.xlu0 %v14690_v27, %s12114_s27 }
 0x417   :  { %v4328_v60 = vpop.permute.xlu0 %4327  ;;  %v4353_v1 = vpop.permute.xlu1 %4352 }
 0x41b   :  { %v4378_v25 = vpop.permute.xlu0 %4377  ;;  %v4403_v29 = vpop.permute.xlu1 %4402 }
 0x41f   :  { %v14744_v3 = vpop.permute.xlu0 %4450  ;;  %v14746_v30 = vpop.permute.xlu1 %4426 }
 0x423   :  { %v14748_v32 = vpop.permute.xlu0 %4475 }
 0x43e   :  { %v14706_v59 = vpop.f32.mrb[20].mxu0 }
 0x43f   :  { %v14708_v53 = vpop.f32.mrb[21].mxu0  ;;  %4446 = vrot.lane.b32.xlu1 %v14706_v59, %s12113_s4  ;;  %4323 = vrot.lane.b32.xlu0 %v14706_v59, %s12111_s16 }
 0x440   :  { %v4078_v58 = vpop.f32.mrb[22].mxu0 }
 0x441   :  { %v4079_v28 = vpop.f32.mrb[23].mxu0  ;;  %v14766_v58 = vld [vmem:[%s19953_s19] sm:$0xff] }
 0x442   :  { %v14775_v34 = vrot.slane %v14766_v58, %v20693_v62  ;;  %v14793_v7 = vrot.slane %v14766_v58, %v20691_v5 }
 0x443   :  { %4325 = vrot.lane.b32.xlu1 %v14708_v53, %s12111_s16  ;;  %4348 = vrot.lane.b32.xlu0 %v14706_v59, %s12110_s14 }
 0x447   :  { %4350 = vrot.lane.b32.xlu1 %v14708_v53, %s12110_s14  ;;  %4373 = vrot.lane.b32.xlu0 %v14706_v59, %s12112_s23 }
 0x44b   :  { %4375 = vrot.lane.b32.xlu1 %v14708_v53, %s12112_s23  ;;  %4398 = vrot.lane.b32.xlu0 %v14706_v59, %s12105_s25 }
 0x44f   :  { %4400 = vrot.lane.b32.xlu1 %v14708_v53, %s12105_s25  ;;  %4422 = vrot.lane.b32.xlu0 %v14706_v59, %s12106_s26 }
 0x453   :  { %4496 = vrot.lane.b32.xlu1 %v14706_v59, %s12115_s28  ;;  %4424 = vrot.lane.b32.xlu0 %v14708_v53, %s12106_s26 }
 0x457   :  { %4448 = vrot.lane.b32.xlu1 %v14708_v53, %s12113_s4  ;;  %4471 = vrot.lane.b32.xlu0 %v14706_v59, %s12114_s27 }
 0x45b   :  { %4473 = vrot.lane.b32.xlu1 %v14708_v53, %s12114_s27  ;;  %4498 = vrot.lane.b32.xlu0 %v14708_v53, %s12115_s28 }
 0x45f   :  { %4500 = vrot.lane.b32.xlu1 %v14690_v27, %s12115_s28 }
 0x4b1   :  { %v14750_v24 = vpop.permute.xlu1 %4446  ;;  %v4324_v47 = vpop.permute.xlu0 %4323 }
 0x4b2   :  { %v4332_v9 = vsel %vm4329_vm15, %v4328_v60, %v4324_v47 }
 0x4b5   :  { %v4326_v28 = vpop.permute.xlu1 %4325  ;;  %v4349_v19 = vpop.permute.xlu0 %4348 }
 0x4b6   :  { %v4357_v33 = vsel %vm4354_vm14, %v4353_v1, %v4349_v19  ;;  %v4330_v2 = vsel %vm4329_vm15, %v4326_v28, %v4328_v60  ;;  %v4331_v23 = vsel %vm4329_vm15, %v4324_v47, %v4326_v28  ;;  %v4345_v60 = vmul.f32 %v14793_v7, %v4332_v9 }
 0x4b7   :  { %v4370_v22 = vmul.f32 %v14775_v34, %v4357_v33  ;;  %v4346_v56 = vmul.f32 %v14779_v44, %v4331_v23  ;;  %v4347_v35 = vmul.f32 %v14771_v18, %v4330_v2  ;;  %v14818_v23 = vrot.slane %v14761_v51, %v12601_v13 }
 0x4b8   :  { %v14822_v2 = vrot.slane %v14766_v58, %v20678_v48 }
 0x4b9   :  { %v4351_v55 = vpop.permute.xlu1 %4350  ;;  %v4374_v21 = vpop.permute.xlu0 %4373  ;;  %20750 = vst [vmem:[#allocation101_spill] sm:$0xff] %v14818_v23 }
 0x4ba   :  { %v4355_v62 = vsel %vm4354_vm14, %v4351_v55, %v4353_v1  ;;  %v4356_v5 = vsel %vm4354_vm14, %v4349_v19, %v4351_v55  ;;  %v4521_v1 = vpack.c.bf16 %v4370_v22, %v4345_v60  ;;  %v14814_v55 = vrot.slane %v14755_v42, %v12601_v13 }
 0x4bb   :  { %v4371_v39 = vmul.f32 %v14785_v4, %v4356_v5  ;;  %v4372_v28 = vmul.f32 %v14789_v31, %v4355_v62  ;;  %v14836_v22 = vrot.slane %v14766_v58, %v12601_v13  ;;  %v14851_v13 = vrot.slane %v14766_v58, %v12641_v61 }
 0x4bd   :  { %v4523_v47 = vpack.c.bf16 %v4372_v28, %v4347_v35  ;;  %v4376_v33 = vpop.permute.xlu1 %4375  ;;  %v4399_v26 = vpop.permute.xlu0 %4398  ;;  %v4522_v36 = vpack.c.bf16 %v4371_v39, %v4346_v56  ;;  %v14828_v39 = vrot.slane %v14755_v42, %v20678_v48  ;;  %v14832_v56 = vrot.slane %v14761_v51, %v20678_v48 }
 0x4be   :  { %v4406_v35 = vsel %vm1011_vm7, %v4403_v29, %v4399_v26  ;;  %v4380_v9 = vsel %vm4379_vm0, %v4376_v33, %v4378_v25  ;;  %v4381_v19 = vsel %vm4379_vm0, %v4374_v21, %v4376_v33  ;;  %v14847_v48 = vrot.slane %v14761_v51, %v12641_v61 }
 0x4bf   :  { %4553 = vmatprep.subr.bf16.mxu0 %v4522_v36  ;;  %10948 = vmatpush3.bf16.msra.mxu1 %v4523_v47  ;;  %20751 = vst [vmem:[#allocation102_spill] sm:$0xff] %v14832_v56  ;;  %v4382_v36 = vsel %vm4379_vm0, %v4378_v25, %v4374_v21  ;;  %v14855_v28 = vrot.slane %v14755_v42, %v12641_v61 }
 0x4c0   :  { %4554 = vmatpush1.bf16.msra.mxu0 %v4521_v1  ;;  %10949 = vmatprep.subr.bf16.mxu1 %v20747_v12  ;;  %20752 = vst [vmem:[#allocation103_spill] sm:$0xff] %v14847_v48  ;;  %v4419_v60 = vmul.f32 %v14822_v2, %v4406_v35  ;;  %v4396_v33 = vmul.f32 %v14814_v55, %v4381_v19 }
 0x4c1   :  { %v4401_v62 = vpop.permute.xlu1 %4400  ;;  %v4423_v5 = vpop.permute.xlu0 %4422  ;;  %v4397_v1 = vmul.f32 %v14818_v23, %v4380_v9  ;;  %v4395_v35 = vmul.f32 %v14836_v22, %v4382_v36 }
 0x4c2   :  { %v4404_v47 = vsel %vm1011_vm7, %v4401_v62, %v4403_v29  ;;  %v4405_v21 = vsel %vm1011_vm7, %v4399_v26, %v4401_v62  ;;  %v4430_v25 = vsel %vm1108_vm8, %v14746_v30, %v4423_v5 }
 0x4c3   :  { %v4420_v20 = vmul.f32 %v14828_v39, %v4405_v21  ;;  %v4421_v61 = vmul.f32 %v14832_v56, %v4404_v47  ;;  %v4445_v16 = vmul.f32 %v14847_v48, %v4430_v25  ;;  %v4524_v19 = vpack.c.bf16 %v4419_v60, %v4395_v35 }
 0x4c5   :  { %v4526_v29 = vpack.c.bf16 %v4421_v61, %v4397_v1  ;;  %v4497_v26 = vpop.permute.xlu1 %4496  ;;  %v4425_v62 = vpop.permute.xlu0 %4424  ;;  %v4525_v52 = vpack.c.bf16 %v4420_v20, %v4396_v33  ;;  %v14886_v20 = vrot.slane %v14761_v51, %v12657_v54  ;;  %v14902_v1 = vrot.slane %v14755_v42, %v20639_v50 }
 0x4c6   :  { %v4428_v9 = vsel %vm1108_vm8, %v4425_v62, %v14746_v30  ;;  %v4429_v36 = vsel %vm1108_vm8, %v4423_v5, %v4425_v62  ;;  %v4455_v30 = vsel %vm4452_vm1, %v14744_v3, %v14750_v24  ;;  %v4529_v5 = vpack.c.bf16 %v4445_v16, %v14690_v27 }
 0x4c7   :  { %v4443_v47 = vmul.f32 %v14851_v13, %v4429_v36  ;;  %v4444_v21 = vmul.f32 %v14855_v28, %v4428_v9  ;;  %4555 = vmatprep.subr.bf16.mxu0 %v4525_v52  ;;  %10950 = vmatpush3.bf16.msra.mxu1 %v4526_v29  ;;  %20754 = vst [vmem:[#allocation105_spill] sm:$0xff] %v14886_v20 }
 0x4c8   :  { %4556 = vmatpush1.bf16.msra.mxu0 %v4524_v19  ;;  %10951 = vmatprep.subr.bf16.mxu1 %v20747_v12  ;;  %v14897_v52 = vrot.slane %v14766_v58, %v20639_v50  ;;  %v14909_v16 = vrot.slane %v14766_v58, %v12657_v54  ;;  %v14913_v27 = vrot.slane %v14755_v42, %v12657_v54  ;;  %v14927_v54 = vld [vmem:[%s19953_s19 + $0x18] ss:$0 sm:$0xff] }
 0x4c9   :  { %v4527_v60 = vpack.c.bf16 %v4443_v47, %v14706_v59  ;;  %v4449_v25 = vpop.permute.xlu1 %4448  ;;  %v4472_v33 = vpop.permute.xlu0 %4471  ;;  %v4528_v51 = vpack.c.bf16 %v4444_v21, %v14708_v53  ;;  %v4470_v59 = vmul.f32 %v14874_v43, %v4455_v30  ;;  %v14945_v30 = vld [vmem:[%s19953_s19 + $0x20] ss:$0 sm:$0xff] }
 0x4ca   :  { %v4480_v61 = vsel %vm4477_vm2, %v14748_v32, %v4472_v33  ;;  %v4454_v53 = vsel %vm4452_vm1, %v14750_v24, %v4449_v25  ;;  %v4453_v58 = vsel %vm4452_vm1, %v4449_v25, %v14744_v3 }
 0x4cb   :  { %v4495_v50 = vmul.f32 %v14886_v20, %v4480_v61  ;;  %4557 = vmatprep.subr.bf16.mxu0 %v4528_v51  ;;  %10952 = vmatpush3.bf16.msra.mxu1 %v4529_v5  ;;  %v4468_v29 = vmul.f32 %v14897_v52, %v4454_v53  ;;  %v4469_v9 = vmul.f32 %v14902_v1, %v4453_v58 }
 0x4cc   :  { %4558 = vmatpush1.bf16.msra.mxu0 %v4527_v60  ;;  %10953 = vmatprep.subr.bf16.mxu1 %v20747_v12 }
 0x4cd   :  { %v4532_v42 = vpack.c.bf16 %v4495_v50, %v4470_v59  ;;  %v4474_v24 = vpop.permute.xlu1 %4473  ;;  %v4499_v35 = vpop.permute.xlu0 %4498 }
 0x4ce   :  { %v4478_v62 = vsel %vm4477_vm2, %v4474_v24, %v14748_v32  ;;  %v4479_v3 = vsel %vm4477_vm2, %v4472_v33, %v4474_v24  ;;  %v4504_v19 = vsel %vm4502_vm5, %v4497_v26, %v4499_v35  ;;  %v14950_v32 = vld [vmem:[%s19953_s19 + $0x28] ss:$0 sm:$0xff]  ;;  %v11456_v24 = vld [vmem:[%s19952_s6] sm:$0xff]  }
 0x4cf   :  { %v4493_v36 = vmul.f32 %v14909_v16, %v4479_v3  ;;  %v4494_v47 = vmul.f32 %v14913_v27, %v4478_v62  ;;  %v4518_v21 = vmul.f32 %v14927_v54, %v4504_v19  ;;  %10954 = vmatpush3.bf16.msra.mxu1 %v4532_v42  ;;  %20755 = vst [vmem:[#allocation106_spill] sm:$0xff] %v14950_v32 }
 0x4d0   :  { %10955 = vmatprep.subr.bf16.mxu1 %v20747_v12 }
 0x4d1   :  { %v4530_v5 = vpack.c.bf16 %v4493_v36, %v4468_v29  ;;  %v4501_v60 = vpop.permute.xlu1 %4500  ;;  %v4531_v25 = vpack.c.bf16 %v4494_v47, %v4469_v9  ;;  %v4533_v61 = vpack.c.bf16 %v4518_v21, %v4518_v21 }
 0x4d2   :  { %v4503_v33 = vsel %vm4502_vm5, %v4499_v35, %v4501_v60  ;;  %v4505_v51 = vsel %vm4502_vm5, %v4501_v60, %v4497_v26 }
 0x4d3   :  { %v4519_v59 = vmul.f32 %v14945_v30, %v4503_v33  ;;  %v4520_v53 = vmul.f32 %v14950_v32, %v4505_v51  ;;  %4559 = vmatprep.subr.bf16.mxu0 %v4531_v25  ;;  %v4545_v12 = vsel %vm1536_vm12, %v4533_v61, 0 }
 0x4d4   :  { %4560 = vmatpush1.bf16.msra.mxu0 %v4530_v5 }
 0x4d5   :  { %v4534_v50 = vpack.c.bf16 %v4519_v59, %v4519_v59  ;;  %v4535_v58 = vpack.c.bf16 %v4520_v53, %v4520_v53 }
 0x4d7   :  { %10435 = vmatprep.subr.msk.bf16.mxu0 %vm1536_vm12, %v4534_v50  ;;  %v4551_v42 = vsel %vm1536_vm12, %v4535_v58, 0 }
 0x4d8   :  { %4562 = vmatpush1.bf16.msra.mxu0 %v4545_v12  ;;  %10956 = vmatpush3.bf16.msra.mxu1 %v4551_v42 }
 0x4db   :  { %10436 = vmatmul.mubr.msk.bf16.vlgmr.msra.gmra.mrb[16].mxu0 %vm20181_vm13, %v11456_v24  ;;  %10958 = vmatmul.mubr.msk.bf16.vlgmr.msra.gmra.mrb[16].mxu1 %vm20181_vm13, %v11456_v24  ;;  %vm4921_vm13 = vcmask 130048  }
 0x5ae   :  { %v4587_v26 = vpop.f32.mrb[16].mxu0  ;;  %v4630_v35 = vpop.f32.mrb[16].mxu1 }
 0x5af   :  { %v10440_v29 = vmul.f32 -1.442695, %v4630_v35  ;;  %v14967_v62 = vpop.f32.mrb[17].mxu0  ;;  %v10959_v3 = vpop.f32.mrb[17].mxu1  ;;  %v10438_v51 = vmul.f32 -1.442695, %v4587_v26 }
 0x5b0   :  { %v4591_v19 = vpop.f32.mrb[18].mxu0  ;;  %v4633_v9 = vpop.f32.mrb[18].mxu1 }
 0x5b1   :  { %v10443_v36 = vmul.f32 -1.442695, %v4633_v9  ;;  %v14969_v47 = vpop.f32.mrb[19].mxu0  ;;  %v10960_v21 = vpop.f32.mrb[19].mxu1  ;;  %11954 = vpow2.f32 %v10440_v29  ;;  %v10441_v61 = vmul.f32 -1.442695, %v4591_v19 }
 0x5b2   :  { %v10439_v29 = vmul.f32 -1.442695, %v14967_v62 }
 0x5b3   :  { %11956 = vpow2.f32 %v10443_v36 }
 0x5bb   :  { %v11955_v5 = vpop.eup %11954 }
 0x5bc   :  { %v4657_v60 = vadd.f32 1.0, %v11955_v5 }
 0x5bd   :  { %v11957_v25 = vpop.eup %11956 }
 0x5be   :  { %11958 = vrcp.f32 %v4657_v60  ;;  %v4660_v33 = vadd.f32 1.0, %v11957_v25 }
 0x5c0   :  { %11960 = vrcp.f32 %v4660_v33 }
 0x5c1   :  { %11962 = vpow2.f32 %v10438_v51 }
 0x5c2   :  { %11964 = vpow2.f32 %v10441_v61 }
 0x5c8   :  { %v11959_v59 = vpop.eup %11958 }
 0x5c9   :  { %v14971_v53 = vmul.f32 %v11959_v59, %v4630_v35 }
 0x5ca   :  { %v11961_v50 = vpop.eup %11960 }
 0x5cb   :  { %20756 = vst [vmem:[#allocation107_spill] sm:$0xff] %v14971_v53  ;;  %4691 = vrot.lane.b32.xlu0 %v14971_v53, %s12111_s16  ;;  %v14975_v58 = vmul.f32 %v11961_v50, %v4633_v9  ;;  %v11963_v12 = vpop.eup %11962  ;;  %v10442_v9 = vmul.f32 -1.442695, %v14969_v47  ;;  %v4682_v50 = vld [vmem:[%s19955_s8 + $0x8] sm:$0xff] }
 0x5cc   :  { %v11965_v42 = vpop.eup %11964  ;;  %v4655_v24 = vadd.f32 1.0, %v11963_v12 }
 0x5cd   :  { %20757 = vst [vmem:[#allocation108_spill] sm:$0xff] %v14975_v58  ;;  %4693 = vrot.lane.b32.xlu1 %v14975_v58, %s12111_s16  ;;  %v4658_v35 = vadd.f32 1.0, %v11965_v42 }
 0x5ce   :  { %11966 = vrcp.f32 %v4655_v24 }
 0x5cf   :  { %4715 = vrot.lane.b32.xlu0 %v14971_v53, %s12110_s14  ;;  %11968 = vrcp.f32 %v4658_v35 }
 0x5d0   :  { %11970 = vpow2.f32 %v10439_v29 }
 0x5d1   :  { %4717 = vrot.lane.b32.xlu1 %v14975_v58, %s12110_s14  ;;  %11972 = vpow2.f32 %v10442_v9 }
 0x5d3   :  { %4739 = vrot.lane.b32.xlu0 %v14971_v53, %s12112_s23 }
 0x5d5   :  { %4741 = vrot.lane.b32.xlu1 %v14975_v58, %s12112_s23 }
 0x5d7   :  { %4763 = vrot.lane.b32.xlu0 %v14971_v53, %s12105_s25 }
 0x5d8   :  { %v11967_v3 = vpop.eup %11966 }
 0x5d9   :  { %4765 = vrot.lane.b32.xlu1 %v14975_v58, %s12105_s25  ;;  %v11969_v36 = vpop.eup %11968  ;;  %v15003_v21 = vmul.f32 %v11967_v3, %v4587_v26 }
 0x5da   :  { %v15009_v5 = vmul.f32 %v11969_v36, %v4591_v19  ;;  %v11971_v60 = vpop.eup %11970 }
 0x5db   :  { %4787 = vrot.lane.b32.xlu0 %v14971_v53, %s12106_s26  ;;  %v11973_v26 = vpop.eup %11972  ;;  %v4656_v25 = vadd.f32 1.0, %v11971_v60 }
 0x5dc   :  { %v4659_v19 = vadd.f32 1.0, %v11973_v26 }
 0x5dd   :  { %4789 = vrot.lane.b32.xlu1 %v14975_v58, %s12106_s26  ;;  %11974 = vrcp.f32 %v4656_v25 }
 0x5de   :  { %11976 = vrcp.f32 %v4659_v19 }
 0x5df   :  { %4811 = vrot.lane.b32.xlu0 %v14971_v53, %s12113_s4 }
 0x5e1   :  { %4813 = vrot.lane.b32.xlu1 %v14975_v58, %s12113_s4 }
 0x5e3   :  { %4835 = vrot.lane.b32.xlu0 %v14971_v53, %s12114_s27 }
 0x5e5   :  { %4837 = vrot.lane.b32.xlu1 %v14975_v58, %s12114_s27 }
 0x5e7   :  { %4683 = vrot.lane.b32.xlu0 %v15003_v21, %s12111_s16  ;;  %v11975_v33 = vpop.eup %11974 }
 0x5e8   :  { %v11977_v51 = vpop.eup %11976  ;;  %v15036_v61 = vmul.f32 %v11975_v33, %v14967_v62  ;;  %v15078_v62 = vld [vmem:[%s19954_s7 + $0x4] ss:$8 sps:$4 sm:$0xff]  }
 0x5e9   :  { %4685 = vrot.lane.b32.xlu1 %v15009_v5, %s12111_s16  ;;  %v15043_v59 = vmul.f32 %v11977_v51, %v14969_v47  ;;  %20758 = vst [vmem:[#allocation109_spill] sm:$0xff] %v15078_v62  ;;  %10446 = vmatprep.mubr.msk.bf16.mxu1 %vm4921_vm13, %v15078_v62  ;;  %v4681_v47 = vld [vmem:[%s19955_s8] sm:$0xff]  ;;  %s20760_s8 = smov 111  }
 0x5eb   :  { %4707 = vrot.lane.b32.xlu0 %v15003_v21, %s12110_s14 }
 0x5ed   :  { %4709 = vrot.lane.b32.xlu1 %v15009_v5, %s12110_s14 }
 0x5ef   :  { %4731 = vrot.lane.b32.xlu0 %v15003_v21, %s12112_s23 }
 0x5f1   :  { %4733 = vrot.lane.b32.xlu1 %v15009_v5, %s12112_s23 }
 0x5f3   :  { %4755 = vrot.lane.b32.xlu0 %v15003_v21, %s12105_s25 }
 0x5f5   :  { %4757 = vrot.lane.b32.xlu1 %v15009_v5, %s12105_s25 }
 0x5f7   :  { %4779 = vrot.lane.b32.xlu0 %v15003_v21, %s12106_s26 }
 0x5f9   :  { %4781 = vrot.lane.b32.xlu1 %v15009_v5, %s12106_s26 }
 0x5fb   :  { %4803 = vrot.lane.b32.xlu0 %v15003_v21, %s12113_s4 }
 0x5fd   :  { %4805 = vrot.lane.b32.xlu1 %v15009_v5, %s12113_s4 }
 0x5ff   :  { %4827 = vrot.lane.b32.xlu0 %v15003_v21, %s12114_s27 }
 0x601   :  { %4829 = vrot.lane.b32.xlu1 %v15009_v5, %s12114_s27 }
 0x603   :  { %4687 = vrot.lane.b32.xlu0 %v15036_v61, %s12111_s16 }
 0x605   :  { %4689 = vrot.lane.b32.xlu1 %v15043_v59, %s12111_s16 }
 0x607   :  { %4711 = vrot.lane.b32.xlu0 %v15036_v61, %s12110_s14 }
 0x609   :  { %4713 = vrot.lane.b32.xlu1 %v15043_v59, %s12110_s14 }
 0x60b   :  { %4735 = vrot.lane.b32.xlu0 %v15036_v61, %s12112_s23 }
 0x60d   :  { %4737 = vrot.lane.b32.xlu1 %v15043_v59, %s12112_s23 }
 0x60f   :  { %4759 = vrot.lane.b32.xlu0 %v15036_v61, %s12105_s25 }
 0x611   :  { %4761 = vrot.lane.b32.xlu1 %v15043_v59, %s12105_s25 }
 0x613   :  { %4859 = vrot.lane.b32.xlu0 %v14971_v53, %s12115_s28 }
 0x615   :  { %4861 = vrot.lane.b32.xlu1 %v14975_v58, %s12115_s28 }
 0x617   :  { %4783 = vrot.lane.b32.xlu0 %v15036_v61, %s12106_s26 }
 0x619   :  { %4785 = vrot.lane.b32.xlu1 %v15043_v59, %s12106_s26 }
 0x61b   :  { %4807 = vrot.lane.b32.xlu0 %v15036_v61, %s12113_s4 }
 0x61d   :  { %4809 = vrot.lane.b32.xlu1 %v15043_v59, %s12113_s4 }
 0x61f   :  { %4831 = vrot.lane.b32.xlu0 %v15036_v61, %s12114_s27 }
 0x621   :  { %4833 = vrot.lane.b32.xlu1 %v15043_v59, %s12114_s27 }
 0x623   :  { %4855 = vrot.lane.b32.xlu0 %v15036_v61, %s12115_s28 }
 0x625   :  { %4857 = vrot.lane.b32.xlu1 %v15043_v59, %s12115_s28 }
 0x627   :  { %4851 = vrot.lane.b32.xlu0 %v15003_v21, %s12115_s28 }
 0x629   :  { %4853 = vrot.lane.b32.xlu1 %v15009_v5, %s12115_s28 }
 0x62b   :  { %4904 = vperm.xlu0 %11055, %v4681_v47  }
 0x62d   :  { %4909 = vperm.xlu1 %11056, %v4682_v50  }
 0x62f   :  { %8066 = vrot.lane.b32.xlu0 %v13863_v63, %s12102_s1 }
 0x631   :  { %8068 = vrot.lane.b32.xlu1 %v13865_v40, %s12102_s1 }
 0x633   :  { %8114 = vrot.lane.b32.xlu0 %v13863_v63, %s12103_s0 }
 0x635   :  { %8116 = vrot.lane.b32.xlu1 %v13865_v40, %s12103_s0 }
 0x637   :  { %8088 = vrot.lane.b32.xlu0 %v14329_v41, %s12102_s1 }
 0x639   :  { %8136 = vrot.lane.b32.xlu1 %v14329_v41, %s12103_s0 }
 0x63b   :  { %8162 = vrot.lane.b32.xlu0 %v13863_v63, %s12104_s2 }
 0x63d   :  { %v15110_v12 = vpop.permute.xlu0 %4691  ;;  %8164 = vrot.lane.b32.xlu1 %v13865_v40, %s12104_s2 }
 0x63f   :  { %8210 = vrot.lane.b32.xlu0 %v13863_v63, %s12105_s25  ;;  %v15116_v42 = vpop.permute.xlu1 %4693 }
 0x641   :  { %v15118_v24 = vpop.permute.xlu0 %4715  ;;  %8212 = vrot.lane.b32.xlu1 %v13865_v40, %s12105_s25 }
 0x643   :  { %8184 = vrot.lane.b32.xlu0 %v14329_v41, %s12104_s2  ;;  %v15124_v35 = vpop.permute.xlu1 %4717 }
 0x644   :  { %20759 = vst [vmem:[#allocation110_spill] sm:$0xff] %v15124_v35 }
 0x645   :  { %v15126_v29 = vpop.permute.xlu0 %4739  ;;  %8232 = vrot.lane.b32.xlu1 %v14329_v41, %s12105_s25 }
 0x647   :  { %8260 = vrot.lane.b32.xlu0 %v13865_v40, %s12106_s26  ;;  %v15132_v3 = vpop.permute.xlu1 %4741 }
 0x649   :  { %v15134_v9 = vpop.permute.xlu0 %4763  ;;  %8262 = vrot.lane.b32.xlu1 %v13972_v11, %s12106_s26 }
 0x64b   :  { %8258 = vrot.lane.b32.xlu0 %v13863_v63, %s12106_s26  ;;  %v15140_v36 = vpop.permute.xlu1 %4765 }
 0x64d   :  { %v15142_v60 = vpop.permute.xlu0 %4787  ;;  %8308 = vrot.lane.b32.xlu1 %v13865_v40, %s20523_s22 }
 0x64f   :  { %8310 = vrot.lane.b32.xlu0 %v13972_v11, %s20523_s22  ;;  %v15148_v26 = vpop.permute.xlu1 %4789 }
 0x651   :  { %v15150_v25 = vpop.permute.xlu0 %4811  ;;  %8356 = vrot.lane.b32.xlu1 %v13865_v40, %s20526_s24 }
 0x653   :  { %8358 = vrot.lane.b32.xlu0 %v13972_v11, %s20526_s24  ;;  %v15156_v19 = vpop.permute.xlu1 %4813 }
 0x655   :  { %v15158_v33 = vpop.permute.xlu0 %4835  ;;  %8306 = vrot.lane.b32.xlu1 %v13863_v63, %s20523_s22 }
 0x657   :  { %8354 = vrot.lane.b32.xlu0 %v13863_v63, %s20526_s24  ;;  %v15164_v51 = vpop.permute.xlu1 %4837 }
 0x659   :  { %v4684_v47 = vpop.permute.xlu0 %4683  ;;  %8402 = vrot.lane.b32.xlu1 %v13863_v63, %s20760_s8 }
 0x65a   :  { %v4699_v14 = vsel %vm4329_vm15, %v15110_v12, %v4684_v47 }
 0x65b   :  { %8404 = vrot.lane.b32.xlu0 %v13865_v40, %s20760_s8  ;;  %v4686_v50 = vpop.permute.xlu1 %4685 }
 0x65c   :  { %v4700_v53 = vsel %vm4329_vm15, %v15116_v42, %v4686_v50 }
 0x65d   :  { %v4708_v37 = vpop.permute.xlu0 %4707  ;;  %8406 = vrot.lane.b32.xlu1 %v13972_v11, %s20760_s8  ;;  %v4704_v62 = vmul.f32 %v4700_v53, %v14793_v7 }
 0x65f   :  { %8070 = vrot.lane.b32.xlu0 %v13972_v11, %s12102_s1  ;;  %v4710_v10 = vpop.permute.xlu1 %4709 }
 0x660   :  { %v4724_v45 = vsel %vm4354_vm14, %v15124_v35, %v4710_v10 }
 0x661   :  { %v4732_v38 = vpop.permute.xlu0 %4731  ;;  %8072 = vrot.lane.b32.xlu1 %v13936_v46, %s12102_s1 }
 0x663   :  { %8118 = vrot.lane.b32.xlu0 %v13972_v11, %s12103_s0  ;;  %v4734_v63 = vpop.permute.xlu1 %4733 }
 0x665   :  { %v15178_v41 = vpop.permute.xlu0 %4755  ;;  %8120 = vrot.lane.b32.xlu1 %v13936_v46, %s12103_s0 }
 0x667   :  { %8166 = vrot.lane.b32.xlu0 %v13972_v11, %s12104_s2  ;;  %v15184_v40 = vpop.permute.xlu1 %4757 }
 0x669   :  { %v15186_v49 = vpop.permute.xlu0 %4779  ;;  %8168 = vrot.lane.b32.xlu1 %v13936_v46, %s12104_s2 }
 0x66b   :  { %8214 = vrot.lane.b32.xlu0 %v13972_v11, %s12105_s25  ;;  %v15192_v32 = vpop.permute.xlu1 %4781 }
 0x66d   :  { %v15194_v17 = vpop.permute.xlu0 %4803  ;;  %8216 = vrot.lane.b32.xlu1 %v13936_v46, %s12105_s25 }
 0x66f   :  { %8264 = vrot.lane.b32.xlu0 %v13936_v46, %s12106_s26  ;;  %v15200_v20 = vpop.permute.xlu1 %4805 }
 0x671   :  { %v15202_v43 = vpop.permute.xlu0 %4827  ;;  %8266 = vrot.lane.b32.xlu1 %v14090_v6, %s12106_s26 }
 0x673   :  { %8312 = vrot.lane.b32.xlu0 %v13936_v46, %s20523_s22  ;;  %v15208_v11 = vpop.permute.xlu1 %4829 }
 0x675   :  { %v15210_v58 = vpop.permute.xlu0 %4687  ;;  %8314 = vrot.lane.b32.xlu1 %v14090_v6, %s20523_s22 }
 0x676   :  { %v4697_v48 = vsel %vm4329_vm15, %v4684_v47, %v15210_v58  ;;  %v4701_v47 = vmul.f32 %v4699_v14, %v14793_v7 }
 0x677   :  { %8360 = vrot.lane.b32.xlu0 %v13936_v46, %s20526_s24  ;;  %v15225_v56 = vpop.permute.xlu1 %4689  ;;  %v4702_v8 = vmul.f32 %v4697_v48, %v14779_v44 }
 0x678   :  { %v4698_v23 = vsel %vm4329_vm15, %v4686_v50, %v15225_v56  ;;  %v4723_v50 = vsel %vm4354_vm14, %v15118_v24, %v4708_v37 }
 0x679   :  { %v15231_v31 = vpop.permute.xlu0 %4711  ;;  %v4705_v18 = vmul.f32 %v4698_v23, %v14779_v44  ;;  %8362 = vrot.lane.b32.xlu1 %v14090_v6, %s20526_s24  ;;  %v4875_v44 = vpack.c.bf16 %v4704_v62, %v4701_v47  ;;  %v4728_v23 = vmul.f32 %v4724_v45, %v14775_v34  ;;  %v4725_v45 = vmul.f32 %v4723_v50, %v14775_v34 }
 0x67a   :  { %20761 = vst [vmem:[#allocation111_spill] sm:$0xff] %v15231_v31  ;;  %v4721_v53 = vsel %vm4354_vm14, %v4708_v37, %v15231_v31  ;;  %v4772_v50 = vsel %vm1011_vm7, %v15140_v36, %v15184_v40 }
 0x67b   :  { %8408 = vrot.lane.b32.xlu0 %v13936_v46, %s20760_s8  ;;  %v15249_v35 = vpop.permute.xlu1 %4713  ;;  %v4876_v48 = vpack.c.bf16 %v4705_v18, %v4702_v8  ;;  %v4748_v46 = vsel %vm4379_vm0, %v15132_v3, %v4734_v63  ;;  %v4726_v31 = vmul.f32 %v4721_v53, %v14785_v4  ;;  %v4747_v18 = vsel %vm4379_vm0, %v15126_v29, %v4732_v38 }
 0x67c   :  { %v4722_v7 = vsel %vm4354_vm14, %v4710_v10, %v15249_v35  ;;  %v4878_v62 = vpack.c.bf16 %v4728_v23, %v4725_v45  ;;  %v4752_v47 = vmul.f32 %v4748_v46, %v14836_v22  ;;  %v4771_v46 = vsel %vm1011_vm7, %v15134_v9, %v15178_v41 }
 0x67d   :  { %v15255_v14 = vpop.permute.xlu0 %4735  ;;  %v4729_v37 = vmul.f32 %v4722_v7, %v14785_v4  ;;  %8410 = vrot.lane.b32.xlu1 %v14090_v6, %s20760_s8  ;;  %4925 = vmatprep.subr.bf16.mxu1 %v4876_v48 }
 0x67e   :  { %v4745_v10 = vsel %vm4379_vm0, %v4732_v38, %v15255_v14  ;;  %4926 = vmatpush1.bf16.msra.mxu1 %v4875_v44 }
 0x67f   :  { %8074 = vrot.lane.b32.xlu0 %v14090_v6, %s12102_s1  ;;  %v15273_v8 = vpop.permute.xlu1 %4737  ;;  %v4879_v4 = vpack.c.bf16 %v4729_v37, %v4726_v31  ;;  %v4750_v48 = vmul.f32 %v4745_v10, %v14814_v55  ;;  %v4749_v31 = vmul.f32 %v4747_v18, %v14836_v22  ;;  %v4776_v22 = vmul.f32 %v4772_v50, %v14822_v2 }
 0x680   :  { %v4746_v34 = vsel %vm4379_vm0, %v4734_v63, %v15273_v8  ;;  %v4887_v50 = vpack.c.bf16 %v15009_v5, %v15003_v21 }
 0x681   :  { %v15279_v53 = vpop.permute.xlu0 %4759  ;;  %v4753_v38 = vmul.f32 %v4746_v34, %v14814_v55  ;;  %8076 = vrot.lane.b32.xlu1 %v13984_v15, %s12102_s1  ;;  %4927 = vmatprep.subr.bf16.mxu1 %v4879_v4  ;;  %v4881_v23 = vpack.c.bf16 %v4752_v47, %v4749_v31  ;;  %v4888_v47 = vpack.c.bf16 %v15043_v59, %v15036_v61 }
 0x682   :  { %v4769_v63 = vsel %vm1011_vm7, %v15178_v41, %v15279_v53  ;;  %4928 = vmatpush1.bf16.msra.mxu1 %v4878_v62  ;;  %v4773_v41 = vmul.f32 %v4771_v46, %v14822_v2 }
 0x683   :  { %8122 = vrot.lane.b32.xlu0 %v14090_v6, %s12103_s0  ;;  %v15300_v55 = vpop.permute.xlu1 %4761  ;;  %v4882_v44 = vpack.c.bf16 %v4753_v38, %v4750_v48  ;;  %v4774_v45 = vmul.f32 %v4769_v63, %v14828_v39 }
 0x684   :  { %v4770_v7 = vsel %vm1011_vm7, %v15184_v40, %v15300_v55  ;;  %v4884_v40 = vpack.c.bf16 %v4776_v22, %v4773_v41 }
 0x685   :  { %v15307_v37 = vpop.permute.xlu0 %4859  ;;  %v4777_v10 = vmul.f32 %v4770_v7, %v14828_v39  ;;  %8124 = vrot.lane.b32.xlu1 %v13984_v15, %s12103_s0  ;;  %4929 = vmatprep.subr.bf16.mxu1 %v4882_v44 }
 0x686   :  { %4930 = vmatpush1.bf16.msra.mxu1 %v4881_v23 }
 0x687   :  { %8170 = vrot.lane.b32.xlu0 %v14090_v6, %s12104_s2  ;;  %v15316_v18 = vpop.permute.xlu1 %4861  ;;  %v4885_v4 = vpack.c.bf16 %v4777_v10, %v4774_v45 }
 0x689   :  { %v4784_v62 = vpop.permute.xlu0 %4783  ;;  %8172 = vrot.lane.b32.xlu1 %v13984_v15, %s12104_s2  ;;  %4931 = vmatprep.subr.bf16.mxu1 %v4885_v4 }
 0x68a   :  { %v4791_v39 = vsel %vm1108_vm8, %v4784_v62, %v15142_v60  ;;  %v4793_v2 = vsel %vm1108_vm8, %v15186_v49, %v4784_v62  ;;  %4932 = vmatpush1.bf16.msra.mxu1 %v4884_v40 }
 0x68b   :  { %8218 = vrot.lane.b32.xlu0 %v14090_v6, %s12105_s25  ;;  %v4786_v34 = vpop.permute.xlu1 %4785  ;;  %4933 = vmatprep.subr.bf16.mxu1 %v4888_v47  ;;  %v4797_v48 = vmul.f32 %v4793_v2, %v14851_v13  ;;  %v4798_v38 = vmul.f32 %v4791_v39, %v14855_v28  ;;  %v11688_v6 = vld [vmem:[%s19956_s15 + $0x550] ss:$48 sps:$4 sm:$0xff]  }
 0x68c   :  { %v4792_v31 = vsel %vm1108_vm8, %v4786_v34, %v15148_v26  ;;  %v4794_v61 = vsel %vm1108_vm8, %v15192_v32, %v4786_v34 }
 0x68d   :  { %v4808_v59 = vpop.permute.xlu0 %4807  ;;  %v4800_v63 = vmul.f32 %v4794_v61, %v14851_v13  ;;  %v4801_v46 = vmul.f32 %v4792_v31, %v14855_v28  ;;  %8220 = vrot.lane.b32.xlu1 %v13984_v15, %s12105_s25 }
 0x68e   :  { %v4815_v21 = vsel %vm4452_vm1, %v4808_v59, %v15150_v25  ;;  %v4817_v5 = vsel %vm4452_vm1, %v15194_v17, %v4808_v59  ;;  %4934 = vmatpush1.bf16.msra.mxu1 %v4887_v50 }
 0x68f   :  { %8268 = vrot.lane.b32.xlu0 %v13984_v15, %s12106_s26  ;;  %v4890_v44 = vpack.c.bf16 %v4800_v63, %v4797_v48  ;;  %v4810_v23 = vpop.permute.xlu1 %4809  ;;  %v4891_v13 = vpack.c.bf16 %v4801_v46, %v4798_v38  ;;  %v4821_v28 = vmul.f32 %v4817_v5, %v14897_v52  ;;  %v4822_v22 = vmul.f32 %v4815_v21, %v14902_v1 }
 0x690   :  { %v4816_v7 = vsel %vm4452_vm1, %v4810_v23, %v15156_v19  ;;  %v4818_v45 = vsel %vm4452_vm1, %v15200_v20, %v4810_v23 }
 0x691   :  { %v4832_v10 = vpop.permute.xlu0 %4831  ;;  %v4824_v41 = vmul.f32 %v4818_v45, %v14897_v52  ;;  %v4825_v4 = vmul.f32 %v4816_v7, %v14902_v1  ;;  %8270 = vrot.lane.b32.xlu1 %v14209_v57, %s12106_s26  ;;  %4935 = vmatprep.subr.bf16.mxu1 %v4891_v13  ;;  %v4695_v45 = vsel %vm4329_vm15, %v15210_v58, %v15110_v12  ;;  %v20764_v58 = vld [vmem:[#allocation21_spill] sm:$0xff]  ;;  %v20765_v12 = vld [vmem:[#allocation111_spill] sm:$0xff] }
 0x692   :  { %v4839_v40 = vsel %vm4477_vm2, %v4832_v10, %v15158_v33  ;;  %v4841_v62 = vsel %vm4477_vm2, %v15202_v43, %v4832_v10  ;;  %4936 = vmatpush1.bf16.msra.mxu1 %v4890_v44 }
 0x693   :  { %8316 = vrot.lane.b32.xlu0 %v13984_v15, %s20523_s22  ;;  %v4893_v39 = vpack.c.bf16 %v4824_v41, %v4821_v28  ;;  %v4834_v52 = vpop.permute.xlu1 %4833  ;;  %v4894_v2 = vpack.c.bf16 %v4825_v4, %v4822_v22  ;;  %v4846_v1 = vmul.f32 %v4839_v40, %v14913_v27  ;;  %v4845_v48 = vmul.f32 %v4841_v62, %v14909_v16  ;;  %v20763_v41 = vld [vmem:[#allocation110_spill] sm:$0xff] }
 0x694   :  { %v4840_v47 = vsel %vm4477_vm2, %v4834_v52, %v15164_v51  ;;  %v4842_v34 = vsel %vm4477_vm2, %v15208_v11, %v4834_v52  ;;  %v15430_v4 = vld [vmem:[%s19954_s7] ss:$8 sps:$4 sm:$0xff]   ;;  %v4719_v62 = vsel %vm4354_vm14, %v20765_v12, %v15118_v24  ;;  %v20767_v52 = vld [vmem:[#allocation100_spill] sm:$0xff]  ;;  %v4743_v24 = vsel %vm4379_vm0, %v15255_v14, %v15126_v29 }
 0x695   :  { %v4856_v50 = vpop.permute.xlu0 %4855  ;;  %v4848_v38 = vmul.f32 %v4842_v34, %v14909_v16  ;;  %v4849_v31 = vmul.f32 %v4840_v47, %v14913_v27  ;;  %8318 = vrot.lane.b32.xlu1 %v14209_v57, %s20523_s22  ;;  %4937 = vmatprep.subr.bf16.mxu1 %v4894_v2  ;;  %v4727_v47 = vmul.f32 %v4719_v62, %v20767_v52  ;;  %v11469_v12 = vld [vmem:[%s19956_s15 + $0x60] ss:$48 sps:$4 sm:$0xff]   ;;  %v11474_v62 = vld [vmem:[%s19956_s15 + $0xcc] ss:$48 sps:$4 sm:$0xff]  }
 0x696   :  { %v4863_v61 = vsel %vm4502_vm5, %v4856_v50, %v15307_v37  ;;  %4938 = vmatpush1.bf16.msra.mxu1 %v4893_v39  ;;  %v4767_v29 = vsel %vm1011_vm7, %v15279_v53, %v15134_v9  ;;  %v4796_v53 = vsel %vm1108_vm8, %v15148_v26, %v15192_v32  ;;  %v4820_v32 = vsel %vm4452_vm1, %v15156_v19, %v15200_v20 }
 0x697   :  { %8364 = vrot.lane.b32.xlu0 %v13984_v15, %s20526_s24  ;;  %v4896_v59 = vpack.c.bf16 %v4848_v38, %v4845_v48  ;;  %v4858_v63 = vpop.permute.xlu1 %4857  ;;  %v4897_v46 = vpack.c.bf16 %v4849_v31, %v4846_v1  ;;  %v4870_v21 = vmul.f32 %v14945_v30, %v4863_v61  ;;  %v4744_v1 = vsel %vm4379_vm0, %v15273_v8, %v15132_v3  ;;  %v20768_v3 = vld [vmem:[#allocation101_spill] sm:$0xff]  ;;  %v20770_v31 = vld [vmem:[#allocation102_spill] sm:$0xff] }
 0x698   :  { %v4864_v16 = vsel %vm4502_vm5, %v4858_v63, %v15316_v18  ;;  %v4754_v8 = vmul.f32 %v4744_v1, %v20768_v3  ;;  %v4768_v48 = vsel %vm1011_vm7, %v15300_v55, %v15140_v36  ;;  %v4751_v38 = vmul.f32 %v4743_v24, %v20768_v3  ;;  %v20771_v55 = vld [vmem:[#allocation96_spill] sm:$0xff]  ;;  %v11480_v1 = vld [vmem:[%s19956_s15 + $0x12c] ss:$48 sps:$4 sm:$0xff]   ;;  %v11478_v24 = vld [vmem:[%s19956_s15 + $0x128] ss:$48 sps:$4 sm:$0xff]  }
 0x699   :  { %v15392_v27 = vpop.permute.xlu0 %4851  ;;  %v4873_v5 = vmul.f32 %v14945_v30, %v4864_v16  ;;  %8366 = vrot.lane.b32.xlu1 %v14209_v57, %s20526_s24  ;;  %4939 = vmatprep.subr.bf16.mxu1 %v4897_v46  ;;  %v4696_v30 = vsel %vm4329_vm15, %v15225_v56, %v15116_v42  ;;  %v20762_v56 = vld [vmem:[#allocation99_spill] sm:$0xff]  ;;  %v4778_v61 = vmul.f32 %v4768_v48, %v20770_v31  ;;  %v11487_v48 = vld [vmem:[%s19956_s15 + $0x180] ss:$48 sps:$4 sm:$0xff]  }
 0x69a   :  { %v4865_v44 = vsel %vm4502_vm5, %v15392_v27, %v4856_v50  ;;  %4940 = vmatpush1.bf16.msra.mxu1 %v4896_v59  ;;  %v4706_v42 = vmul.f32 %v4696_v30, %v20762_v56  ;;  %v4703_v40 = vmul.f32 %v4695_v45, %v20762_v56  ;;  %v20769_v50 = vld [vmem:[#allocation109_spill] sm:$0xff]  ;;  %v4883_v14 = vpack.c.bf16 %v4754_v8, %v4751_v38  ;;  %v20773_v16 = vld [vmem:[#allocation107_spill] sm:$0xff]  ;;  %v11489_v8 = vld [vmem:[%s19956_s15 + $0x184] ss:$48 sps:$4 sm:$0xff]  }
 0x69b   :  { %8412 = vrot.lane.b32.xlu0 %v13984_v15, %s20760_s8  ;;  %v15403_v23 = vpop.permute.xlu1 %4853  ;;  %v4900_v13 = vpack.c.bf16 %v4873_v5, %v4870_v21  ;;  %v4869_v22 = vmul.f32 %v14927_v54, %v4865_v44  ;;  %v4775_v36 = vmul.f32 %v4767_v29, %v20770_v31  ;;  %v4795_v59 = vsel %vm1108_vm8, %v15142_v60, %v15186_v49  ;;  %v20774_v21 = vld [vmem:[#allocation108_spill] sm:$0xff]  ;;  %v20776_v30 = vld [vmem:[#allocation105_spill] sm:$0xff] }
 0x69c   :  { %v4866_v28 = vsel %vm4502_vm5, %v15403_v23, %v4858_v63  ;;  %v4877_v39 = vpack.c.bf16 %v4706_v42, %v4703_v40  ;;  %v20772_v63 = vld [vmem:[#allocation103_spill] sm:$0xff]  ;;  %v4889_v5 = vpack.c.bf16 %v20774_v21, %v20773_v16  ;;  %v4819_v49 = vsel %vm4452_vm1, %v15150_v25, %v15194_v17  ;;  %v20775_v44 = vld [vmem:[#allocation104_spill] sm:$0xff] }
 0x69d   :  { %v4872_v7 = vmul.f32 %v14927_v54, %v4866_v28  ;;  %8414 = vrot.lane.b32.xlu1 %v14209_v57, %s20760_s8  ;;  %4941 = vmatprep.subr.bf16.mxu1 %v4900_v13  ;;  %v4720_v54 = vsel %vm4354_vm14, %v15249_v35, %v20763_v41  ;;  %v20766_v35 = vmov 0   ;;  %v4886_v9 = vpack.c.bf16 %v4778_v61, %v4775_v36  ;;  %v11462_v56 = vld [vmem:[%s19956_s15 + $0xc] ss:$48 sps:$4 sm:$0xff]   ;;  %v11460_v42 = vld [vmem:[%s19956_s15 + $0x8] ss:$48 sps:$4 sm:$0xff]  }
 0x69e   :  { %v4730_v2 = vmul.f32 %v4720_v54, %v20767_v52  ;;  %v4802_v46 = vmul.f32 %v4796_v53, %v20772_v63  ;;  %v4799_v26 = vmul.f32 %v4795_v59, %v20772_v63  ;;  %v4826_v13 = vmul.f32 %v4820_v32, %v20775_v44  ;;  %6868 = vmatprep.subr.bf16.mxu0 %v11462_v56  ;;  %v11465_v41 = vld [vmem:[%s19956_s15 + $0x4] ss:$48 sps:$4 sm:$0xff]   ;;  %v11468_v54 = vld [vmem:[%s19956_s15 + $0x6c] ss:$48 sps:$4 sm:$0xff]   ;;  %v11466_v40 = vld [vmem:[%s19956_s15 + $0x68] ss:$48 sps:$4 sm:$0xff]  }
 0x69f   :  { %8078 = vrot.lane.b32.xlu0 %v14209_v57, %s12102_s1  ;;  %v4899_v10 = vpack.c.bf16 %v4872_v7, %v4869_v22  ;;  %v4844_v20 = vsel %vm4477_vm2, %v15164_v51, %v15208_v11  ;;  %v4823_v19 = vmul.f32 %v4819_v49, %v20775_v44  ;;  %v4843_v17 = vsel %vm4477_vm2, %v15158_v33, %v15202_v43  ;;  %v20777_v33 = vld [vmem:[#allocation98_spill] sm:$0xff]  ;;  %v11472_v52 = vld [vmem:[%s19956_s15 + $0xc8] ss:$48 sps:$4 sm:$0xff]   ;;  %v11486_v3 = vld [vmem:[%s19956_s15 + $0x18c] ss:$48 sps:$4 sm:$0xff]  }
 0x6a0   :  { %v4880_v34 = vpack.c.bf16 %v4730_v2, %v4727_v47  ;;  %v4892_v60 = vpack.c.bf16 %v4802_v46, %v4799_v26  ;;  %v4850_v28 = vmul.f32 %v4844_v20, %v20776_v30  ;;  %v4868_v11 = vsel %vm4502_vm5, %v15316_v18, %v15403_v23  ;;  %v20778_v7 = vld [vmem:[#allocation106_spill] sm:$0xff]  ;;  %v20779_v23 = vld [vmem:[#allocation20_spill] sm:$0xff]  ;;  %6869 = vmatpush1.bf16.msra.mxu0 %v11460_v42  ;;  %v11495_v29 = vld [vmem:[%s19956_s15 + $0x1ec] ss:$48 sps:$4 sm:$0xff]  }
 0x6a1   :  { %8080 = vrot.lane.b32.xlu1 %v20764_v58, %s12102_s1  ;;  %4942 = vmatpush1.bf16.msra.mxu1 %v4899_v10  ;;  %v4895_v25 = vpack.c.bf16 %v4826_v13, %v4823_v19  ;;  %v4847_v51 = vmul.f32 %v4843_v17, %v20776_v30  ;;  %v4867_v43 = vsel %vm4502_vm5, %v15307_v37, %v15392_v27  ;;  %v20780_v27 = vld [vmem:[#allocation97_spill] sm:$0xff]  ;;  %v11463_v10 = vld [vmem:[%s19956_s15] ss:$48 sps:$4 sm:$0xff]   ;;  %v11483_v47 = vld [vmem:[%s19956_s15 + $0x124] ss:$48 sps:$4 sm:$0xff]   ;;  %vm20887_vm14 = vcmask 588800  }
 0x6a2   :  { %4968 = vmatprep.subr.bf16.mxu1 %v20766_v35  ;;  %v4874_v45 = vmul.f32 %v20778_v7, %v4868_v11  ;;  %v4871_v18 = vmul.f32 %v20778_v7, %v4867_v43  ;;  %6870 = vmatprep.subr.bf16.mxu0 %v11468_v54  ;;  %v11475_v2 = vld [vmem:[%s19956_s15 + $0xc0] ss:$48 sps:$4 sm:$0xff]   ;;  %v11492_v38 = vld [vmem:[%s19956_s15 + $0x1e4] ss:$48 sps:$4 sm:$0xff]   ;;  %v11493_v31 = vld [vmem:[%s19956_s15 + $0x1e8] ss:$48 sps:$4 sm:$0xff]  }
 0x6a3   :  { %8126 = vrot.lane.b32.xlu0 %v14209_v57, %s12103_s0  ;;  %v4898_v22 = vpack.c.bf16 %v4850_v28, %v4847_v51  ;;  %v11498_v61 = vld [vmem:[%s19956_s15 + $0x244] ss:$48 sps:$4 sm:$0xff]   ;;  %v11499_v36 = vld [vmem:[%s19956_s15 + $0x248] ss:$48 sps:$4 sm:$0xff]   ;;  %v11501_v53 = vld [vmem:[%s19956_s15 + $0x24c] ss:$48 sps:$4 sm:$0xff]  }
 0x6a4   :  { %4958 = vmatmul.mubr.bf16.vlgmr.msra.gmra.mrb[44].mxu1 %v15430_v4  ;;  %v4901_v37 = vpack.c.bf16 %v4874_v45, %v4871_v18  ;;  %6871 = vmatpush1.bf16.msra.mxu0 %v11466_v40  ;;  %v11504_v59 = vld [vmem:[%s19956_s15 + $0x2a4] ss:$48 sps:$4 sm:$0xff]   ;;  %v11507_v63 = vld [vmem:[%s19956_s15 + $0x2ac] ss:$48 sps:$4 sm:$0xff]   ;;  %v11502_v46 = vld [vmem:[%s19956_s15 + $0x2a0] ss:$48 sps:$4 sm:$0xff]  }
 0x6a5   :  { %8128 = vrot.lane.b32.xlu1 %v20764_v58, %s12103_s0  ;;  %4969 = vmatpush1.bf16.msra.mxu1 %v4877_v39  ;;  %v11477_v39 = vld [vmem:[%s19956_s15 + $0xc4] ss:$48 sps:$4 sm:$0xff]   ;;  %v11505_v16 = vld [vmem:[%s19956_s15 + $0x2a8] ss:$48 sps:$4 sm:$0xff]   ;;  %v11508_v32 = vld [vmem:[%s19956_s15 + $0x300] ss:$48 sps:$4 sm:$0xff]  }
 0x6a6   :  { %4970 = vmatprep.subr.bf16.mxu1 %v20766_v35  ;;  %10447 = vmatprep.mubr.msk.bf16.mxu1 %vm4921_vm13, %v20769_v50  ;;  %v11484_v50 = vld [vmem:[%s19956_s15 + $0x188] ss:$48 sps:$4 sm:$0xff]   ;;  %v11510_v21 = vld [vmem:[%s19956_s15 + $0x304] ss:$48 sps:$4 sm:$0xff]   ;;  %v11514_v44 = vld [vmem:[%s19956_s15 + $0x360] ss:$48 sps:$4 sm:$0xff]  }
 0x6a7   :  { %8174 = vrot.lane.b32.xlu0 %v14209_v57, %s12104_s2  ;;  %6872 = vmatprep.subr.bf16.mxu0 %v11474_v62  ;;  %v11511_v26 = vld [vmem:[%s19956_s15 + $0x308] ss:$48 sps:$4 sm:$0xff]   ;;  %v11516_v49 = vld [vmem:[%s19956_s15 + $0x364] ss:$48 sps:$4 sm:$0xff]   ;;  %v11525_v19 = vld [vmem:[%s19956_s15 + $0x3cc] ss:$48 sps:$4 sm:$0xff]  }
 0x6a8   :  { %6873 = vmatpush1.bf16.msra.mxu0 %v11472_v52  ;;  %v11517_v13 = vld [vmem:[%s19956_s15 + $0x368] ss:$48 sps:$4 sm:$0xff]   ;;  %v11522_v20 = vld [vmem:[%s19956_s15 + $0x3c4] ss:$48 sps:$4 sm:$0xff]   ;;  %v11520_v17 = vld [vmem:[%s19956_s15 + $0x3c0] ss:$48 sps:$4 sm:$0xff]  }
 0x6a9   :  { %8176 = vrot.lane.b32.xlu1 %v20764_v58, %s12104_s2  ;;  %4971 = vmatpush1.bf16.msra.mxu1 %v4880_v34  ;;  %v11481_v34 = vld [vmem:[%s19956_s15 + $0x120] ss:$48 sps:$4 sm:$0xff]   ;;  %v11528_v30 = vld [vmem:[%s19956_s15 + $0x424] ss:$48 sps:$4 sm:$0xff]   ;;  %v11531_v28 = vld [vmem:[%s19956_s15 + $0x42c] ss:$48 sps:$4 sm:$0xff]  }
 0x6aa   :  { %4972 = vmatprep.subr.bf16.mxu1 %v20766_v35  ;;  %6874 = vmatprep.subr.bf16.mxu0 %v11480_v1  ;;  %v11526_v11 = vld [vmem:[%s19956_s15 + $0x420] ss:$48 sps:$4 sm:$0xff]   ;;  %v11529_v51 = vld [vmem:[%s19956_s15 + $0x428] ss:$48 sps:$4 sm:$0xff]   ;;  %v11534_v43 = vld [vmem:[%s19956_s15 + $0x484] ss:$48 sps:$4 sm:$0xff]   ;;  %v15790_v1 = vpop.permute.xlu0 %4904 }
 0x6ab   :  { %8222 = vrot.lane.b32.xlu0 %v14209_v57, %s12105_s25  ;;  %v11532_v7 = vld [vmem:[%s19956_s15 + $0x480] ss:$48 sps:$4 sm:$0xff]   ;;  %v11535_v45 = vld [vmem:[%s19956_s15 + $0x488] ss:$48 sps:$4 sm:$0xff]   ;;  %v11540_v18 = vld [vmem:[%s19956_s15 + $0x4e4] ss:$48 sps:$4 sm:$0xff]  }
 0x6ac   :  { %6875 = vmatpush1.bf16.msra.mxu0 %v11478_v24  ;;  %v11538_v56 = vld [vmem:[%s19956_s15 + $0x4e0] ss:$48 sps:$4 sm:$0xff]   ;;  %v11541_v42 = vld [vmem:[%s19956_s15 + $0x4e8] ss:$48 sps:$4 sm:$0xff]   ;;  %v11552_v40 = vld [vmem:[%s19956_s15 + $0x5a4] ss:$48 sps:$4 sm:$0xff]  }
 0x6ad   :  { %8224 = vrot.lane.b32.xlu1 %v20764_v58, %s12105_s25  ;;  %4973 = vmatpush1.bf16.msra.mxu1 %v4883_v14  ;;  %v11490_v14 = vld [vmem:[%s19956_s15 + $0x1e0] ss:$48 sps:$4 sm:$0xff]   ;;  %v11558_v52 = vld [vmem:[%s19956_s15 + $0x604] ss:$48 sps:$4 sm:$0xff]   ;;  %v11687_v57 = vld [vmem:[%s19956_s15 + $0x4fc] ss:$48 sps:$4 sm:$0xff]  }
 0x6ae   :  { %4974 = vmatprep.subr.bf16.mxu1 %v20766_v35  ;;  %6876 = vmatprep.subr.bf16.mxu0 %v11486_v3  ;;  %v11544_v54 = vld [vmem:[%s19956_s15 + $0x540] ss:$48 sps:$4 sm:$0xff]   ;;  %v15794_v24 = vpop.permute.xlu0 %8066  ;;  %v11699_v15 = vld [vmem:[%s19956_s15 + $0x5bc] ss:$48 sps:$4 sm:$0xff]   ;;  %vm20889_vm15 = vmmov %vm20887_vm14 }
 0x6af   :  { %8272 = vrot.lane.b32.xlu0 %v20764_v58, %s12106_s26  ;;  %v11550_v62 = vld [vmem:[%s19956_s15 + $0x5a0] ss:$48 sps:$4 sm:$0xff]   ;;  %vm20922_vm0 = vmmov %vm20887_vm14 }
 0x6b0   :  { %6877 = vmatpush1.bf16.msra.mxu0 %v11484_v50  ;;  %vm20951_vm1 = vmmov %vm20922_vm0 }
 0x6b1   :  { %8274 = vrot.lane.b32.xlu1 %v20771_v55, %s12106_s26  ;;  %4975 = vmatpush1.bf16.msra.mxu1 %v4886_v9  ;;  %v11496_v9 = vld [vmem:[%s19956_s15 + $0x240] ss:$48 sps:$4 sm:$0xff]   ;;  %vm20984_vm2 = vmmov %vm20922_vm0 }
 0x6b2   :  { %4976 = vmatprep.subr.bf16.mxu1 %v20766_v35  ;;  %6878 = vmatprep.subr.bf16.mxu0 %v11495_v29  ;;  %v15798_v3 = vpop.permute.xlu0 %8114  ;;  %vm20996_vm5 = vmmov %vm20922_vm0 }
 0x6b3   :  { %8320 = vrot.lane.b32.xlu0 %v20764_v58, %s20523_s22 }
 0x6b4   :  { %6879 = vmatpush1.bf16.msra.mxu0 %v11493_v31 }
 0x6b5   :  { %8322 = vrot.lane.b32.xlu1 %v20771_v55, %s20523_s22  ;;  %4977 = vmatpush1.bf16.msra.mxu1 %v4889_v5  ;;  %v11513_v5 = vld [vmem:[%s19956_s15 + $0x30c] ss:$48 sps:$4 sm:$0xff]  }
 0x6b6   :  { %4978 = vmatprep.subr.bf16.mxu1 %v20766_v35  ;;  %6880 = vmatprep.subr.bf16.mxu0 %v11501_v53  ;;  %v15802_v50 = vpop.permute.xlu0 %8088 }
 0x6b7   :  { %8368 = vrot.lane.b32.xlu0 %v20764_v58, %s20526_s24  ;;  %20782 = vst [vmem:[#allocation110_spill] sm:$0xff] %v15802_v50 }
 0x6b8   :  { %6881 = vmatpush1.bf16.msra.mxu0 %v11499_v36 }
 0x6b9   :  { %8370 = vrot.lane.b32.xlu1 %v20771_v55, %s20526_s24  ;;  %4979 = vmatpush1.bf16.msra.mxu1 %v4892_v60  ;;  %v11519_v60 = vld [vmem:[%s19956_s15 + $0x36c] ss:$48 sps:$4 sm:$0xff]  }
 0x6ba   :  { %4980 = vmatprep.subr.bf16.mxu1 %v20766_v35  ;;  %6882 = vmatprep.subr.bf16.mxu0 %v11507_v63 }
 0x6bb   :  { %8416 = vrot.lane.b32.xlu0 %v20764_v58, %s20760_s8  ;;  %v11693_v58 = vld [vmem:[%s19956_s15 + $0x55c] ss:$48 sps:$4 sm:$0xff]  }
 0x6bc   :  { %6883 = vmatpush1.bf16.msra.mxu0 %v11505_v16 }
 0x6bd   :  { %8418 = vrot.lane.b32.xlu1 %v20771_v55, %s20760_s8  ;;  %4981 = vmatpush1.bf16.msra.mxu1 %v4895_v25  ;;  %v11523_v25 = vld [vmem:[%s19956_s15 + $0x3c8] ss:$48 sps:$4 sm:$0xff]  }
 0x6be   :  { %4982 = vmatprep.subr.bf16.mxu1 %v20766_v35  ;;  %6884 = vmatprep.subr.bf16.mxu0 %v11513_v5 }
 0x6bf   :  { %8086 = vrot.lane.b32.xlu0 %v20777_v33, %s12102_s1 }
 0x6c0   :  { %6885 = vmatpush1.bf16.msra.mxu0 %v11511_v26 }
 0x6c1   :  { %8134 = vrot.lane.b32.xlu1 %v20777_v33, %s12103_s0  ;;  %4983 = vmatpush1.bf16.msra.mxu1 %v4898_v22  ;;  %v11537_v22 = vld [vmem:[%s19956_s15 + $0x48c] ss:$48 sps:$4 sm:$0xff]  }
 0x6c2   :  { %4984 = vmatprep.subr.bf16.mxu1 %v20766_v35  ;;  %6886 = vmatprep.subr.bf16.mxu0 %v11519_v60 }
 0x6c3   :  { %8084 = vrot.lane.b32.xlu0 %v20779_v23, %s12102_s1 }
 0x6c4   :  { %6887 = vmatpush1.bf16.msra.mxu0 %v11517_v13 }
 0x6c5   :  { %8132 = vrot.lane.b32.xlu1 %v20779_v23, %s12103_s0  ;;  %4985 = vmatpush1.bf16.msra.mxu1 %v4901_v37  ;;  %v11543_v37 = vld [vmem:[%s19956_s15 + $0x4ec] ss:$48 sps:$4 sm:$0xff]  }
 0x6c6   :  { %6782 = vmatprep.subr.bf16.mxu1 %v11465_v41  ;;  %6888 = vmatprep.subr.bf16.mxu0 %v11525_v19  ;;  %v11549_v41 = vld [vmem:[%s19956_s15 + $0x54c] ss:$48 sps:$4 sm:$0xff]  }
 0x6c7   :  { %8182 = vrot.lane.b32.xlu0 %v20777_v33, %s12104_s2 }
 0x6c8   :  { %5001 = vmatmul.mubr.bf16.vlgmr.msra.gmra.mrb[48].mxu1 %v15430_v4  ;;  %v11471_v4 = vld [vmem:[%s19956_s15 + $0x64] ss:$48 sps:$4 sm:$0xff]   ;;  %6889 = vmatpush1.bf16.msra.mxu0 %v11523_v25 }
 0x6c9   :  { %8230 = vrot.lane.b32.xlu1 %v20777_v33, %s12105_s25  ;;  %6783 = vmatpush1.bf16.msra.mxu1 %v11463_v10  ;;  %v11546_v10 = vld [vmem:[%s19956_s15 + $0x544] ss:$48 sps:$4 sm:$0xff]  }
 0x6ca   :  { %6784 = vmatprep.subr.bf16.mxu1 %v11471_v4  ;;  %6890 = vmatprep.subr.bf16.mxu0 %v11531_v28  ;;  %v11547_v4 = vld [vmem:[%s19956_s15 + $0x548] ss:$48 sps:$4 sm:$0xff]  }
 0x6cb   :  { %8180 = vrot.lane.b32.xlu0 %v20779_v23, %s12104_s2 }
 0x6cc   :  { %6891 = vmatpush1.bf16.msra.mxu0 %v11529_v51 }
 0x6cd   :  { %8228 = vrot.lane.b32.xlu1 %v20779_v23, %s12105_s25  ;;  %6785 = vmatpush1.bf16.msra.mxu1 %v11469_v12  ;;  %v11555_v12 = vld [vmem:[%s19956_s15 + $0x5ac] ss:$48 sps:$4 sm:$0xff]  }
 0x6ce   :  { %6786 = vmatprep.subr.bf16.mxu1 %v11477_v39  ;;  %6892 = vmatprep.subr.bf16.mxu0 %v11537_v22  ;;  %v11553_v39 = vld [vmem:[%s19956_s15 + $0x5a8] ss:$48 sps:$4 sm:$0xff]  }
 0x6cf   :  { %8280 = vrot.lane.b32.xlu0 %v20780_v27, %s12106_s26 }
 0x6d0   :  { %6893 = vmatpush1.bf16.msra.mxu0 %v11535_v45 }
 0x6d1   :  { %8278 = vrot.lane.b32.xlu1 %v20777_v33, %s12106_s26  ;;  %6787 = vmatpush1.bf16.msra.mxu1 %v11475_v2  ;;  %v11561_v2 = vld [vmem:[%s19956_s15 + $0x60c] ss:$48 sps:$4 sm:$0xff]  }
 0x6d2   :  { %6788 = vmatprep.subr.bf16.mxu1 %v11483_v47  ;;  %6894 = vmatprep.subr.bf16.mxu0 %v11543_v37  ;;  %v15792_v47 = vpop.permute.xlu1 %4909 }
 0x6d3   :  { %8328 = vrot.lane.b32.xlu0 %v20780_v27, %s20523_s22 }
 0x6d4   :  { %6895 = vmatpush1.bf16.msra.mxu0 %v11541_v42 }
 0x6d5   :  { %8376 = vrot.lane.b32.xlu1 %v20780_v27, %s20526_s24  ;;  %6789 = vmatpush1.bf16.msra.mxu1 %v11481_v34 }
 0x6d6   :  { %6790 = vmatprep.subr.bf16.mxu1 %v11489_v8  ;;  %6896 = vmatprep.subr.bf16.mxu0 %v11549_v41  ;;  %v15796_v34 = vpop.permute.xlu1 %8068 }
 0x6d7   :  { %8326 = vrot.lane.b32.xlu0 %v20777_v33, %s20523_s22  ;;  %20781 = vst [vmem:[#allocation99_spill] sm:$0xff] %v15796_v34 }
 0x6d8   :  { %6897 = vmatpush1.bf16.msra.mxu0 %v11547_v4 }
 0x6d9   :  { %8374 = vrot.lane.b32.xlu1 %v20777_v33, %s20526_s24  ;;  %6791 = vmatpush1.bf16.msra.mxu1 %v11487_v48 }
 0x6da   :  { %6792 = vmatprep.subr.bf16.mxu1 %v11492_v38  ;;  %6898 = vmatprep.subr.bf16.mxu0 %v11555_v12  ;;  %v15800_v8 = vpop.permute.xlu1 %8116  ;;  %v15806_v38 = vpop.permute.xlu0 %8162 }
 0x6db   :  { %8422 = vrot.lane.b32.xlu0 %v20777_v33, %s20760_s8  ;;  %v11670_v33 = vld [vmem:[%s19956_s15 + $0x430] ss:$48 sps:$4 sm:$0xff]  }
 0x6dc   :  { %6899 = vmatpush1.bf16.msra.mxu0 %v11553_v39  ;;  %v11556_v39 = vld [vmem:[%s19956_s15 + $0x600] ss:$48 sps:$4 sm:$0xff]  }
 0x6dd   :  { %8424 = vrot.lane.b32.xlu1 %v20780_v27, %s20760_s8  ;;  %6793 = vmatpush1.bf16.msra.mxu1 %v11490_v14  ;;  %v11681_v27 = vld [vmem:[%s19956_s15 + $0x49c] ss:$48 sps:$4 sm:$0xff]  }
 0x6de   :  { %6794 = vmatprep.subr.bf16.mxu1 %v11498_v61  ;;  %6911 = vmatprep.subr.bf16.mxu0 %v11561_v2  ;;  %v15804_v48 = vpop.permute.xlu1 %8136  ;;  %v11564_v2 = vld [vmem:[%s19956_s15 + $0x664] ss:$48 sps:$4 sm:$0xff]  }
 0x6df   :  { %8082 = vrot.lane.b32.xlu0 %v20771_v55, %s12102_s1  ;;  %20783 = vst [vmem:[#allocation111_spill] sm:$0xff] %v15804_v48 }
 0x6e1   :  { %8130 = vrot.lane.b32.xlu1 %v20771_v55, %s12103_s0  ;;  %6795 = vmatpush1.bf16.msra.mxu1 %v11496_v9 }
 0x6e2   :  { %6796 = vmatprep.subr.bf16.mxu1 %v11504_v59  ;;  %v15809_v61 = vpop.permute.xlu1 %8164 }
 0x6e3   :  { %8178 = vrot.lane.b32.xlu0 %v20771_v55, %s12104_s2 }
 0x6e5   :  { %8226 = vrot.lane.b32.xlu1 %v20771_v55, %s12105_s25  ;;  %6797 = vmatpush1.bf16.msra.mxu1 %v11502_v46  ;;  %v15813_v46 = vpop.permute.xlu0 %8210 }
 0x6e6   :  { %6798 = vmatprep.subr.bf16.mxu1 %v11510_v21  ;;  %v15816_v26 = vpop.permute.xlu1 %8212 }
 0x6e7   :  { %8276 = vrot.lane.b32.xlu0 %v20779_v23, %s12106_s26  ;;  %20784 = vst [vmem:[#allocation100_spill] sm:$0xff] %v15816_v26 }
 0x6e9   :  { %8324 = vrot.lane.b32.xlu1 %v20779_v23, %s20523_s22  ;;  %6799 = vmatpush1.bf16.msra.mxu1 %v11508_v32 }
 0x6ea   :  { %6800 = vmatprep.subr.bf16.mxu1 %v11516_v49  ;;  %v15818_v49 = vpop.permute.xlu0 %8184  ;;  %v15820_v60 = vpop.permute.xlu1 %8232 }
 0x6eb   :  { %8372 = vrot.lane.b32.xlu0 %v20779_v23, %s20526_s24  ;;  %20785 = vst [vmem:[#allocation101_spill] sm:$0xff] %v15818_v49  ;;  %20786 = vst [vmem:[#allocation109_spill] sm:$0xff] %v15820_v60 }
 0x6ed   :  { %8420 = vrot.lane.b32.xlu1 %v20779_v23, %s20760_s8  ;;  %6801 = vmatpush1.bf16.msra.mxu1 %v11514_v44 }
 0x6ee   :  { %6802 = vmatprep.subr.bf16.mxu1 %v11522_v20  ;;  %v15822_v20 = vpop.permute.xlu0 %8260  ;;  %v15824_v51 = vpop.permute.xlu1 %8262 }
 0x6ef   :  { %20787 = vst [vmem:[#allocation102_spill] sm:$0xff] %v15824_v51 }
 0x6f1   :  { %6803 = vmatpush1.bf16.msra.mxu1 %v11520_v17 }
 0x6f2   :  { %6804 = vmatprep.subr.bf16.mxu1 %v11528_v30  ;;  %v15828_v22 = vpop.permute.xlu1 %8308 }
 0x6f5   :  { %6805 = vmatpush1.bf16.msra.mxu1 %v11526_v11 }
 0x6f6   :  { %6806 = vmatprep.subr.bf16.mxu1 %v11534_v43  ;;  %v15826_v43 = vpop.permute.xlu0 %8258  ;;  %v15832_v41 = vpop.permute.xlu1 %8356 }
 0x6f7   :  { %20788 = vst [vmem:[#allocation96_spill] sm:$0xff] %v15826_v43 }
 0x6f9   :  { %6807 = vmatpush1.bf16.msra.mxu1 %v11532_v7 }
 0x6fa   :  { %6808 = vmatprep.subr.bf16.mxu1 %v11540_v18  ;;  %v15830_v45 = vpop.permute.xlu0 %8310 }
 0x6fd   :  { %6809 = vmatpush1.bf16.msra.mxu1 %v11538_v56 }
 0x6fe   :  { %6810 = vmatprep.subr.bf16.mxu1 %v11546_v10  ;;  %v15836_v12 = vpop.permute.xlu0 %8358 }
 0x701   :  { %6811 = vmatpush1.bf16.msra.mxu1 %v11544_v54 }
 0x702   :  { %6812 = vmatprep.subr.bf16.mxu1 %v11552_v40 }
 0x705   :  { %6813 = vmatpush1.bf16.msra.mxu1 %v11550_v62 }
 0x706   :  { %6825 = vmatprep.subr.bf16.mxu1 %v11558_v52  ;;  %v11559_v52 = vld [vmem:[%s19956_s15 + $0x608] ss:$48 sps:$4 sm:$0xff]  }
 0x777   :  { %v4959_v29 = vpop.f32.mrb[44].mxu1 }
 0x778   :  { %v4960_v14 = vadd.f32 %v4959_v29, %v15790_v1  ;;  %v4961_v31 = vpop.f32.mrb[45].mxu1  ;;  %v11567_v29 = vld [vmem:[%s19956_s15 + $0x66c] ss:$48 sps:$4 sm:$0xff]  }
 0x779   :  { %v4962_v36 = vadd.f32 %v4961_v31, %v15790_v1  ;;  %v4963_v9 = vpop.f32.mrb[46].mxu1 }
 0x77a   :  { %v10448_v53 = vmul.f32 -1.442695, %v4960_v14  ;;  %v4964_v59 = vadd.f32 %v4963_v9, %v15792_v47  ;;  %v4965_v63 = vpop.f32.mrb[47].mxu1  ;;  %v11562_v9 = vld [vmem:[%s19956_s15 + $0x660] ss:$48 sps:$4 sm:$0xff]  }
 0x77b   :  { %v10449_v16 = vmul.f32 -1.442695, %v4962_v36  ;;  %v4966_v21 = vadd.f32 %v4965_v63, %v15792_v47  ;;  %v11565_v63 = vld [vmem:[%s19956_s15 + $0x668] ss:$48 sps:$4 sm:$0xff]  }
 0x77c   :  { %11978 = vpow2.f32 %v10448_v53  ;;  %v10451_v5 = vmul.f32 -1.442695, %v4964_v59  ;;  %v15862_v53 = vpop.permute.xlu1 %8306 }
 0x77d   :  { %11980 = vpow2.f32 %v10449_v16  ;;  %v10452_v32 = vmul.f32 -1.442695, %v4966_v21 }
 0x77e   :  { %11982 = vpow2.f32 %v10451_v5 }
 0x77f   :  { %11984 = vpow2.f32 %v10452_v32  ;;  %v11573_v32 = vld [vmem:[%s19956_s15 + $0x6cc] ss:$48 sps:$4 sm:$0xff]  }
 0x786   :  { %v11979_v44 = vpop.eup %11978 }
 0x787   :  { %v11981_v13 = vpop.eup %11980  ;;  %v5027_v19 = vadd.f32 1.0, %v11979_v44  ;;  %v15877_v44 = vpop.permute.xlu0 %8354 }
 0x788   :  { %v11983_v17 = vpop.eup %11982  ;;  %v5028_v25 = vadd.f32 1.0, %v11981_v13 }
 0x789   :  { %v11985_v30 = vpop.eup %11984  ;;  %11986 = vrcp.f32 %v5027_v19  ;;  %v5030_v28 = vadd.f32 1.0, %v11983_v17  ;;  %v11571_v19 = vld [vmem:[%s19956_s15 + $0x6c8] ss:$48 sps:$4 sm:$0xff]   ;;  %v11576_v17 = vld [vmem:[%s19956_s15 + $0x724] ss:$48 sps:$4 sm:$0xff]  }
 0x78a   :  { %11988 = vrcp.f32 %v5028_v25  ;;  %v5031_v11 = vadd.f32 1.0, %v11985_v30  ;;  %v11579_v25 = vld [vmem:[%s19956_s15 + $0x72c] ss:$48 sps:$4 sm:$0xff]   ;;  %v15894_v30 = vpop.permute.xlu1 %8402 }
 0x78b   :  { %11990 = vrcp.f32 %v5030_v28  ;;  %v15896_v28 = vpop.permute.xlu0 %8404 }
 0x78c   :  { %11992 = vrcp.f32 %v5031_v11  ;;  %v11574_v11 = vld [vmem:[%s19956_s15 + $0x720] ss:$48 sps:$4 sm:$0xff]  }
 0x793   :  { %v11987_v7 = vpop.eup %11986 }
 0x794   :  { %v11989_v18 = vpop.eup %11988  ;;  %v5045_v42 = vmul.f32 %v11987_v7, %v4960_v14  ;;  %v11577_v7 = vld [vmem:[%s19956_s15 + $0x728] ss:$48 sps:$4 sm:$0xff]  }
 0x795   :  { %v11991_v37 = vpop.eup %11990  ;;  %v5046_v54 = vmul.f32 %v11989_v18, %v4962_v36  ;;  %v11582_v18 = vld [vmem:[%s19956_s15 + $0x784] ss:$48 sps:$4 sm:$0xff]  }
 0x796   :  { %v11993_v56 = vpop.eup %11992  ;;  %v5048_v10 = vmul.f32 %v11991_v37, %v4964_v59  ;;  %v11585_v37 = vld [vmem:[%s19956_s15 + $0x78c] ss:$48 sps:$4 sm:$0xff]  }
 0x797   :  { %v5049_v4 = vmul.f32 %v11993_v56, %v4966_v21  ;;  %v15910_v56 = vpop.permute.xlu1 %8406 }
 0x798   :  { %v15834_v40 = vpack.c.bf16 %v5048_v10, %v5045_v42  ;;  %v11580_v42 = vld [vmem:[%s19956_s15 + $0x780] ss:$48 sps:$4 sm:$0xff]   ;;  %v11583_v10 = vld [vmem:[%s19956_s15 + $0x788] ss:$48 sps:$4 sm:$0xff]  }
 0x799   :  { %v15838_v62 = vpack.c.bf16 %v5049_v4, %v5046_v54  ;;  %v11588_v4 = vld [vmem:[%s19956_s15 + $0x7e4] ss:$48 sps:$4 sm:$0xff]  }
 0x79b   :  { %v5002_v14 = vpop.f32.mrb[48].mxu1  ;;  %6814 = vmatprep.mubr.bf16.mxu1 %v15838_v62  ;;  %6900 = vmatprep.mubr.bf16.mxu0 %v15838_v62 }
 0x79c   :  { %v15855_v31 = vadd.f32 %v5002_v14, %v15790_v1  ;;  %v5004_v36 = vpop.f32.mrb[49].mxu1  ;;  %6815 = vmatmul.mubr.bf16.vlgmr.msra.gmra.mrb[52].mxu1 %v15834_v40  ;;  %6901 = vmatmul.mubr.bf16.vlgmr.msra.gmra.mrb[24].mxu0 %v15834_v40  ;;  %v11570_v1 = vld [vmem:[%s19956_s15 + $0x6c4] ss:$48 sps:$4 sm:$0xff]  }
 0x79d   :  { %v5005_v59 = vpop.f32.mrb[50].mxu1  ;;  %6826 = vmatpush1.bf16.msra.mxu1 %v11556_v39  ;;  %6912 = vmatpush1.bf16.msra.mxu0 %v11559_v52  ;;  %v11591_v39 = vld [vmem:[%s19956_s15 + $0x7ec] ss:$48 sps:$4 sm:$0xff]   ;;  %v15924_v52 = vpop.permute.xlu0 %8070  ;;  %v11586_v36 = vld [vmem:[%s19956_s15 + $0x7e0] ss:$48 sps:$4 sm:$0xff]  }
 0x79e   :  { %v10450_v16 = vmul.f32 -1.442695, %v15855_v31  ;;  %v15872_v21 = vadd.f32 %v5005_v59, %v15792_v47  ;;  %v5007_v5 = vpop.f32.mrb[51].mxu1  ;;  %6827 = vmatprep.subr.bf16.mxu1 %v11564_v2  ;;  %6913 = vmatprep.subr.bf16.mxu0 %v11567_v29  ;;  %v11568_v47 = vld [vmem:[%s19956_s15 + $0x6c0] ss:$48 sps:$4 sm:$0xff]  }
 0x79f   :  { %6857 = vmatprep.mubr.bf16.mxu1 %v20766_v35  ;;  %6943 = vmatprep.mubr.bf16.mxu0 %v20766_v35  ;;  %v11594_v59 = vld [vmem:[%s19956_s15 + $0x844] ss:$48 sps:$4 sm:$0xff]   ;;  %v11592_v5 = vld [vmem:[%s19956_s15 + $0x840] ss:$48 sps:$4 sm:$0xff]  }
 0x7a0   :  { %11994 = vpow2.f32 %v10450_v16  ;;  %v10453_v13 = vmul.f32 -1.442695, %v15872_v21 }
 0x7a1   :  { %6828 = vmatpush1.bf16.msra.mxu1 %v11562_v9  ;;  %6914 = vmatpush1.bf16.msra.mxu0 %v11565_v63  ;;  %v11589_v9 = vld [vmem:[%s19956_s15 + $0x7e8] ss:$48 sps:$4 sm:$0xff]   ;;  %v11597_v63 = vld [vmem:[%s19956_s15 + $0x84c] ss:$48 sps:$4 sm:$0xff]   ;;  %v15940_v16 = vpop.permute.xlu0 %8118 }
 0x7a2   :  { %11996 = vpow2.f32 %v10453_v13  ;;  %6829 = vmatprep.subr.bf16.mxu1 %v11570_v1  ;;  %6915 = vmatprep.subr.bf16.mxu0 %v11573_v32  ;;  %v15938_v1 = vpop.permute.xlu1 %8072  ;;  %v11595_v32 = vld [vmem:[%s19956_s15 + $0x848] ss:$48 sps:$4 sm:$0xff]   ;;  %v11600_v13 = vld [vmem:[%s19956_s15 + $0x8a4] ss:$48 sps:$4 sm:$0xff]  }
 0x7a5   :  { %6830 = vmatpush1.bf16.msra.mxu1 %v11568_v47  ;;  %6916 = vmatpush1.bf16.msra.mxu0 %v11571_v19  ;;  %v11603_v47 = vld [vmem:[%s19956_s15 + $0x8ac] ss:$48 sps:$4 sm:$0xff]  }
 0x7a6   :  { %6831 = vmatprep.subr.bf16.mxu1 %v11576_v17  ;;  %6917 = vmatprep.subr.bf16.mxu0 %v11579_v25  ;;  %v15954_v19 = vpop.permute.xlu1 %8120  ;;  %v11598_v17 = vld [vmem:[%s19956_s15 + $0x8a0] ss:$48 sps:$4 sm:$0xff]   ;;  %v11601_v25 = vld [vmem:[%s19956_s15 + $0x8a8] ss:$48 sps:$4 sm:$0xff]  }
 0x7a9   :  { %6832 = vmatpush1.bf16.msra.mxu1 %v11574_v11  ;;  %6918 = vmatpush1.bf16.msra.mxu0 %v11577_v7  ;;  %v11606_v11 = vld [vmem:[%s19956_s15 + $0x14] ss:$48 sps:$4 sm:$0xff]   ;;  %v11609_v7 = vld [vmem:[%s19956_s15 + $0x1c] ss:$48 sps:$4 sm:$0xff]  }
 0x7aa   :  { %v11995_v54 = vpop.eup %11994  ;;  %6833 = vmatprep.subr.bf16.mxu1 %v11582_v18  ;;  %6919 = vmatprep.subr.bf16.mxu0 %v11585_v37  ;;  %v15968_v37 = vpop.permute.xlu0 %8166 }
 0x7ab   :  { %v5029_v2 = vadd.f32 1.0, %v11995_v54  ;;  %20789 = vst [vmem:[#allocation103_spill] sm:$0xff] %v15968_v37 }
 0x7ac   :  { %v11997_v29 = vpop.eup %11996 }
 0x7ad   :  { %11998 = vrcp.f32 %v5029_v2  ;;  %v5032_v14 = vadd.f32 1.0, %v11997_v29  ;;  %6834 = vmatpush1.bf16.msra.mxu1 %v11580_v42  ;;  %6920 = vmatpush1.bf16.msra.mxu0 %v11583_v10  ;;  %v11607_v2 = vld [vmem:[%s19956_s15 + $0x18] ss:$48 sps:$4 sm:$0xff]  }
 0x7ae   :  { %6835 = vmatprep.subr.bf16.mxu1 %v11588_v4  ;;  %6921 = vmatprep.subr.bf16.mxu0 %v11591_v39  ;;  %v15972_v4 = vpop.permute.xlu1 %8168  ;;  %v11604_v39 = vld [vmem:[%s19956_s15 + $0x10] ss:$48 sps:$4 sm:$0xff]  }
 0x7af   :  { %12000 = vrcp.f32 %v5032_v14  ;;  %20790 = vst [vmem:[#allocation107_spill] sm:$0xff] %v15972_v4  ;;  %v15982_v14 = vpop.permute.xlu0 %8214  ;;  %v8149_v4 = vsel %vm817_vm4, %v15804_v48, %v15798_v3 }
 0x7b0   :  { %20791 = vst [vmem:[#allocation108_spill] sm:$0xff] %v15982_v14 }
 0x7b1   :  { %6836 = vmatpush1.bf16.msra.mxu1 %v11586_v36  ;;  %6922 = vmatpush1.bf16.msra.mxu0 %v11589_v9  ;;  %v11610_v36 = vld [vmem:[%s19956_s15 + $0x70] ss:$48 sps:$4 sm:$0xff]   ;;  %v11613_v9 = vld [vmem:[%s19956_s15 + $0x78] ss:$48 sps:$4 sm:$0xff]  }
 0x7b2   :  { %6837 = vmatprep.subr.bf16.mxu1 %v11594_v59  ;;  %6923 = vmatprep.subr.bf16.mxu0 %v11597_v63  ;;  %v11618_v59 = vld [vmem:[%s19956_s15 + $0xd4] ss:$48 sps:$4 sm:$0xff]   ;;  %v11621_v63 = vld [vmem:[%s19956_s15 + $0xdc] ss:$48 sps:$4 sm:$0xff]  }
 0x7b5   :  { %6838 = vmatpush1.bf16.msra.mxu1 %v11592_v5  ;;  %6924 = vmatpush1.bf16.msra.mxu0 %v11595_v32  ;;  %v16006_v5 = vpop.permute.xlu1 %8216  ;;  %v16008_v32 = vpop.permute.xlu0 %8264 }
 0x7b6   :  { %6839 = vmatprep.subr.bf16.mxu1 %v11600_v13  ;;  %6925 = vmatprep.subr.bf16.mxu0 %v11603_v47  ;;  %20792 = vst [vmem:[#allocation104_spill] sm:$0xff] %v16006_v5  ;;  %20793 = vst [vmem:[#allocation105_spill] sm:$0xff] %v16008_v32  ;;  %v11616_v13 = vld [vmem:[%s19956_s15 + $0xd0] ss:$48 sps:$4 sm:$0xff]   ;;  %v11619_v47 = vld [vmem:[%s19956_s15 + $0xd8] ss:$48 sps:$4 sm:$0xff]  }
 0x7b7   :  { %v11999_v18 = vpop.eup %11998  ;;  %v11877_v32 = vld [vmem:[%s19956_s15 + $0x808] ss:$48 sps:$4 sm:$0xff]  }
 0x7b8   :  { %v5047_v10 = vmul.f32 %v11999_v18, %v15855_v31  ;;  %v11612_v31 = vld [vmem:[%s19956_s15 + $0x74] ss:$48 sps:$4 sm:$0xff]   ;;  %v11625_v18 = vld [vmem:[%s19956_s15 + $0x138] ss:$48 sps:$4 sm:$0xff]  }
 0x7b9   :  { %v12001_v42 = vpop.eup %12000  ;;  %6840 = vmatpush1.bf16.msra.mxu1 %v11598_v17  ;;  %6926 = vmatpush1.bf16.msra.mxu0 %v11601_v25  ;;  %v11624_v17 = vld [vmem:[%s19956_s15 + $0x134] ss:$48 sps:$4 sm:$0xff]   ;;  %v11627_v25 = vld [vmem:[%s19956_s15 + $0x13c] ss:$48 sps:$4 sm:$0xff]  }
 0x7ba   :  { %v5050_v54 = vmul.f32 %v12001_v42, %v15872_v21  ;;  %6954 = vmatprep.subr.bf16.mxu1 %v11606_v11  ;;  %7040 = vmatprep.subr.bf16.mxu0 %v11609_v7  ;;  %v11615_v21 = vld [vmem:[%s19956_s15 + $0x7c] ss:$48 sps:$4 sm:$0xff]   ;;  %v16022_v11 = vpop.permute.xlu1 %8266  ;;  %v11622_v7 = vld [vmem:[%s19956_s15 + $0x130] ss:$48 sps:$4 sm:$0xff]   ;;  %v11630_v42 = vld [vmem:[%s19956_s15 + $0x194] ss:$48 sps:$4 sm:$0xff]  }
 0x7bb   :  { %20794 = vst [vmem:[#allocation106_spill] sm:$0xff] %v16022_v11  ;;  %v11882_v11 = vld [vmem:[%s19956_s15 + $0x864] ss:$48 sps:$4 sm:$0xff]  }
 0x7bc   :  { %v15980_v29 = vpack.c.bf16 %v5050_v54, %v5047_v10  ;;  %v11633_v10 = vld [vmem:[%s19956_s15 + $0x19c] ss:$48 sps:$4 sm:$0xff]   ;;  %v16036_v54 = vpop.permute.xlu0 %8312 }
 0x7bd   :  { %20795 = vst [vmem:[#allocation20_spill] sm:$0xff] %v16036_v54 }
 0x7be   :  { %6858 = vmatmul.mubr.bf16.vlgmr.msra.gmra.mrb[52].mxu1 %v15980_v29  ;;  %6944 = vmatmul.mubr.bf16.vlgmr.msra.gmra.mrb[24].mxu0 %v15980_v29 }
 0x7bf   :  { %6955 = vmatpush1.bf16.msra.mxu1 %v11604_v39  ;;  %7041 = vmatpush1.bf16.msra.mxu0 %v11607_v2  ;;  %v11628_v39 = vld [vmem:[%s19956_s15 + $0x190] ss:$48 sps:$4 sm:$0xff]   ;;  %v11631_v2 = vld [vmem:[%s19956_s15 + $0x198] ss:$48 sps:$4 sm:$0xff]  }
 0x7c0   :  { %6986 = vmatprep.mubr.bf16.mxu1 %v15838_v62  ;;  %7072 = vmatprep.mubr.bf16.mxu0 %v15838_v62 }
 0x7c1   :  { %6956 = vmatprep.subr.bf16.mxu1 %v11612_v31  ;;  %7042 = vmatprep.subr.bf16.mxu0 %v11615_v21  ;;  %v11636_v31 = vld [vmem:[%s19956_s15 + $0x1f4] ss:$48 sps:$4 sm:$0xff]   ;;  %v11639_v21 = vld [vmem:[%s19956_s15 + $0x1fc] ss:$48 sps:$4 sm:$0xff]  }
 0x7c3   :  { %6957 = vmatpush1.bf16.msra.mxu1 %v11610_v36  ;;  %7043 = vmatpush1.bf16.msra.mxu0 %v11613_v9  ;;  %v16050_v36 = vpop.permute.xlu1 %8314  ;;  %v16052_v9 = vpop.permute.xlu0 %8360 }
 0x7c4   :  { %6958 = vmatprep.subr.bf16.mxu1 %v11618_v59  ;;  %7044 = vmatprep.subr.bf16.mxu0 %v11621_v63  ;;  %20796 = vst [vmem:[#allocation112_spill] sm:$0xff] %v16050_v36  ;;  %20797 = vst [vmem:[#allocation113_spill] sm:$0xff] %v16052_v9  ;;  %v11634_v59 = vld [vmem:[%s19956_s15 + $0x1f0] ss:$48 sps:$4 sm:$0xff]   ;;  %v11637_v63 = vld [vmem:[%s19956_s15 + $0x1f8] ss:$48 sps:$4 sm:$0xff]  }
 0x7c5   :  { %v11870_v9 = vld [vmem:[%s19956_s15 + $0x7a4] ss:$48 sps:$4 sm:$0xff]  }
 0x7c7   :  { %6959 = vmatpush1.bf16.msra.mxu1 %v11616_v13  ;;  %7045 = vmatpush1.bf16.msra.mxu0 %v11619_v47  ;;  %v11642_v13 = vld [vmem:[%s19956_s15 + $0x254] ss:$48 sps:$4 sm:$0xff]   ;;  %v11645_v47 = vld [vmem:[%s19956_s15 + $0x25c] ss:$48 sps:$4 sm:$0xff]  }
 0x7c8   :  { %6960 = vmatprep.subr.bf16.mxu1 %v11624_v17  ;;  %7046 = vmatprep.subr.bf16.mxu0 %v11627_v25  ;;  %v16066_v17 = vpop.permute.xlu1 %8362  ;;  %v11640_v25 = vld [vmem:[%s19956_s15 + $0x250] ss:$48 sps:$4 sm:$0xff]  }
 0x7c9   :  { %20798 = vst [vmem:[#allocation114_spill] sm:$0xff] %v16066_v17 }
 0x7cb   :  { %6961 = vmatpush1.bf16.msra.mxu1 %v11622_v7  ;;  %7047 = vmatpush1.bf16.msra.mxu0 %v11625_v18  ;;  %v11643_v7 = vld [vmem:[%s19956_s15 + $0x258] ss:$48 sps:$4 sm:$0xff]   ;;  %v11648_v18 = vld [vmem:[%s19956_s15 + $0x2b4] ss:$48 sps:$4 sm:$0xff]  }
 0x7cc   :  { %6962 = vmatprep.subr.bf16.mxu1 %v11630_v42  ;;  %7048 = vmatprep.subr.bf16.mxu0 %v11633_v10  ;;  %v11651_v42 = vld [vmem:[%s19956_s15 + $0x2bc] ss:$48 sps:$4 sm:$0xff]   ;;  %v16080_v10 = vpop.permute.xlu0 %8408 }
 0x7cd   :  { %20799 = vst [vmem:[#allocation115_spill] sm:$0xff] %v16080_v10 }
 0x7cf   :  { %6963 = vmatpush1.bf16.msra.mxu1 %v11628_v39  ;;  %7049 = vmatpush1.bf16.msra.mxu0 %v11631_v2  ;;  %v11646_v39 = vld [vmem:[%s19956_s15 + $0x2b0] ss:$48 sps:$4 sm:$0xff]   ;;  %v11649_v2 = vld [vmem:[%s19956_s15 + $0x2b8] ss:$48 sps:$4 sm:$0xff]  }
 0x7d0   :  { %6964 = vmatprep.subr.bf16.mxu1 %v11636_v31  ;;  %7050 = vmatprep.subr.bf16.mxu0 %v11639_v21  ;;  %v11654_v31 = vld [vmem:[%s19956_s15 + $0x314] ss:$48 sps:$4 sm:$0xff]   ;;  %v11657_v21 = vld [vmem:[%s19956_s15 + $0x31c] ss:$48 sps:$4 sm:$0xff]  }
 0x7d3   :  { %6965 = vmatpush1.bf16.msra.mxu1 %v11634_v59  ;;  %7051 = vmatpush1.bf16.msra.mxu0 %v11637_v63  ;;  %v16094_v59 = vpop.permute.xlu1 %8410  ;;  %v16096_v63 = vpop.permute.xlu0 %8074 }
 0x7d4   :  { %6966 = vmatprep.subr.bf16.mxu1 %v11642_v13  ;;  %7052 = vmatprep.subr.bf16.mxu0 %v11645_v47  ;;  %20800 = vst [vmem:[#allocation116_spill] sm:$0xff] %v16094_v59  ;;  %20801 = vst [vmem:[#allocation117_spill] sm:$0xff] %v16096_v63  ;;  %v11652_v13 = vld [vmem:[%s19956_s15 + $0x310] ss:$48 sps:$4 sm:$0xff]   ;;  %v11655_v47 = vld [vmem:[%s19956_s15 + $0x318] ss:$48 sps:$4 sm:$0xff]  }
 0x7d7   :  { %6967 = vmatpush1.bf16.msra.mxu1 %v11640_v25  ;;  %7053 = vmatpush1.bf16.msra.mxu0 %v11643_v7  ;;  %v11660_v25 = vld [vmem:[%s19956_s15 + $0x374] ss:$48 sps:$4 sm:$0xff]   ;;  %v11663_v7 = vld [vmem:[%s19956_s15 + $0x37c] ss:$48 sps:$4 sm:$0xff]  }
 0x7d8   :  { %6968 = vmatprep.subr.bf16.mxu1 %v11648_v18  ;;  %7054 = vmatprep.subr.bf16.mxu0 %v11651_v42  ;;  %v16110_v18 = vpop.permute.xlu1 %8076  ;;  %v11658_v42 = vld [vmem:[%s19956_s15 + $0x370] ss:$48 sps:$4 sm:$0xff]  }
 0x7d9   :  { %20802 = vst [vmem:[#allocation118_spill] sm:$0xff] %v16110_v18 }
 0x7db   :  { %6969 = vmatpush1.bf16.msra.mxu1 %v11646_v39  ;;  %7055 = vmatpush1.bf16.msra.mxu0 %v11649_v2  ;;  %v11661_v39 = vld [vmem:[%s19956_s15 + $0x378] ss:$48 sps:$4 sm:$0xff]   ;;  %v11666_v2 = vld [vmem:[%s19956_s15 + $0x3d4] ss:$48 sps:$4 sm:$0xff]  }
 0x7dc   :  { %6970 = vmatprep.subr.bf16.mxu1 %v11654_v31  ;;  %7056 = vmatprep.subr.bf16.mxu0 %v11657_v21  ;;  %v11669_v31 = vld [vmem:[%s19956_s15 + $0x3dc] ss:$48 sps:$4 sm:$0xff]   ;;  %v16124_v21 = vpop.permute.xlu0 %8122 }
 0x7dd   :  { %20803 = vst [vmem:[#allocation119_spill] sm:$0xff] %v16124_v21 }
 0x7df   :  { %6971 = vmatpush1.bf16.msra.mxu1 %v11652_v13  ;;  %7057 = vmatpush1.bf16.msra.mxu0 %v11655_v47  ;;  %v11664_v13 = vld [vmem:[%s19956_s15 + $0x3d0] ss:$48 sps:$4 sm:$0xff]   ;;  %v11667_v47 = vld [vmem:[%s19956_s15 + $0x3d8] ss:$48 sps:$4 sm:$0xff]  }
 0x7e0   :  { %6972 = vmatprep.subr.bf16.mxu1 %v11660_v25  ;;  %7058 = vmatprep.subr.bf16.mxu0 %v11663_v7  ;;  %v11672_v25 = vld [vmem:[%s19956_s15 + $0x434] ss:$48 sps:$4 sm:$0xff]   ;;  %v11675_v7 = vld [vmem:[%s19956_s15 + $0x43c] ss:$48 sps:$4 sm:$0xff]  }
 0x7e3   :  { %6973 = vmatpush1.bf16.msra.mxu1 %v11658_v42  ;;  %7059 = vmatpush1.bf16.msra.mxu0 %v11661_v39  ;;  %v16138_v42 = vpop.permute.xlu1 %8124  ;;  %v16140_v39 = vpop.permute.xlu0 %8170 }
 0x7e4   :  { %6974 = vmatprep.subr.bf16.mxu1 %v11666_v2  ;;  %7060 = vmatprep.subr.bf16.mxu0 %v11669_v31  ;;  %20804 = vst [vmem:[#allocation120_spill] sm:$0xff] %v16138_v42  ;;  %20805 = vst [vmem:[#allocation121_spill] sm:$0xff] %v16140_v39  ;;  %v11673_v2 = vld [vmem:[%s19956_s15 + $0x438] ss:$48 sps:$4 sm:$0xff]   ;;  %v11678_v31 = vld [vmem:[%s19956_s15 + $0x494] ss:$48 sps:$4 sm:$0xff]  }
 0x7e5   :  { %v11742_v39 = vld [vmem:[%s19956_s15 + $0x8b0] ss:$48 sps:$4 sm:$0xff]  }
 0x7e7   :  { %6975 = vmatpush1.bf16.msra.mxu1 %v11664_v13  ;;  %7061 = vmatpush1.bf16.msra.mxu0 %v11667_v47  ;;  %v16154_v13 = vpop.permute.xlu1 %8172  ;;  %v11676_v47 = vld [vmem:[%s19956_s15 + $0x490] ss:$48 sps:$4 sm:$0xff]  }
 0x7e8   :  { %6976 = vmatprep.subr.bf16.mxu1 %v11672_v25  ;;  %7062 = vmatprep.subr.bf16.mxu0 %v11675_v7  ;;  %20806 = vst [vmem:[#allocation122_spill] sm:$0xff] %v16154_v13  ;;  %v11679_v25 = vld [vmem:[%s19956_s15 + $0x498] ss:$48 sps:$4 sm:$0xff]   ;;  %v11684_v7 = vld [vmem:[%s19956_s15 + $0x4f4] ss:$48 sps:$4 sm:$0xff]  }
 0x7e9   :  { %v11756_v13 = vld [vmem:[%s19956_s15 + $0x84] ss:$48 sps:$4 sm:$0xff]  }
 0x7eb   :  { %6977 = vmatpush1.bf16.msra.mxu1 %v11670_v33  ;;  %7063 = vmatpush1.bf16.msra.mxu0 %v11673_v2  ;;  %v16168_v33 = vpop.permute.xlu0 %8218  ;;  %v11682_v2 = vld [vmem:[%s19956_s15 + $0x4f0] ss:$48 sps:$4 sm:$0xff]  }
 0x7ec   :  { %6978 = vmatprep.subr.bf16.mxu1 %v11678_v31  ;;  %7064 = vmatprep.subr.bf16.mxu0 %v11681_v27  ;;  %20807 = vst [vmem:[#allocation123_spill] sm:$0xff] %v16168_v33  ;;  %v11685_v27 = vld [vmem:[%s19956_s15 + $0x4f8] ss:$48 sps:$4 sm:$0xff]   ;;  %v11690_v31 = vld [vmem:[%s19956_s15 + $0x554] ss:$48 sps:$4 sm:$0xff]  }
 0x7ef   :  { %6979 = vmatpush1.bf16.msra.mxu1 %v11676_v47  ;;  %7065 = vmatpush1.bf16.msra.mxu0 %v11679_v25  ;;  %v16182_v47 = vpop.permute.xlu1 %8220  ;;  %v16184_v25 = vpop.permute.xlu0 %8268 }
 0x7f0   :  { %6980 = vmatprep.subr.bf16.mxu1 %v11684_v7  ;;  %7066 = vmatprep.subr.bf16.mxu0 %v11687_v57  ;;  %20808 = vst [vmem:[#allocation124_spill] sm:$0xff] %v16182_v47  ;;  %20809 = vst [vmem:[#allocation125_spill] sm:$0xff] %v16184_v25  ;;  %v11691_v57 = vld [vmem:[%s19956_s15 + $0x558] ss:$48 sps:$4 sm:$0xff]   ;;  %v11696_v7 = vld [vmem:[%s19956_s15 + $0x5b4] ss:$48 sps:$4 sm:$0xff]  }
 0x7f1   :  { %v11705_v25 = vld [vmem:[%s19956_s15 + $0x61c] ss:$48 sps:$4 sm:$0xff]  }
 0x7f3   :  { %6981 = vmatpush1.bf16.msra.mxu1 %v11682_v2  ;;  %7067 = vmatpush1.bf16.msra.mxu0 %v11685_v27  ;;  %v16198_v2 = vpop.permute.xlu1 %8270  ;;  %v11694_v27 = vld [vmem:[%s19956_s15 + $0x5b0] ss:$48 sps:$4 sm:$0xff]  }
 0x7f4   :  { %6982 = vmatprep.subr.bf16.mxu1 %v11690_v31  ;;  %7068 = vmatprep.subr.bf16.mxu0 %v11693_v58  ;;  %20810 = vst [vmem:[#allocation126_spill] sm:$0xff] %v16198_v2  ;;  %v11697_v58 = vld [vmem:[%s19956_s15 + $0x5b8] ss:$48 sps:$4 sm:$0xff]   ;;  %v11702_v31 = vld [vmem:[%s19956_s15 + $0x614] ss:$48 sps:$4 sm:$0xff]  }
 0x7f5   :  { %v11724_v2 = vld [vmem:[%s19956_s15 + $0x790] ss:$48 sps:$4 sm:$0xff]  }
 0x7f7   :  { %6983 = vmatpush1.bf16.msra.mxu1 %v11688_v6  ;;  %7069 = vmatpush1.bf16.msra.mxu0 %v11691_v57  ;;  %v16212_v6 = vpop.permute.xlu0 %8316  ;;  %v11700_v57 = vld [vmem:[%s19956_s15 + $0x610] ss:$48 sps:$4 sm:$0xff]  }
 0x7f8   :  { %6984 = vmatprep.subr.bf16.mxu1 %v11696_v7  ;;  %7070 = vmatprep.subr.bf16.mxu0 %v11699_v15  ;;  %20811 = vst [vmem:[#allocation127_spill] sm:$0xff] %v16212_v6  ;;  %v11703_v15 = vld [vmem:[%s19956_s15 + $0x618] ss:$48 sps:$4 sm:$0xff]   ;;  %v11708_v7 = vld [vmem:[%s19956_s15 + $0x674] ss:$48 sps:$4 sm:$0xff]  }
 0x7f9   :  { %v11711_v6 = vld [vmem:[%s19956_s15 + $0x67c] ss:$48 sps:$4 sm:$0xff]  }
 0x7fb   :  { %6985 = vmatpush1.bf16.msra.mxu1 %v11694_v27  ;;  %7071 = vmatpush1.bf16.msra.mxu0 %v11697_v58  ;;  %v16226_v27 = vpop.permute.xlu1 %8318  ;;  %v16230_v58 = vpop.permute.xlu0 %8364 }
 0x7fc   :  { %6997 = vmatprep.subr.bf16.mxu1 %v11702_v31  ;;  %7083 = vmatprep.subr.bf16.mxu0 %v11705_v25  ;;  %20812 = vst [vmem:[#allocation128_spill] sm:$0xff] %v16226_v27  ;;  %20813 = vst [vmem:[#allocation129_spill] sm:$0xff] %v16230_v58  ;;  %v11706_v25 = vld [vmem:[%s19956_s15 + $0x670] ss:$48 sps:$4 sm:$0xff]   ;;  %v11709_v31 = vld [vmem:[%s19956_s15 + $0x678] ss:$48 sps:$4 sm:$0xff]  }
 0x7fd   :  { %v11714_v27 = vld [vmem:[%s19956_s15 + $0x6d4] ss:$48 sps:$4 sm:$0xff]   ;;  %v11717_v58 = vld [vmem:[%s19956_s15 + $0x6dc] ss:$48 sps:$4 sm:$0xff]  }
 0x7fe   :  { %6987 = vmatmul.mubr.bf16.vlgmr.msra.gmra.mrb[56].mxu1 %v15834_v40  ;;  %7073 = vmatmul.mubr.bf16.vlgmr.msra.gmra.mrb[28].mxu0 %v15834_v40 }
 0x7ff   :  { %6998 = vmatpush1.bf16.msra.mxu1 %v11700_v57  ;;  %7084 = vmatpush1.bf16.msra.mxu0 %v11703_v15  ;;  %v16246_v57 = vpop.permute.xlu1 %8366  ;;  %v11715_v15 = vld [vmem:[%s19956_s15 + $0x6d8] ss:$48 sps:$4 sm:$0xff]  }
 0x800   :  { %6999 = vmatprep.subr.bf16.mxu1 %v11708_v7  ;;  %7085 = vmatprep.subr.bf16.mxu0 %v11711_v6  ;;  %20814 = vst [vmem:[#allocation130_spill] sm:$0xff] %v16246_v57  ;;  %v11712_v6 = vld [vmem:[%s19956_s15 + $0x6d0] ss:$48 sps:$4 sm:$0xff]   ;;  %v11720_v7 = vld [vmem:[%s19956_s15 + $0x734] ss:$48 sps:$4 sm:$0xff]  }
 0x801   :  { %7029 = vmatprep.mubr.bf16.mxu1 %v20766_v35  ;;  %7115 = vmatprep.mubr.bf16.mxu0 %v20766_v35  ;;  %v11723_v57 = vld [vmem:[%s19956_s15 + $0x73c] ss:$48 sps:$4 sm:$0xff]  }
 0x803   :  { %7000 = vmatpush1.bf16.msra.mxu1 %v11706_v25  ;;  %7086 = vmatpush1.bf16.msra.mxu0 %v11709_v31  ;;  %v16260_v25 = vpop.permute.xlu0 %8412  ;;  %v11718_v31 = vld [vmem:[%s19956_s15 + $0x730] ss:$48 sps:$4 sm:$0xff]  }
 0x804   :  { %7001 = vmatprep.subr.bf16.mxu1 %v11714_v27  ;;  %7087 = vmatprep.subr.bf16.mxu0 %v11717_v58  ;;  %20815 = vst [vmem:[#allocation131_spill] sm:$0xff] %v16260_v25  ;;  %v11721_v27 = vld [vmem:[%s19956_s15 + $0x738] ss:$48 sps:$4 sm:$0xff]   ;;  %v11726_v58 = vld [vmem:[%s19956_s15 + $0x794] ss:$48 sps:$4 sm:$0xff]  }
 0x805   :  { %v11729_v25 = vld [vmem:[%s19956_s15 + $0x79c] ss:$48 sps:$4 sm:$0xff]  }
 0x807   :  { %7002 = vmatpush1.bf16.msra.mxu1 %v11712_v6  ;;  %7088 = vmatpush1.bf16.msra.mxu0 %v11715_v15  ;;  %v16274_v6 = vpop.permute.xlu1 %8414  ;;  %v16276_v15 = vpop.permute.xlu0 %8078 }
 0x808   :  { %7003 = vmatprep.subr.bf16.mxu1 %v11720_v7  ;;  %7089 = vmatprep.subr.bf16.mxu0 %v11723_v57  ;;  %20816 = vst [vmem:[#allocation132_spill] sm:$0xff] %v16274_v6  ;;  %20817 = vst [vmem:[#allocation133_spill] sm:$0xff] %v16276_v15  ;;  %v11727_v57 = vld [vmem:[%s19956_s15 + $0x798] ss:$48 sps:$4 sm:$0xff]   ;;  %v11732_v7 = vld [vmem:[%s19956_s15 + $0x7f4] ss:$48 sps:$4 sm:$0xff]  }
 0x809   :  { %v11735_v15 = vld [vmem:[%s19956_s15 + $0x7fc] ss:$48 sps:$4 sm:$0xff]  }
 0x80a   :  { %v11741_v6 = vld [vmem:[%s19956_s15 + $0x85c] ss:$48 sps:$4 sm:$0xff]  }
 0x80b   :  { %7004 = vmatpush1.bf16.msra.mxu1 %v11718_v31  ;;  %7090 = vmatpush1.bf16.msra.mxu0 %v11721_v27  ;;  %v16290_v31 = vpop.permute.xlu1 %8080  ;;  %v11730_v27 = vld [vmem:[%s19956_s15 + $0x7f0] ss:$48 sps:$4 sm:$0xff]  }
 0x80c   :  { %7005 = vmatprep.subr.bf16.mxu1 %v11726_v58  ;;  %7091 = vmatprep.subr.bf16.mxu0 %v11729_v25  ;;  %v11733_v25 = vld [vmem:[%s19956_s15 + $0x7f8] ss:$48 sps:$4 sm:$0xff]   ;;  %v11738_v58 = vld [vmem:[%s19956_s15 + $0x854] ss:$48 sps:$4 sm:$0xff]  }
 0x80f   :  { %7006 = vmatpush1.bf16.msra.mxu1 %v11724_v2  ;;  %7092 = vmatpush1.bf16.msra.mxu0 %v11727_v57  ;;  %v16304_v2 = vpop.permute.xlu0 %8126  ;;  %v11736_v57 = vld [vmem:[%s19956_s15 + $0x850] ss:$48 sps:$4 sm:$0xff]  }
 0x810   :  { %7007 = vmatprep.subr.bf16.mxu1 %v11732_v7  ;;  %7093 = vmatprep.subr.bf16.mxu0 %v11735_v15  ;;  %20818 = vst [vmem:[#allocation134_spill] sm:$0xff] %v16304_v2  ;;  %v11739_v15 = vld [vmem:[%s19956_s15 + $0x858] ss:$48 sps:$4 sm:$0xff]   ;;  %v11744_v7 = vld [vmem:[%s19956_s15 + $0x8b4] ss:$48 sps:$4 sm:$0xff]  }
 0x811   :  { %v11747_v2 = vld [vmem:[%s19956_s15 + $0x8bc] ss:$48 sps:$4 sm:$0xff]  }
 0x813   :  { %7008 = vmatpush1.bf16.msra.mxu1 %v11730_v27  ;;  %7094 = vmatpush1.bf16.msra.mxu0 %v11733_v25  ;;  %v16318_v27 = vpop.permute.xlu1 %8128  ;;  %v16320_v25 = vpop.permute.xlu0 %8174 }
 0x814   :  { %7009 = vmatprep.subr.bf16.mxu1 %v11738_v58  ;;  %7095 = vmatprep.subr.bf16.mxu0 %v11741_v6  ;;  %20819 = vst [vmem:[#allocation135_spill] sm:$0xff] %v16318_v27  ;;  %20820 = vst [vmem:[#allocation136_spill] sm:$0xff] %v16320_v25  ;;  %v11745_v6 = vld [vmem:[%s19956_s15 + $0x8b8] ss:$48 sps:$4 sm:$0xff]   ;;  %v11750_v58 = vld [vmem:[%s19956_s15 + $0x24] ss:$48 sps:$4 sm:$0xff]  }
 0x815   :  { %v11753_v25 = vld [vmem:[%s19956_s15 + $0x2c] ss:$48 sps:$4 sm:$0xff]  }
 0x817   :  { %7010 = vmatpush1.bf16.msra.mxu1 %v11736_v57  ;;  %7096 = vmatpush1.bf16.msra.mxu0 %v11739_v15  ;;  %v16334_v57 = vpop.permute.xlu1 %8176  ;;  %v11748_v15 = vld [vmem:[%s19956_s15 + $0x20] ss:$48 sps:$4 sm:$0xff]  }
 0x818   :  { %7011 = vmatprep.subr.bf16.mxu1 %v11744_v7  ;;  %7097 = vmatprep.subr.bf16.mxu0 %v11747_v2  ;;  %v11751_v2 = vld [vmem:[%s19956_s15 + $0x28] ss:$48 sps:$4 sm:$0xff]   ;;  %v16342_v7 = vpop.permute.xlu0 %8222 }
 0x819   :  { %20821 = vst [vmem:[#allocation137_spill] sm:$0xff] %v16342_v7 }
 0x81b   :  { %7012 = vmatpush1.bf16.msra.mxu1 %v11742_v39  ;;  %7098 = vmatpush1.bf16.msra.mxu0 %v11745_v6  ;;  %v11759_v39 = vld [vmem:[%s19956_s15 + $0x8c] ss:$48 sps:$4 sm:$0xff]   ;;  %v11757_v6 = vld [vmem:[%s19956_s15 + $0x88] ss:$48 sps:$4 sm:$0xff]   ;;  %v16363_v7 = vpop.permute.xlu1 %8224 }
 0x81c   :  { %7126 = vmatprep.subr.bf16.mxu1 %v11750_v58  ;;  %7212 = vmatprep.subr.bf16.mxu0 %v11753_v25  ;;  %v11754_v25 = vld [vmem:[%s19956_s15 + $0x80] ss:$48 sps:$4 sm:$0xff]   ;;  %v11762_v58 = vld [vmem:[%s19956_s15 + $0xe4] ss:$48 sps:$4 sm:$0xff]   ;;  %v16368_v33 = vpop.permute.xlu0 %8272 }
 0x81d   :  { %20822 = vst [vmem:[#allocation138_spill] sm:$0xff] %v16368_v33 }
 0x81e   :  { %7030 = vmatmul.mubr.bf16.vlgmr.msra.gmra.mrb[56].mxu1 %v15980_v29  ;;  %7116 = vmatmul.mubr.bf16.vlgmr.msra.gmra.mrb[28].mxu0 %v15980_v29 }
 0x81f   :  { %7127 = vmatpush1.bf16.msra.mxu1 %v11748_v15  ;;  %7158 = vmatprep.mubr.bf16.mxu1 %v15838_v62  ;;  %v11765_v15 = vld [vmem:[%s19956_s15 + $0xec] ss:$48 sps:$4 sm:$0xff]  }
 0x820   :  { %7213 = vmatpush1.bf16.msra.mxu0 %v11751_v2  ;;  %7244 = vmatprep.mubr.bf16.mxu0 %v15838_v62  ;;  %v11760_v62 = vld [vmem:[%s19956_s15 + $0xe0] ss:$48 sps:$4 sm:$0xff]   ;;  %v11763_v2 = vld [vmem:[%s19956_s15 + $0xe8] ss:$48 sps:$4 sm:$0xff]   ;;  %v16393_v33 = vpop.permute.xlu0 %8320 }
 0x821   :  { %7128 = vmatprep.subr.bf16.mxu1 %v11756_v13  ;;  %7214 = vmatprep.subr.bf16.mxu0 %v11759_v39  ;;  %v11768_v13 = vld [vmem:[%s19956_s15 + $0x144] ss:$48 sps:$4 sm:$0xff]   ;;  %v11771_v39 = vld [vmem:[%s19956_s15 + $0x14c] ss:$48 sps:$4 sm:$0xff]   ;;  %20823 = vst [vmem:[#allocation139_spill] sm:$0xff] %v16393_v33 }
 0x822   :  { %v11780_v33 = vld [vmem:[%s19956_s15 + $0x204] ss:$48 sps:$4 sm:$0xff]  }
 0x823   :  { %7129 = vmatpush1.bf16.msra.mxu1 %v11754_v25  ;;  %v16382_v25 = vpop.permute.xlu1 %8274 }
 0x824   :  { %7215 = vmatpush1.bf16.msra.mxu0 %v11757_v6  ;;  %7130 = vmatprep.subr.bf16.mxu1 %v11762_v58  ;;  %v11766_v6 = vld [vmem:[%s19956_s15 + $0x140] ss:$48 sps:$4 sm:$0xff]   ;;  %v11769_v58 = vld [vmem:[%s19956_s15 + $0x148] ss:$48 sps:$4 sm:$0xff]   ;;  %v16412_v47 = vpop.permute.xlu0 %8368 }
 0x825   :  { %7216 = vmatprep.subr.bf16.mxu0 %v11765_v15  ;;  %v11774_v15 = vld [vmem:[%s19956_s15 + $0x1a4] ss:$48 sps:$4 sm:$0xff]   ;;  %20824 = vst [vmem:[#allocation140_spill] sm:$0xff] %v16412_v47  ;;  %v11789_v47 = vld [vmem:[%s19956_s15 + $0x26c] ss:$48 sps:$4 sm:$0xff]  }
 0x827   :  { %7131 = vmatpush1.bf16.msra.mxu1 %v11760_v62  ;;  %v11777_v62 = vld [vmem:[%s19956_s15 + $0x1ac] ss:$48 sps:$4 sm:$0xff]  }
 0x828   :  { %7217 = vmatpush1.bf16.msra.mxu0 %v11763_v2  ;;  %7132 = vmatprep.subr.bf16.mxu1 %v11768_v13  ;;  %v11772_v2 = vld [vmem:[%s19956_s15 + $0x1a0] ss:$48 sps:$4 sm:$0xff]   ;;  %v11775_v13 = vld [vmem:[%s19956_s15 + $0x1a8] ss:$48 sps:$4 sm:$0xff]   ;;  %v16437_v63 = vpop.permute.xlu0 %8416 }
 0x829   :  { %7218 = vmatprep.subr.bf16.mxu0 %v11771_v39  ;;  %v16407_v39 = vpop.permute.xlu1 %8322  ;;  %20825 = vst [vmem:[#allocation141_spill] sm:$0xff] %v16437_v63  ;;  %v11798_v63 = vld [vmem:[%s19956_s15 + $0x324] ss:$48 sps:$4 sm:$0xff]  }
 0x82b   :  { %7133 = vmatpush1.bf16.msra.mxu1 %v11766_v6  ;;  %v11783_v6 = vld [vmem:[%s19956_s15 + $0x20c] ss:$48 sps:$4 sm:$0xff]  }
 0x82c   :  { %7219 = vmatpush1.bf16.msra.mxu0 %v11769_v58  ;;  %7134 = vmatprep.subr.bf16.mxu1 %v11774_v15  ;;  %v11778_v58 = vld [vmem:[%s19956_s15 + $0x200] ss:$48 sps:$4 sm:$0xff]   ;;  %v11781_v15 = vld [vmem:[%s19956_s15 + $0x208] ss:$48 sps:$4 sm:$0xff]   ;;  %v16456_v18 = vpop.permute.xlu0 %8086 }
 0x82d   :  { %7220 = vmatprep.subr.bf16.mxu0 %v11777_v62  ;;  %v11786_v62 = vld [vmem:[%s19956_s15 + $0x264] ss:$48 sps:$4 sm:$0xff]   ;;  %20826 = vst [vmem:[#allocation142_spill] sm:$0xff] %v16456_v18  ;;  %v11807_v18 = vld [vmem:[%s19956_s15 + $0x38c] ss:$48 sps:$4 sm:$0xff]  }
 0x82f   :  { %7135 = vmatpush1.bf16.msra.mxu1 %v11772_v2  ;;  %v16426_v2 = vpop.permute.xlu1 %8370 }
 0x830   :  { %7221 = vmatpush1.bf16.msra.mxu0 %v11775_v13  ;;  %7136 = vmatprep.subr.bf16.mxu1 %v11780_v33  ;;  %v11784_v33 = vld [vmem:[%s19956_s15 + $0x260] ss:$48 sps:$4 sm:$0xff]   ;;  %v11787_v13 = vld [vmem:[%s19956_s15 + $0x268] ss:$48 sps:$4 sm:$0xff]   ;;  %v16481_v21 = vpop.permute.xlu0 %8084 }
 0x831   :  { %7222 = vmatprep.subr.bf16.mxu0 %v11783_v6  ;;  %v11792_v6 = vld [vmem:[%s19956_s15 + $0x2c4] ss:$48 sps:$4 sm:$0xff]   ;;  %20828 = vst [vmem:[#allocation144_spill] sm:$0xff] %v16481_v21 }
 0x833   :  { %7137 = vmatpush1.bf16.msra.mxu1 %v11778_v58  ;;  %v11795_v58 = vld [vmem:[%s19956_s15 + $0x2cc] ss:$48 sps:$4 sm:$0xff]  }
 0x834   :  { %7223 = vmatpush1.bf16.msra.mxu0 %v11781_v15  ;;  %7138 = vmatprep.subr.bf16.mxu1 %v11786_v62  ;;  %v11790_v15 = vld [vmem:[%s19956_s15 + $0x2c0] ss:$48 sps:$4 sm:$0xff]   ;;  %v11793_v62 = vld [vmem:[%s19956_s15 + $0x2c8] ss:$48 sps:$4 sm:$0xff]   ;;  %v16500_v42 = vpop.permute.xlu0 %8182 }
 0x835   :  { %7224 = vmatprep.subr.bf16.mxu0 %v11789_v47  ;;  %v16451_v47 = vpop.permute.xlu1 %8418  ;;  %20830 = vst [vmem:[#allocation146_spill] sm:$0xff] %v16500_v42  ;;  %v11825_v42 = vld [vmem:[%s19956_s15 + $0x4ac] ss:$48 sps:$4 sm:$0xff]  }
 0x837   :  { %7139 = vmatpush1.bf16.msra.mxu1 %v11784_v33  ;;  %v11801_v33 = vld [vmem:[%s19956_s15 + $0x32c] ss:$48 sps:$4 sm:$0xff]  }
 0x838   :  { %7225 = vmatpush1.bf16.msra.mxu0 %v11787_v13  ;;  %7140 = vmatprep.subr.bf16.mxu1 %v11792_v6  ;;  %v11796_v13 = vld [vmem:[%s19956_s15 + $0x320] ss:$48 sps:$4 sm:$0xff]   ;;  %v11799_v6 = vld [vmem:[%s19956_s15 + $0x328] ss:$48 sps:$4 sm:$0xff]   ;;  %v16525_v59 = vpop.permute.xlu0 %8180 }
 0x839   :  { %7226 = vmatprep.subr.bf16.mxu0 %v11795_v58  ;;  %v11804_v58 = vld [vmem:[%s19956_s15 + $0x384] ss:$48 sps:$4 sm:$0xff]  }
 0x83b   :  { %7141 = vmatpush1.bf16.msra.mxu1 %v11790_v15  ;;  %v16470_v15 = vpop.permute.xlu1 %8134 }
 0x83c   :  { %7227 = vmatpush1.bf16.msra.mxu0 %v11793_v62  ;;  %7142 = vmatprep.subr.bf16.mxu1 %v11798_v63  ;;  %20827 = vst [vmem:[#allocation143_spill] sm:$0xff] %v16470_v15  ;;  %v11802_v63 = vld [vmem:[%s19956_s15 + $0x380] ss:$48 sps:$4 sm:$0xff]   ;;  %v11805_v62 = vld [vmem:[%s19956_s15 + $0x388] ss:$48 sps:$4 sm:$0xff]   ;;  %v16544_v10 = vpop.permute.xlu0 %8280 }
 0x83d   :  { %7228 = vmatprep.subr.bf16.mxu0 %v11801_v33  ;;  %v11810_v33 = vld [vmem:[%s19956_s15 + $0x3e4] ss:$48 sps:$4 sm:$0xff]   ;;  %20833 = vst [vmem:[#allocation149_spill] sm:$0xff] %v16544_v10  ;;  %v11843_v10 = vld [vmem:[%s19956_s15 + $0x5cc] ss:$48 sps:$4 sm:$0xff]  }
 0x83e   :  { %v11816_v15 = vld [vmem:[%s19956_s15 + $0x444] ss:$48 sps:$4 sm:$0xff]  }
 0x83f   :  { %7143 = vmatpush1.bf16.msra.mxu1 %v11796_v13  ;;  %v11813_v13 = vld [vmem:[%s19956_s15 + $0x3ec] ss:$48 sps:$4 sm:$0xff]  }
 0x840   :  { %7229 = vmatpush1.bf16.msra.mxu0 %v11799_v6  ;;  %7144 = vmatprep.subr.bf16.mxu1 %v11804_v58  ;;  %v11808_v6 = vld [vmem:[%s19956_s15 + $0x3e0] ss:$48 sps:$4 sm:$0xff]   ;;  %v11811_v58 = vld [vmem:[%s19956_s15 + $0x3e8] ss:$48 sps:$4 sm:$0xff]   ;;  %v16569_v54 = vpop.permute.xlu0 %8328 }
 0x841   :  { %7230 = vmatprep.subr.bf16.mxu0 %v11807_v18  ;;  %v16495_v18 = vpop.permute.xlu1 %8132  ;;  %20834 = vst [vmem:[#allocation150_spill] sm:$0xff] %v16569_v54  ;;  %v11852_v54 = vld [vmem:[%s19956_s15 + $0x684] ss:$48 sps:$4 sm:$0xff]  }
 0x842   :  { %20829 = vst [vmem:[#allocation145_spill] sm:$0xff] %v16495_v18 }
 0x843   :  { %7145 = vmatpush1.bf16.msra.mxu1 %v11802_v63  ;;  %v11819_v63 = vld [vmem:[%s19956_s15 + $0x44c] ss:$48 sps:$4 sm:$0xff]  }
 0x844   :  { %7231 = vmatpush1.bf16.msra.mxu0 %v11805_v62  ;;  %7146 = vmatprep.subr.bf16.mxu1 %v11810_v33  ;;  %v11814_v62 = vld [vmem:[%s19956_s15 + $0x440] ss:$48 sps:$4 sm:$0xff]   ;;  %v11817_v33 = vld [vmem:[%s19956_s15 + $0x448] ss:$48 sps:$4 sm:$0xff]   ;;  %v16589_v36 = vpop.permute.xlu0 %8326 }
 0x845   :  { %7232 = vmatprep.subr.bf16.mxu0 %v11813_v13  ;;  %v11822_v13 = vld [vmem:[%s19956_s15 + $0x4a4] ss:$48 sps:$4 sm:$0xff]  }
 0x847   :  { %7147 = vmatpush1.bf16.msra.mxu1 %v11808_v6  ;;  %v16514_v6 = vpop.permute.xlu1 %8230 }
 0x848   :  { %7233 = vmatpush1.bf16.msra.mxu0 %v11811_v58  ;;  %7148 = vmatprep.subr.bf16.mxu1 %v11816_v15  ;;  %20831 = vst [vmem:[#allocation147_spill] sm:$0xff] %v16514_v6  ;;  %v11820_v15 = vld [vmem:[%s19956_s15 + $0x4a0] ss:$48 sps:$4 sm:$0xff]   ;;  %v11823_v58 = vld [vmem:[%s19956_s15 + $0x4a8] ss:$48 sps:$4 sm:$0xff]  }
 0x849   :  { %7234 = vmatprep.subr.bf16.mxu0 %v11819_v63  ;;  %v11828_v63 = vld [vmem:[%s19956_s15 + $0x504] ss:$48 sps:$4 sm:$0xff]  }
 0x84a   :  { %v11834_v6 = vld [vmem:[%s19956_s15 + $0x564] ss:$48 sps:$4 sm:$0xff]  }
 0x84b   :  { %7149 = vmatpush1.bf16.msra.mxu1 %v11814_v62  ;;  %v11831_v62 = vld [vmem:[%s19956_s15 + $0x50c] ss:$48 sps:$4 sm:$0xff]  }
 0x84c   :  { %7235 = vmatpush1.bf16.msra.mxu0 %v11817_v33  ;;  %7150 = vmatprep.subr.bf16.mxu1 %v11822_v13  ;;  %v11826_v33 = vld [vmem:[%s19956_s15 + $0x500] ss:$48 sps:$4 sm:$0xff]   ;;  %v11829_v13 = vld [vmem:[%s19956_s15 + $0x508] ss:$48 sps:$4 sm:$0xff]  }
 0x84d   :  { %7236 = vmatprep.subr.bf16.mxu0 %v11825_v42  ;;  %v16539_v42 = vpop.permute.xlu1 %8228 }
 0x84e   :  { %20832 = vst [vmem:[#allocation148_spill] sm:$0xff] %v16539_v42 }
 0x84f   :  { %7151 = vmatpush1.bf16.msra.mxu1 %v11820_v15  ;;  %v11837_v15 = vld [vmem:[%s19956_s15 + $0x56c] ss:$48 sps:$4 sm:$0xff]  }
 0x850   :  { %7237 = vmatpush1.bf16.msra.mxu0 %v11823_v58  ;;  %7152 = vmatprep.subr.bf16.mxu1 %v11828_v63  ;;  %v11832_v58 = vld [vmem:[%s19956_s15 + $0x560] ss:$48 sps:$4 sm:$0xff]   ;;  %v11835_v63 = vld [vmem:[%s19956_s15 + $0x568] ss:$48 sps:$4 sm:$0xff]  }
 0x851   :  { %7238 = vmatprep.subr.bf16.mxu0 %v11831_v62  ;;  %v11840_v62 = vld [vmem:[%s19956_s15 + $0x5c4] ss:$48 sps:$4 sm:$0xff]  }
 0x853   :  { %7153 = vmatpush1.bf16.msra.mxu1 %v11826_v33  ;;  %v16558_v33 = vpop.permute.xlu1 %8278 }
 0x854   :  { %7239 = vmatpush1.bf16.msra.mxu0 %v11829_v13  ;;  %7154 = vmatprep.subr.bf16.mxu1 %v11834_v6  ;;  %v11838_v6 = vld [vmem:[%s19956_s15 + $0x5c0] ss:$48 sps:$4 sm:$0xff]   ;;  %v11841_v13 = vld [vmem:[%s19956_s15 + $0x5c8] ss:$48 sps:$4 sm:$0xff]  }
 0x855   :  { %7240 = vmatprep.subr.bf16.mxu0 %v11837_v15  ;;  %v11846_v15 = vld [vmem:[%s19956_s15 + $0x624] ss:$48 sps:$4 sm:$0xff]  }
 0x857   :  { %7155 = vmatpush1.bf16.msra.mxu1 %v11832_v58  ;;  %v11849_v58 = vld [vmem:[%s19956_s15 + $0x62c] ss:$48 sps:$4 sm:$0xff]  }
 0x858   :  { %7241 = vmatpush1.bf16.msra.mxu0 %v11835_v63  ;;  %7156 = vmatprep.subr.bf16.mxu1 %v11840_v62  ;;  %v11844_v63 = vld [vmem:[%s19956_s15 + $0x620] ss:$48 sps:$4 sm:$0xff]   ;;  %v11847_v62 = vld [vmem:[%s19956_s15 + $0x628] ss:$48 sps:$4 sm:$0xff]  }
 0x859   :  { %7242 = vmatprep.subr.bf16.mxu0 %v11843_v10  ;;  %v16583_v10 = vpop.permute.xlu1 %8376 }
 0x85a   :  { %20835 = vst [vmem:[#allocation151_spill] sm:$0xff] %v16583_v10  ;;  %v16617_v10 = vpop.permute.xlu0 %8422 }
 0x85b   :  { %7157 = vmatpush1.bf16.msra.mxu1 %v11838_v6  ;;  %v11855_v6 = vld [vmem:[%s19956_s15 + $0x68c] ss:$48 sps:$4 sm:$0xff]  }
 0x85c   :  { %7243 = vmatpush1.bf16.msra.mxu0 %v11841_v13  ;;  %7169 = vmatprep.subr.bf16.mxu1 %v11846_v15  ;;  %v11850_v13 = vld [vmem:[%s19956_s15 + $0x680] ss:$48 sps:$4 sm:$0xff]   ;;  %v11853_v15 = vld [vmem:[%s19956_s15 + $0x688] ss:$48 sps:$4 sm:$0xff]  }
 0x85d   :  { %7255 = vmatprep.subr.bf16.mxu0 %v11849_v58  ;;  %v11858_v58 = vld [vmem:[%s19956_s15 + $0x6e4] ss:$48 sps:$4 sm:$0xff]  }
 0x85e   :  { %7159 = vmatmul.mubr.bf16.vlgmr.msra.gmra.mrb[60].mxu1 %v15834_v40  ;;  %v8083_v17 = vpop.permute.xlu0 %8082 }
 0x85f   :  { %7245 = vmatmul.mubr.bf16.vlgmr.msra.gmra.mrb[32].mxu0 %v15834_v40  ;;  %7170 = vmatpush1.bf16.msra.mxu1 %v11844_v63  ;;  %v11861_v40 = vld [vmem:[%s19956_s15 + $0x6ec] ss:$48 sps:$4 sm:$0xff]   ;;  %v16606_v63 = vpop.permute.xlu1 %8374 }
 0x860   :  { %7256 = vmatpush1.bf16.msra.mxu0 %v11847_v62  ;;  %7171 = vmatprep.subr.bf16.mxu1 %v11852_v54  ;;  %v11856_v54 = vld [vmem:[%s19956_s15 + $0x6e0] ss:$48 sps:$4 sm:$0xff]   ;;  %v11859_v62 = vld [vmem:[%s19956_s15 + $0x6e8] ss:$48 sps:$4 sm:$0xff]  }
 0x861   :  { %7257 = vmatprep.subr.bf16.mxu0 %v11855_v6  ;;  %7201 = vmatprep.mubr.bf16.mxu1 %v20766_v35  ;;  %v11864_v6 = vld [vmem:[%s19956_s15 + $0x744] ss:$48 sps:$4 sm:$0xff]  }
 0x862   :  { %7287 = vmatprep.mubr.bf16.mxu0 %v20766_v35  ;;  %v8179_v14 = vpop.permute.xlu0 %8178 }
 0x863   :  { %7172 = vmatpush1.bf16.msra.mxu1 %v11850_v13  ;;  %v11867_v13 = vld [vmem:[%s19956_s15 + $0x74c] ss:$48 sps:$4 sm:$0xff]  }
 0x864   :  { %7258 = vmatpush1.bf16.msra.mxu0 %v11853_v15  ;;  %7173 = vmatprep.subr.bf16.mxu1 %v11858_v58  ;;  %v11862_v15 = vld [vmem:[%s19956_s15 + $0x740] ss:$48 sps:$4 sm:$0xff]   ;;  %v11865_v58 = vld [vmem:[%s19956_s15 + $0x748] ss:$48 sps:$4 sm:$0xff]  }
 0x865   :  { %7259 = vmatprep.subr.bf16.mxu0 %v11861_v40  ;;  %v16631_v40 = vpop.permute.xlu1 %8424 }
 0x866   :  { %20836 = vst [vmem:[#allocation152_spill] sm:$0xff] %v16631_v40  ;;  %v11879_v40 = vld [vmem:[%s19956_s15 + $0x80c] ss:$48 sps:$4 sm:$0xff]  }
 0x867   :  { %7174 = vmatpush1.bf16.msra.mxu1 %v11856_v54  ;;  %v11873_v54 = vld [vmem:[%s19956_s15 + $0x7ac] ss:$48 sps:$4 sm:$0xff]  }
 0x868   :  { %7260 = vmatpush1.bf16.msra.mxu0 %v11859_v62  ;;  %7175 = vmatprep.subr.bf16.mxu1 %v11864_v6  ;;  %v11868_v62 = vld [vmem:[%s19956_s15 + $0x7a0] ss:$48 sps:$4 sm:$0xff]   ;;  %v11871_v6 = vld [vmem:[%s19956_s15 + $0x7a8] ss:$48 sps:$4 sm:$0xff]  }
 0x869   :  { %7261 = vmatprep.subr.bf16.mxu0 %v11867_v13  ;;  %v11876_v13 = vld [vmem:[%s19956_s15 + $0x804] ss:$48 sps:$4 sm:$0xff]  }
 0x86b   :  { %7176 = vmatpush1.bf16.msra.mxu1 %v11862_v15  ;;  %v8148_v15 = vsel %vm817_vm4, %v15798_v3, %v15800_v8  ;;  %v11880_v3 = vld [vmem:[%s19956_s15 + $0x860] ss:$48 sps:$4 sm:$0xff]  }
 0x86c   :  { %7262 = vmatpush1.bf16.msra.mxu0 %v11865_v58  ;;  %7177 = vmatprep.subr.bf16.mxu1 %v11870_v9  ;;  %v8131_v58 = vpop.permute.xlu1 %8130  ;;  %v11874_v9 = vld [vmem:[%s19956_s15 + $0x800] ss:$48 sps:$4 sm:$0xff]  }
 0x86d   :  { %7263 = vmatprep.subr.bf16.mxu0 %v11873_v54  ;;  %v8100_v54 = vsel %vm720_vm3, %v15794_v24, %v15796_v34  ;;  %v20838_v34 = vld [vmem:[#allocation47_spill] sm:$0xff]  ;;  %v8140_v48 = vsel %vm817_vm4, %v8131_v58, %v16495_v18  ;;  %v8196_v18 = vsel %vm914_vm6, %v15806_v38, %v15809_v61 }
 0x86e   :  { %v8103_v5 = vmul.f32 %v8100_v54, %v20838_v34  ;;  %v20840_v54 = vld [vmem:[#allocation50_spill] sm:$0xff] }
 0x86f   :  { %7178 = vmatpush1.bf16.msra.mxu1 %v11868_v62  ;;  %v20837_v62 = vld [vmem:[#allocation48_spill] sm:$0xff] }
 0x870   :  { %7264 = vmatpush1.bf16.msra.mxu0 %v11871_v6  ;;  %7179 = vmatprep.subr.bf16.mxu1 %v11876_v13  ;;  %v8151_v37 = vmul.f32 %v8148_v15, %v20837_v62  ;;  %v11885_v6 = vld [vmem:[%s19956_s15 + $0x86c] ss:$48 sps:$4 sm:$0xff]   ;;  %v8101_v13 = vsel %vm720_vm3, %v15802_v50, %v15794_v24  ;;  %v8244_v15 = vsel %vm1011_vm7, %v15813_v46, %v15816_v26  ;;  %v11883_v24 = vld [vmem:[%s19956_s15 + $0x868] ss:$48 sps:$4 sm:$0xff]   ;;  %v20841_v50 = vld [vmem:[#allocation54_spill] sm:$0xff] }
 0x871   :  { %7265 = vmatprep.subr.bf16.mxu0 %v11879_v40  ;;  %v20839_v40 = vld [vmem:[#allocation49_spill] sm:$0xff]  ;;  %v8102_v34 = vmul.f32 %v8101_v13, %v20840_v54  ;;  %v8247_v26 = vmul.f32 %v8244_v15, %v20841_v50  ;;  %v8291_v13 = vsel %vm1108_vm8, %v15822_v20, %v15824_v51  ;;  %v8277_v54 = vpop.permute.xlu0 %8276 }
 0x872   :  { %v16686_v62 = vmul.f32 %v8149_v4, %v20839_v40  ;;  %v8245_v4 = vsel %vm1011_vm7, %v15820_v60, %v15813_v46  ;;  %v8227_v40 = vpop.permute.xlu1 %8226  ;;  %v8092_v46 = vsel %vm720_vm3, %v8083_v17, %v16481_v21  ;;  %v20842_v15 = vld [vmem:[#allocation89_spill] sm:$0xff]  ;;  %v11886_v21 = vld [vmem:[%s19956_s15 + $0x8c0] ss:$48 sps:$4 sm:$0xff]  }
 0x873   :  { %7180 = vmatpush1.bf16.msra.mxu1 %v11874_v9  ;;  %v11888_v9 = vld [vmem:[%s19956_s15 + $0x8c4] ss:$48 sps:$4 sm:$0xff]   ;;  %v8159_v50 = vmul.f32 %v8140_v48, %v20842_v15  ;;  %v11889_v48 = vld [vmem:[%s19956_s15 + $0x8c8] ss:$48 sps:$4 sm:$0xff]  }
 0x874   :  { %7266 = vmatpush1.bf16.msra.mxu0 %v11877_v32  ;;  %7181 = vmatprep.subr.bf16.mxu1 %v11882_v11  ;;  %v11891_v32 = vld [vmem:[%s19956_s15 + $0x8cc] ss:$48 sps:$4 sm:$0xff]   ;;  %v8561_v11 = vpack.c.bf16 %v8151_v37, %v8103_v5  ;;  %v8197_v37 = vsel %vm914_vm6, %v15818_v49, %v15806_v38  ;;  %v8292_v5 = vsel %vm1108_vm8, %v15826_v43, %v15822_v20  ;;  %v20843_v38 = vld [vmem:[#allocation56_spill] sm:$0xff] }
 0x875   :  { %7267 = vmatprep.subr.bf16.mxu0 %v11885_v6  ;;  %v8141_v6 = vsel %vm817_vm4, %v16318_v27, %v8131_v58  ;;  %v8560_v60 = vpack.c.bf16 %v16686_v62, %v8102_v34  ;;  %v8246_v49 = vmul.f32 %v8245_v4, %v20843_v38  ;;  %v8236_v20 = vsel %vm1011_vm7, %v8227_v40, %v16539_v42  ;;  %v20844_v58 = vld [vmem:[#allocation53_spill] sm:$0xff]  ;;  %v20845_v15 = vld [vmem:[#allocation59_spill] sm:$0xff]  ;;  %v20846_v62 = vld [vmem:[#allocation88_spill] sm:$0xff] }
 0x876   :  { %v8295_v43 = vmul.f32 %v8291_v13, %v20845_v15  ;;  %v8093_v34 = vsel %vm720_vm3, %v16290_v31, %v8083_v17  ;;  %v8111_v4 = vmul.f32 %v8092_v46, %v20846_v62  ;;  %v20847_v38 = vld [vmem:[#allocation57_spill] sm:$0xff]  ;;  %v20848_v42 = vld [vmem:[#allocation60_spill] sm:$0xff]  ;;  %v8237_v13 = vsel %vm1011_vm7, %v16363_v7, %v8227_v40  ;;  %v20851_v62 = vld [vmem:[#allocation91_spill] sm:$0xff] }
 0x877   :  { %7182 = vmatpush1.bf16.msra.mxu1 %v11880_v3  ;;  %v8199_v3 = vmul.f32 %v8196_v18, %v20844_v58  ;;  %v8198_v27 = vmul.f32 %v8197_v37, %v20847_v38  ;;  %v8188_v18 = vsel %vm914_vm6, %v8179_v14, %v16525_v59  ;;  %v20850_v15 = vld [vmem:[#allocation93_spill] sm:$0xff]  ;;  %v8325_v58 = vpop.permute.xlu1 %8324  ;;  %v8387_v40 = vsel %vm1302_vm10, %v15832_v41, %v15836_v12 }
 0x878   :  { %7268 = vmatpush1.bf16.msra.mxu0 %v11883_v24  ;;  %7183 = vmatprep.subr.bf16.mxu1 %v11888_v9  ;;  %v16748_v24 = vmul.f32 %v8292_v5, %v20848_v42  ;;  %v20849_v9 = vld [vmem:[#allocation90_spill] sm:$0xff]  ;;  %v8255_v17 = vmul.f32 %v8236_v20, %v20850_v15  ;;  %v8110_v5 = vmul.f32 %v8093_v34, %v20851_v62  ;;  %v20902_v42 = vld [vmem:[#allocation19_spill] sm:$0xff] }
 0x879   :  { %7269 = vmatprep.subr.bf16.mxu0 %v11891_v32  ;;  %v8158_v51 = vmul.f32 %v8141_v6, %v20849_v9  ;;  %v8569_v32 = vpack.c.bf16 %v8159_v50, %v8111_v4  ;;  %v8573_v46 = vpack.c.bf16 %v8247_v26, %v8199_v3  ;;  %v8572_v37 = vpack.c.bf16 %v8246_v49, %v8198_v27  ;;  %v20852_v50 = vld [vmem:[#allocation92_spill] sm:$0xff]  ;;  %v8373_v49 = vpop.permute.xlu0 %8372  ;;  %v20853_v27 = vld [vmem:[#allocation78_spill] sm:$0xff]  ;;  %v20854_v3 = vld [vmem:[#allocation55_spill] sm:$0xff] }
 0x87a   :  { %v8283_v6 = vsel %vm1108_vm8, %v8277_v54, %v16558_v33  ;;  %v8207_v26 = vmul.f32 %v8188_v18, %v20852_v50  ;;  %v8585_v20 = vpack.c.bf16 %v8295_v43, %v20853_v27  ;;  %v8584_v34 = vpack.c.bf16 %v16748_v24, %v20854_v3  ;;  %v20855_v4 = vld [vmem:[#allocation94_spill] sm:$0xff]  ;;  %v20856_v18 = vld [vmem:[#allocation3_spill] sm:$0xff] }
 0x87b   :  { %7184 = vmatpush1.bf16.msra.mxu1 %v11886_v21  ;;  %v8189_v21 = vsel %vm914_vm6, %v16334_v57, %v8179_v14  ;;  %v8254_v15 = vmul.f32 %v8237_v13, %v20855_v4  ;;  %v8284_v14 = vsel %vm1108_vm8, %v16382_v25, %v8277_v54  ;;  %v20857_v24 = vld [vmem:[#allocation63_spill] sm:$0xff]  ;;  %v20859_v13 = vld [vmem:[#allocation61_spill] sm:$0xff]  ;;  %v8340_v54 = vsel %vm1205_vm9, %v15862_v53, %v15828_v22  ;;  %v20893_v9 = vld [vmem:[#allocation58_spill] sm:$0xff] }
 0x87c   :  { %7270 = vmatpush1.bf16.msra.mxu0 %v11889_v48  ;;  %8659 = vmatprep.subr.bf16.mxu1 %v8561_v11  ;;  %v8339_v11 = vsel %vm1205_vm9, %v15828_v22, %v15830_v45  ;;  %v8568_v48 = vpack.c.bf16 %v8158_v51, %v8110_v5  ;;  %v8581_v43 = vpack.c.bf16 %v8255_v17, %v8207_v26  ;;  %v20858_v3 = vld [vmem:[#allocation95_spill] sm:$0xff]  ;;  %v20861_v26 = vld [vmem:[#allocation9_spill] sm:$0xff] }
 0x87d   :  { %8823 = vmatprep.subr.bf16.mxu0 %v8569_v32  ;;  %v8303_v32 = vmul.f32 %v8283_v6, %v20856_v18  ;;  %v8391_v27 = vmul.f32 %v8387_v40, %v20857_v24  ;;  %v8206_v50 = vmul.f32 %v8189_v21, %v20858_v3  ;;  %v8379_v51 = vsel %vm1302_vm10, %v8373_v49, %v16606_v63  ;;  %v20860_v6 = vld [vmem:[#allocation7_spill] sm:$0xff]  ;;  %v20891_v18 = vld [vmem:[#allocation113_spill] sm:$0xff]  ;;  %v20895_v24 = vld [vmem:[#allocation20_spill] sm:$0xff] }
 0x87e   :  { %7202 = vmatmul.mubr.bf16.vlgmr.msra.gmra.mrb[60].mxu1 %v15980_v29  ;;  %v8343_v5 = vmul.f32 %v8339_v11, %v20859_v13  ;;  %v8436_v17 = vsel %vm1399_vm11, %v15894_v30, %v15896_v28  ;;  %v8302_v40 = vmul.f32 %v8284_v14, %v20860_v6  ;;  %v8331_v22 = vsel %vm1205_vm9, %v8325_v58, %v16589_v36  ;;  %v20862_v14 = vld [vmem:[#allocation62_spill] sm:$0xff]  ;;  %v20863_v6 = vld [vmem:[#allocation64_spill] sm:$0xff]  ;;  %v20898_v3 = vld [vmem:[#allocation115_spill] sm:$0xff] }
 0x87f   :  { %7288 = vmatmul.mubr.bf16.vlgmr.msra.gmra.mrb[32].mxu0 %v15980_v29  ;;  %8660 = vmatpush1.bf16.msra.mxu1 %v8560_v60  ;;  %v8388_v60 = vsel %vm1302_vm10, %v15877_v44, %v15832_v41  ;;  %v8421_v29 = vpop.permute.xlu1 %8420  ;;  %v8435_v41 = vsel %vm1399_vm11, %v15896_v28, %v15910_v56  ;;  %v8380_v21 = vsel %vm1302_vm10, %v16426_v2, %v8373_v49 }
 0x880   :  { %8824 = vmatpush1.bf16.msra.mxu0 %v8568_v48  ;;  %8661 = vmatprep.subr.bf16.mxu1 %v8573_v46  ;;  %v8580_v46 = vpack.c.bf16 %v8254_v15, %v8206_v50  ;;  %v8399_v11 = vmul.f32 %v8379_v51, %v20861_v26  ;;  %v8593_v15 = vpack.c.bf16 %v8303_v32, %v20779_v23  ;;  %v20864_v23 = vld [vmem:[#allocation8_spill] sm:$0xff]  ;;  %v12063_v51 = vld [vmem:[%s19949_s18 + $0x60] ss:$0 sm:$0xff] }
 0x881   :  { %8825 = vmatprep.subr.bf16.mxu0 %v8581_v43  ;;  %8691 = vmatprep.mubr.bf16.mxu1 %v20766_v35  ;;  %v8427_v50 = vsel %vm1399_vm11, %v8421_v29, %v16617_v10  ;;  %v8428_v48 = vsel %vm1399_vm11, %v16451_v47, %v8421_v29  ;;  %v8597_v28 = vpack.c.bf16 %v8391_v27, %v8343_v5  ;;  %v12065_v29 = vld [vmem:[%s19949_s18 + $0xa0] ss:$0 sm:$0xff] }
 0x882   :  { %8855 = vmatprep.mubr.bf16.mxu0 %v20766_v35  ;;  %v8342_v43 = vmul.f32 %v8340_v54, %v20862_v14  ;;  %v8390_v49 = vmul.f32 %v8388_v60, %v20863_v6  ;;  %v8351_v32 = vmul.f32 %v8331_v22, %v20864_v23  ;;  %v8438_v26 = vmul.f32 %v12063_v51, %v8436_v17  ;;  %v20865_v54 = vld [vmem:[#allocation12_spill] sm:$0xff]  ;;  %v12066_v17 = vld [vmem:[%s19949_s18 + $0xa8] ss:$0 sm:$0xff]  ;;  %v20890_v23 = vld [vmem:[#allocation114_spill] sm:$0xff] }
 0x883   :  { %8662 = vmatpush1.bf16.msra.mxu1 %v8572_v37  ;;  %v8332_v37 = vsel %vm1205_vm9, %v16407_v39, %v8325_v58  ;;  %v8592_v5 = vpack.c.bf16 %v8302_v40, %v20771_v55  ;;  %v8398_v60 = vmul.f32 %v8380_v21, %v20865_v54  ;;  %v8146_v58 = vsel %vm817_vm4, %v15940_v16, %v15954_v19  ;;  %v20866_v55 = vld [vmem:[#allocation10_spill] sm:$0xff]  ;;  %v20894_v6 = vld [vmem:[#allocation112_spill] sm:$0xff] }
 0x884   :  { %8826 = vmatpush1.bf16.msra.mxu0 %v8580_v46  ;;  %8663 = vmatprep.subr.bf16.mxu1 %v8585_v20  ;;  %v12064_v20 = vld [vmem:[%s19949_s18 + $0x68] ss:$0 sm:$0xff]  ;;  %v8446_v46 = vmul.f32 %v12065_v29, %v8428_v48  ;;  %v8447_v22 = vmul.f32 %v12066_v17, %v8427_v50  ;;  %v8350_v40 = vmul.f32 %v8332_v37, %v20866_v55  ;;  %v20870_v37 = vld [vmem:[#allocation108_spill] sm:$0xff] }
 0x885   :  { %8827 = vmatprep.subr.bf16.mxu0 %v8593_v15  ;;  %v8439_v27 = vmul.f32 %v12064_v20, %v8435_v41  ;;  %v8605_v41 = vpack.c.bf16 %v8399_v11, %v8351_v32  ;;  %v8596_v21 = vpack.c.bf16 %v8390_v49, %v8342_v43  ;;  %v8098_v15 = vsel %vm720_vm3, %v15924_v52, %v15938_v1  ;;  %v20867_v20 = vld [vmem:[#allocation69_spill] sm:$0xff]  ;;  %v20869_v49 = vld [vmem:[#allocation104_spill] sm:$0xff] }
 0x886   :  { %v8608_v51 = vpack.c.bf16 %v8438_v26, %v8438_v26  ;;  %v8153_v29 = vmul.f32 %v8146_v58, %v20867_v20  ;;  %v8604_v54 = vpack.c.bf16 %v8398_v60, %v8350_v40  ;;  %v8616_v11 = vpack.c.bf16 %v8446_v46, %v8446_v46  ;;  %v20871_v26 = vld [vmem:[#allocation99_spill] sm:$0xff] }
 0x887   :  { %8664 = vmatpush1.bf16.msra.mxu1 %v8584_v34  ;;  %v8609_v48 = vpack.c.bf16 %v8439_v27, %v8439_v27  ;;  %v8147_v34 = vsel %vm817_vm4, %v15800_v8, %v15940_v16  ;;  %v8617_v50 = vpack.c.bf16 %v8447_v22, %v8447_v22  ;;  %v8242_v32 = vsel %vm1011_vm7, %v20870_v37, %v20869_v49  ;;  %v20872_v8 = vld [vmem:[#allocation68_spill] sm:$0xff]  ;;  %v20874_v60 = vld [vmem:[#allocation103_spill] sm:$0xff] }
 0x888   :  { %8828 = vmatpush1.bf16.msra.mxu0 %v8592_v5  ;;  %8665 = vmatprep.subr.bf16.mxu1 %v8597_v28  ;;  %v20868_v28 = vld [vmem:[#allocation66_spill] sm:$0xff]  ;;  %v8099_v27 = vsel %vm720_vm3, %v20871_v26, %v15924_v52  ;;  %v8152_v16 = vmul.f32 %v8147_v34, %v20872_v8  ;;  %v20873_v5 = vld [vmem:[#allocation107_spill] sm:$0xff]  ;;  %v8624_v46 = vsel %vm1536_vm12, %v8608_v51, 0  ;;  %v20875_v22 = vld [vmem:[#allocation100_spill] sm:$0xff]  ;;  %v8385_v4 = vsel %vm1302_vm10, %v20891_v18, %v20890_v23 }
 0x889   :  { %8829 = vmatprep.subr.bf16.mxu0 %v8605_v41  ;;  %v8105_v43 = vmul.f32 %v8098_v15, %v20868_v28  ;;  %v8194_v58 = vsel %vm914_vm6, %v20874_v60, %v20873_v5  ;;  %v8243_v52 = vsel %vm1011_vm7, %v20875_v22, %v20870_v37  ;;  %v20876_v41 = vld [vmem:[#allocation71_spill] sm:$0xff]  ;;  %v20877_v15 = vld [vmem:[#allocation65_spill] sm:$0xff]  ;;  %v20878_v34 = vld [vmem:[#allocation106_spill] sm:$0xff]  ;;  %v8337_v14 = vsel %vm1205_vm9, %v20895_v24, %v20894_v6 }
 0x88a   :  { %v8249_v40 = vmul.f32 %v8242_v32, %v20876_v41  ;;  %v20879_v51 = vld [vmem:[#allocation105_spill] sm:$0xff]  ;;  %v20882_v26 = vld [vmem:[#allocation2_spill] sm:$0xff] }
 0x88b   :  { %8666 = vmatpush1.bf16.msra.mxu1 %v8596_v21  ;;  %v8563_v17 = vpack.c.bf16 %v8153_v29, %v8105_v43  ;;  %v8648_v21 = vsel %vm1536_vm12, %v8616_v11, 0  ;;  %v8289_v29 = vsel %vm1108_vm8, %v20879_v51, %v20878_v34 }
 0x88c   :  { %8830 = vmatpush1.bf16.msra.mxu0 %v8604_v54  ;;  %10742 = vmatprep.subr.msk.bf16.mxu1 %vm1536_vm12, %v8609_v48  ;;  %v8195_v54 = vsel %vm914_vm6, %v15809_v61, %v20874_v60  ;;  %v8104_v48 = vmul.f32 %v8099_v27, %v20877_v15  ;;  %v16892_v61 = vld [vmem:[%s19957_s10] sm:$0xf]  ;;  %v20883_v60 = vld [vmem:[#allocation13_spill] sm:$0xff] }
 0x88d   :  { %10750 = vmatprep.subr.msk.bf16.mxu0 %vm1536_vm12, %v8617_v50  ;;  %v20880_v50 = vld [vmem:[#allocation70_spill] sm:$0xff]  ;;  %v8200_v27 = vmul.f32 %v8195_v54, %v20882_v26 }
 0x88e   :  { %v8201_v43 = vmul.f32 %v8194_v58, %v20880_v50  ;;  %v8562_v11 = vpack.c.bf16 %v8152_v16, %v8104_v48  ;;  %v20885_v58 = vld [vmem:[#allocation102_spill] sm:$0xff]  ;;  %v20886_v16 = vld [vmem:[#allocation11_spill] sm:$0xff] }
 0x88f   :  { %8668 = vmatpush1.bf16.msra.mxu1 %v8624_v46  ;;  %v8248_v46 = vmul.f32 %v8243_v52, %v20883_v60  ;;  %v8297_v48 = vmul.f32 %v8289_v29, %v20886_v16  ;;  %v20919_v60 = vld [vmem:[#allocation77_spill] sm:$0xff] }
 0x890   :  { %8832 = vmatpush1.bf16.msra.mxu0 %v8648_v21  ;;  %8700 = vmatprep.subr.bf16.mxu1 %v8563_v17  ;;  %v8290_v21 = vsel %vm1108_vm8, %v20885_v58, %v20879_v51  ;;  %v8575_v55 = vpack.c.bf16 %v8249_v40, %v8201_v43  ;;  %v20896_v40 = vld [vmem:[#allocation14_spill] sm:$0xff]  ;;  %v8434_v58 = vsel %vm1399_vm11, %v15910_v56, %v20898_v3  ;;  %v20899_v43 = vld [vmem:[#allocation116_spill] sm:$0xff] }
 0x891   :  { %v16895_v37 = vpop.f32.mrb[52].mxu1  ;;  %v16897_v32 = vpop.f32.mrb[24].mxu0  ;;  %v8296_v62 = vmul.f32 %v8290_v21, %v20893_v9  ;;  %v8433_v13 = vsel %vm1399_vm11, %v20898_v3, %v20899_v43  ;;  %v12067_v56 = vld [vmem:[%s19949_s18 + $0x70] ss:$0 sm:$0xff] }
 0x892   :  { %20881 = vst [vmem:[#allocation78_spill] sm:$0xff] %v16895_v37  ;;  %7690 = vrot.lane.b32.xlu1 %v16897_v32, %s12106_s26  ;;  %7306 = vrot.lane.b32.xlu0 %v16897_v32, %s12102_s1  ;;  %v16905_v17 = vpop.f32.mrb[53].mxu1  ;;  %v16907_v22 = vpop.f32.mrb[25].mxu0  ;;  %v8440_v3 = vmul.f32 %v12067_v56, %v8434_v58  ;;  %v20910_v56 = vld [vmem:[#allocation123_spill] sm:$0xff] }
 0x893   :  { %20884 = vst [vmem:[#allocation55_spill] sm:$0xff] %v16905_v17  ;;  %10743 = vmatmul.mubr.msk.bf16.vlgmr.msra.gmra.mrb[64].mxu1 %vm20887_vm14, %v16892_v61  ;;  %v16916_v54 = vpop.f32.mrb[54].mxu1  ;;  %v16918_v52 = vpop.f32.mrb[26].mxu0  ;;  %10751 = vmatmul.mubr.msk.bf16.vlgmr.msra.gmra.mrb[36].mxu0 %vm20889_vm15, %v16892_v61  ;;  %vm21406_vm14 = vmmov %vm20922_vm0 }
 0x894   :  { %20888 = vst [vmem:[#allocation104_spill] sm:$0xff] %v16916_v54  ;;  %8701 = vmatpush1.bf16.msra.mxu1 %v8562_v11  ;;  %v16926_v51 = vpop.f32.mrb[55].mxu1  ;;  %v16928_v29 = vpop.f32.mrb[27].mxu0  ;;  %8732 = vmatprep.mubr.bf16.mxu1 %v20766_v35  ;;  %v8574_v11 = vpack.c.bf16 %v8248_v46, %v8200_v27  ;;  %v8393_v27 = vmul.f32 %v8385_v4, %v20896_v40  ;;  %v20897_v46 = vld [vmem:[#allocation67_spill] sm:$0xff]  ;;  %v20906_v40 = vld [vmem:[#allocation118_spill] sm:$0xff]  ;;  %vm21443_vm15 = vmmov %vm20922_vm0 }
 0x895   :  { %20892 = vst [vmem:[#allocation108_spill] sm:$0xff] %v16926_v51  ;;  %8702 = vmatprep.subr.bf16.mxu1 %v8575_v55  ;;  %v8386_v55 = vsel %vm1302_vm10, %v15836_v12, %v20891_v18  ;;  %v8587_v21 = vpack.c.bf16 %v8297_v48, %v20897_v46  ;;  %v8338_v12 = vsel %vm1205_vm9, %v15830_v45, %v20895_v24  ;;  %v20900_v18 = vld [vmem:[#allocation17_spill] sm:$0xff]  ;;  %v20901_v48 = vld [vmem:[#allocation4_spill] sm:$0xff] }
 0x896   :  { %7694 = vrot.lane.b32.xlu1 %v16907_v22, %s12106_s26  ;;  %7402 = vrot.lane.b32.xlu0 %v16897_v32, %s12103_s0  ;;  %v8345_v4 = vmul.f32 %v8337_v14, %v20900_v18  ;;  %v8586_v46 = vpack.c.bf16 %v8296_v62, %v20901_v48  ;;  %v8392_v38 = vmul.f32 %v8386_v55, %v20902_v42  ;;  %v12068_v45 = vld [vmem:[%s19949_s18 + $0x78] ss:$0 sm:$0xff]  ;;  %v20903_v62 = vld [vmem:[#allocation15_spill] sm:$0xff]  ;;  %v20904_v55 = vld [vmem:[#allocation120_spill] sm:$0xff] }
 0x897   :  { %v8441_v24 = vmul.f32 %v12068_v45, %v8433_v13  ;;  %v20907_v18 = vld [vmem:[#allocation117_spill] sm:$0xff]  ;;  %v8610_v13 = vpack.c.bf16 %v8440_v3, %v8440_v3 }
 0x898   :  { %8703 = vmatpush1.bf16.msra.mxu1 %v8574_v11  ;;  %v8599_v14 = vpack.c.bf16 %v8393_v27, %v8345_v4  ;;  %v8344_v11 = vmul.f32 %v8338_v12, %v20903_v62  ;;  %v8096_v58 = vsel %vm720_vm3, %v20907_v18, %v20906_v40  ;;  %v20908_v4 = vld [vmem:[#allocation75_spill] sm:$0xff]  ;;  %v20911_v3 = vld [vmem:[#allocation73_spill] sm:$0xff] }
 0x899   :  { %8704 = vmatprep.subr.bf16.mxu1 %v8587_v21  ;;  %v20905_v21 = vld [vmem:[#allocation119_spill] sm:$0xff]  ;;  %v8611_v27 = vpack.c.bf16 %v8441_v24, %v8441_v24  ;;  %v8107_v24 = vmul.f32 %v8096_v58, %v20911_v3  ;;  %v8630_v58 = vsel %vm1536_vm12, %v8610_v13, 0  ;;  %v20918_v3 = vld [vmem:[#allocation125_spill] sm:$0xff] }
 0x89a   :  { %7790 = vrot.lane.b32.xlu1 %v16907_v22, %s20523_s22  ;;  %7498 = vrot.lane.b32.xlu0 %v16897_v32, %s12104_s2  ;;  %v8144_v48 = vsel %vm817_vm4, %v20905_v21, %v20904_v55  ;;  %v8598_v42 = vpack.c.bf16 %v8392_v38, %v8344_v11  ;;  %v8145_v12 = vsel %vm817_vm4, %v15954_v19, %v20905_v21  ;;  %v20912_v11 = vld [vmem:[#allocation74_spill] sm:$0xff]  ;;  %v20914_v21 = vld [vmem:[#allocation121_spill] sm:$0xff] }
 0x89b   :  { %v8155_v38 = vmul.f32 %v8144_v48, %v20908_v4  ;;  %v8154_v62 = vmul.f32 %v8145_v12, %v20912_v11  ;;  %v20913_v19 = vld [vmem:[#allocation122_spill] sm:$0xff]  ;;  %v20916_v12 = vld [vmem:[#allocation72_spill] sm:$0xff]  ;;  %v8193_v9 = vsel %vm914_vm6, %v20873_v5, %v20914_v21 }
 0x89c   :  { %8705 = vmatpush1.bf16.msra.mxu1 %v8586_v46  ;;  %v20909_v46 = vld [vmem:[#allocation124_spill] sm:$0xff]  ;;  %v8192_v48 = vsel %vm914_vm6, %v20914_v21, %v20913_v19  ;;  %v20917_v11 = vld [vmem:[#allocation126_spill] sm:$0xff] }
 0x89d   :  { %8706 = vmatprep.subr.bf16.mxu1 %v8599_v14  ;;  %v8240_v45 = vsel %vm1011_vm7, %v20910_v56, %v20909_v46  ;;  %v8097_v14 = vsel %vm720_vm3, %v15938_v1, %v20907_v18  ;;  %v8241_v1 = vsel %vm1011_vm7, %v20869_v49, %v20910_v56  ;;  %v8287_v16 = vsel %vm1108_vm8, %v20918_v3, %v20917_v11  ;;  %v20924_v21 = vld [vmem:[#allocation130_spill] sm:$0xff] }
 0x89e   :  { %7308 = vrot.lane.b32.xlu1 %v16918_v52, %s12102_s1  ;;  %7594 = vrot.lane.b32.xlu0 %v16897_v32, %s12105_s25  ;;  %v8106_v4 = vmul.f32 %v8097_v14, %v20916_v12  ;;  %v8203_v49 = vmul.f32 %v8192_v48, %v20919_v60  ;;  %v20921_v14 = vld [vmem:[#allocation83_spill] sm:$0xff]  ;;  %v20925_v48 = vld [vmem:[#allocation129_spill] sm:$0xff] }
 0x8a0   :  { %8707 = vmatpush1.bf16.msra.mxu1 %v8598_v42  ;;  %v20915_v42 = vld [vmem:[#allocation81_spill] sm:$0xff]  ;;  %v8564_v56 = vpack.c.bf16 %v8154_v62, %v8106_v4  ;;  %v20923_v62 = vld [vmem:[#allocation76_spill] sm:$0xff] }
 0x8a1   :  { %10744 = vmatprep.subr.msk.bf16.mxu1 %vm1536_vm12, %v8611_v27  ;;  %v8251_v18 = vmul.f32 %v8240_v45, %v20915_v42  ;;  %v8565_v27 = vpack.c.bf16 %v8155_v38, %v8107_v24  ;;  %v20920_v45 = vld [vmem:[#allocation80_spill] sm:$0xff]  ;;  %v8288_v38 = vsel %vm1108_vm8, %v20878_v34, %v20918_v3  ;;  %v8299_v24 = vmul.f32 %v8287_v16, %v20921_v14  ;;  %v20928_v16 = vld [vmem:[#allocation127_spill] sm:$0xff] }
 0x8a2   :  { %7404 = vrot.lane.b32.xlu1 %v16918_v52, %s12103_s0  ;;  %7786 = vrot.lane.b32.xlu0 %v16897_v32, %s20523_s22  ;;  %v8250_v13 = vmul.f32 %v8241_v1, %v20920_v45  ;;  %v8202_v4 = vmul.f32 %v8193_v9, %v20923_v62  ;;  %v8383_v1 = vsel %vm1302_vm10, %v20925_v48, %v20924_v21  ;;  %v20927_v3 = vld [vmem:[#allocation128_spill] sm:$0xff]  ;;  %v20981_v45 = vld [vmem:[#allocation43_spill] sm:$0xff] }
 0x8a3   :  { %v8577_v5 = vpack.c.bf16 %v8251_v18, %v8203_v49  ;;  %v8335_v14 = vsel %vm1205_vm9, %v20928_v16, %v20927_v3  ;;  %v8384_v9 = vsel %vm1302_vm10, %v20890_v23, %v20925_v48  ;;  %v20929_v18 = vld [vmem:[#allocation87_spill] sm:$0xff]  ;;  %v8336_v23 = vsel %vm1205_vm9, %v20894_v6, %v20928_v16  ;;  %v20933_v48 = vld [vmem:[#allocation85_spill] sm:$0xff] }
 0x8a4   :  { %8709 = vmatpush1.bf16.msra.mxu1 %v8630_v58  ;;  %v8576_v58 = vpack.c.bf16 %v8250_v13, %v8202_v4  ;;  %v8395_v49 = vmul.f32 %v8383_v1, %v20929_v18  ;;  %v20932_v4 = vld [vmem:[#allocation132_spill] sm:$0xff]  ;;  %v8347_v1 = vmul.f32 %v8335_v14, %v20933_v48  ;;  %v20935_v18 = vld [vmem:[#allocation86_spill] sm:$0xff]  ;;  %v12070_v6 = vld [vmem:[%s19949_s18 + $0x88] ss:$0 sm:$0xff] }
 0x8a5   :  { %8741 = vmatprep.subr.bf16.mxu1 %v8565_v27  ;;  %v20926_v27 = vld [vmem:[#allocation82_spill] sm:$0xff]  ;;  %v8394_v42 = vmul.f32 %v8384_v9, %v20935_v18  ;;  %v20937_v9 = vld [vmem:[#allocation135_spill] sm:$0xff]  ;;  %v20939_v48 = vld [vmem:[#allocation133_spill] sm:$0xff] }
 0x8a6   :  { %7500 = vrot.lane.b32.xlu1 %v16918_v52, %s12104_s2  ;;  %7298 = vrot.lane.b32.xlu0 %v16895_v37, %s12102_s1  ;;  %v8298_v34 = vmul.f32 %v8288_v38, %v20926_v27  ;;  %v20931_v38 = vld [vmem:[#allocation131_spill] sm:$0xff]  ;;  %v8601_v16 = vpack.c.bf16 %v8395_v49, %v8347_v1  ;;  %v20940_v1 = vld [vmem:[#allocation22_spill] sm:$0xff] }
 0x8a7   :  { %10745 = vmatmul.mubr.msk.bf16.vlgmr.msra.gmra.mrb[68].mxu1 %vm20922_vm0, %v16892_v61  ;;  %v8431_v27 = vsel %vm1399_vm11, %v20931_v38, %v20932_v4 }
 0x8a8   :  { %8742 = vmatpush1.bf16.msra.mxu1 %v8564_v56  ;;  %8773 = vmatprep.mubr.bf16.mxu1 %v20766_v35  ;;  %v20930_v56 = vld [vmem:[#allocation5_spill] sm:$0xff]  ;;  %v8443_v14 = vmul.f32 %v12070_v6, %v8431_v27 }
 0x8a9   :  { %8743 = vmatprep.subr.bf16.mxu1 %v8577_v5  ;;  %v8589_v13 = vpack.c.bf16 %v8299_v24, %v20930_v56  ;;  %v8432_v5 = vsel %vm1399_vm11, %v20899_v43, %v20931_v38  ;;  %v20934_v24 = vld [vmem:[#allocation79_spill] sm:$0xff]  ;;  %v12069_v43 = vld [vmem:[%s19949_s18 + $0x80] ss:$0 sm:$0xff] }
 0x8aa   :  { %7596 = vrot.lane.b32.xlu1 %v16918_v52, %s12105_s25  ;;  %7882 = vrot.lane.b32.xlu0 %v16897_v32, %s20526_s24  ;;  %v8588_v56 = vpack.c.bf16 %v8298_v34, %v20934_v24  ;;  %v20936_v34 = vld [vmem:[#allocation84_spill] sm:$0xff]  ;;  %v20938_v38 = vld [vmem:[#allocation134_spill] sm:$0xff]  ;;  %v8613_v49 = vpack.c.bf16 %v8443_v14, %v8443_v14 }
 0x8ab   :  { %v8142_v24 = vsel %vm817_vm4, %v20938_v38, %v20937_v9  ;;  %v20943_v14 = vld [vmem:[#allocation24_spill] sm:$0xff] }
 0x8ac   :  { %8744 = vmatpush1.bf16.msra.mxu1 %v8576_v58  ;;  %v8442_v58 = vmul.f32 %v12069_v43, %v8432_v5  ;;  %v8094_v5 = vsel %vm720_vm3, %v20939_v48, %v16290_v31  ;;  %v8095_v43 = vsel %vm720_vm3, %v20906_v40, %v20939_v48  ;;  %v20945_v40 = vld [vmem:[#allocation25_spill] sm:$0xff] }
 0x8ad   :  { %8745 = vmatprep.subr.bf16.mxu1 %v8589_v13  ;;  %v8346_v13 = vmul.f32 %v8336_v23, %v20936_v34  ;;  %v8143_v23 = vsel %vm817_vm4, %v20904_v55, %v20938_v38  ;;  %v20944_v55 = vld [vmem:[#allocation136_spill] sm:$0xff]  ;;  %v20946_v38 = vld [vmem:[#allocation23_spill] sm:$0xff]  ;;  %v20974_v34 = vld [vmem:[#allocation101_spill] sm:$0xff] }
 0x8ae   :  { %7788 = vrot.lane.b32.xlu1 %v16918_v52, %s20523_s22  ;;  %7394 = vrot.lane.b32.xlu0 %v16895_v37, %s12103_s0  ;;  %v8612_v27 = vpack.c.bf16 %v8442_v58, %v8442_v58  ;;  %v20942_v58 = vld [vmem:[#allocation16_spill] sm:$0xff] }
 0x8af   :  { %v8600_v18 = vpack.c.bf16 %v8394_v42, %v8346_v13  ;;  %v8157_v42 = vmul.f32 %v8142_v24, %v20940_v1  ;;  %v8109_v6 = vmul.f32 %v8094_v5, %v20942_v58  ;;  %v8190_v13 = vsel %vm914_vm6, %v20944_v55, %v16334_v57  ;;  %v20947_v57 = vld [vmem:[#allocation138_spill] sm:$0xff] }
 0x8b0   :  { %8746 = vmatpush1.bf16.msra.mxu1 %v8588_v56  ;;  %v20941_v56 = vld [vmem:[#allocation137_spill] sm:$0xff]  ;;  %v8636_v48 = vsel %vm1536_vm12, %v8612_v27, 0  ;;  %v8108_v24 = vmul.f32 %v8095_v43, %v20946_v38  ;;  %v8285_v5 = vsel %vm1108_vm8, %v20947_v57, %v16382_v25  ;;  %v8286_v25 = vsel %vm1108_vm8, %v20917_v11, %v20947_v57 }
 0x8b1   :  { %8747 = vmatprep.subr.bf16.mxu1 %v8601_v16  ;;  %v8238_v31 = vsel %vm1011_vm7, %v20941_v56, %v16363_v7  ;;  %v8156_v16 = vmul.f32 %v8143_v23, %v20943_v14  ;;  %v8239_v7 = vsel %vm1011_vm7, %v20909_v46, %v20941_v56  ;;  %v8567_v9 = vpack.c.bf16 %v8157_v42, %v8109_v6  ;;  %v20948_v23 = vld [vmem:[#allocation26_spill] sm:$0xff]  ;;  %v20950_v42 = vld [vmem:[#allocation29_spill] sm:$0xff]  ;;  %v20952_v6 = vld [vmem:[#allocation28_spill] sm:$0xff] }
 0x8b2   :  { %7300 = vrot.lane.b32.xlu1 %v16916_v54, %s12102_s1  ;;  %7978 = vrot.lane.b32.xlu0 %v16897_v32, %s20760_s8  ;;  %v8205_v46 = vmul.f32 %v8190_v13, %v20948_v23  ;;  %v8301_v43 = vmul.f32 %v8285_v5, %v20950_v42  ;;  %v20957_v5 = vld [vmem:[#allocation21_spill] sm:$0xff] }
 0x8b3   :  { %v8566_v56 = vpack.c.bf16 %v8156_v16, %v8108_v24 }
 0x8b4   :  { %8748 = vmatpush1.bf16.msra.mxu1 %v8600_v18  ;;  %v8253_v18 = vmul.f32 %v8238_v31, %v20945_v40  ;;  %v20949_v31 = vld [vmem:[#allocation27_spill] sm:$0xff] }
 0x8b5   :  { %10746 = vmatprep.subr.msk.bf16.mxu1 %vm1536_vm12, %v8613_v49  ;;  %v8191_v49 = vsel %vm914_vm6, %v20913_v19, %v20944_v55  ;;  %v8252_v27 = vmul.f32 %v8239_v7, %v20949_v31  ;;  %v20953_v55 = vld [vmem:[#allocation140_spill] sm:$0xff] }
 0x8b6   :  { %7884 = vrot.lane.b32.xlu1 %v16918_v52, %s20526_s24  ;;  %7490 = vrot.lane.b32.xlu0 %v16895_v37, %s12104_s2  ;;  %v8579_v19 = vpack.c.bf16 %v8253_v18, %v8205_v46  ;;  %v8204_v16 = vmul.f32 %v8191_v49, %v20952_v6  ;;  %v8381_v13 = vsel %vm1302_vm10, %v20953_v55, %v16426_v2  ;;  %v20956_v18 = vld [vmem:[#allocation30_spill] sm:$0xff]  ;;  %v20958_v46 = vld [vmem:[#allocation141_spill] sm:$0xff] }
 0x8b7   :  { %v8382_v2 = vsel %vm1302_vm10, %v20924_v21, %v20953_v55  ;;  %v8397_v57 = vmul.f32 %v8381_v13, %v20956_v18  ;;  %v8591_v49 = vpack.c.bf16 %v8301_v43, %v20957_v5  ;;  %v20960_v43 = vld [vmem:[#allocation18_spill] sm:$0xff] }
 0x8b8   :  { %8750 = vmatpush1.bf16.msra.mxu1 %v8636_v48  ;;  %v8578_v7 = vpack.c.bf16 %v8252_v27, %v8204_v16  ;;  %v20954_v48 = vld [vmem:[#allocation52_spill] sm:$0xff]  ;;  %v20959_v27 = vld [vmem:[#allocation51_spill] sm:$0xff]  ;;  %v20961_v16 = vld [vmem:[#allocation6_spill] sm:$0xff] }
 0x8b9   :  { %8782 = vmatprep.subr.bf16.mxu1 %v8567_v9  ;;  %v8300_v11 = vmul.f32 %v8286_v25, %v20954_v48  ;;  %v20955_v9 = vld [vmem:[#allocation139_spill] sm:$0xff]  ;;  %v8396_v55 = vmul.f32 %v8382_v2, %v20961_v16 }
 0x8ba   :  { %7396 = vrot.lane.b32.xlu1 %v16916_v54, %s12103_s0  ;;  %7586 = vrot.lane.b32.xlu0 %v16895_v37, %s12105_s25  ;;  %v8333_v24 = vsel %vm1205_vm9, %v20955_v9, %v16407_v39  ;;  %v8430_v39 = vsel %vm1399_vm11, %v20932_v4, %v20958_v46  ;;  %v8334_v21 = vsel %vm1205_vm9, %v20927_v3, %v20955_v9  ;;  %v12072_v3 = vld [vmem:[%s19949_s18 + $0x98] ss:$0 sm:$0xff]  ;;  %v20964_v2 = vld [vmem:[#allocation143_spill] sm:$0xff] }
 0x8bb   :  { %10747 = vmatmul.mubr.msk.bf16.vlgmr.msra.gmra.mrb[72].mxu1 %vm20951_vm1, %v16892_v61  ;;  %v8349_v25 = vmul.f32 %v8333_v24, %v20959_v27  ;;  %v20963_v24 = vld [vmem:[#allocation111_spill] sm:$0xff] }
 0x8bc   :  { %8783 = vmatpush1.bf16.msra.mxu1 %v8566_v56  ;;  %8814 = vmatprep.mubr.bf16.mxu1 %v20766_v35  ;;  %v8429_v56 = vsel %vm1399_vm11, %v20958_v46, %v16451_v47  ;;  %v12071_v47 = vld [vmem:[%s19949_s18 + $0x90] ss:$0 sm:$0xff]  ;;  %v8138_v5 = vsel %vm817_vm4, %v20964_v2, %v20963_v24  ;;  %v20965_v46 = vld [vmem:[#allocation110_spill] sm:$0xff] }
 0x8bd   :  { %8784 = vmatprep.subr.bf16.mxu1 %v8579_v19  ;;  %v8590_v19 = vpack.c.bf16 %v8300_v11, %v20960_v43  ;;  %v8444_v4 = vmul.f32 %v12071_v47, %v8430_v39  ;;  %v8445_v13 = vmul.f32 %v12072_v3, %v8429_v56  ;;  %v20962_v11 = vld [vmem:[#allocation31_spill] sm:$0xff]  ;;  %v20966_v43 = vld [vmem:[#allocation142_spill] sm:$0xff]  ;;  %v20968_v47 = vld [vmem:[#allocation145_spill] sm:$0xff] }
 0x8be   :  { %7980 = vrot.lane.b32.xlu1 %v16918_v52, %s20760_s8  ;;  %7682 = vrot.lane.b32.xlu0 %v16895_v37, %s12106_s26  ;;  %v8348_v9 = vmul.f32 %v8334_v21, %v20962_v11  ;;  %v8090_v39 = vsel %vm720_vm3, %v20966_v43, %v20965_v46  ;;  %v20967_v21 = vld [vmem:[#allocation32_spill] sm:$0xff]  ;;  %v20970_v3 = vld [vmem:[#allocation147_spill] sm:$0xff] }
 0x8bf   :  { %v8615_v56 = vpack.c.bf16 %v8445_v13, %v8445_v13  ;;  %v20972_v46 = vld [vmem:[#allocation144_spill] sm:$0xff]  ;;  %v20973_v13 = vld [vmem:[#allocation45_spill] sm:$0xff] }
 0x8c0   :  { %8785 = vmatpush1.bf16.msra.mxu1 %v8578_v7  ;;  %v8603_v7 = vpack.c.bf16 %v8397_v57, %v8349_v25  ;;  %v8614_v57 = vpack.c.bf16 %v8444_v4, %v8444_v4  ;;  %v8161_v25 = vmul.f32 %v8138_v5, %v20967_v21  ;;  %v8091_v4 = vsel %vm720_vm3, %v20972_v46, %v20966_v43  ;;  %v20975_v21 = vld [vmem:[#allocation146_spill] sm:$0xff] }
 0x8c1   :  { %8786 = vmatprep.subr.bf16.mxu1 %v8591_v49  ;;  %v8602_v49 = vpack.c.bf16 %v8396_v55, %v8348_v9  ;;  %v20969_v55 = vld [vmem:[#allocation109_spill] sm:$0xff]  ;;  %v20971_v9 = vld [vmem:[#allocation34_spill] sm:$0xff] }
 0x8c2   :  { %7492 = vrot.lane.b32.xlu1 %v16916_v54, %s12104_s2  ;;  %7778 = vrot.lane.b32.xlu0 %v16895_v37, %s20523_s22  ;;  %v8113_v24 = vmul.f32 %v8090_v39, %v20971_v9 }
 0x8c4   :  { %8787 = vmatpush1.bf16.msra.mxu1 %v8590_v19  ;;  %v8139_v19 = vsel %vm817_vm4, %v20968_v47, %v20964_v2  ;;  %v8186_v2 = vsel %vm914_vm6, %v20975_v21, %v20974_v34  ;;  %v20977_v47 = vld [vmem:[#allocation148_spill] sm:$0xff]  ;;  %v20980_v34 = vld [vmem:[#allocation149_spill] sm:$0xff] }
 0x8c5   :  { %8788 = vmatprep.subr.bf16.mxu1 %v8603_v7  ;;  %v8234_v7 = vsel %vm1011_vm7, %v20970_v3, %v20969_v55  ;;  %v8160_v5 = vmul.f32 %v8139_v19, %v20973_v13  ;;  %v8235_v43 = vsel %vm1011_vm7, %v20977_v47, %v20970_v3  ;;  %v8571_v19 = vpack.c.bf16 %v8161_v25, %v8113_v24  ;;  %v20978_v55 = vld [vmem:[#allocation33_spill] sm:$0xff]  ;;  %v20979_v13 = vld [vmem:[#allocation96_spill] sm:$0xff]  ;;  %v20982_v47 = vld [vmem:[#allocation35_spill] sm:$0xff] }
 0x8c6   :  { %7588 = vrot.lane.b32.xlu1 %v16916_v54, %s12105_s25  ;;  %7874 = vrot.lane.b32.xlu0 %v16895_v37, %s20526_s24  ;;  %v8112_v46 = vmul.f32 %v8091_v4, %v20978_v55  ;;  %v8293_v60 = vsel %vm1108_vm8, %v20980_v34, %v20979_v13  ;;  %v8209_v62 = vmul.f32 %v8186_v2, %v20981_v45  ;;  %v20983_v25 = vld [vmem:[#allocation38_spill] sm:$0xff] }
 0x8c7   :  { %v8305_v24 = vmul.f32 %v8293_v60, %v20983_v25  ;;  %v8282_v4 = vsel %vm1108_vm8, %v16558_v33, %v20980_v34  ;;  %v20988_v33 = vld [vmem:[#allocation150_spill] sm:$0xff] }
 0x8c8   :  { %8789 = vmatpush1.bf16.msra.mxu1 %v8602_v49  ;;  %v20976_v49 = vld [vmem:[#allocation36_spill] sm:$0xff]  ;;  %v8570_v3 = vpack.c.bf16 %v8160_v5, %v8112_v46  ;;  %v20986_v5 = vld [vmem:[#allocation151_spill] sm:$0xff]  ;;  %v20990_v46 = vld [vmem:[#allocation97_spill] sm:$0xff] }
 0x8c9   :  { %10748 = vmatprep.subr.msk.bf16.mxu1 %vm1536_vm12, %v8615_v56  ;;  %v8257_v39 = vmul.f32 %v8234_v7, %v20976_v49  ;;  %v8642_v56 = vsel %vm1536_vm12, %v8614_v57, 0  ;;  %v8187_v7 = vsel %vm914_vm6, %v16525_v59, %v20975_v21  ;;  %v8256_v57 = vmul.f32 %v8235_v43, %v20982_v47  ;;  %v20985_v21 = vld [vmem:[#allocation37_spill] sm:$0xff]  ;;  %v20987_v43 = vld [vmem:[#allocation44_spill] sm:$0xff] }
 0x8ca   :  { %7684 = vrot.lane.b32.xlu1 %v16916_v54, %s12106_s26  ;;  %7970 = vrot.lane.b32.xlu0 %v16895_v37, %s20760_s8  ;;  %v8208_v13 = vmul.f32 %v8187_v7, %v20985_v21  ;;  %v8389_v2 = vsel %vm1302_vm10, %v20986_v5, %v15877_v44  ;;  %v8595_v34 = vpack.c.bf16 %v8305_v24, %v20990_v46  ;;  %v20991_v7 = vld [vmem:[#allocation152_spill] sm:$0xff]  ;;  %v20993_v24 = vld [vmem:[#allocation98_spill] sm:$0xff] }
 0x8cb   :  { %v8583_v59 = vpack.c.bf16 %v8257_v39, %v8209_v62  ;;  %v20989_v62 = vld [vmem:[#allocation40_spill] sm:$0xff]  ;;  %v8378_v39 = vsel %vm1302_vm10, %v16606_v63, %v20986_v5  ;;  %v8330_v63 = vsel %vm1205_vm9, %v16589_v36, %v20988_v33  ;;  %v12074_v36 = vld [vmem:[%s19949_s18 + $0xb8] ss:$0 sm:$0xff] }
 0x8cc   :  { %8791 = vmatpush1.bf16.msra.mxu1 %v8642_v56  ;;  %v8582_v60 = vpack.c.bf16 %v8256_v57, %v8208_v13  ;;  %v8304_v56 = vmul.f32 %v8282_v4, %v20987_v43  ;;  %v8401_v44 = vmul.f32 %v8389_v2, %v20989_v62  ;;  %v20992_v57 = vld [vmem:[#allocation46_spill] sm:$0xff] }
 0x8cd   :  { %8864 = vmatprep.subr.bf16.mxu1 %v8571_v19  ;;  %v8341_v19 = vsel %vm1205_vm9, %v20988_v33, %v15862_v53  ;;  %v8426_v53 = vsel %vm1399_vm11, %v16617_v10, %v20991_v7  ;;  %v20994_v13 = vld [vmem:[#allocation42_spill] sm:$0xff] }
 0x8ce   :  { %7780 = vrot.lane.b32.xlu1 %v16916_v54, %s20523_s22  ;;  %7310 = vrot.lane.b32.xlu0 %v16907_v22, %s12102_s1  ;;  %v8353_v4 = vmul.f32 %v8341_v19, %v20992_v57  ;;  %v8400_v5 = vmul.f32 %v8378_v39, %v20994_v13 }
 0x8cf   :  { %10749 = vmatmul.mubr.msk.bf16.vlgmr.msra.gmra.mrb[76].mxu1 %vm20984_vm2, %v16892_v61 }
 0x8d0   :  { %8865 = vmatpush1.bf16.msra.mxu1 %v8570_v3  ;;  %8896 = vmatprep.mubr.bf16.mxu1 %v20766_v35  ;;  %v8437_v3 = vsel %vm1399_vm11, %v20991_v7, %v15894_v30  ;;  %v12073_v30 = vld [vmem:[%s19949_s18 + $0xb0] ss:$0 sm:$0xff] }
 0x8d1   :  { %8866 = vmatprep.subr.bf16.mxu1 %v8583_v59  ;;  %v8594_v59 = vpack.c.bf16 %v8304_v56, %v20993_v24  ;;  %v8448_v10 = vmul.f32 %v12073_v30, %v8426_v53  ;;  %v8449_v2 = vmul.f32 %v12074_v36, %v8437_v3  ;;  %v20995_v56 = vld [vmem:[#allocation39_spill] sm:$0xff] }
 0x8d2   :  { %7876 = vrot.lane.b32.xlu1 %v16916_v54, %s20526_s24  ;;  %7302 = vrot.lane.b32.xlu0 %v16905_v17, %s12102_s1  ;;  %v8352_v33 = vmul.f32 %v8330_v63, %v20995_v56 }
 0x8d3   :  { %v8618_v39 = vpack.c.bf16 %v8448_v10, %v8448_v10  ;;  %v8619_v46 = vpack.c.bf16 %v8449_v2, %v8449_v2 }
 0x8d4   :  { %8867 = vmatpush1.bf16.msra.mxu1 %v8582_v60  ;;  %v8607_v60 = vpack.c.bf16 %v8401_v44, %v8353_v4  ;;  %v8606_v19 = vpack.c.bf16 %v8400_v5, %v8352_v33 }
 0x8d5   :  { %8868 = vmatprep.subr.bf16.mxu1 %v8595_v34  ;;  %v8654_v44 = vsel %vm1536_vm12, %v8618_v39, 0 }
 0x8d6   :  { %7972 = vrot.lane.b32.xlu1 %v16916_v54, %s20760_s8  ;;  %7406 = vrot.lane.b32.xlu0 %v16907_v22, %s12103_s0 }
 0x8d8   :  { %8869 = vmatpush1.bf16.msra.mxu1 %v8594_v59 }
 0x8d9   :  { %8870 = vmatprep.subr.bf16.mxu1 %v8607_v60 }
 0x8da   :  { %7312 = vrot.lane.b32.xlu1 %v16928_v29, %s12102_s1  ;;  %7398 = vrot.lane.b32.xlu0 %v16905_v17, %s12103_s0 }
 0x8dc   :  { %8871 = vmatpush1.bf16.msra.mxu1 %v8606_v19 }
 0x8dd   :  { %10752 = vmatprep.subr.msk.bf16.mxu1 %vm1536_vm12, %v8619_v46 }
 0x8de   :  { %7304 = vrot.lane.b32.xlu1 %v16926_v51, %s12102_s1  ;;  %7502 = vrot.lane.b32.xlu0 %v16907_v22, %s12104_s2 }
 0x8e0   :  { %8873 = vmatpush1.bf16.msra.mxu1 %v8654_v44 }
 0x8e2   :  { %7408 = vrot.lane.b32.xlu1 %v16928_v29, %s12103_s0  ;;  %7494 = vrot.lane.b32.xlu0 %v16905_v17, %s12104_s2 }
 0x8e3   :  { %10753 = vmatmul.mubr.msk.bf16.vlgmr.msra.gmra.mrb[80].mxu1 %vm20996_vm5, %v16892_v61 }
 0x8e6   :  { %7400 = vrot.lane.b32.xlu1 %v16926_v51, %s12103_s0  ;;  %7598 = vrot.lane.b32.xlu0 %v16907_v22, %s12105_s25 }
 0x8ea   :  { %7504 = vrot.lane.b32.xlu1 %v16928_v29, %s12104_s2  ;;  %7590 = vrot.lane.b32.xlu0 %v16905_v17, %s12105_s25 }
 0x8ee   :  { %7496 = vrot.lane.b32.xlu1 %v16926_v51, %s12104_s2  ;;  %7886 = vrot.lane.b32.xlu0 %v16907_v22, %s20526_s24 }
 0x8f1   :  { %v17341_v34 = vpop.f32.mrb[56].mxu1  ;;  %v17343_v61 = vpop.f32.mrb[28].mxu0 }
 0x8f2   :  { %20997 = vst [vmem:[#allocation99_spill] sm:$0xff] %v17341_v34  ;;  %20998 = vst [vmem:[#allocation107_spill] sm:$0xff] %v17343_v61  ;;  %v17345_v7 = vpop.f32.mrb[57].mxu1  ;;  %v17347_v53 = vpop.f32.mrb[29].mxu0  ;;  %7600 = vrot.lane.b32.xlu1 %v16928_v29, %s12105_s25  ;;  %7982 = vrot.lane.b32.xlu0 %v16907_v22, %s20760_s8 }
 0x8f3   :  { %20999 = vst [vmem:[#allocation103_spill] sm:$0xff] %v17345_v7  ;;  %21000 = vst [vmem:[#allocation100_spill] sm:$0xff] %v17347_v53  ;;  %v17353_v3 = vpop.f32.mrb[30].mxu0  ;;  %v17355_v4 = vpop.f32.mrb[58].mxu1 }
 0x8f4   :  { %21001 = vst [vmem:[#allocation106_spill] sm:$0xff] %v17353_v3  ;;  %21002 = vst [vmem:[#allocation105_spill] sm:$0xff] %v17355_v4  ;;  %v17357_v63 = vpop.f32.mrb[59].mxu1  ;;  %v17359_v24 = vpop.f32.mrb[31].mxu0 }
 0x8f5   :  { %21003 = vst [vmem:[#allocation102_spill] sm:$0xff] %v17357_v63  ;;  %21004 = vst [vmem:[#allocation114_spill] sm:$0xff] %v17359_v24 }
 0x8f6   :  { %7592 = vrot.lane.b32.xlu1 %v16926_v51, %s12105_s25  ;;  %7686 = vrot.lane.b32.xlu0 %v16905_v17, %s12106_s26 }
 0x8fa   :  { %7888 = vrot.lane.b32.xlu1 %v16928_v29, %s20526_s24  ;;  %7782 = vrot.lane.b32.xlu0 %v16905_v17, %s20523_s22 }
 0x8fe   :  { %7984 = vrot.lane.b32.xlu1 %v16928_v29, %s20760_s8  ;;  %7878 = vrot.lane.b32.xlu0 %v16905_v17, %s20526_s24 }
 0x902   :  { %7688 = vrot.lane.b32.xlu1 %v16926_v51, %s12106_s26  ;;  %7974 = vrot.lane.b32.xlu0 %v16905_v17, %s20760_s8 }
 0x904   :  { %v17385_v36 = vpop.permute.xlu1 %7690  ;;  %v17387_v2 = vpop.permute.xlu0 %7306 }
 0x905   :  { %21005 = vst [vmem:[#allocation113_spill] sm:$0xff] %v17385_v36 }
 0x906   :  { %7784 = vrot.lane.b32.xlu1 %v16926_v51, %s20523_s22  ;;  %7692 = vrot.lane.b32.xlu0 %v16918_v52, %s12106_s26 }
 0x908   :  { %v17393_v60 = vpop.permute.xlu1 %7694  ;;  %v17395_v33 = vpop.permute.xlu0 %7402 }
 0x90a   :  { %7880 = vrot.lane.b32.xlu1 %v16926_v51, %s20526_s24  ;;  %7696 = vrot.lane.b32.xlu0 %v16928_v29, %s12106_s26 }
 0x90c   :  { %v17401_v19 = vpop.permute.xlu1 %7790  ;;  %v17403_v39 = vpop.permute.xlu0 %7498 }
 0x90e   :  { %7976 = vrot.lane.b32.xlu1 %v16926_v51, %s20760_s8  ;;  %7792 = vrot.lane.b32.xlu0 %v16928_v29, %s20523_s22 }
 0x910   :  { %v17409_v46 = vpop.permute.xlu1 %7308  ;;  %v17411_v44 = vpop.permute.xlu0 %7594 }
 0x912   :  { %7698 = vrot.lane.b32.xlu1 %v17341_v34, %s12106_s26  ;;  %7890 = vrot.lane.b32.xlu0 %v17341_v34, %s20526_s24 }
 0x914   :  { %v17417_v5 = vpop.permute.xlu1 %7404  ;;  %v17419_v10 = vpop.permute.xlu0 %7786 }
 0x916   :  { %7794 = vrot.lane.b32.xlu1 %v17341_v34, %s20523_s22  ;;  %7986 = vrot.lane.b32.xlu0 %v17341_v34, %s20760_s8 }
 0x918   :  { %v17425_v59 = vpop.permute.xlu1 %7500  ;;  %v17427_v30 = vpop.permute.xlu0 %7298 }
 0x919   :  { %21006 = vst [vmem:[#allocation112_spill] sm:$0xff] %v17427_v30 }
 0x91a   :  { %7892 = vrot.lane.b32.xlu1 %v17355_v4, %s20526_s24  ;;  %7322 = vrot.lane.b32.xlu0 %v17343_v61, %s12102_s1 }
 0x91c   :  { %v17433_v35 = vpop.permute.xlu1 %7596  ;;  %v17435_v13 = vpop.permute.xlu0 %7882 }
 0x91e   :  { %7988 = vrot.lane.b32.xlu1 %v17355_v4, %s20760_s8  ;;  %7418 = vrot.lane.b32.xlu0 %v17343_v61, %s12103_s0 }
 0x920   :  { %v17441_v62 = vpop.permute.xlu1 %7788  ;;  %v17443_v56 = vpop.permute.xlu0 %7394 }
 0x921   :  { %21007 = vst [vmem:[#allocation20_spill] sm:$0xff] %v17443_v56 }
 0x922   :  { %7324 = vrot.lane.b32.xlu1 %v17353_v3, %s12102_s1  ;;  %7514 = vrot.lane.b32.xlu0 %v17343_v61, %s12104_s2 }
 0x924   :  { %v17449_v57 = vpop.permute.xlu1 %7300  ;;  %v17451_v43 = vpop.permute.xlu0 %7978 }
 0x925   :  { %21008 = vst [vmem:[#allocation67_spill] sm:$0xff] %v17449_v57 }
 0x926   :  { %7420 = vrot.lane.b32.xlu1 %v17353_v3, %s12103_s0  ;;  %7610 = vrot.lane.b32.xlu0 %v17343_v61, %s12105_s25 }
 0x928   :  { %v17457_v25 = vpop.permute.xlu1 %7884  ;;  %v17459_v47 = vpop.permute.xlu0 %7490 }
 0x929   :  { %21009 = vst [vmem:[#allocation115_spill] sm:$0xff] %v17459_v47 }
 0x92a   :  { %7516 = vrot.lane.b32.xlu1 %v17353_v3, %s12104_s2  ;;  %7706 = vrot.lane.b32.xlu0 %v17343_v61, %s12106_s26 }
 0x92c   :  { %v17465_v21 = vpop.permute.xlu1 %7396  ;;  %v17467_v49 = vpop.permute.xlu0 %7586 }
 0x92d   :  { %21010 = vst [vmem:[#allocation116_spill] sm:$0xff] %v17465_v21  ;;  %21011 = vst [vmem:[#allocation4_spill] sm:$0xff] %v17467_v49 }
 0x92e   :  { %7612 = vrot.lane.b32.xlu1 %v17353_v3, %s12105_s25  ;;  %7802 = vrot.lane.b32.xlu0 %v17343_v61, %s20523_s22 }
 0x930   :  { %v17473_v45 = vpop.permute.xlu1 %7980  ;;  %v17475_v55 = vpop.permute.xlu0 %7682 }
 0x931   :  { %21012 = vst [vmem:[#allocation120_spill] sm:$0xff] %v17475_v55 }
 0x932   :  { %7708 = vrot.lane.b32.xlu1 %v17353_v3, %s12106_s26  ;;  %7314 = vrot.lane.b32.xlu0 %v17341_v34, %s12102_s1 }
 0x934   :  { %v17481_v12 = vpop.permute.xlu1 %7492  ;;  %v17483_v37 = vpop.permute.xlu0 %7778 }
 0x935   :  { %21013 = vst [vmem:[#allocation119_spill] sm:$0xff] %v17481_v12  ;;  %21014 = vst [vmem:[#allocation118_spill] sm:$0xff] %v17483_v37 }
 0x936   :  { %7804 = vrot.lane.b32.xlu1 %v17353_v3, %s20523_s22  ;;  %7898 = vrot.lane.b32.xlu0 %v17343_v61, %s20526_s24 }
 0x938   :  { %v17489_v54 = vpop.permute.xlu1 %7588  ;;  %v17491_v17 = vpop.permute.xlu0 %7874 }
 0x939   :  { %21015 = vst [vmem:[#allocation117_spill] sm:$0xff] %v17489_v54  ;;  %21016 = vst [vmem:[#allocation124_spill] sm:$0xff] %v17491_v17 }
 0x93a   :  { %7316 = vrot.lane.b32.xlu1 %v17355_v4, %s12102_s1  ;;  %7410 = vrot.lane.b32.xlu0 %v17341_v34, %s12103_s0 }
 0x93c   :  { %v17497_v51 = vpop.permute.xlu1 %7684  ;;  %v17499_v55 = vpop.permute.xlu0 %7970 }
 0x93d   :  { %21017 = vst [vmem:[#allocation123_spill] sm:$0xff] %v17497_v51  ;;  %21018 = vst [vmem:[#allocation122_spill] sm:$0xff] %v17499_v55 }
 0x93e   :  { %7900 = vrot.lane.b32.xlu1 %v17353_v3, %s20526_s24  ;;  %7994 = vrot.lane.b32.xlu0 %v17343_v61, %s20760_s8  ;;  %v21027_v61 = vld [vmem:[#allocation47_spill] sm:$0xff] }
 0x940   :  { %v17505_v37 = vpop.permute.xlu1 %7780  ;;  %v17507_v9 = vpop.permute.xlu0 %7310 }
 0x941   :  { %21019 = vst [vmem:[#allocation121_spill] sm:$0xff] %v17505_v37  ;;  %21020 = vst [vmem:[#allocation126_spill] sm:$0xff] %v17507_v9 }
 0x942   :  { %7412 = vrot.lane.b32.xlu1 %v17355_v4, %s12103_s0  ;;  %7506 = vrot.lane.b32.xlu0 %v17341_v34, %s12104_s2 }
 0x944   :  { %v17513_v17 = vpop.permute.xlu1 %7876  ;;  %v7303_v51 = vpop.permute.xlu0 %7302 }
 0x945   :  { %21021 = vst [vmem:[#allocation125_spill] sm:$0xff] %v17513_v17  ;;  %v7362_v17 = vsel %vm720_vm3, %v17387_v2, %v17507_v9  ;;  %v7366_v18 = vsel %vm720_vm3, %v17427_v30, %v7303_v51  ;;  %v7364_v9 = vsel %vm720_vm3, %v7303_v51, %v17387_v2 }
 0x946   :  { %7996 = vrot.lane.b32.xlu1 %v17353_v3, %s20760_s8  ;;  %7602 = vrot.lane.b32.xlu0 %v17341_v34, %s12105_s25  ;;  %v7371_v3 = vmul.f32 %v7366_v18, %v21027_v61  ;;  %v7372_v27 = vmul.f32 %v7364_v9, %v20877_v15 }
 0x948   :  { %v17519_v55 = vpop.permute.xlu1 %7972  ;;  %v17521_v37 = vpop.permute.xlu0 %7406 }
 0x949   :  { %21022 = vst [vmem:[#allocation130_spill] sm:$0xff] %v17519_v55  ;;  %21023 = vst [vmem:[#allocation129_spill] sm:$0xff] %v17521_v37  ;;  %v7373_v55 = vmul.f32 %v7362_v17, %v20868_v28 }
 0x94a   :  { %7508 = vrot.lane.b32.xlu1 %v17355_v4, %s12104_s2  ;;  %7326 = vrot.lane.b32.xlu0 %v17347_v53, %s12102_s1 }
 0x94c   :  { %v17531_v16 = vpop.permute.xlu1 %7312  ;;  %v17533_v54 = vpop.permute.xlu0 %7398 }
 0x94d   :  { %21024 = vst [vmem:[#allocation128_spill] sm:$0xff] %v17531_v16  ;;  %21025 = vst [vmem:[#allocation127_spill] sm:$0xff] %v17533_v54  ;;  %v7363_v34 = vsel %vm720_vm3, %v17409_v46, %v17531_v16  ;;  %v7460_v12 = vsel %vm817_vm4, %v17533_v54, %v17395_v33 }
 0x94e   :  { %v7385_v11 = vmul.f32 %v7363_v34, %v20868_v28  ;;  %7604 = vrot.lane.b32.xlu1 %v17355_v4, %s12105_s25  ;;  %7318 = vrot.lane.b32.xlu0 %v17345_v7, %s12102_s1 }
 0x950   :  { %v7305_v49 = vpop.permute.xlu1 %7304  ;;  %v17551_v16 = vpop.permute.xlu0 %7502  ;;  %v8454_v17 = vpack.c.bf16 %v7385_v11, %v7373_v55 }
 0x951   :  { %21026 = vst [vmem:[#allocation5_spill] sm:$0xff] %v17551_v16  ;;  %v7365_v34 = vsel %vm720_vm3, %v7305_v49, %v17409_v46  ;;  %v7367_v28 = vsel %vm720_vm3, %v17449_v57, %v7305_v49  ;;  %v17560_v30 = vpop.f32.mrb[60].mxu1 }
 0x952   :  { %21028 = vst [vmem:[#allocation131_spill] sm:$0xff] %v17560_v30  ;;  %v17563_v48 = vpop.f32.mrb[32].mxu0  ;;  %v7383_v51 = vmul.f32 %v7367_v28, %v21027_v61  ;;  %v7384_v11 = vmul.f32 %v7365_v34, %v20877_v15  ;;  %v17567_v55 = vpop.f32.mrb[61].mxu1  ;;  %7328 = vrot.lane.b32.xlu1 %v17359_v24, %s12102_s1  ;;  %7422 = vrot.lane.b32.xlu0 %v17347_v53, %s12103_s0 }
 0x953   :  { %21029 = vst [vmem:[#allocation132_spill] sm:$0xff] %v17563_v48  ;;  %21030 = vst [vmem:[#allocation79_spill] sm:$0xff] %v17567_v55  ;;  %v17573_v18 = vpop.f32.mrb[33].mxu0  ;;  %v17575_v49 = vpop.f32.mrb[62].mxu1  ;;  %8955 = vmatprep.subr.bf16.mxu1 %v8454_v17  ;;  %v7458_v28 = vsel %vm817_vm4, %v17395_v33, %v17521_v37 }
 0x954   :  { %21031 = vst [vmem:[#allocation135_spill] sm:$0xff] %v17573_v18  ;;  %21032 = vst [vmem:[#allocation134_spill] sm:$0xff] %v17575_v49  ;;  %v8453_v9 = vpack.c.bf16 %v7384_v11, %v7372_v27  ;;  %v17581_v2 = vpop.f32.mrb[34].mxu0  ;;  %v17583_v46 = vpop.f32.mrb[63].mxu1  ;;  %v8452_v34 = vpack.c.bf16 %v7383_v51, %v7371_v3  ;;  %v7469_v51 = vmul.f32 %v7458_v28, %v20867_v20 }
 0x955   :  { %21033 = vst [vmem:[#allocation133_spill] sm:$0xff] %v17581_v2  ;;  %21034 = vst [vmem:[#allocation137_spill] sm:$0xff] %v17583_v46  ;;  %v17587_v61 = vpop.f32.mrb[35].mxu0  ;;  %v17589_v57 = vpop.permute.xlu1 %7408  ;;  %v7468_v28 = vmul.f32 %v7460_v12, %v20872_v8 }
 0x956   :  { %21035 = vst [vmem:[#allocation136_spill] sm:$0xff] %v17587_v61  ;;  %21036 = vst [vmem:[#allocation138_spill] sm:$0xff] %v17589_v57  ;;  %v7459_v27 = vsel %vm817_vm4, %v17417_v5, %v17589_v57  ;;  %v17599_v11 = vpop.permute.xlu0 %7494  ;;  %7320 = vrot.lane.b32.xlu1 %v17357_v63, %s12102_s1  ;;  %7414 = vrot.lane.b32.xlu0 %v17345_v7, %s12103_s0 }
 0x957   :  { %21037 = vst [vmem:[#allocation140_spill] sm:$0xff] %v17599_v11  ;;  %v7481_v15 = vmul.f32 %v7459_v27, %v20867_v20  ;;  %8914 = vmatprep.subr.bf16.mxu0 %v8452_v34  ;;  %8956 = vmatpush1.bf16.msra.mxu1 %v8453_v9 }
 0x959   :  { %v17613_v17 = vpop.permute.xlu1 %7400  ;;  %v8466_v37 = vpack.c.bf16 %v7481_v15, %v7469_v51  ;;  %v7554_v15 = vsel %vm914_vm6, %v17403_v39, %v17551_v16 }
 0x95a   :  { %21038 = vst [vmem:[#allocation139_spill] sm:$0xff] %v17613_v17  ;;  %v7461_v57 = vsel %vm817_vm4, %v17613_v17, %v17417_v5  ;;  %v17619_v3 = vpop.permute.xlu0 %7598  ;;  %7424 = vrot.lane.b32.xlu1 %v17359_v24, %s12103_s0  ;;  %7518 = vrot.lane.b32.xlu0 %v17347_v53, %s12104_s2 }
 0x95b   :  { %21039 = vst [vmem:[#allocation21_spill] sm:$0xff] %v17619_v3  ;;  %v7480_v33 = vmul.f32 %v7461_v57, %v20872_v8  ;;  %8957 = vmatprep.subr.bf16.mxu1 %v8466_v37  ;;  %v7565_v37 = vmul.f32 %v7554_v15, %v20880_v50  ;;  %v7556_v57 = vsel %vm914_vm6, %v17599_v11, %v17403_v39 }
 0x95c   :  { %v7564_v15 = vmul.f32 %v7556_v57, %v20882_v26 }
 0x95d   :  { %v8465_v9 = vpack.c.bf16 %v7480_v33, %v7468_v28  ;;  %v17631_v5 = vpop.permute.xlu1 %7504 }
 0x95e   :  { %21040 = vst [vmem:[#allocation141_spill] sm:$0xff] %v17631_v5  ;;  %v7555_v34 = vsel %vm914_vm6, %v17425_v59, %v17631_v5  ;;  %v17637_v27 = vpop.permute.xlu0 %7590  ;;  %7416 = vrot.lane.b32.xlu1 %v17357_v63, %s12103_s0  ;;  %7510 = vrot.lane.b32.xlu0 %v17345_v7, %s12104_s2 }
 0x95f   :  { %21041 = vst [vmem:[#allocation18_spill] sm:$0xff] %v17637_v27  ;;  %v7577_v12 = vmul.f32 %v7555_v34, %v20880_v50  ;;  %8958 = vmatpush1.bf16.msra.mxu1 %v8465_v9  ;;  %v7650_v9 = vsel %vm1011_vm7, %v17411_v44, %v17619_v3 }
 0x960   :  { %v7661_v57 = vmul.f32 %v7650_v9, %v20876_v41  ;;  %v21046_v9 = vld [vmem:[#allocation13_spill] sm:$0xff] }
 0x961   :  { %v17649_v51 = vpop.permute.xlu1 %7496  ;;  %v8478_v28 = vpack.c.bf16 %v7577_v12, %v7565_v37 }
 0x962   :  { %21042 = vst [vmem:[#allocation111_spill] sm:$0xff] %v17649_v51  ;;  %v7557_v33 = vsel %vm914_vm6, %v17649_v51, %v17425_v59  ;;  %v17655_v8 = vpop.permute.xlu0 %7886  ;;  %7520 = vrot.lane.b32.xlu1 %v17359_v24, %s12104_s2  ;;  %7614 = vrot.lane.b32.xlu0 %v17347_v53, %s12105_s25 }
 0x963   :  { %v7576_v39 = vmul.f32 %v7557_v33, %v20882_v26  ;;  %8959 = vmatprep.subr.bf16.mxu1 %v8478_v28  ;;  %v7652_v33 = vsel %vm1011_vm7, %v17637_v27, %v17411_v44 }
 0x965   :  { %v8477_v34 = vpack.c.bf16 %v7576_v39, %v7564_v15  ;;  %v17667_v59 = vpop.permute.xlu1 %7600 }
 0x966   :  { %21043 = vst [vmem:[#allocation143_spill] sm:$0xff] %v17667_v59  ;;  %v7651_v37 = vsel %vm1011_vm7, %v17433_v35, %v17667_v59  ;;  %v17673_v12 = vpop.permute.xlu0 %7982  ;;  %7512 = vrot.lane.b32.xlu1 %v17357_v63, %s12104_s2  ;;  %7606 = vrot.lane.b32.xlu0 %v17345_v7, %s12105_s25 }
 0x967   :  { %v7673_v28 = vmul.f32 %v7651_v37, %v20876_v41  ;;  %8960 = vmatpush1.bf16.msra.mxu1 %v8477_v34  ;;  %v7660_v34 = vmul.f32 %v7652_v33, %v21046_v9  ;;  %v17764_v41 = vld [vmem:[%s19958_s9] sm:$0xff] }
 0x968   :  { %v17770_v59 = vcombine.high %v17764_v41, %v17764_v41 }
 0x969   :  { %v17685_v15 = vpop.permute.xlu1 %7592  ;;  %v8490_v39 = vpack.c.bf16 %v7673_v28, %v7661_v57 }
 0x96a   :  { %21044 = vst [vmem:[#allocation110_spill] sm:$0xff] %v17685_v15  ;;  %v7653_v26 = vsel %vm1011_vm7, %v17685_v15, %v17433_v35  ;;  %v17691_v50 = vpop.permute.xlu0 %7686  ;;  %7616 = vrot.lane.b32.xlu1 %v17359_v24, %s12105_s25  ;;  %7710 = vrot.lane.b32.xlu0 %v17347_v53, %s12106_s26  ;;  %v21048_v35 = vpack.c.bf16 %v16928_v29, %v16907_v22 }
 0x96b   :  { %21045 = vst [vmem:[#allocation142_spill] sm:$0xff] %v17691_v50  ;;  %v7672_v44 = vmul.f32 %v7653_v26, %v21046_v9  ;;  %8961 = vmatprep.subr.bf16.mxu1 %v8490_v39  ;;  %v21050_v39 = vpack.c.bf16 %v16918_v52, %v16897_v32  ;;  %10757 = vmatprep.mubr.msk.bf16.mxu1 %vm4921_vm13, %v17770_v59 }
 0x96c   :  { %10756 = vmatprep.mubr.msk.bf16.mxu0 %vm4921_vm13, %v17770_v59 }
 0x96d   :  { %v8489_v37 = vpack.c.bf16 %v7672_v44, %v7660_v34  ;;  %v17699_v57 = vpop.permute.xlu1 %7888 }
 0x96e   :  { %v17701_v28 = vpop.permute.xlu0 %7782  ;;  %7608 = vrot.lane.b32.xlu1 %v17357_v63, %s12105_s25  ;;  %7806 = vrot.lane.b32.xlu0 %v17347_v53, %s20523_s22 }
 0x96f   :  { %21047 = vst [vmem:[#allocation145_spill] sm:$0xff] %v17701_v28  ;;  %8962 = vmatpush1.bf16.msra.mxu1 %v8489_v37 }
 0x970   :  { %8963 = vmatprep.subr.bf16.mxu1 %v21048_v35 }
 0x971   :  { %v17710_v33 = vpop.permute.xlu1 %7984 }
 0x972   :  { %v17712_v26 = vpop.permute.xlu0 %7878  ;;  %7712 = vrot.lane.b32.xlu1 %v17359_v24, %s12106_s26  ;;  %7902 = vrot.lane.b32.xlu0 %v17347_v53, %s20526_s24 }
 0x973   :  { %21049 = vst [vmem:[#allocation109_spill] sm:$0xff] %v17712_v26  ;;  %8964 = vmatpush1.bf16.msra.mxu1 %v21050_v39 }
 0x975   :  { %v17721_v34 = vpop.permute.xlu1 %7688 }
 0x976   :  { %21051 = vst [vmem:[#allocation147_spill] sm:$0xff] %v17721_v34  ;;  %v17723_v44 = vpop.permute.xlu0 %7974  ;;  %7808 = vrot.lane.b32.xlu1 %v17359_v24, %s20523_s22  ;;  %7998 = vrot.lane.b32.xlu0 %v17347_v53, %s20760_s8 }
 0x977   :  { %21052 = vst [vmem:[#allocation144_spill] sm:$0xff] %v17723_v44 }
 0x979   :  { %v17729_v22 = vpop.permute.xlu1 %7784 }
 0x97a   :  { %21053 = vst [vmem:[#allocation101_spill] sm:$0xff] %v17729_v22  ;;  %v17731_v29 = vpop.permute.xlu0 %7692  ;;  %7904 = vrot.lane.b32.xlu1 %v17359_v24, %s20526_s24  ;;  %7702 = vrot.lane.b32.xlu0 %v17345_v7, %s12106_s26 }
 0x97b   :  { %21054 = vst [vmem:[#allocation146_spill] sm:$0xff] %v17731_v29 }
 0x97d   :  { %v17737_v32 = vpop.permute.xlu1 %7880 }
 0x97e   :  { %21055 = vst [vmem:[#allocation148_spill] sm:$0xff] %v17737_v32  ;;  %v17739_v52 = vpop.permute.xlu0 %7696  ;;  %8000 = vrot.lane.b32.xlu1 %v17359_v24, %s20760_s8  ;;  %7798 = vrot.lane.b32.xlu0 %v17345_v7, %s20523_s22 }
 0x981   :  { %v17745_v37 = vpop.permute.xlu1 %7976 }
 0x982   :  { %21056 = vst [vmem:[#allocation96_spill] sm:$0xff] %v17745_v37  ;;  %v17747_v35 = vpop.permute.xlu0 %7792  ;;  %7704 = vrot.lane.b32.xlu1 %v17357_v63, %s12106_s26  ;;  %7700 = vrot.lane.b32.xlu0 %v17355_v4, %s12106_s26 }
 0x985   :  { %v17753_v39 = vpop.permute.xlu1 %7698 }
 0x986   :  { %21057 = vst [vmem:[#allocation149_spill] sm:$0xff] %v17753_v39  ;;  %v17755_v9 = vpop.permute.xlu0 %7890  ;;  %7800 = vrot.lane.b32.xlu1 %v17357_v63, %s20523_s22  ;;  %7796 = vrot.lane.b32.xlu0 %v17355_v4, %s20523_s22 }
 0x987   :  { %21058 = vst [vmem:[#allocation151_spill] sm:$0xff] %v17755_v9 }
 0x989   :  { %v17766_v20 = vpop.permute.xlu1 %7794 }
 0x98a   :  { %21059 = vst [vmem:[#allocation150_spill] sm:$0xff] %v17766_v20  ;;  %v17772_v3 = vpop.permute.xlu0 %7986  ;;  %7716 = vrot.lane.b32.xlu1 %v17575_v49, %s12106_s26  ;;  %7714 = vrot.lane.b32.xlu0 %v17560_v30, %s12106_s26 }
 0x98b   :  { %21060 = vst [vmem:[#allocation97_spill] sm:$0xff] %v17772_v3 }
 0x98d   :  { %v17782_v4 = vpop.permute.xlu1 %7892 }
 0x98e   :  { %21061 = vst [vmem:[#allocation152_spill] sm:$0xff] %v17782_v4  ;;  %v17784_v16 = vpop.permute.xlu0 %7322  ;;  %7812 = vrot.lane.b32.xlu1 %v17575_v49, %s20523_s22  ;;  %7810 = vrot.lane.b32.xlu0 %v17560_v30, %s20523_s22 }
 0x991   :  { %v17790_v5 = vpop.permute.xlu1 %7988 }
 0x992   :  { %21062 = vst [vmem:[#allocation98_spill] sm:$0xff] %v17790_v5  ;;  %v17792_v44 = vpop.permute.xlu0 %7418  ;;  %7908 = vrot.lane.b32.xlu1 %v17575_v49, %s20526_s24  ;;  %7906 = vrot.lane.b32.xlu0 %v17560_v30, %s20526_s24 }
 0x995   :  { %v17798_v37 = vpop.permute.xlu1 %7324 }
 0x996   :  { %v17800_v26 = vpop.permute.xlu0 %7514  ;;  %8004 = vrot.lane.b32.xlu1 %v17575_v49, %s20760_s8  ;;  %8002 = vrot.lane.b32.xlu0 %v17560_v30, %s20760_s8 }
 0x999   :  { %v17806_v32 = vpop.permute.xlu1 %7420 }
 0x99a   :  { %v17808_v28 = vpop.permute.xlu0 %7610  ;;  %7340 = vrot.lane.b32.xlu1 %v17581_v2, %s12102_s1  ;;  %7338 = vrot.lane.b32.xlu0 %v17563_v48, %s12102_s1 }
 0x99b   :  { %21063 = vst [vmem:[#allocation153_spill] sm:$0xff] %v17808_v28 }
 0x99d   :  { %v17814_v22 = vpop.permute.xlu1 %7516 }
 0x99e   :  { %v17816_v50 = vpop.permute.xlu0 %7706  ;;  %7436 = vrot.lane.b32.xlu1 %v17581_v2, %s12103_s0  ;;  %7434 = vrot.lane.b32.xlu0 %v17563_v48, %s12103_s0 }
 0x99f   :  { %21064 = vst [vmem:[#allocation154_spill] sm:$0xff] %v17816_v50 }
 0x9a1   :  { %v17822_v34 = vpop.permute.xlu1 %7612 }
 0x9a2   :  { %v17824_v15 = vpop.permute.xlu0 %7802  ;;  %7532 = vrot.lane.b32.xlu1 %v17581_v2, %s12104_s2  ;;  %7530 = vrot.lane.b32.xlu0 %v17563_v48, %s12104_s2 }
 0x9a3   :  { %21065 = vst [vmem:[#allocation155_spill] sm:$0xff] %v17824_v15 }
 0x9a5   :  { %v17830_v27 = vpop.permute.xlu1 %7708 }
 0x9a6   :  { %21066 = vst [vmem:[#allocation156_spill] sm:$0xff] %v17830_v27  ;;  %v17832_v53 = vpop.permute.xlu0 %7314  ;;  %7628 = vrot.lane.b32.xlu1 %v17581_v2, %s12105_s25  ;;  %7626 = vrot.lane.b32.xlu0 %v17563_v48, %s12105_s25 }
 0x9a7   :  { %21067 = vst [vmem:[#allocation157_spill] sm:$0xff] %v17832_v53 }
 0x9a9   :  { %v17838_v24 = vpop.permute.xlu1 %7804 }
 0x9aa   :  { %21068 = vst [vmem:[#allocation158_spill] sm:$0xff] %v17838_v24  ;;  %v17840_v50 = vpop.permute.xlu0 %7898  ;;  %7344 = vrot.lane.b32.xlu1 %v17587_v61, %s12102_s1  ;;  %7342 = vrot.lane.b32.xlu0 %v17573_v18, %s12102_s1 }
 0x9ab   :  { %21069 = vst [vmem:[#allocation159_spill] sm:$0xff] %v17840_v50 }
 0x9ad   :  { %v17846_v15 = vpop.permute.xlu1 %7316 }
 0x9ae   :  { %21070 = vst [vmem:[#allocation160_spill] sm:$0xff] %v17846_v15  ;;  %v17848_v51 = vpop.permute.xlu0 %7410  ;;  %7440 = vrot.lane.b32.xlu1 %v17587_v61, %s12103_s0  ;;  %7438 = vrot.lane.b32.xlu0 %v17573_v18, %s12103_s0 }
 0x9af   :  { %21071 = vst [vmem:[#allocation161_spill] sm:$0xff] %v17848_v51 }
 0x9b1   :  { %v17854_v53 = vpop.permute.xlu1 %7900 }
 0x9b2   :  { %21072 = vst [vmem:[#allocation162_spill] sm:$0xff] %v17854_v53  ;;  %v17856_v24 = vpop.permute.xlu0 %7994  ;;  %7536 = vrot.lane.b32.xlu1 %v17587_v61, %s12104_s2  ;;  %7534 = vrot.lane.b32.xlu0 %v17573_v18, %s12104_s2 }
 0x9b3   :  { %21073 = vst [vmem:[#allocation163_spill] sm:$0xff] %v17856_v24 }
 0x9b5   :  { %v17862_v50 = vpop.permute.xlu1 %7412 }
 0x9b6   :  { %21074 = vst [vmem:[#allocation164_spill] sm:$0xff] %v17862_v50  ;;  %v17864_v15 = vpop.permute.xlu0 %7506  ;;  %7632 = vrot.lane.b32.xlu1 %v17587_v61, %s12105_s25  ;;  %7630 = vrot.lane.b32.xlu0 %v17573_v18, %s12105_s25 }
 0x9b7   :  { %21075 = vst [vmem:[#allocation165_spill] sm:$0xff] %v17864_v15 }
 0x9b9   :  { %v17870_v51 = vpop.permute.xlu1 %7996 }
 0x9ba   :  { %21076 = vst [vmem:[#allocation166_spill] sm:$0xff] %v17870_v51  ;;  %v17872_v53 = vpop.permute.xlu0 %7602  ;;  %7896 = vrot.lane.b32.xlu1 %v17357_v63, %s20526_s24  ;;  %7894 = vrot.lane.b32.xlu0 %v17345_v7, %s20526_s24 }
 0x9bb   :  { %21077 = vst [vmem:[#allocation167_spill] sm:$0xff] %v17872_v53 }
 0x9bd   :  { %v17878_v24 = vpop.permute.xlu1 %7508 }
 0x9be   :  { %21078 = vst [vmem:[#allocation168_spill] sm:$0xff] %v17878_v24  ;;  %v17880_v50 = vpop.permute.xlu0 %7326  ;;  %7724 = vrot.lane.b32.xlu1 %v17581_v2, %s12106_s26  ;;  %7334 = vrot.lane.b32.xlu0 %v17567_v55, %s12102_s1 }
 0x9bf   :  { %21079 = vst [vmem:[#allocation169_spill] sm:$0xff] %v17880_v50 }
 0x9c1   :  { %v17886_v15 = vpop.permute.xlu1 %7604 }
 0x9c2   :  { %21080 = vst [vmem:[#allocation170_spill] sm:$0xff] %v17886_v15  ;;  %v17888_v51 = vpop.permute.xlu0 %7318  ;;  %7992 = vrot.lane.b32.xlu1 %v17357_v63, %s20760_s8  ;;  %7430 = vrot.lane.b32.xlu0 %v17567_v55, %s12103_s0 }
 0x9c5   :  { %v17894_v53 = vpop.permute.xlu1 %7328 }
 0x9c6   :  { %21081 = vst [vmem:[#allocation171_spill] sm:$0xff] %v17894_v53  ;;  %v17896_v24 = vpop.permute.xlu0 %7422  ;;  %7820 = vrot.lane.b32.xlu1 %v17581_v2, %s20523_s22  ;;  %7526 = vrot.lane.b32.xlu0 %v17567_v55, %s12104_s2 }
 0x9c7   :  { %21082 = vst [vmem:[#allocation172_spill] sm:$0xff] %v17896_v24 }
 0x9c9   :  { %v17902_v42 = vpop.permute.xlu1 %7320 }
 0x9ca   :  { %v17904_v15 = vpop.permute.xlu0 %7414  ;;  %7332 = vrot.lane.b32.xlu1 %v17575_v49, %s12102_s1  ;;  %7622 = vrot.lane.b32.xlu0 %v17567_v55, %s12105_s25 }
 0x9cd   :  { %v17910_v63 = vpop.permute.xlu1 %7424 }
 0x9ce   :  { %21083 = vst [vmem:[#allocation173_spill] sm:$0xff] %v17910_v63  ;;  %v17912_v27 = vpop.permute.xlu0 %7518  ;;  %7916 = vrot.lane.b32.xlu1 %v17581_v2, %s20526_s24  ;;  %7726 = vrot.lane.b32.xlu0 %v17573_v18, %s12106_s26 }
 0x9cf   :  { %21084 = vst [vmem:[#allocation174_spill] sm:$0xff] %v17912_v27 }
 0x9d1   :  { %v17918_v47 = vpop.permute.xlu1 %7416 }
 0x9d2   :  { %v17920_v11 = vpop.permute.xlu0 %7510  ;;  %7428 = vrot.lane.b32.xlu1 %v17575_v49, %s12103_s0  ;;  %7722 = vrot.lane.b32.xlu0 %v17563_v48, %s12106_s26 }
 0x9d3   :  { %21085 = vst [vmem:[#allocation175_spill] sm:$0xff] %v17920_v11 }
 0x9d5   :  { %v17926_v56 = vpop.permute.xlu1 %7520 }
 0x9d6   :  { %21086 = vst [vmem:[#allocation176_spill] sm:$0xff] %v17926_v56  ;;  %v17928_v54 = vpop.permute.xlu0 %7614  ;;  %7336 = vrot.lane.b32.xlu1 %v17583_v46, %s12102_s1  ;;  %7822 = vrot.lane.b32.xlu0 %v17573_v18, %s20523_s22 }
 0x9d7   :  { %21087 = vst [vmem:[#allocation177_spill] sm:$0xff] %v17928_v54 }
 0x9d9   :  { %v17934_v21 = vpop.permute.xlu1 %7512 }
 0x9da   :  { %v17936_v17 = vpop.permute.xlu0 %7606  ;;  %7432 = vrot.lane.b32.xlu1 %v17583_v46, %s12103_s0  ;;  %7990 = vrot.lane.b32.xlu0 %v17345_v7, %s20760_s8 }
 0x9db   :  { %21088 = vst [vmem:[#allocation178_spill] sm:$0xff] %v17936_v17 }
 0x9dd   :  { %v17942_v31 = vpop.permute.xlu1 %7616 }
 0x9de   :  { %21089 = vst [vmem:[#allocation179_spill] sm:$0xff] %v17942_v31  ;;  %v17944_v40 = vpop.permute.xlu0 %7710  ;;  %7528 = vrot.lane.b32.xlu1 %v17583_v46, %s12104_s2  ;;  %7818 = vrot.lane.b32.xlu0 %v17563_v48, %s20523_s22 }
 0x9df   :  { %21090 = vst [vmem:[#allocation180_spill] sm:$0xff] %v17944_v40 }
 0x9e1   :  { %v17950_v6 = vpop.permute.xlu1 %7608 }
 0x9e2   :  { %21091 = vst [vmem:[#allocation181_spill] sm:$0xff] %v17950_v6  ;;  %v17952_v28 = vpop.permute.xlu0 %7806  ;;  %7624 = vrot.lane.b32.xlu1 %v17583_v46, %s12105_s25  ;;  %7330 = vrot.lane.b32.xlu0 %v17560_v30, %s12102_s1 }
 0x9e3   :  { %21092 = vst [vmem:[#allocation182_spill] sm:$0xff] %v17952_v28 }
 0x9e5   :  { %v17958_v7 = vpop.permute.xlu1 %7712 }
 0x9e6   :  { %21093 = vst [vmem:[#allocation183_spill] sm:$0xff] %v17958_v7  ;;  %v17960_v17 = vpop.permute.xlu0 %7902  ;;  %8012 = vrot.lane.b32.xlu1 %v17581_v2, %s20760_s8  ;;  %7918 = vrot.lane.b32.xlu0 %v17573_v18, %s20526_s24  ;;  %v17976_v7 = vpop.f32.mrb[64].mxu1 }
 0x9e7   :  { %21094 = vst [vmem:[#allocation184_spill] sm:$0xff] %v17960_v17  ;;  %21097 = vst [vmem:[#allocation187_spill] sm:$0xff] %v17976_v7  ;;  %v17984_v2 = vpop.f32.mrb[65].mxu1  ;;  %v7747_v7 = vsel %vm1108_vm8, %v17731_v29, %v17739_v52 }
 0x9e8   :  { %21099 = vst [vmem:[#allocation189_spill] sm:$0xff] %v17984_v2  ;;  %v7746_v2 = vsel %vm1108_vm8, %v17385_v36, %v17393_v60 }
 0x9e9   :  { %v17966_v40 = vpop.permute.xlu1 %7808 }
 0x9ea   :  { %21095 = vst [vmem:[#allocation185_spill] sm:$0xff] %v17966_v40  ;;  %v17968_v6 = vpop.permute.xlu0 %7998  ;;  %7728 = vrot.lane.b32.xlu1 %v17587_v61, %s12106_s26  ;;  %7914 = vrot.lane.b32.xlu0 %v17563_v48, %s20526_s24 }
 0x9eb   :  { %21096 = vst [vmem:[#allocation186_spill] sm:$0xff] %v17968_v6  ;;  %v8697_v6 = vpop.f32.mrb[66].mxu1 }
 0x9ec   :  { %v8698_v40 = vpop.f32.mrb[67].mxu1 }
 0x9ed   :  { %v17974_v28 = vpop.permute.xlu1 %7904  ;;  %v7744_v40 = vsel %vm1108_vm8, %v17393_v60, %v17753_v39  ;;  %v7843_v60 = vsel %vm1205_vm9, %v17441_v62, %v17747_v35  ;;  %v21104_v39 = vld [vmem:[#allocation11_spill] sm:$0xff] }
 0x9ee   :  { %v17978_v17 = vpop.permute.xlu0 %7702  ;;  %7824 = vrot.lane.b32.xlu1 %v17587_v61, %s20523_s22  ;;  %7426 = vrot.lane.b32.xlu0 %v17560_v30, %s12103_s0  ;;  %v7757_v36 = vmul.f32 %v7744_v40, %v21104_v39  ;;  %v7842_v40 = vsel %vm1205_vm9, %v17419_v10, %v17401_v19 }
 0x9ef   :  { %21098 = vst [vmem:[#allocation188_spill] sm:$0xff] %v17978_v17 }
 0x9f1   :  { %v17986_v54 = vpop.permute.xlu1 %8000 }
 0x9f2   :  { %v17988_v11 = vpop.permute.xlu0 %7798  ;;  %7920 = vrot.lane.b32.xlu1 %v17587_v61, %s20526_s24  ;;  %8014 = vrot.lane.b32.xlu0 %v17573_v18, %s20760_s8  ;;  %v21103_v18 = vld [vmem:[#allocation58_spill] sm:$0xff] }
 0x9f3   :  { %21100 = vst [vmem:[#allocation190_spill] sm:$0xff] %v17988_v11  ;;  %v7768_v17 = vmul.f32 %v7747_v7, %v21103_v18  ;;  %v7840_v7 = vsel %vm1205_vm9, %v17401_v19, %v17766_v20 }
 0x9f5   :  { %v18002_v6 = vpop.permute.xlu1 %7704 }
 0x9f6   :  { %21101 = vst [vmem:[#allocation191_spill] sm:$0xff] %v18002_v6  ;;  %v18008_v11 = vpop.permute.xlu0 %7700  ;;  %8016 = vrot.lane.b32.xlu1 %v17587_v61, %s20760_s8  ;;  %8010 = vrot.lane.b32.xlu0 %v17563_v48, %s20760_s8  ;;  %v7756_v61 = vmul.f32 %v7746_v2, %v21103_v18  ;;  %v21107_v18 = vld [vmem:[#allocation15_spill] sm:$0xff] }
 0x9f7   :  { %21102 = vst [vmem:[#allocation192_spill] sm:$0xff] %v18008_v11  ;;  %v7745_v6 = vsel %vm1108_vm8, %v17739_v52, %v18008_v11  ;;  %v7937_v52 = vsel %vm1302_vm10, %v17699_v57, %v17782_v4  ;;  %v7864_v20 = vmul.f32 %v7843_v60, %v21107_v18  ;;  %v7936_v4 = vsel %vm1302_vm10, %v17655_v8, %v17755_v9  ;;  %v21108_v11 = vld [vmem:[#allocation17_spill] sm:$0xff] }
 0x9f8   :  { %v7769_v29 = vmul.f32 %v7745_v6, %v21104_v39  ;;  %v8513_v39 = vpack.c.bf16 %v7768_v17, %v7756_v61  ;;  %v21109_v61 = vld [vmem:[#allocation14_spill] sm:$0xff]  ;;  %v7852_v60 = vmul.f32 %v7842_v40, %v21107_v18  ;;  %v8033_v9 = vsel %vm1399_vm11, %v17710_v33, %v17790_v5 }
 0x9f9   :  { %v18034_v48 = vpop.permute.xlu1 %7800  ;;  %v7961_v17 = vmul.f32 %v7937_v52, %v21109_v61  ;;  %v8032_v18 = vsel %vm1399_vm11, %v17673_v12, %v17772_v3 }
 0x9fa   :  { %21105 = vst [vmem:[#allocation193_spill] sm:$0xff] %v18034_v48  ;;  %v18040_v6 = vpop.permute.xlu0 %7796  ;;  %7524 = vrot.lane.b32.xlu1 %v17575_v49, %s12104_s2  ;;  %7522 = vrot.lane.b32.xlu0 %v17560_v30, %s12104_s2  ;;  %v8514_v2 = vpack.c.bf16 %v7769_v29, %v7757_v36  ;;  %v7939_v48 = vsel %vm1302_vm10, %v17457_v25, %v17699_v57 }
 0x9fb   :  { %21106 = vst [vmem:[#allocation194_spill] sm:$0xff] %v18040_v6  ;;  %v7841_v19 = vsel %vm1205_vm9, %v17747_v35, %v18040_v6  ;;  %v7853_v36 = vmul.f32 %v7840_v7, %v21108_v11  ;;  %v7938_v57 = vsel %vm1302_vm10, %v17435_v13, %v17655_v8  ;;  %v7949_v7 = vmul.f32 %v7936_v4, %v21109_v61  ;;  %v12075_v4 = vld [vmem:[%s19949_s18 + $0x78] ss:$0 sm:$0xff] }
 0x9fc   :  { %v7865_v29 = vmul.f32 %v7841_v19, %v21108_v11  ;;  %8965 = vmatprep.subr.bf16.mxu1 %v8514_v2  ;;  %v21112_v2 = vld [vmem:[#allocation19_spill] sm:$0xff]  ;;  %v8525_v19 = vpack.c.bf16 %v7864_v20, %v7852_v60  ;;  %v8035_v8 = vsel %vm1399_vm11, %v17473_v45, %v17710_v33  ;;  %v8057_v61 = vmul.f32 %v12075_v4, %v8033_v9  ;;  %v18099_v60 = vpop.f32.mrb[68].mxu1 }
 0x9fd   :  { %8966 = vmatpush1.bf16.msra.mxu1 %v8513_v39  ;;  %v18067_v35 = vpop.permute.xlu1 %7716  ;;  %v7960_v39 = vmul.f32 %v7939_v48, %v21112_v2  ;;  %v7948_v48 = vmul.f32 %v7938_v57, %v21112_v2  ;;  %v7355_v20 = vsel %vm720_vm3, %v17798_v37, %v17894_v53  ;;  %21114 = vst [vmem:[#allocation198_spill] sm:$0xff] %v18099_v60  ;;  %v18109_v57 = vpop.f32.mrb[69].mxu1 }
 0x9fe   :  { %21110 = vst [vmem:[#allocation195_spill] sm:$0xff] %v18067_v35  ;;  %v18074_v52 = vpop.permute.xlu0 %7714  ;;  %7620 = vrot.lane.b32.xlu1 %v17575_v49, %s12105_s25  ;;  %7618 = vrot.lane.b32.xlu0 %v17560_v30, %s12105_s25  ;;  %v8526_v40 = vpack.c.bf16 %v7865_v29, %v7853_v36  ;;  %v8538_v36 = vpack.c.bf16 %v7961_v17, %v7949_v7  ;;  %21116 = vst [vmem:[#allocation200_spill] sm:$0xff] %v18109_v57  ;;  %v21131_v30 = vld [vmem:[#allocation139_spill] sm:$0xff] }
 0x9ff   :  { %21111 = vst [vmem:[#allocation196_spill] sm:$0xff] %v18074_v52  ;;  %v8034_v33 = vsel %vm1399_vm11, %v17451_v43, %v17673_v12  ;;  %v8045_v9 = vmul.f32 %v12075_v4, %v8032_v18  ;;  %v8537_v7 = vpack.c.bf16 %v7960_v39, %v7948_v48  ;;  %v7354_v12 = vsel %vm720_vm3, %v17784_v16, %v17880_v50  ;;  %v8738_v18 = vpop.f32.mrb[70].mxu1 }
 0xa00   :  { %8967 = vmatprep.subr.bf16.mxu1 %v8526_v40  ;;  %v12076_v40 = vld [vmem:[%s19949_s18 + $0x70] ss:$0 sm:$0xff]  ;;  %v7389_v4 = vmul.f32 %v7355_v20, %v20942_v58  ;;  %v7357_v39 = vsel %vm720_vm3, %v17902_v42, %v17798_v37  ;;  %v8739_v48 = vpop.f32.mrb[71].mxu1  ;;  %v7377_v18 = vmul.f32 %v7354_v12, %v20942_v58  ;;  %v7356_v20 = vsel %vm720_vm3, %v17888_v51, %v17784_v16 }
 0xa01   :  { %8968 = vmatpush1.bf16.msra.mxu1 %v8525_v19  ;;  %v18097_v29 = vpop.permute.xlu1 %7812  ;;  %v8056_v19 = vmul.f32 %v12076_v40, %v8035_v8  ;;  %v8044_v11 = vmul.f32 %v12076_v40, %v8034_v33  ;;  %v7451_v8 = vsel %vm817_vm4, %v17806_v32, %v17910_v63  ;;  %v7450_v33 = vsel %vm817_vm4, %v17792_v44, %v17896_v24  ;;  %v21156_v63 = vld [vmem:[#allocation155_spill] sm:$0xff]  ;;  %v21157_v24 = vld [vmem:[#allocation52_spill] sm:$0xff] }
 0xa02   :  { %21113 = vst [vmem:[#allocation197_spill] sm:$0xff] %v18097_v29  ;;  %8969 = vmatprep.subr.bf16.mxu1 %v8538_v36  ;;  %v18105_v17 = vpop.permute.xlu0 %7810  ;;  %7720 = vrot.lane.b32.xlu1 %v17583_v46, %s12106_s26  ;;  %v8550_v36 = vpack.c.bf16 %v8057_v61, %v8045_v9  ;;  %v7388_v9 = vmul.f32 %v7357_v39, %v20946_v38 }
 0xa03   :  { %21115 = vst [vmem:[#allocation199_spill] sm:$0xff] %v18105_v17  ;;  %7718 = vrot.lane.b32.xlu0 %v17567_v55, %s12106_s26  ;;  %v8549_v61 = vpack.c.bf16 %v8056_v19, %v8044_v11  ;;  %v7453_v16 = vsel %vm817_vm4, %v17918_v47, %v17806_v32  ;;  %v8458_v40 = vpack.c.bf16 %v7389_v4, %v7377_v18 }
 0xa04   :  { %v18154_v11 = vcombine.low %v17764_v41, %v17764_v41  ;;  %v7376_v19 = vmul.f32 %v7356_v20, %v20946_v38  ;;  %v7547_v12 = vsel %vm914_vm6, %v17814_v22, %v17926_v56  ;;  %v7452_v32 = vsel %vm817_vm4, %v17904_v15, %v17792_v44  ;;  %v21151_v56 = vld [vmem:[#allocation100_spill] sm:$0xff] }
 0xa05   :  { %8970 = vmatpush1.bf16.msra.mxu1 %v8537_v7  ;;  %v18129_v2 = vpop.permute.xlu1 %7908  ;;  %v7485_v7 = vmul.f32 %v7451_v8, %v20940_v1  ;;  %v7546_v48 = vsel %vm914_vm6, %v17800_v26, %v17912_v27  ;;  %v7484_v8 = vmul.f32 %v7453_v16, %v20943_v14  ;;  %v7581_v18 = vmul.f32 %v7547_v12, %v20948_v23  ;;  %v21122_v12 = vld [vmem:[#allocation177_spill] sm:$0xff]  ;;  %v21150_v27 = vld [vmem:[#allocation114_spill] sm:$0xff] }
 0xa06   :  { %21117 = vst [vmem:[#allocation201_spill] sm:$0xff] %v18129_v2  ;;  %8971 = vmatprep.subr.bf16.mxu1 %v8550_v36  ;;  %v18136_v37 = vpop.permute.xlu0 %7906  ;;  %7816 = vrot.lane.b32.xlu1 %v17583_v46, %s20523_s22  ;;  %v7473_v36 = vmul.f32 %v7450_v33, %v20940_v1  ;;  %v8457_v4 = vpack.c.bf16 %v7388_v9, %v7376_v19  ;;  %v21127_v1 = vld [vmem:[#allocation178_spill] sm:$0xff] }
 0xa07   :  { %21118 = vst [vmem:[#allocation202_spill] sm:$0xff] %v18136_v37  ;;  %7814 = vrot.lane.b32.xlu0 %v17567_v55, %s20523_s22  ;;  %v7549_v44 = vsel %vm914_vm6, %v17934_v21, %v17814_v22  ;;  %v7643_v33 = vsel %vm1011_vm7, %v17822_v34, %v17942_v31  ;;  %v7569_v16 = vmul.f32 %v7546_v48, %v20948_v23  ;;  %v21121_v22 = vld [vmem:[#allocation175_spill] sm:$0xff]  ;;  %v21125_v48 = vld [vmem:[#allocation25_spill] sm:$0xff] }
 0xa08   :  { %v8470_v20 = vpack.c.bf16 %v7485_v7, %v7473_v36  ;;  %v7548_v7 = vsel %vm914_vm6, %v21121_v22, %v17800_v26  ;;  %v21123_v36 = vld [vmem:[#allocation153_spill] sm:$0xff]  ;;  %v7677_v23 = vmul.f32 %v7643_v33, %v21125_v48 }
 0xa09   :  { %8972 = vmatpush1.bf16.msra.mxu1 %v8549_v61  ;;  %v18161_v39 = vpop.permute.xlu1 %8004  ;;  %v7472_v61 = vmul.f32 %v7452_v32, %v20943_v14  ;;  %v7642_v32 = vsel %vm1011_vm7, %v21123_v36, %v21122_v12  ;;  %v21126_v26 = vld [vmem:[#allocation181_spill] sm:$0xff]  ;;  %v8482_v38 = vpack.c.bf16 %v7581_v18, %v7569_v16  ;;  %v7644_v33 = vsel %vm1011_vm7, %v21127_v1, %v21123_v36  ;;  %v21129_v16 = vld [vmem:[#allocation27_spill] sm:$0xff] }
 0xa0a   :  { %21119 = vst [vmem:[#allocation203_spill] sm:$0xff] %v18161_v39  ;;  %9037 = vmatprep.subr.bf16.mxu1 %v8458_v40  ;;  %v18168_v41 = vpop.permute.xlu0 %8002  ;;  %7912 = vrot.lane.b32.xlu1 %v17583_v46, %s20526_s24  ;;  %v7664_v36 = vmul.f32 %v7644_v33, %v21129_v16  ;;  %v21144_v31 = vld [vmem:[#allocation185_spill] sm:$0xff] }
 0xa0b   :  { %21120 = vst [vmem:[#allocation204_spill] sm:$0xff] %v18168_v41  ;;  %7910 = vrot.lane.b32.xlu0 %v17567_v55, %s20526_s24  ;;  %v8469_v19 = vpack.c.bf16 %v7484_v8, %v7472_v61  ;;  %v9160_v8 = vld [vmem:[%s19959_s11] sm:$0xff] }
 0xa0c   :  { %8988 = vmatmul.mubr.bf16.vlgmr.msra.gmra.mrb[84].mxu1 %v18154_v11 }
 0xa0d   :  { %9038 = vmatpush1.bf16.msra.mxu1 %v8457_v4  ;;  %v18190_v9 = vpop.permute.xlu1 %7340  ;;  %10759 = vmatprep.mubr.msk.bf16.mxu1 %vm4921_vm13, %v17770_v59  ;;  %v21124_v4 = vld [vmem:[#allocation28_spill] sm:$0xff] }
 0xa0e   :  { %9039 = vmatprep.subr.bf16.mxu1 %v8470_v20  ;;  %v18199_v40 = vpop.permute.xlu0 %7338  ;;  %8008 = vrot.lane.b32.xlu1 %v17583_v46, %s20760_s8  ;;  %v7580_v14 = vmul.f32 %v7549_v44, %v21124_v4  ;;  %v7645_v20 = vsel %vm1011_vm7, %v21126_v26, %v17822_v34  ;;  %v7568_v61 = vmul.f32 %v7548_v7, %v21124_v4  ;;  %v18228_v34 = vpop.f32.mrb[72].mxu1  ;;  %v21141_v46 = vld [vmem:[#allocation48_spill] sm:$0xff] }
 0xa0f   :  { %8006 = vrot.lane.b32.xlu0 %v17567_v55, %s20760_s8  ;;  %v7665_v44 = vmul.f32 %v7642_v32, %v21125_v48  ;;  %21128 = vst [vmem:[#allocation175_spill] sm:$0xff] %v18228_v34  ;;  %v7676_v60 = vmul.f32 %v7645_v20, %v21129_v16  ;;  %v18231_v7 = vpop.f32.mrb[73].mxu1  ;;  %v21132_v32 = vld [vmem:[#allocation116_spill] sm:$0xff] }
 0xa10   :  { %v8481_v18 = vpack.c.bf16 %v7580_v14, %v7568_v61  ;;  %21130 = vst [vmem:[#allocation153_spill] sm:$0xff] %v18231_v7  ;;  %v8779_v4 = vpop.f32.mrb[74].mxu1  ;;  %v7463_v48 = vsel %vm817_vm4, %v21132_v32, %v21131_v30  ;;  %v21134_v14 = vld [vmem:[#allocation180_spill] sm:$0xff]  ;;  %v21136_v61 = vld [vmem:[#allocation127_spill] sm:$0xff] }
 0xa11   :  { %9040 = vmatpush1.bf16.msra.mxu1 %v8469_v19  ;;  %v18219_v58 = vpop.permute.xlu1 %7436  ;;  %v8494_v19 = vpack.c.bf16 %v7677_v23, %v7665_v44  ;;  %v7736_v20 = vsel %vm1108_vm8, %v21134_v14, %v18074_v52  ;;  %v8780_v4 = vpop.f32.mrb[75].mxu1  ;;  %v21137_v44 = vld [vmem:[#allocation20_spill] sm:$0xff]  ;;  %v21139_v7 = vld [vmem:[#allocation115_spill] sm:$0xff]  ;;  %v8493_v55 = vpack.c.bf16 %v7676_v60, %v7664_v36  ;;  %v21143_v52 = vld [vmem:[#allocation29_spill] sm:$0xff]  ;;  %v7833_v60 = vsel %vm1205_vm9, %v21144_v31, %v18097_v29 }
 0xa12   :  { %9041 = vmatprep.subr.bf16.mxu1 %v8482_v38  ;;  %v18226_v57 = vpop.permute.xlu0 %7434  ;;  %v21133_v38 = vld [vmem:[#allocation183_spill] sm:$0xff]  ;;  %v18250_v30 = vpop.f32.mrb[76].mxu1  ;;  %v7462_v33 = vsel %vm817_vm4, %v21137_v44, %v21136_v61  ;;  %v21138_v16 = vld [vmem:[#allocation140_spill] sm:$0xff]  ;;  %v18263_v4 = vmul.f32 %v7463_v48, %v21141_v46  ;;  %v7761_v61 = vmul.f32 %v7736_v20, %v21143_v52 }
 0xa13   :  { %9163 = vperm.xlu0 %11055, %v9160_v8   ;;  %v7737_v34 = vsel %vm1108_vm8, %v21133_v38, %v18067_v35  ;;  %21135 = vst [vmem:[#allocation181_spill] sm:$0xff] %v18250_v30  ;;  %v7558_v49 = vsel %vm914_vm6, %v21139_v7, %v21138_v16  ;;  %v21145_v16 = vld [vmem:[#allocation182_spill] sm:$0xff]  ;;  %v21148_v20 = vld [vmem:[#allocation119_spill] sm:$0xff] }
 0xa14   :  { %v7773_v35 = vmul.f32 %v7737_v34, %v21143_v52  ;;  %v7832_v48 = vsel %vm1205_vm9, %v21145_v16, %v18105_v17  ;;  %v21147_v34 = vld [vmem:[#allocation111_spill] sm:$0xff]  ;;  %v21149_v52 = vld [vmem:[#allocation154_spill] sm:$0xff]  ;;  %v21152_v17 = vpack.c.bf16 %v21150_v27, %v21151_v56 }
 0xa15   :  { %9042 = vmatpush1.bf16.msra.mxu1 %v8481_v18  ;;  %v18246_v23 = vpop.permute.xlu1 %7532  ;;  %v18260_v18 = vpop.f32.mrb[77].mxu1  ;;  %v7738_v29 = vsel %vm1108_vm8, %v21149_v52, %v21134_v14  ;;  %v21158_v14 = vld [vmem:[#allocation158_spill] sm:$0xff] }
 0xa16   :  { %9043 = vmatprep.subr.bf16.mxu1 %v8494_v19  ;;  %v18248_v8 = vpop.permute.xlu0 %7530  ;;  %21140 = vst [vmem:[#allocation178_spill] sm:$0xff] %v18260_v18  ;;  %v21142_v19 = vld [vmem:[#allocation156_spill] sm:$0xff]  ;;  %v8820_v12 = vpop.f32.mrb[78].mxu1  ;;  %v7835_v56 = vsel %vm1205_vm9, %v21158_v14, %v21144_v31  ;;  %v7929_v31 = vsel %vm1302_vm10, %v17974_v28, %v18129_v2  ;;  %v21168_v2 = vld [vmem:[#allocation67_spill] sm:$0xff] }
 0xa17   :  { %v7739_v30 = vsel %vm1108_vm8, %v21142_v19, %v21133_v38  ;;  %v8821_v18 = vpop.f32.mrb[79].mxu1  ;;  %v18282_v38 = vmul.f32 %v7462_v33, %v21141_v46  ;;  %v7559_v12 = vsel %vm914_vm6, %v21148_v20, %v21147_v34  ;;  %v21155_v33 = vld [vmem:[#allocation53_spill] sm:$0xff]  ;;  %v7834_v34 = vsel %vm1205_vm9, %v21156_v63, %v21145_v16 }
 0xa18   :  { %v18297_v18 = vpop.f32.mrb[80].mxu1  ;;  %v18300_v46 = vmul.f32 %v7558_v49, %v21155_v33  ;;  %v7772_v50 = vmul.f32 %v7739_v30, %v21157_v24  ;;  %v8518_v49 = vpack.c.bf16 %v7773_v35, %v7761_v61  ;;  %v18318_v16 = vmul.f32 %v7559_v12, %v21155_v33  ;;  %v21162_v35 = vld [vmem:[#allocation106_spill] sm:$0xff]  ;;  %v21163_v61 = vld [vmem:[#allocation107_spill] sm:$0xff]  ;;  %v21166_v12 = vld [vmem:[#allocation4_spill] sm:$0xff] }
 0xa19   :  { %9044 = vmatpush1.bf16.msra.mxu1 %v8493_v55  ;;  %v18279_v36 = vpop.permute.xlu1 %7628  ;;  %21154 = vst [vmem:[#allocation183_spill] sm:$0xff] %v18297_v18  ;;  %v18311_v27 = vpop.f32.mrb[81].mxu1  ;;  %v8464_v53 = vpack.c.bf16 %v18263_v4, %v18282_v38  ;;  %v7760_v30 = vmul.f32 %v7738_v29, %v21157_v24  ;;  %v21165_v38 = vld [vmem:[#allocation18_spill] sm:$0xff] }
 0xa1a   :  { %21146 = vst [vmem:[#allocation139_spill] sm:$0xff] %v18279_v36  ;;  %9045 = vmatprep.subr.bf16.mxu1 %v21152_v17  ;;  %v18295_v55 = vpop.permute.xlu0 %7626  ;;  %21159 = vst [vmem:[#allocation180_spill] sm:$0xff] %v18311_v27  ;;  %v21160_v17 = vld [vmem:[#allocation51_spill] sm:$0xff]  ;;  %v8902_v5 = vpop.f32.mrb[82].mxu1  ;;  %v21161_v27 = vld [vmem:[#allocation184_spill] sm:$0xff]  ;;  %v7654_v29 = vsel %vm1011_vm7, %v21166_v12, %v21165_v38 }
 0xa1b   :  { %21153 = vst [vmem:[#allocation116_spill] sm:$0xff] %v18295_v55  ;;  %v7869_v3 = vmul.f32 %v7833_v60, %v21160_v17  ;;  %v7857_v18 = vmul.f32 %v7832_v48, %v21160_v17  ;;  %v7928_v60 = vsel %vm1302_vm10, %v21161_v27, %v18136_v37  ;;  %v21164_v48 = vpack.c.bf16 %v21162_v35, %v21163_v61  ;;  %v8903_v4 = vpop.f32.mrb[83].mxu1  ;;  %v21167_v17 = vld [vmem:[#allocation31_spill] sm:$0xff]  ;;  %v21169_v35 = vld [vmem:[#allocation162_spill] sm:$0xff]  ;;  %v21171_v55 = vld [vmem:[#allocation112_spill] sm:$0xff] }
 0xa1c   :  { %v7856_v24 = vmul.f32 %v7834_v34, %v21167_v17  ;;  %v7868_v33 = vmul.f32 %v7835_v56, %v21167_v17  ;;  %v8517_v14 = vpack.c.bf16 %v7772_v50, %v7760_v30  ;;  %v7931_v61 = vsel %vm1302_vm10, %v21169_v35, %v17974_v28  ;;  %v21172_v38 = vld [vmem:[#allocation30_spill] sm:$0xff]  ;;  %v21174_v50 = vld [vmem:[#allocation117_spill] sm:$0xff] }
 0xa1d   :  { %9046 = vmatpush1.bf16.msra.mxu1 %v21164_v48  ;;  %v7345_v5 = vpop.permute.xlu1 %7344  ;;  %v21170_v48 = vld [vmem:[#allocation50_spill] sm:$0xff]  ;;  %v7965_v56 = vmul.f32 %v7929_v31, %v21172_v38  ;;  %v7953_v17 = vmul.f32 %v7928_v60, %v21172_v38  ;;  %v8025_v28 = vsel %vm1399_vm11, %v17986_v54, %v18161_v39 }
 0xa1e   :  { %v7369_v6 = vsel %vm720_vm3, %v7345_v5, %v21168_v2  ;;  %9047 = vmatprep.subr.bf16.mxu1 %v8518_v49  ;;  %v7343_v37 = vpop.permute.xlu0 %7342  ;;  %v8530_v49 = vpack.c.bf16 %v7869_v3, %v7857_v18  ;;  %v21173_v36 = vld [vmem:[#allocation110_spill] sm:$0xff]  ;;  %v8476_v3 = vpack.c.bf16 %v18318_v16, %v18300_v46  ;;  %v21176_v18 = vld [vmem:[#allocation159_spill] sm:$0xff]  ;;  %v8529_v60 = vpack.c.bf16 %v7868_v33, %v7856_v24  ;;  %v21179_v16 = vld [vmem:[#allocation49_spill] sm:$0xff] }
 0xa1f   :  { %v7382_v4 = vmul.f32 %v7369_v6, %v21170_v48  ;;  %v7368_v34 = vsel %vm720_vm3, %v7343_v37, %v21171_v55  ;;  %v7655_v30 = vsel %vm1011_vm7, %v21174_v50, %v21173_v36  ;;  %v21175_v6 = vld [vmem:[#allocation186_spill] sm:$0xff]  ;;  %v7930_v36 = vsel %vm1302_vm10, %v21176_v18, %v21161_v27 }
 0xa20   :  { %v7370_v2 = vmul.f32 %v7368_v34, %v21170_v48  ;;  %v8024_v55 = vsel %vm1399_vm11, %v21175_v6, %v18168_v41  ;;  %v21178_v39 = vld [vmem:[#allocation166_spill] sm:$0xff] }
 0xa21   :  { %9048 = vmatpush1.bf16.msra.mxu1 %v8517_v14  ;;  %v18364_v31 = vpop.permute.xlu1 %7440  ;;  %v21177_v14 = vld [vmem:[#allocation6_spill] sm:$0xff]  ;;  %v8027_v46 = vsel %vm1399_vm11, %v21178_v39, %v17986_v54  ;;  %v7347_v54 = vsel %vm720_vm3, %v18190_v9, %v7345_v5 }
 0xa22   :  { %v8451_v34 = vpack.c.bf16 %v7382_v4, %v7370_v2  ;;  %v7465_v38 = vsel %vm817_vm4, %v18364_v31, %v21132_v32  ;;  %9049 = vmatprep.subr.bf16.mxu1 %v8530_v49  ;;  %v18376_v48 = vpop.permute.xlu0 %7438  ;;  %v7964_v41 = vmul.f32 %v7931_v61, %v21177_v14  ;;  %v12077_v32 = vld [vmem:[%s19949_s18 + $0x98] ss:$0 sm:$0xff]  ;;  %v8542_v4 = vpack.c.bf16 %v7965_v56, %v7953_v17  ;;  %v21180_v49 = vld [vmem:[#allocation54_spill] sm:$0xff] }
 0xa23   :  { %v7478_v35 = vmul.f32 %v7465_v38, %v21179_v16  ;;  %v7464_v24 = vsel %vm817_vm4, %v18376_v48, %v21137_v44  ;;  %v8061_v33 = vmul.f32 %v12077_v32, %v8025_v28  ;;  %v8049_v27 = vmul.f32 %v12077_v32, %v8024_v55  ;;  %v21181_v55 = vld [vmem:[#allocation163_spill] sm:$0xff] }
 0xa24   :  { %v7466_v61 = vmul.f32 %v7464_v24, %v21179_v16  ;;  %8915 = vmatpush1.bf16.msra.mxu0 %v8451_v34  ;;  %v7952_v2 = vmul.f32 %v7930_v36, %v21177_v14  ;;  %v7346_v44 = vsel %vm720_vm3, %v18199_v40, %v7343_v37  ;;  %v7671_v28 = vmul.f32 %v7655_v30, %v21180_v49  ;;  %v12078_v37 = vld [vmem:[%s19949_s18 + $0x90] ss:$0 sm:$0xff]  ;;  %v21203_v14 = vld [vmem:[#allocation78_spill] sm:$0xff] }
 0xa25   :  { %8916 = vmatprep.subr.bf16.mxu0 %v8464_v53  ;;  %9050 = vmatpush1.bf16.msra.mxu1 %v8529_v60  ;;  %v18399_v38 = vpop.permute.xlu1 %7536  ;;  %v8026_v17 = vsel %vm1399_vm11, %v21181_v55, %v21175_v6  ;;  %v8060_v30 = vmul.f32 %v12078_v37, %v8027_v46  ;;  %v21182_v60 = vld [vmem:[#allocation57_spill] sm:$0xff]  ;;  %v21183_v6 = vld [vmem:[#allocation34_spill] sm:$0xff] }
 0xa26   :  { %v8463_v56 = vpack.c.bf16 %v7478_v35, %v7466_v61  ;;  %v7561_v5 = vsel %vm914_vm6, %v18399_v38, %v21148_v20  ;;  %9051 = vmatprep.subr.bf16.mxu1 %v8542_v4  ;;  %v18410_v36 = vpop.permute.xlu0 %7534  ;;  %v8541_v53 = vpack.c.bf16 %v7964_v41, %v7952_v2  ;;  %v7393_v24 = vmul.f32 %v7347_v54, %v21183_v6 }
 0xa27   :  { %v7574_v34 = vmul.f32 %v7561_v5, %v21182_v60  ;;  %v7560_v35 = vsel %vm914_vm6, %v18410_v36, %v21139_v7  ;;  %v7381_v20 = vmul.f32 %v7346_v44, %v21183_v6  ;;  %v8554_v41 = vpack.c.bf16 %v8061_v33, %v8049_v27  ;;  %v21184_v5 = vld [vmem:[#allocation56_spill] sm:$0xff]  ;;  %v21185_v33 = vld [vmem:[#allocation146_spill] sm:$0xff]  ;;  %v21186_v27 = vld [vmem:[#allocation147_spill] sm:$0xff] }
 0xa28   :  { %v7562_v32 = vmul.f32 %v7560_v35, %v21182_v60  ;;  %8917 = vmatpush1.bf16.msra.mxu0 %v8463_v56  ;;  %v7659_v61 = vmul.f32 %v7654_v29, %v21180_v49  ;;  %v8048_v4 = vmul.f32 %v12078_v37, %v8026_v17  ;;  %v7749_v17 = vsel %vm1108_vm8, %v21186_v27, %v21185_v33 }
 0xa29   :  { %8918 = vmatprep.subr.bf16.mxu0 %v8476_v3  ;;  %9052 = vmatpush1.bf16.msra.mxu1 %v8541_v53  ;;  %v18424_v46 = vpop.permute.xlu1 %7632 }
 0xa2a   :  { %v8475_v2 = vpack.c.bf16 %v7574_v34, %v7562_v32  ;;  %v7657_v7 = vsel %vm1011_vm7, %v18424_v46, %v21174_v50  ;;  %9053 = vmatprep.subr.bf16.mxu1 %v8554_v41  ;;  %v18430_v54 = vpop.permute.xlu0 %7630  ;;  %v8553_v44 = vpack.c.bf16 %v8060_v30, %v8048_v4  ;;  %v8488_v3 = vpack.c.bf16 %v7671_v28, %v7659_v61  ;;  %v21187_v30 = vld [vmem:[#allocation113_spill] sm:$0xff]  ;;  %v21188_v34 = vld [vmem:[#allocation142_spill] sm:$0xff]  ;;  %v21189_v32 = vld [vmem:[#allocation123_spill] sm:$0xff] }
 0xa2b   :  { %v7670_v56 = vmul.f32 %v7657_v7, %v21184_v5  ;;  %v7656_v29 = vsel %vm1011_vm7, %v18430_v54, %v21166_v12  ;;  %v8462_v50 = vpack.c.bf16 %v7393_v24, %v7381_v20  ;;  %v7748_v35 = vsel %vm1108_vm8, %v21188_v34, %v21187_v30  ;;  %v21190_v61 = vld [vmem:[#allocation59_spill] sm:$0xff]  ;;  %v21191_v20 = vld [vmem:[#allocation101_spill] sm:$0xff] }
 0xa2c   :  { %v7658_v53 = vmul.f32 %v7656_v29, %v21184_v5  ;;  %8919 = vmatpush1.bf16.msra.mxu0 %v8475_v2  ;;  %v7751_v41 = vsel %vm1108_vm8, %v21189_v32, %v21186_v27  ;;  %v7767_v24 = vmul.f32 %v7749_v17, %v21190_v61  ;;  %v7845_v4 = vsel %vm1205_vm9, %v21191_v20, %v17441_v62  ;;  %v21192_v2 = vld [vmem:[#allocation120_spill] sm:$0xff]  ;;  %v21194_v29 = vld [vmem:[#allocation55_spill] sm:$0xff]  ;;  %v21197_v62 = vld [vmem:[#allocation145_spill] sm:$0xff] }
 0xa2d   :  { %8920 = vmatprep.subr.bf16.mxu0 %v8488_v3  ;;  %9054 = vmatpush1.bf16.msra.mxu1 %v8553_v44  ;;  %v18442_v37 = vpop.permute.xlu1 %7896  ;;  %v7750_v7 = vsel %vm1108_vm8, %v21192_v2, %v21188_v34  ;;  %v7755_v44 = vmul.f32 %v7748_v35, %v21190_v61  ;;  %v7844_v27 = vsel %vm1205_vm9, %v21197_v62, %v17419_v10  ;;  %v21198_v17 = vld [vmem:[#allocation60_spill] sm:$0xff]  ;;  %v21199_v30 = vld [vmem:[#allocation121_spill] sm:$0xff]  ;;  %v21205_v5 = vld [vmem:[#allocation118_spill] sm:$0xff] }
 0xa2e   :  { %v8487_v12 = vpack.c.bf16 %v7670_v56, %v7658_v53  ;;  %9119 = vmatprep.subr.bf16.mxu1 %v8462_v50  ;;  %v18448_v28 = vpop.permute.xlu0 %7894  ;;  %v21193_v56 = vld [vmem:[#allocation108_spill] sm:$0xff]  ;;  %v7766_v53 = vmul.f32 %v7751_v41, %v21198_v17  ;;  %v7847_v34 = vsel %vm1205_vm9, %v21199_v30, %v21191_v20  ;;  %v21200_v35 = vld [vmem:[#allocation61_spill] sm:$0xff]  ;;  %v7846_v60 = vsel %vm1205_vm9, %v21205_v5, %v21197_v62 }
 0xa2f   :  { %v21195_v3 = vpack.c.bf16 %v21193_v56, %v21194_v29  ;;  %v8512_v56 = vpack.c.bf16 %v7767_v24, %v7755_v44  ;;  %v7754_v29 = vmul.f32 %v7750_v7, %v21198_v17  ;;  %v21202_v10 = vld [vmem:[#allocation104_spill] sm:$0xff]  ;;  %v7851_v20 = vmul.f32 %v7844_v27, %v21200_v35  ;;  %v21207_v44 = vld [vmem:[#allocation62_spill] sm:$0xff] }
 0xa30   :  { %8921 = vmatpush1.bf16.msra.mxu0 %v8487_v12  ;;  %9070 = vmatmul.mubr.bf16.vlgmr.msra.gmra.mrb[88].mxu1 %v18154_v11  ;;  %v7863_v12 = vmul.f32 %v7845_v4, %v21200_v35  ;;  %v21204_v41 = vpack.c.bf16 %v21202_v10, %v21203_v14  ;;  %v21206_v4 = vld [vmem:[#allocation109_spill] sm:$0xff]  ;;  %v7862_v17 = vmul.f32 %v7847_v34, %v21207_v44  ;;  %v21210_v61 = vld [vmem:[#allocation96_spill] sm:$0xff] }
 0xa31   :  { %8922 = vmatprep.subr.bf16.mxu0 %v21195_v3  ;;  %v18468_v33 = vpop.permute.xlu1 %7724  ;;  %10761 = vmatprep.mubr.msk.bf16.mxu1 %vm4921_vm13, %v17770_v59  ;;  %v21201_v3 = vld [vmem:[#allocation148_spill] sm:$0xff]  ;;  %v7940_v7 = vsel %vm1302_vm10, %v21206_v4, %v17435_v13  ;;  %v21208_v10 = vld [vmem:[#allocation125_spill] sm:$0xff]  ;;  %v7850_v35 = vmul.f32 %v7846_v60, %v21207_v44  ;;  %v8037_v13 = vsel %vm1399_vm11, %v21210_v61, %v17473_v45 }
 0xa32   :  { %21196 = vst [vmem:[#allocation127_spill] sm:$0xff] %v18468_v33  ;;  %v18477_v50 = vpop.permute.xlu0 %7334  ;;  %v7941_v6 = vsel %vm1302_vm10, %v21201_v3, %v17457_v25  ;;  %v8511_v25 = vpack.c.bf16 %v7766_v53, %v7754_v29  ;;  %v7943_v62 = vsel %vm1302_vm10, %v21208_v10, %v21201_v3  ;;  %v21211_v53 = vld [vmem:[#allocation124_spill] sm:$0xff]  ;;  %v21212_v3 = vld [vmem:[#allocation130_spill] sm:$0xff] }
 0xa33   :  { %v7942_v34 = vsel %vm1302_vm10, %v21211_v53, %v21206_v4  ;;  %v21216_v4 = vld [vmem:[#allocation122_spill] sm:$0xff]  ;;  %v21225_v10 = vld [vmem:[#allocation168_spill] sm:$0xff]  ;;  %v21236_v53 = vld [vmem:[#allocation143_spill] sm:$0xff] }
 0xa34   :  { %8923 = vmatpush1.bf16.msra.mxu0 %v21204_v41  ;;  %v21209_v41 = vld [vmem:[#allocation63_spill] sm:$0xff] }
 0xa35   :  { %8924 = vmatprep.subr.bf16.mxu0 %v8512_v56  ;;  %v18497_v24 = vpop.permute.xlu1 %7992  ;;  %v7959_v27 = vmul.f32 %v7941_v6, %v21209_v41  ;;  %v8524_v56 = vpack.c.bf16 %v7863_v12, %v7851_v20  ;;  %v7947_v29 = vmul.f32 %v7940_v7, %v21209_v41  ;;  %v8039_v6 = vsel %vm1399_vm11, %v21212_v3, %v21210_v61  ;;  %v21214_v12 = vld [vmem:[#allocation144_spill] sm:$0xff]  ;;  %v12079_v61 = vld [vmem:[%s19949_s18 + $0x68] ss:$0 sm:$0xff] }
 0xa36   :  { %v18504_v14 = vpop.permute.xlu0 %7430  ;;  %v8036_v45 = vsel %vm1399_vm11, %v21214_v12, %v17451_v43  ;;  %v8523_v20 = vpack.c.bf16 %v7862_v17, %v7850_v35  ;;  %v8038_v7 = vsel %vm1399_vm11, %v21216_v4, %v21214_v12  ;;  %v12080_v43 = vld [vmem:[%s19949_s18 + $0x60] ss:$0 sm:$0xff]  ;;  %v21217_v35 = vld [vmem:[#allocation160_spill] sm:$0xff] }
 0xa37   :  { %v8536_v41 = vpack.c.bf16 %v7959_v27, %v7947_v29  ;;  %v8054_v17 = vmul.f32 %v12080_v43, %v8039_v6  ;;  %v8043_v12 = vmul.f32 %v12079_v61, %v8036_v45  ;;  %v21218_v3 = vld [vmem:[#allocation128_spill] sm:$0xff]  ;;  %v21220_v4 = vld [vmem:[#allocation126_spill] sm:$0xff] }
 0xa38   :  { %8925 = vmatpush1.bf16.msra.mxu0 %v8511_v25  ;;  %v21215_v25 = vld [vmem:[#allocation64_spill] sm:$0xff] }
 0xa39   :  { %8926 = vmatprep.subr.bf16.mxu0 %v8524_v56  ;;  %v18525_v60 = vpop.permute.xlu1 %7820  ;;  %v7958_v44 = vmul.f32 %v7943_v62, %v21215_v25  ;;  %v8055_v56 = vmul.f32 %v12079_v61, %v8037_v13  ;;  %v7946_v49 = vmul.f32 %v7942_v34, %v21215_v25  ;;  %v7359_v62 = vsel %vm720_vm3, %v21217_v35, %v17902_v42  ;;  %v21219_v25 = vld [vmem:[#allocation157_spill] sm:$0xff]  ;;  %v21222_v61 = vld [vmem:[#allocation138_spill] sm:$0xff] }
 0xa3a   :  { %21213 = vst [vmem:[#allocation20_spill] sm:$0xff] %v18525_v60  ;;  %v18532_v16 = vpop.permute.xlu0 %7526  ;;  %v7361_v13 = vsel %vm720_vm3, %v21218_v3, %v21217_v35  ;;  %v8042_v34 = vmul.f32 %v12080_v43, %v8038_v7  ;;  %v7360_v6 = vsel %vm720_vm3, %v21220_v4, %v21219_v25  ;;  %v7358_v42 = vsel %vm720_vm3, %v21219_v25, %v17888_v51  ;;  %v21223_v3 = vld [vmem:[#allocation73_spill] sm:$0xff]  ;;  %v21224_v43 = vld [vmem:[#allocation72_spill] sm:$0xff] }
 0xa3b   :  { %v8535_v29 = vpack.c.bf16 %v7958_v44, %v7946_v49  ;;  %v7387_v7 = vmul.f32 %v7359_v62, %v21223_v3  ;;  %v8548_v49 = vpack.c.bf16 %v8055_v56, %v8043_v12  ;;  %v7386_v35 = vmul.f32 %v7361_v13, %v21224_v43  ;;  %v21226_v4 = vld [vmem:[#allocation141_spill] sm:$0xff] }
 0xa3c   :  { %8927 = vmatpush1.bf16.msra.mxu0 %v8523_v20  ;;  %v21221_v20 = vld [vmem:[#allocation164_spill] sm:$0xff]  ;;  %v8547_v44 = vpack.c.bf16 %v8054_v17, %v8042_v34  ;;  %v7553_v30 = vsel %vm914_vm6, %v21226_v4, %v21225_v10  ;;  %v7374_v25 = vmul.f32 %v7360_v6, %v21224_v43  ;;  %v21228_v60 = vld [vmem:[#allocation129_spill] sm:$0xff]  ;;  %v7375_v13 = vmul.f32 %v7358_v42, %v21223_v3  ;;  %v21232_v4 = vld [vmem:[#allocation74_spill] sm:$0xff] }
 0xa3d   :  { %8928 = vmatprep.subr.bf16.mxu0 %v8536_v41  ;;  %v18553_v27 = vpop.permute.xlu1 %7332  ;;  %v7457_v41 = vsel %vm817_vm4, %v21222_v61, %v21221_v20  ;;  %v7455_v51 = vsel %vm817_vm4, %v21221_v20, %v17918_v47  ;;  %v21227_v61 = vld [vmem:[#allocation161_spill] sm:$0xff]  ;;  %v21235_v43 = vld [vmem:[#allocation170_spill] sm:$0xff] }
 0xa3e   :  { %v18563_v45 = vpop.permute.xlu0 %7622  ;;  %v7456_v56 = vsel %vm817_vm4, %v21228_v60, %v21227_v61  ;;  %v21229_v17 = vld [vmem:[#allocation165_spill] sm:$0xff]  ;;  %v7482_v47 = vmul.f32 %v7457_v41, %v21232_v4  ;;  %v7649_v60 = vsel %vm1011_vm7, %v21236_v53, %v21235_v43  ;;  %v7454_v42 = vsel %vm817_vm4, %v21227_v61, %v17904_v15  ;;  %v21238_v41 = vld [vmem:[#allocation75_spill] sm:$0xff]  ;;  %v21239_v15 = vld [vmem:[#allocation80_spill] sm:$0xff] }
 0xa3f   :  { %v21230_v62 = vld [vmem:[#allocation5_spill] sm:$0xff]  ;;  %v8456_v32 = vpack.c.bf16 %v7387_v7, %v7375_v13  ;;  %v8455_v33 = vpack.c.bf16 %v7386_v35, %v7374_v25  ;;  %v7470_v53 = vmul.f32 %v7456_v56, %v21232_v4  ;;  %v18619_v61 = vmul.f32 %v7649_v60, %v21239_v15 }
 0xa40   :  { %8929 = vmatpush1.bf16.msra.mxu0 %v8535_v29  ;;  %v7552_v12 = vsel %vm914_vm6, %v21230_v62, %v21229_v17  ;;  %v21233_v29 = vld [vmem:[#allocation167_spill] sm:$0xff]  ;;  %v21234_v20 = vld [vmem:[#allocation21_spill] sm:$0xff]  ;;  %v21237_v62 = vld [vmem:[#allocation76_spill] sm:$0xff] }
 0xa41   :  { %8930 = vmatprep.subr.bf16.mxu0 %v8548_v49  ;;  %v18589_v34 = vpop.permute.xlu1 %7916  ;;  %v7648_v6 = vsel %vm1011_vm7, %v21234_v20, %v21233_v29  ;;  %v18607_v3 = vmul.f32 %v7553_v30, %v21237_v62  ;;  %v7551_v20 = vsel %vm914_vm6, %v21225_v10, %v17934_v21  ;;  %v18616_v5 = vmul.f32 %v7552_v12, %v21237_v62  ;;  %v21240_v35 = vld [vmem:[#allocation77_spill] sm:$0xff] }
 0xa42   :  { %21231 = vst [vmem:[#allocation140_spill] sm:$0xff] %v18589_v34  ;;  %v18604_v49 = vpop.permute.xlu0 %7726  ;;  %v7483_v34 = vmul.f32 %v7455_v51, %v21238_v41  ;;  %v7471_v30 = vmul.f32 %v7454_v42, %v21238_v41  ;;  %v7550_v51 = vsel %vm914_vm6, %v21229_v17, %v21121_v22  ;;  %v7647_v21 = vsel %vm1011_vm7, %v21235_v43, %v21126_v26  ;;  %v21241_v12 = vld [vmem:[#allocation81_spill] sm:$0xff] }
 0xa43   :  { %v8467_v7 = vpack.c.bf16 %v7482_v47, %v7470_v53  ;;  %v7579_v25 = vmul.f32 %v7551_v20, %v21240_v35  ;;  %v7646_v56 = vsel %vm1011_vm7, %v21233_v29, %v21127_v1  ;;  %v8479_v17 = vpack.c.bf16 %v18607_v3, %v18616_v5  ;;  %v21242_v3 = vld [vmem:[#allocation188_spill] sm:$0xff]  ;;  %v21243_v47 = vld [vmem:[#allocation149_spill] sm:$0xff] }
 0xa44   :  { %8931 = vmatpush1.bf16.msra.mxu0 %v8547_v44  ;;  %v18633_v44 = vmul.f32 %v7648_v6, %v21239_v15  ;;  %v7443_v26 = vsel %vm817_vm4, %v18219_v58, %v18364_v31  ;;  %v8468_v43 = vpack.c.bf16 %v7483_v34, %v7471_v30  ;;  %v7567_v1 = vmul.f32 %v7550_v51, %v21240_v35  ;;  %v21245_v30 = vld [vmem:[#allocation33_spill] sm:$0xff] }
 0xa45   :  { %8996 = vmatprep.subr.bf16.mxu0 %v8456_v32  ;;  %v18630_v10 = vpop.permute.xlu1 %7428  ;;  %v7442_v32 = vsel %vm817_vm4, %v18226_v57, %v18376_v48  ;;  %v7675_v13 = vmul.f32 %v7647_v21, %v21241_v12  ;;  %v7348_v5 = vsel %vm720_vm3, %v18477_v50, %v18199_v40  ;;  %v7663_v48 = vmul.f32 %v7646_v56, %v21241_v12  ;;  %v21368_v12 = vld [vmem:[#allocation70_spill] sm:$0xff] }
 0xa46   :  { %v18640_v22 = vpop.permute.xlu0 %7722  ;;  %v8491_v31 = vpack.c.bf16 %v18619_v61, %v18633_v44  ;;  %v7740_v34 = vsel %vm1108_vm8, %v21242_v3, %v21149_v52  ;;  %v7742_v29 = vsel %vm1108_vm8, %v21243_v47, %v21242_v3  ;;  %v8480_v52 = vpack.c.bf16 %v7579_v25, %v7567_v1  ;;  %v21246_v44 = vld [vmem:[#allocation82_spill] sm:$0xff] }
 0xa47   :  { %8947 = vmatmul.mubr.bf16.vlgmr.msra.gmra.mrb[40].mxu0 %v18154_v11  ;;  %v7539_v53 = vsel %vm914_vm6, %v18246_v23, %v18399_v38  ;;  %v7538_v61 = vsel %vm914_vm6, %v18248_v8, %v18410_v36  ;;  %v7380_v51 = vmul.f32 %v7348_v5, %v21245_v30  ;;  %v18693_v56 = vmul.f32 %v7742_v29, %v21246_v44  ;;  %v21250_v5 = vld [vmem:[#allocation192_spill] sm:$0xff]  ;;  %v21252_v29 = vld [vmem:[#allocation139_spill] sm:$0xff] }
 0xa48   :  { %8997 = vmatpush1.bf16.msra.mxu0 %v8455_v33  ;;  %10758 = vmatprep.mubr.msk.bf16.mxu0 %vm4921_vm13, %v17770_v59  ;;  %v21244_v33 = vld [vmem:[#allocation32_spill] sm:$0xff]  ;;  %v7444_v38 = vsel %vm817_vm4, %v18504_v14, %v18226_v57  ;;  %v8492_v25 = vpack.c.bf16 %v7675_v13, %v7663_v48 }
 0xa49   :  { %8998 = vmatprep.subr.bf16.mxu0 %v8468_v43  ;;  %v18672_v40 = vpop.permute.xlu1 %7336  ;;  %v7489_v6 = vmul.f32 %v7443_v26, %v21244_v33  ;;  %v7477_v60 = vmul.f32 %v7442_v32, %v21244_v33  ;;  %v21248_v32 = vld [vmem:[#allocation190_spill] sm:$0xff]  ;;  %v21249_v43 = vld [vmem:[#allocation191_spill] sm:$0xff] }
 0xa4a   :  { %v7349_v42 = vsel %vm720_vm3, %v18672_v40, %v18190_v9  ;;  %v18680_v20 = vpop.permute.xlu0 %7822  ;;  %v21247_v9 = vld [vmem:[#allocation83_spill] sm:$0xff]  ;;  %v7836_v36 = vsel %vm1205_vm9, %v21248_v32, %v21156_v63  ;;  %v7741_v1 = vsel %vm1108_vm8, %v21249_v43, %v21142_v19  ;;  %v7743_v3 = vsel %vm1108_vm8, %v21250_v5, %v21249_v43  ;;  %v21257_v43 = vld [vmem:[#allocation193_spill] sm:$0xff] }
 0xa4b   :  { %v7392_v21 = vmul.f32 %v7349_v42, %v21245_v30  ;;  %v18696_v26 = vmul.f32 %v7740_v34, %v21247_v9  ;;  %v8474_v19 = vpack.c.bf16 %v7489_v6, %v7477_v60  ;;  %v7635_v42 = vsel %vm1011_vm7, %v21252_v29, %v18424_v46 }
 0xa4c   :  { %8999 = vmatpush1.bf16.msra.mxu0 %v8467_v7  ;;  %v21251_v7 = vld [vmem:[#allocation43_spill] sm:$0xff]  ;;  %v7771_v60 = vmul.f32 %v7741_v1, %v21247_v9  ;;  %v7540_v46 = vsel %vm914_vm6, %v18532_v16, %v18248_v8  ;;  %v21259_v8 = vld [vmem:[#allocation36_spill] sm:$0xff] }
 0xa4d   :  { %v8461_v34 = vpack.c.bf16 %v7392_v21, %v7380_v51  ;;  %9000 = vmatprep.subr.bf16.mxu0 %v8480_v52  ;;  %v18714_v57 = vpop.permute.xlu1 %7432  ;;  %v7585_v13 = vmul.f32 %v7539_v53, %v21251_v7  ;;  %v7573_v48 = vmul.f32 %v7538_v61, %v21251_v7  ;;  %v21253_v52 = vld [vmem:[#allocation116_spill] sm:$0xff]  ;;  %v21254_v51 = vld [vmem:[#allocation45_spill] sm:$0xff] }
 0xa4e   :  { %v7445_v63 = vsel %vm817_vm4, %v18714_v57, %v18219_v58  ;;  %v18722_v47 = vpop.permute.xlu0 %7990  ;;  %v7634_v53 = vsel %vm1011_vm7, %v21253_v52, %v18430_v54  ;;  %v7476_v61 = vmul.f32 %v7444_v38, %v21254_v51  ;;  %v21255_v58 = vld [vmem:[#allocation150_spill] sm:$0xff]  ;;  %v18744_v54 = vmul.f32 %v7743_v3, %v21246_v44  ;;  %v21366_v9 = vld [vmem:[#allocation48_spill] sm:$0xff] }
 0xa4f   :  { %v7488_v21 = vmul.f32 %v7445_v63, %v21254_v51  ;;  %9120 = vmatpush1.bf16.msra.mxu1 %v8461_v34  ;;  %v7838_v6 = vsel %vm1205_vm9, %v21255_v58, %v21248_v32  ;;  %v21256_v38 = vld [vmem:[#allocation158_spill] sm:$0xff] }
 0xa50   :  { %9001 = vmatpush1.bf16.msra.mxu0 %v8479_v17  ;;  %9121 = vmatprep.subr.bf16.mxu1 %v8474_v19  ;;  %v7837_v5 = vsel %vm1205_vm9, %v21257_v43, %v21256_v38  ;;  %v21258_v34 = vld [vmem:[#allocation194_spill] sm:$0xff]  ;;  %v7681_v17 = vmul.f32 %v7635_v42, %v21259_v8  ;;  %v7669_v19 = vmul.f32 %v7634_v53, %v21259_v8 }
 0xa51   :  { %v7839_v32 = vsel %vm1205_vm9, %v21258_v34, %v21257_v43  ;;  %v8473_v1 = vpack.c.bf16 %v7488_v21, %v7476_v61  ;;  %9002 = vmatprep.subr.bf16.mxu0 %v8492_v25  ;;  %v18754_v63 = vpop.permute.xlu1 %7528  ;;  %v8486_v38 = vpack.c.bf16 %v7585_v13, %v7573_v48  ;;  %v21260_v51 = vld [vmem:[#allocation162_spill] sm:$0xff]  ;;  %v21261_v25 = vld [vmem:[#allocation152_spill] sm:$0xff]  ;;  %v21262_v21 = vld [vmem:[#allocation37_spill] sm:$0xff] }
 0xa52   :  { %v7541_v3 = vsel %vm914_vm6, %v18754_v63, %v18246_v23  ;;  %v18762_v58 = vpop.permute.xlu0 %7818  ;;  %v7933_v61 = vsel %vm1302_vm10, %v18442_v37, %v21260_v51  ;;  %v7935_v42 = vsel %vm1302_vm10, %v21261_v25, %v18442_v37  ;;  %v7572_v53 = vmul.f32 %v7540_v46, %v21262_v21  ;;  %v21263_v13 = vld [vmem:[#allocation151_spill] sm:$0xff]  ;;  %v21264_v51 = vld [vmem:[#allocation85_spill] sm:$0xff]  ;;  %v21265_v34 = vld [vmem:[#allocation84_spill] sm:$0xff] }
 0xa53   :  { %v7584_v43 = vmul.f32 %v7541_v3, %v21262_v21  ;;  %9122 = vmatpush1.bf16.msra.mxu1 %v8473_v1  ;;  %v7932_v23 = vsel %vm1302_vm10, %v18448_v28, %v21176_v18  ;;  %v7934_v48 = vsel %vm1302_vm10, %v21263_v13, %v18448_v28  ;;  %v7636_v37 = vsel %vm1011_vm7, %v18563_v45, %v21253_v52  ;;  %v21266_v25 = vld [vmem:[#allocation102_spill] sm:$0xff]  ;;  %v21267_v18 = vld [vmem:[#allocation103_spill] sm:$0xff] }
 0xa54   :  { %9003 = vmatpush1.bf16.msra.mxu0 %v8491_v31  ;;  %9123 = vmatprep.subr.bf16.mxu1 %v8486_v38  ;;  %v7867_v46 = vmul.f32 %v7837_v5, %v21264_v51  ;;  %v18788_v1 = vmul.f32 %v7839_v32, %v21265_v34  ;;  %v21268_v21 = vpack.c.bf16 %v21266_v25, %v21267_v18  ;;  %v21269_v13 = vld [vmem:[#allocation86_spill] sm:$0xff]  ;;  %v21270_v52 = vld [vmem:[#allocation87_spill] sm:$0xff] }
 0xa55   :  { %v8485_v3 = vpack.c.bf16 %v7584_v43, %v7572_v53  ;;  %v18793_v30 = vpop.permute.xlu1 %7624  ;;  %v8516_v28 = vpack.c.bf16 %v7771_v60, %v18696_v26  ;;  %v18797_v7 = vmul.f32 %v7935_v42, %v21269_v13  ;;  %v7963_v31 = vmul.f32 %v7933_v61, %v21270_v52  ;;  %v21271_v43 = vld [vmem:[#allocation35_spill] sm:$0xff]  ;;  %v21272_v42 = vld [vmem:[#allocation98_spill] sm:$0xff] }
 0xa56   :  { %9004 = vmatprep.subr.bf16.mxu0 %v21268_v21  ;;  %v7637_v5 = vsel %vm1011_vm7, %v18793_v30, %v21252_v29  ;;  %v7331_v32 = vpop.permute.xlu0 %7330  ;;  %v8498_v38 = vpack.c.bf16 %v7681_v17, %v7669_v19  ;;  %v18805_v53 = vmul.f32 %v7934_v48, %v21269_v13  ;;  %v7951_v21 = vmul.f32 %v7932_v23, %v21270_v52  ;;  %v21273_v17 = vld [vmem:[#allocation105_spill] sm:$0xff]  ;;  %v21274_v19 = vld [vmem:[#allocation99_spill] sm:$0xff] }
 0xa57   :  { %v7668_v25 = vmul.f32 %v7636_v37, %v21271_v43  ;;  %v7680_v26 = vmul.f32 %v7637_v5, %v21271_v43  ;;  %9124 = vmatpush1.bf16.msra.mxu1 %v8485_v3  ;;  %v7854_v60 = vmul.f32 %v7838_v6, %v21265_v34  ;;  %v7855_v61 = vmul.f32 %v7836_v36, %v21264_v51  ;;  %v21276_v18 = vld [vmem:[#allocation171_spill] sm:$0xff] }
 0xa58   :  { %v8031_v29 = vsel %vm1399_vm11, %v21272_v42, %v18497_v24  ;;  %v21275_v48 = vpack.c.bf16 %v21273_v17, %v21274_v19  ;;  %9125 = vmatprep.subr.bf16.mxu1 %v8498_v38  ;;  %v8515_v23 = vpack.c.bf16 %v18744_v54, %v18693_v56  ;;  %v8029_v6 = vsel %vm1399_vm11, %v18497_v24, %v21178_v39  ;;  %v12081_v24 = vld [vmem:[%s19949_s18 + $0x80] ss:$0 sm:$0xff]  ;;  %v21283_v17 = vld [vmem:[#allocation97_spill] sm:$0xff] }
 0xa59   :  { %v8497_v37 = vpack.c.bf16 %v7680_v26, %v7668_v25  ;;  %v18825_v36 = vpop.permute.xlu1 %8012  ;;  %v8527_v3 = vpack.c.bf16 %v18788_v1, %v7854_v60  ;;  %v7353_v5 = vsel %vm720_vm3, %v21276_v18, %v18553_v27  ;;  %v7752_v56 = vsel %vm1108_vm8, %v18604_v49, %v21192_v2  ;;  %v12082_v2 = vld [vmem:[%s19949_s18 + $0x88] ss:$0 sm:$0xff]  ;;  %v21277_v26 = vld [vmem:[#allocation136_spill] sm:$0xff] }
 0xa5a   :  { %9005 = vmatpush1.bf16.msra.mxu0 %v21275_v48  ;;  %v7919_v54 = vpop.permute.xlu0 %7918  ;;  %v8528_v38 = vpack.c.bf16 %v7867_v46, %v7855_v61  ;;  %v8539_v39 = vpack.c.bf16 %v18797_v7, %v18805_v53  ;;  %v18841_v1 = vmul.f32 %v12081_v24, %v8031_v29  ;;  %v8540_v25 = vpack.c.bf16 %v7963_v31, %v7951_v21  ;;  %v21280_v31 = vld [vmem:[#allocation91_spill] sm:$0xff]  ;;  %v21281_v61 = vld [vmem:[#allocation38_spill] sm:$0xff] }
 0xa5b   :  { %9006 = vmatprep.subr.bf16.mxu0 %v8516_v28  ;;  %v8028_v28 = vsel %vm1399_vm11, %v18722_v47, %v21181_v55  ;;  %9126 = vmatpush1.bf16.msra.mxu1 %v8497_v37  ;;  %v8059_v46 = vmul.f32 %v12082_v2, %v8029_v6  ;;  %v7730_v7 = vsel %vm1108_vm8, %v18640_v22, %v18604_v49  ;;  %v21278_v55 = vld [vmem:[#allocation135_spill] sm:$0xff]  ;;  %v21282_v29 = vld [vmem:[#allocation118_spill] sm:$0xff] }
 0xa5c   :  { %v7351_v53 = vsel %vm720_vm3, %v18553_v27, %v18672_v40  ;;  %v21279_v60 = vpack.c.bf16 %v21277_v26, %v21278_v55  ;;  %v18862_v21 = vmul.f32 %v7353_v5, %v21280_v31  ;;  %v7765_v42 = vmul.f32 %v7752_v56, %v21281_v61  ;;  %v21285_v37 = vld [vmem:[#allocation123_spill] sm:$0xff]  ;;  %v21286_v56 = vld [vmem:[#allocation44_spill] sm:$0xff]  ;;  %v21288_v55 = vld [vmem:[#allocation133_spill] sm:$0xff] }
 0xa5d   :  { %v7848_v49 = vsel %vm1205_vm9, %v18680_v20, %v21282_v29  ;;  %v8030_v27 = vsel %vm1399_vm11, %v21283_v17, %v18722_v47  ;;  %v7729_v40 = vpop.permute.xlu1 %7728  ;;  %v8047_v19 = vmul.f32 %v12082_v2, %v8028_v28  ;;  %v7350_v48 = vsel %vm720_vm3, %v7331_v32, %v18477_v50  ;;  %v21287_v47 = vld [vmem:[#allocation88_spill] sm:$0xff]  ;;  %v21291_v29 = vld [vmem:[#allocation46_spill] sm:$0xff] }
 0xa5e   :  { %9007 = vmatpush1.bf16.msra.mxu0 %v8515_v23  ;;  %9127 = vmatprep.subr.bf16.mxu1 %v21279_v60  ;;  %v21284_v23 = vld [vmem:[#allocation127_spill] sm:$0xff]  ;;  %v7753_v18 = vsel %vm1108_vm8, %v7729_v40, %v21285_v37  ;;  %v18882_v5 = vpop.permute.xlu0 %7914  ;;  %v7764_v26 = vmul.f32 %v7730_v7, %v21286_v56  ;;  %v21289_v50 = vld [vmem:[#allocation132_spill] sm:$0xff]  ;;  %v7861_v17 = vmul.f32 %v7848_v49, %v21291_v29 }
 0xa5f   :  { %9008 = vmatprep.subr.bf16.mxu0 %v8528_v38  ;;  %v7731_v6 = vsel %vm1108_vm8, %v21284_v23, %v7729_v40  ;;  %v7391_v38 = vmul.f32 %v7351_v53, %v21287_v47  ;;  %v7777_v2 = vmul.f32 %v7753_v18, %v21281_v61  ;;  %v21290_v60 = vpack.c.bf16 %v21288_v55, %v21289_v50  ;;  %v21292_v53 = vld [vmem:[#allocation169_spill] sm:$0xff] }
 0xa60   :  { %v7776_v28 = vmul.f32 %v7731_v6, %v21286_v56  ;;  %v7447_v40 = vsel %vm817_vm4, %v18630_v10, %v18714_v57  ;;  %v8046_v37 = vmul.f32 %v12081_v24, %v8030_v27  ;;  %v7826_v7 = vsel %vm1205_vm9, %v18762_v58, %v18680_v20  ;;  %v21294_v24 = vld [vmem:[#allocation20_spill] sm:$0xff]  ;;  %v21295_v20 = vld [vmem:[#allocation121_spill] sm:$0xff] }
 0xa61   :  { %9128 = vmatpush1.bf16.msra.mxu1 %v21290_v60  ;;  %v7352_v6 = vsel %vm720_vm3, %v21292_v53, %v7331_v32  ;;  %v7379_v18 = vmul.f32 %v7350_v48, %v21287_v47  ;;  %v7825_v49 = vpop.permute.xlu1 %7824  ;;  %v8522_v50 = vpack.c.bf16 %v7777_v2, %v7765_v42  ;;  %v21293_v60 = vld [vmem:[#allocation124_spill] sm:$0xff]  ;;  %v8552_v32 = vpack.c.bf16 %v8059_v46, %v8047_v19  ;;  %v21296_v53 = vld [vmem:[#allocation39_spill] sm:$0xff] }
 0xa62   :  { %9009 = vmatpush1.bf16.msra.mxu0 %v8527_v3  ;;  %v8521_v55 = vpack.c.bf16 %v7776_v28, %v7764_v26  ;;  %v7944_v57 = vsel %vm1302_vm10, %v7919_v54, %v21293_v60  ;;  %v7827_v27 = vsel %vm1205_vm9, %v21294_v24, %v7825_v49  ;;  %v7849_v3 = vsel %vm1205_vm9, %v7825_v49, %v21295_v20  ;;  %v7427_v56 = vpop.permute.xlu0 %7426  ;;  %v21297_v46 = vld [vmem:[#allocation40_spill] sm:$0xff] }
 0xa63   :  { %9010 = vmatprep.subr.bf16.mxu0 %v8540_v25  ;;  %v7860_v48 = vmul.f32 %v7826_v7, %v21296_v53  ;;  %v7872_v25 = vmul.f32 %v7827_v27, %v21296_v53  ;;  %v7873_v42 = vmul.f32 %v7849_v3, %v21291_v29  ;;  %v7446_v26 = vsel %vm817_vm4, %v7427_v56, %v18504_v14  ;;  %v21298_v3 = vld [vmem:[#allocation172_spill] sm:$0xff] }
 0xa64   :  { %9129 = vmatprep.subr.bf16.mxu1 %v8522_v50  ;;  %v8551_v28 = vpack.c.bf16 %v18841_v1, %v8046_v37  ;;  %v7378_v2 = vmul.f32 %v7352_v6, %v21280_v31  ;;  %v7922_v49 = vsel %vm1302_vm10, %v18882_v5, %v7919_v54  ;;  %v7957_v19 = vmul.f32 %v7944_v57, %v21297_v46  ;;  %v21299_v1 = vld [vmem:[#allocation89_spill] sm:$0xff]  ;;  %v21300_v6 = vld [vmem:[#allocation140_spill] sm:$0xff]  ;;  %v21302_v57 = vld [vmem:[#allocation42_spill] sm:$0xff] }
 0xa65   :  { %9130 = vmatpush1.bf16.msra.mxu1 %v8521_v55  ;;  %v8533_v7 = vpack.c.bf16 %v7872_v25, %v7860_v48  ;;  %v7921_v60 = vpop.permute.xlu1 %7920  ;;  %v8534_v27 = vpack.c.bf16 %v7873_v42, %v7861_v17  ;;  %v8460_v20 = vpack.c.bf16 %v7391_v38, %v7379_v18  ;;  %v7448_v14 = vsel %vm817_vm4, %v21298_v3, %v7427_v56  ;;  %v21301_v54 = vld [vmem:[#allocation125_spill] sm:$0xff]  ;;  %v21303_v18 = vld [vmem:[#allocation122_spill] sm:$0xff] }
 0xa66   :  { %9011 = vmatpush1.bf16.msra.mxu0 %v8539_v39  ;;  %v7475_v37 = vmul.f32 %v7446_v26, %v21299_v1  ;;  %v7923_v50 = vsel %vm1302_vm10, %v21300_v6, %v7921_v60  ;;  %v7945_v39 = vsel %vm1302_vm10, %v7921_v60, %v21301_v54  ;;  %v8015_v55 = vpop.permute.xlu0 %8014  ;;  %v21304_v48 = vld [vmem:[#allocation173_spill] sm:$0xff]  ;;  %v7487_v42 = vmul.f32 %v7447_v40, %v21299_v1  ;;  %v21306_v40 = vld [vmem:[#allocation130_spill] sm:$0xff] }
 0xa67   :  { %9012 = vmatprep.subr.bf16.mxu0 %v8552_v32  ;;  %v7956_v32 = vmul.f32 %v7922_v49, %v21302_v57  ;;  %v7968_v17 = vmul.f32 %v7923_v50, %v21302_v57  ;;  %v7969_v38 = vmul.f32 %v7945_v39, %v21297_v46  ;;  %v8040_v56 = vsel %vm1399_vm11, %v8015_v55, %v21303_v18  ;;  %v21305_v49 = vld [vmem:[#allocation90_spill] sm:$0xff] }
 0xa68   :  { %9131 = vmatprep.subr.bf16.mxu1 %v8534_v27  ;;  %v7449_v25 = vsel %vm817_vm4, %v21304_v48, %v18630_v10  ;;  %v8459_v26 = vpack.c.bf16 %v18862_v21, %v7378_v2  ;;  %v7474_v60 = vmul.f32 %v7448_v14, %v21305_v49  ;;  %v12083_v27 = vld [vmem:[%s19949_s18 + $0xb8] ss:$0 sm:$0xff]  ;;  %v8472_v2 = vpack.c.bf16 %v7487_v42, %v7475_v37  ;;  %v21307_v48 = vld [vmem:[#allocation176_spill] sm:$0xff] }
 0xa69   :  { %9132 = vmatpush1.bf16.msra.mxu1 %v8533_v7  ;;  %v8545_v3 = vpack.c.bf16 %v7968_v17, %v7956_v32  ;;  %v8017_v50 = vpop.permute.xlu1 %8016  ;;  %v8546_v54 = vpack.c.bf16 %v7969_v38, %v7957_v19  ;;  %v8053_v39 = vmul.f32 %v12083_v27, %v8040_v56  ;;  %v12084_v19 = vld [vmem:[%s19949_s18 + $0xb0] ss:$0 sm:$0xff]  ;;  %v7486_v32 = vmul.f32 %v7449_v25, %v21305_v49 }
 0xa6a   :  { %9013 = vmatpush1.bf16.msra.mxu0 %v8551_v28  ;;  %v8019_v10 = vsel %vm1399_vm11, %v18825_v36, %v8017_v50  ;;  %v8041_v28 = vsel %vm1399_vm11, %v8017_v50, %v21306_v40  ;;  %v18957_v21 = vpop.permute.xlu0 %8010  ;;  %v21308_v50 = vld [vmem:[#allocation95_spill] sm:$0xff] }
 0xa6b   :  { %9078 = vmatprep.subr.bf16.mxu0 %v8460_v20  ;;  %v8064_v7 = vmul.f32 %v12084_v19, %v8019_v10  ;;  %v8065_v20 = vmul.f32 %v12083_v27, %v8041_v28  ;;  %v8018_v14 = vsel %vm1399_vm11, %v18957_v21, %v8015_v55  ;;  %9133 = vmatprep.subr.bf16.mxu1 %v8546_v54 }
 0xa6c   :  { %v8052_v17 = vmul.f32 %v12084_v19, %v8018_v14  ;;  %v8471_v18 = vpack.c.bf16 %v7486_v32, %v7474_v60  ;;  %v21313_v32 = vld [vmem:[#allocation93_spill] sm:$0xff] }
 0xa6d   :  { %9029 = vmatmul.mubr.bf16.vlgmr.msra.gmra.mrb[44].mxu0 %v18154_v11  ;;  %9134 = vmatpush1.bf16.msra.mxu1 %v8545_v3  ;;  %v7525_v37 = vpop.permute.xlu1 %7524  ;;  %v8558_v38 = vpack.c.bf16 %v8065_v20, %v8053_v39  ;;  %v21309_v3 = vld [vmem:[#allocation92_spill] sm:$0xff]  ;;  %v21312_v20 = vld [vmem:[#allocation94_spill] sm:$0xff] }
 0xa6e   :  { %9079 = vmatpush1.bf16.msra.mxu0 %v8459_v26  ;;  %10760 = vmatprep.mubr.msk.bf16.mxu0 %vm4921_vm13, %v17770_v59  ;;  %v8557_v56 = vpack.c.bf16 %v8064_v7, %v8052_v17  ;;  %v7543_v55 = vsel %vm914_vm6, %v7525_v37, %v18754_v63  ;;  %v7545_v42 = vsel %vm914_vm6, %v21307_v48, %v7525_v37  ;;  %v7523_v25 = vpop.permute.xlu0 %7522  ;;  %v21310_v59 = vld [vmem:[#allocation174_spill] sm:$0xff]  ;;  %vm21402_vm13 = vmmov %vm20922_vm0 }
 0xa6f   :  { %9080 = vmatprep.subr.bf16.mxu0 %v8472_v2  ;;  %v7582_v26 = vmul.f32 %v7545_v42, %v21308_v50  ;;  %v7583_v54 = vmul.f32 %v7543_v55, %v21309_v3  ;;  %v7542_v27 = vsel %vm914_vm6, %v7523_v25, %v18532_v16  ;;  %v7544_v60 = vsel %vm914_vm6, %v21310_v59, %v7523_v25  ;;  %v21311_v2 = vld [vmem:[#allocation179_spill] sm:$0xff] }
 0xa70   :  { %9135 = vmatprep.subr.bf16.mxu1 %v8558_v38  ;;  %v7570_v63 = vmul.f32 %v7544_v60, %v21308_v50  ;;  %v7571_v39 = vmul.f32 %v7542_v27, %v21309_v3  ;;  %v21314_v38 = vld [vmem:[#allocation177_spill] sm:$0xff]  ;;  %v21315_v55 = vmov 0   ;;  %v21317_v60 = vld [vmem:[#allocation3_spill] sm:$0xff] }
 0xa71   :  { %9136 = vmatpush1.bf16.msra.mxu1 %v8557_v56  ;;  %v7621_v10 = vpop.permute.xlu1 %7620 }
 0xa72   :  { %9081 = vmatpush1.bf16.msra.mxu0 %v8471_v18  ;;  %v8483_v40 = vpack.c.bf16 %v7582_v26, %v7570_v63  ;;  %v7639_v28 = vsel %vm1011_vm7, %v7621_v10, %v18793_v30  ;;  %v7641_v16 = vsel %vm1011_vm7, %v21311_v2, %v7621_v10  ;;  %v7619_v19 = vpop.permute.xlu0 %7618  ;;  %v8484_v7 = vpack.c.bf16 %v7583_v54, %v7571_v39  ;;  %v21316_v54 = vld [vmem:[#allocation195_spill] sm:$0xff]  ;;  %v21318_v39 = vld [vmem:[#allocation196_spill] sm:$0xff] }
 0xa73   :  { %v7678_v14 = vmul.f32 %v7641_v16, %v21312_v20  ;;  %v7679_v17 = vmul.f32 %v7639_v28, %v21313_v32  ;;  %v7638_v37 = vsel %vm1011_vm7, %v7619_v19, %v18563_v45  ;;  %v7640_v18 = vsel %vm1011_vm7, %v21314_v38, %v7619_v19  ;;  %v21319_v28 = vld [vmem:[#allocation7_spill] sm:$0xff]  ;;  %v21320_v19 = vld [vmem:[#allocation137_spill] sm:$0xff] }
 0xa74   :  { %9152 = vmatmul.mubr.bf16.vlgmr.msra.gmra.mrb[92].mxu1 %v18154_v11  ;;  %v7666_v30 = vmul.f32 %v7640_v18, %v21312_v20  ;;  %v7667_v56 = vmul.f32 %v7638_v37, %v21313_v32  ;;  %9082 = vmatprep.subr.bf16.mxu0 %v8484_v7  ;;  %v21321_v7 = vld [vmem:[#allocation79_spill] sm:$0xff]  ;;  %v21323_v37 = vld [vmem:[#allocation197_spill] sm:$0xff] }
 0xa75   :  { %9825 = vmatprep.mubr.bf16.mxu1 %v21315_v55  ;;  %v7721_v48 = vpop.permute.xlu1 %7720 }
 0xa76   :  { %9083 = vmatpush1.bf16.msra.mxu0 %v8483_v40  ;;  %v8495_v42 = vpack.c.bf16 %v7678_v14, %v7666_v30  ;;  %v7733_v45 = vsel %vm1108_vm8, %v7721_v48, %v21284_v23  ;;  %v7719_v25 = vpop.permute.xlu0 %7718  ;;  %v8496_v26 = vpack.c.bf16 %v7679_v17, %v7667_v56  ;;  %v7735_v27 = vsel %vm1108_vm8, %v21316_v54, %v7721_v48  ;;  %v21324_v30 = vld [vmem:[#allocation199_spill] sm:$0xff] }
 0xa77   :  { %v7732_v59 = vsel %vm1108_vm8, %v7719_v25, %v18640_v22  ;;  %v7775_v63 = vmul.f32 %v7733_v45, %v21317_v60  ;;  %v7734_v10 = vsel %vm1108_vm8, %v21318_v39, %v7719_v25  ;;  %v7774_v2 = vmul.f32 %v7735_v27, %v21319_v28  ;;  %v21326_v25 = vld [vmem:[#allocation134_spill] sm:$0xff] }
 0xa78   :  { %v7763_v40 = vmul.f32 %v7732_v59, %v21317_v60  ;;  %9084 = vmatprep.subr.bf16.mxu0 %v8496_v26  ;;  %v21322_v22 = vpack.c.bf16 %v21320_v19, %v21321_v7  ;;  %v7762_v17 = vmul.f32 %v7734_v10, %v21319_v28  ;;  %v21327_v26 = vld [vmem:[#allocation131_spill] sm:$0xff]  ;;  %v21329_v59 = vld [vmem:[#allocation10_spill] sm:$0xff]  ;;  %v21331_v7 = vld [vmem:[#allocation9_spill] sm:$0xff] }
 0xa79   :  { %v7817_v23 = vpop.permute.xlu1 %7816  ;;  %v21328_v54 = vpack.c.bf16 %v21326_v25, %v21327_v26  ;;  %v21333_v25 = vld [vmem:[#allocation12_spill] sm:$0xff] }
 0xa7a   :  { %9085 = vmatpush1.bf16.msra.mxu0 %v8495_v42  ;;  %v7829_v16 = vsel %vm1205_vm9, %v7817_v23, %v21294_v24  ;;  %v7815_v14 = vpop.permute.xlu0 %7814  ;;  %v7831_v38 = vsel %vm1205_vm9, %v21323_v37, %v7817_v23  ;;  %v21325_v24 = vld [vmem:[#allocation8_spill] sm:$0xff]  ;;  %v8520_v45 = vpack.c.bf16 %v7775_v63, %v7763_v40  ;;  %v8519_v19 = vpack.c.bf16 %v7774_v2, %v7762_v17 }
 0xa7b   :  { %9086 = vmatprep.subr.bf16.mxu0 %v21322_v22  ;;  %v7828_v18 = vsel %vm1205_vm9, %v7815_v14, %v18762_v58  ;;  %v7830_v56 = vsel %vm1205_vm9, %v21324_v30, %v7815_v14  ;;  %v7871_v48 = vmul.f32 %v7829_v16, %v21325_v24  ;;  %v7870_v39 = vmul.f32 %v7831_v38, %v21329_v59  ;;  %v21330_v16 = vld [vmem:[#allocation201_spill] sm:$0xff]  ;;  %v21332_v14 = vld [vmem:[#allocation202_spill] sm:$0xff] }
 0xa7c   :  { %v7859_v42 = vmul.f32 %v7828_v18, %v21325_v24  ;;  %v7858_v10 = vmul.f32 %v7830_v56, %v21329_v59  ;;  %v19055_v18 = vpop.f32.mrb[36].mxu0 }
 0xa7d   :  { %v7913_v27 = vpop.permute.xlu1 %7912  ;;  %v19057_v17 = vpop.f32.mrb[37].mxu0 }
 0xa7e   :  { %9087 = vmatpush1.bf16.msra.mxu0 %v21328_v54  ;;  %v7925_v58 = vsel %vm1302_vm10, %v7913_v27, %v21300_v6  ;;  %v7911_v23 = vpop.permute.xlu0 %7910  ;;  %v7927_v63 = vsel %vm1302_vm10, %v21330_v16, %v7913_v27  ;;  %v8532_v6 = vpack.c.bf16 %v7871_v48, %v7859_v42  ;;  %v8531_v30 = vpack.c.bf16 %v7870_v39, %v7858_v10  ;;  %v21334_v27 = vld [vmem:[#allocation203_spill] sm:$0xff] }
 0xa7f   :  { %9088 = vmatprep.subr.bf16.mxu0 %v8520_v45  ;;  %v7924_v40 = vsel %vm1302_vm10, %v7911_v23, %v18882_v5  ;;  %v7967_v22 = vmul.f32 %v7925_v58, %v21331_v7  ;;  %v7926_v37 = vsel %vm1302_vm10, %v21332_v14, %v7911_v23  ;;  %v8861_v45 = vpop.f32.mrb[38].mxu0  ;;  %v7966_v26 = vmul.f32 %v7927_v63, %v21333_v25  ;;  %v21335_v58 = vld [vmem:[#allocation204_spill] sm:$0xff] }
 0xa80   :  { %v7955_v38 = vmul.f32 %v7924_v40, %v21331_v7  ;;  %v7954_v54 = vmul.f32 %v7926_v37, %v21333_v25  ;;  %v8862_v39 = vpop.f32.mrb[39].mxu0  ;;  %v12086_v40 = vld [vmem:[%s19949_s18 + $0xa0] ss:$0 sm:$0xff] }
 0xa81   :  { %v8009_v2 = vpop.permute.xlu1 %8008 }
 0xa82   :  { %9089 = vmatpush1.bf16.msra.mxu0 %v8519_v19  ;;  %v8021_v5 = vsel %vm1399_vm11, %v8009_v2, %v18825_v36  ;;  %v8007_v56 = vpop.permute.xlu0 %8006  ;;  %v8023_v48 = vsel %vm1399_vm11, %v21334_v27, %v8009_v2  ;;  %v12085_v36 = vld [vmem:[%s19949_s18 + $0xa8] ss:$0 sm:$0xff]  ;;  %v8544_v16 = vpack.c.bf16 %v7967_v22, %v7955_v38  ;;  %v8543_v63 = vpack.c.bf16 %v7966_v26, %v7954_v54  ;;  %v21336_v22 = vld [vmem:[#allocation198_spill] sm:$0xff] }
 0xa83   :  { %9090 = vmatprep.subr.bf16.mxu0 %v8532_v6  ;;  %v8020_v42 = vsel %vm1399_vm11, %v8007_v56, %v18957_v21  ;;  %v8063_v10 = vmul.f32 %v12085_v36, %v8021_v5  ;;  %v8022_v23 = vsel %vm1399_vm11, %v21335_v58, %v8007_v56  ;;  %v8062_v21 = vmul.f32 %v12086_v40, %v8023_v48  ;;  %v21337_v56 = vld [vmem:[#allocation200_spill] sm:$0xff] }
 0xa84   :  { %v8051_v19 = vmul.f32 %v12085_v36, %v8020_v42  ;;  %v8050_v14 = vmul.f32 %v12086_v40, %v8022_v23  ;;  %v21338_v40 = vld [vmem:[#allocation181_spill] sm:$0xff] }
 0xa86   :  { %9091 = vmatpush1.bf16.msra.mxu0 %v8531_v30  ;;  %v8556_v37 = vpack.c.bf16 %v8063_v10, %v8051_v19  ;;  %v8555_v6 = vpack.c.bf16 %v8062_v21, %v8050_v14 }
 0xa87   :  { %9092 = vmatprep.subr.bf16.mxu0 %v8544_v16 }
 0xa8a   :  { %9093 = vmatpush1.bf16.msra.mxu0 %v8543_v63 }
 0xa8b   :  { %9094 = vmatprep.subr.bf16.mxu0 %v8556_v37  ;;  %v21339_v37 = vld [vmem:[#allocation178_spill] sm:$0xff] }
 0xa8e   :  { %9095 = vmatpush1.bf16.msra.mxu0 %v8555_v6 }
 0xa91   :  { %9111 = vmatmul.mubr.bf16.vlgmr.msra.gmra.mrb[48].mxu0 %v18154_v11 }
 0xa92   :  { %9784 = vmatprep.mubr.bf16.mxu0 %v21315_v55  ;;  %v19082_v5 = vpop.permute.xlu0 %9163 }
 0xadf   :  { %v8989_v2 = vpop.f32.mrb[84].mxu1 }
 0xae0   :  { %v8990_v38 = vadd.f32 %v8989_v2, %v21336_v22  ;;  %v8991_v30 = vpop.f32.mrb[85].mxu1 }
 0xae1   :  { %v8992_v45 = vadd.f32 %v8991_v30, %v21337_v56  ;;  %v8993_v26 = vpop.f32.mrb[86].mxu1 }
 0xae2   :  { %v9168_v54 = vadd.f32 %v19082_v5, %v8990_v38  ;;  %v8994_v27 = vpop.f32.mrb[87].mxu1 }
 0xae3   :  { %v9169_v48 = vadd.f32 %v19082_v5, %v8992_v45 }
 0xae4   :  { %v10764_v42 = vmul.f32 -1.442695, %v9168_v54 }
 0xae5   :  { %v10765_v39 = vmul.f32 -1.442695, %v9169_v48 }
 0xae6   :  { %12002 = vpow2.f32 %v10764_v42  ;;  %v21340_v42 = vld [vmem:[#allocation187_spill] sm:$0xff] }
 0xae7   :  { %12004 = vpow2.f32 %v10765_v39 }
 0xaf0   :  { %v12003_v11 = vpop.eup %12002 }
 0xaf1   :  { %v9216_v36 = vadd.f32 1.0, %v12003_v11  ;;  %v12005_v10 = vpop.eup %12004 }
 0xaf2   :  { %v9217_v58 = vadd.f32 1.0, %v12005_v10 }
 0xaf3   :  { %12006 = vrcp.f32 %v9216_v36  ;;  %v21341_v36 = vld [vmem:[#allocation189_spill] sm:$0xff] }
 0xaf4   :  { %12008 = vrcp.f32 %v9217_v58 }
 0xafd   :  { %v12007_v23 = vpop.eup %12006 }
 0xafe   :  { %v19087_v19 = vmul.f32 %v12007_v23, %v9168_v54  ;;  %v12009_v16 = vpop.eup %12008 }
 0xaff   :  { %v19099_v22 = vmul.f32 %v12009_v16, %v9169_v48 }
 0xb00   :  { %9460 = vrot.lane.b32.xlu0 %v19087_v19, %s12106_s26  ;;  %9268 = vrot.lane.b32.xlu1 %v19087_v19, %s12102_s1 }
 0xb03   :  { %v9071_v63 = vpop.f32.mrb[88].mxu1 }
 0xb04   :  { %v9072_v21 = vadd.f32 %v9071_v63, %v21338_v40  ;;  %v9073_v14 = vpop.f32.mrb[89].mxu1  ;;  %9604 = vrot.lane.b32.xlu0 %v19087_v19, %s20760_s8  ;;  %9316 = vrot.lane.b32.xlu1 %v19087_v19, %s12103_s0 }
 0xb05   :  { %v9074_v6 = vadd.f32 %v9073_v14, %v21339_v37  ;;  %v9075_v2 = vpop.f32.mrb[90].mxu1 }
 0xb06   :  { %v9172_v38 = vadd.f32 %v19082_v5, %v9072_v21  ;;  %v9076_v30 = vpop.f32.mrb[91].mxu1 }
 0xb07   :  { %v9173_v45 = vadd.f32 %v19082_v5, %v9074_v6 }
 0xb08   :  { %v10768_v56 = vmul.f32 -1.442695, %v9172_v38  ;;  %9270 = vrot.lane.b32.xlu0 %v19099_v22, %s12102_s1  ;;  %9364 = vrot.lane.b32.xlu1 %v19087_v19, %s12104_s2 }
 0xb09   :  { %v10769_v26 = vmul.f32 -1.442695, %v9173_v45 }
 0xb0a   :  { %12010 = vpow2.f32 %v10768_v56 }
 0xb0b   :  { %12012 = vpow2.f32 %v10769_v26 }
 0xb0c   :  { %9318 = vrot.lane.b32.xlu0 %v19099_v22, %s12103_s0  ;;  %9412 = vrot.lane.b32.xlu1 %v19087_v19, %s12105_s25 }
 0xb10   :  { %9366 = vrot.lane.b32.xlu0 %v19099_v22, %s12104_s2  ;;  %9508 = vrot.lane.b32.xlu1 %v19087_v19, %s20523_s22 }
 0xb14   :  { %v12011_v54 = vpop.eup %12010  ;;  %9414 = vrot.lane.b32.xlu0 %v19099_v22, %s12105_s25  ;;  %9556 = vrot.lane.b32.xlu1 %v19087_v19, %s20526_s24 }
 0xb15   :  { %v9220_v27 = vadd.f32 1.0, %v12011_v54  ;;  %v12013_v63 = vpop.eup %12012 }
 0xb16   :  { %v9221_v14 = vadd.f32 1.0, %v12013_v63 }
 0xb17   :  { %12014 = vrcp.f32 %v9220_v27 }
 0xb18   :  { %9510 = vrot.lane.b32.xlu0 %v19099_v22, %s20523_s22  ;;  %9462 = vrot.lane.b32.xlu1 %v19099_v22, %s12106_s26 }
 0xb1a   :  { %v8948_v48 = vpop.f32.mrb[40].mxu0 }
 0xb1b   :  { %v8949_v39 = vadd.f32 %v8948_v48, %v21340_v42  ;;  %v8950_v11 = vpop.f32.mrb[41].mxu0  ;;  %v21344_v42 = vld [vmem:[#allocation175_spill] sm:$0xff] }
 0xb1c   :  { %v8951_v10 = vadd.f32 %v8950_v11, %v21341_v36  ;;  %9558 = vrot.lane.b32.xlu0 %v19099_v22, %s20526_s24  ;;  %9606 = vrot.lane.b32.xlu1 %v19099_v22, %s20760_s8  ;;  %v8952_v58 = vpop.f32.mrb[42].mxu0  ;;  %v21345_v36 = vld [vmem:[#allocation153_spill] sm:$0xff] }
 0xb1d   :  { %v9166_v23 = vadd.f32 %v19082_v5, %v8949_v39  ;;  %v8953_v16 = vpop.f32.mrb[43].mxu0 }
 0xb1e   :  { %v9167_v6 = vadd.f32 %v19082_v5, %v8951_v10 }
 0xb1f   :  { %v10762_v40 = vmul.f32 -1.442695, %v9166_v23 }
 0xb20   :  { %v10763_v2 = vmul.f32 -1.442695, %v9167_v6 }
 0xb21   :  { %v12015_v21 = vpop.eup %12014  ;;  %12016 = vpow2.f32 %v10762_v40 }
 0xb22   :  { %v19130_v37 = vmul.f32 %v12015_v21, %v9172_v38  ;;  %12018 = vrcp.f32 %v9221_v14  ;;  %v21346_v14 = vld [vmem:[#allocation183_spill] sm:$0xff] }
 0xb23   :  { %12020 = vpow2.f32 %v10763_v2 }
 0xb24   :  { %21342 = vst [vmem:[#allocation115_spill] sm:$0xff] %v19130_v37  ;;  %9468 = vrot.lane.b32.xlu0 %v19130_v37, %s12106_s26  ;;  %9276 = vrot.lane.b32.xlu1 %v19130_v37, %s12102_s1 }
 0xb28   :  { %9516 = vrot.lane.b32.xlu0 %v19130_v37, %s20523_s22  ;;  %9324 = vrot.lane.b32.xlu1 %v19130_v37, %s12103_s0 }
 0xb2b   :  { %v12017_v38 = vpop.eup %12016 }
 0xb2c   :  { %9564 = vrot.lane.b32.xlu0 %v19130_v37, %s20526_s24  ;;  %9372 = vrot.lane.b32.xlu1 %v19130_v37, %s12104_s2  ;;  %v12019_v30 = vpop.eup %12018  ;;  %v9214_v56 = vadd.f32 1.0, %v12017_v38 }
 0xb2d   :  { %v19149_v26 = vmul.f32 %v12019_v30, %v9173_v45  ;;  %v12021_v54 = vpop.eup %12020  ;;  %v21347_v30 = vld [vmem:[#allocation180_spill] sm:$0xff] }
 0xb2e   :  { %12022 = vrcp.f32 %v9214_v56  ;;  %v9215_v27 = vadd.f32 1.0, %v12021_v54 }
 0xb2f   :  { %21343 = vst [vmem:[#allocation156_spill] sm:$0xff] %v19149_v26 }
 0xb30   :  { %9612 = vrot.lane.b32.xlu0 %v19130_v37, %s20760_s8  ;;  %9420 = vrot.lane.b32.xlu1 %v19130_v37, %s12105_s25  ;;  %12024 = vrcp.f32 %v9215_v27 }
 0xb34   :  { %9278 = vrot.lane.b32.xlu0 %v19149_v26, %s12102_s1  ;;  %9470 = vrot.lane.b32.xlu1 %v19149_v26, %s12106_s26 }
 0xb38   :  { %9326 = vrot.lane.b32.xlu0 %v19149_v26, %s12103_s0  ;;  %9518 = vrot.lane.b32.xlu1 %v19149_v26, %s20523_s22  ;;  %v12023_v48 = vpop.eup %12022 }
 0xb39   :  { %v19169_v63 = vmul.f32 %v12023_v48, %v9166_v23 }
 0xb3a   :  { %v12025_v21 = vpop.eup %12024 }
 0xb3c   :  { %9374 = vrot.lane.b32.xlu0 %v19149_v26, %s12104_s2  ;;  %9566 = vrot.lane.b32.xlu1 %v19149_v26, %s20526_s24 }
 0xb40   :  { %v9030_v45 = vpop.f32.mrb[44].mxu0  ;;  %9422 = vrot.lane.b32.xlu0 %v19149_v26, %s12105_s25  ;;  %9614 = vrot.lane.b32.xlu1 %v19149_v26, %s20760_s8 }
 0xb41   :  { %v9031_v39 = vadd.f32 %v9030_v45, %v21344_v42  ;;  %v9032_v11 = vpop.f32.mrb[45].mxu0  ;;  %v19182_v45 = vmul.f32 %v12025_v21, %v9167_v6 }
 0xb42   :  { %v9033_v10 = vadd.f32 %v9032_v11, %v21345_v36  ;;  %v9034_v58 = vpop.f32.mrb[46].mxu0 }
 0xb43   :  { %v9035_v16 = vpop.f32.mrb[47].mxu0  ;;  %v9170_v58 = vadd.f32 %v19082_v5, %v9031_v39 }
 0xb44   :  { %9504 = vrot.lane.b32.xlu0 %v19169_v63, %s20523_s22  ;;  %9264 = vrot.lane.b32.xlu1 %v19169_v63, %s12102_s1 }
 0xb47   :  { %v9153_v40 = vpop.f32.mrb[92].mxu1 }
 0xb48   :  { %v9154_v2 = vadd.f32 %v9153_v40, %v21346_v14  ;;  %v9155_v38 = vpop.f32.mrb[93].mxu1  ;;  %9600 = vrot.lane.b32.xlu0 %v19169_v63, %s20760_s8  ;;  %9312 = vrot.lane.b32.xlu1 %v19169_v63, %s12103_s0  ;;  %v10766_v40 = vmul.f32 -1.442695, %v9170_v58  ;;  %v19211_v14 = vadd.f32 %v19082_v5, %v9033_v10 }
 0xb49   :  { %v9156_v56 = vadd.f32 %v9155_v38, %v21347_v30  ;;  %v9157_v23 = vpop.f32.mrb[94].mxu1 }
 0xb4a   :  { %v9176_v54 = vadd.f32 %v19082_v5, %v9154_v2  ;;  %v9158_v27 = vpop.f32.mrb[95].mxu1 }
 0xb4b   :  { %v9177_v42 = vadd.f32 %v19082_v5, %v9156_v56 }
 0xb4c   :  { %v10772_v48 = vmul.f32 -1.442695, %v9176_v54  ;;  %9266 = vrot.lane.b32.xlu0 %v19182_v45, %s12102_s1  ;;  %9360 = vrot.lane.b32.xlu1 %v19169_v63, %s12104_s2 }
 0xb4d   :  { %v10773_v11 = vmul.f32 -1.442695, %v9177_v42 }
 0xb4e   :  { %12026 = vpow2.f32 %v10772_v48 }
 0xb4f   :  { %12028 = vpow2.f32 %v10773_v11  ;;  %v10767_v11 = vmul.f32 -1.442695, %v19211_v14 }
 0xb50   :  { %9314 = vrot.lane.b32.xlu0 %v19182_v45, %s12103_s0  ;;  %9408 = vrot.lane.b32.xlu1 %v19169_v63, %s12105_s25 }
 0xb54   :  { %9362 = vrot.lane.b32.xlu0 %v19182_v45, %s12104_s2  ;;  %9456 = vrot.lane.b32.xlu1 %v19169_v63, %s12106_s26 }
 0xb58   :  { %v12027_v6 = vpop.eup %12026  ;;  %9410 = vrot.lane.b32.xlu0 %v19182_v45, %s12105_s25  ;;  %9552 = vrot.lane.b32.xlu1 %v19169_v63, %s20526_s24 }
 0xb59   :  { %v9224_v36 = vadd.f32 1.0, %v12027_v6  ;;  %v12029_v16 = vpop.eup %12028 }
 0xb5a   :  { %v9225_v21 = vadd.f32 1.0, %v12029_v16 }
 0xb5b   :  { %12030 = vrcp.f32 %v9224_v36 }
 0xb5c   :  { %9506 = vrot.lane.b32.xlu0 %v19182_v45, %s20523_s22  ;;  %9458 = vrot.lane.b32.xlu1 %v19182_v45, %s12106_s26  ;;  %12032 = vpow2.f32 %v10766_v40 }
 0xb5d   :  { %12034 = vrcp.f32 %v9225_v21 }
 0xb5e   :  { %12036 = vpow2.f32 %v10767_v11 }
 0xb60   :  { %9554 = vrot.lane.b32.xlu0 %v19182_v45, %s20526_s24  ;;  %9602 = vrot.lane.b32.xlu1 %v19182_v45, %s20760_s8 }
 0xb64   :  { %v9112_v39 = vpop.f32.mrb[48].mxu0 }
 0xb65   :  { %v12031_v2 = vpop.eup %12030  ;;  %v9113_v38 = vadd.f32 %v9112_v39, %v19055_v18  ;;  %v9114_v30 = vpop.f32.mrb[49].mxu0 }
 0xb66   :  { %v19214_v56 = vmul.f32 %v12031_v2, %v9176_v54  ;;  %v9115_v23 = vadd.f32 %v9114_v30, %v19057_v17  ;;  %v9116_v27 = vpop.f32.mrb[50].mxu0  ;;  %v12033_v18 = vpop.eup %12032 }
 0xb67   :  { %v9117_v48 = vpop.f32.mrb[51].mxu0  ;;  %v12035_v10 = vpop.eup %12034  ;;  %v9218_v17 = vadd.f32 1.0, %v12033_v18  ;;  %v9174_v16 = vadd.f32 %v19082_v5, %v9113_v38 }
 0xb68   :  { %21348 = vst [vmem:[#allocation185_spill] sm:$0xff] %v19214_v56  ;;  %9332 = vrot.lane.b32.xlu0 %v19214_v56, %s12103_s0  ;;  %9284 = vrot.lane.b32.xlu1 %v19214_v56, %s12102_s1  ;;  %v19230_v54 = vmul.f32 %v12035_v10, %v9177_v42  ;;  %v12037_v40 = vpop.eup %12036 }
 0xb69   :  { %12038 = vrcp.f32 %v9218_v17  ;;  %v10770_v42 = vmul.f32 -1.442695, %v9174_v16  ;;  %v9219_v2 = vadd.f32 1.0, %v12037_v40  ;;  %v21350_v17 = vld [vmem:[#allocation66_spill] sm:$0xff] }
 0xb6a   :  { %21349 = vst [vmem:[#allocation182_spill] sm:$0xff] %v19230_v54 }
 0xb6b   :  { %12040 = vpow2.f32 %v10770_v42  ;;  %v21351_v42 = vld [vmem:[#allocation69_spill] sm:$0xff] }
 0xb6c   :  { %9428 = vrot.lane.b32.xlu0 %v19214_v56, %s12105_s25  ;;  %9380 = vrot.lane.b32.xlu1 %v19214_v56, %s12104_s2  ;;  %12042 = vrcp.f32 %v9219_v2 }
 0xb70   :  { %9476 = vrot.lane.b32.xlu0 %v19214_v56, %s12106_s26  ;;  %9524 = vrot.lane.b32.xlu1 %v19214_v56, %s20523_s22 }
 0xb72   :  { %v19232_v6 = vpop.permute.xlu0 %9460  ;;  %v19234_v36 = vpop.permute.xlu1 %9268 }
 0xb73   :  { %v12039_v48 = vpop.eup %12038 }
 0xb74   :  { %9572 = vrot.lane.b32.xlu0 %v19214_v56, %s20526_s24  ;;  %9286 = vrot.lane.b32.xlu1 %v19230_v54, %s12102_s1  ;;  %v19275_v7 = vmul.f32 %v12039_v48, %v9170_v58 }
 0xb75   :  { %v12041_v60 = vpop.eup %12040 }
 0xb76   :  { %v19241_v21 = vpop.permute.xlu0 %9604  ;;  %v19243_v39 = vpop.permute.xlu1 %9316  ;;  %21352 = vst [vmem:[#allocation111_spill] sm:$0xff] %v19275_v7  ;;  %v9222_v58 = vadd.f32 1.0, %v12041_v60 }
 0xb77   :  { %v12043_v28 = vpop.eup %12042 }
 0xb78   :  { %9334 = vrot.lane.b32.xlu0 %v19230_v54, %s12103_s0  ;;  %9382 = vrot.lane.b32.xlu1 %v19230_v54, %s12104_s2  ;;  %v19294_v48 = vmul.f32 %v12043_v28, %v19211_v14  ;;  %12044 = vrcp.f32 %v9222_v58 }
 0xb7a   :  { %v19249_v38 = vpop.permute.xlu0 %9270  ;;  %v19251_v30 = vpop.permute.xlu1 %9364  ;;  %21354 = vst [vmem:[#allocation154_spill] sm:$0xff] %v19294_v48 }
 0xb7b   :  { %v9296_v27 = vsel %vm720_vm3, %v19234_v36, %v19249_v38 }
 0xb7c   :  { %9430 = vrot.lane.b32.xlu0 %v19230_v54, %s12105_s25  ;;  %9478 = vrot.lane.b32.xlu1 %v19230_v54, %s12106_s26  ;;  %v9303_v40 = vmul.f32 %v9296_v27, %v21350_v17 }
 0xb7e   :  { %v19261_v11 = vpop.permute.xlu0 %9318  ;;  %v19263_v18 = vpop.permute.xlu1 %9412 }
 0xb7f   :  { %v9344_v10 = vsel %vm817_vm4, %v19243_v39, %v19261_v11 }
 0xb80   :  { %9526 = vrot.lane.b32.xlu0 %v19230_v54, %s20523_s22  ;;  %9574 = vrot.lane.b32.xlu1 %v19230_v54, %s20526_s24  ;;  %v9351_v2 = vmul.f32 %v9344_v10, %v21351_v42  ;;  %v9175_v10 = vadd.f32 %v19082_v5, %v9115_v23 }
 0xb82   :  { %v19277_v25 = vpop.permute.xlu0 %9366  ;;  %v19279_v24 = vpop.permute.xlu1 %9508  ;;  %v9651_v59 = vpack.c.bf16 %v9351_v2, %v9303_v40  ;;  %v10771_v40 = vmul.f32 -1.442695, %v9175_v10 }
 0xb83   :  { %v12045_v5 = vpop.eup %12044  ;;  %v9392_v37 = vsel %vm914_vm6, %v19251_v30, %v19277_v25 }
 0xb84   :  { %9464 = vrot.lane.b32.xlu0 %v19275_v7, %s12106_s26  ;;  %9512 = vrot.lane.b32.xlu1 %v19275_v7, %s20523_s22  ;;  %12046 = vpow2.f32 %v10771_v40  ;;  %v19325_v42 = vmul.f32 %v12045_v5, %v9174_v16 }
 0xb85   :  { %9793 = vmatprep.subr.bf16.mxu1 %v9651_v59 }
 0xb86   :  { %v19285_v43 = vpop.permute.xlu0 %9414  ;;  %v19287_v27 = vpop.permute.xlu1 %9556  ;;  %21355 = vst [vmem:[#allocation114_spill] sm:$0xff] %v19325_v42 }
 0xb87   :  { %21353 = vst [vmem:[#allocation119_spill] sm:$0xff] %v19285_v43  ;;  %v9440_v34 = vsel %vm1011_vm7, %v19263_v18, %v19285_v43 }
 0xb88   :  { %9608 = vrot.lane.b32.xlu0 %v19275_v7, %s20760_s8  ;;  %9560 = vrot.lane.b32.xlu1 %v19275_v7, %s20526_s24 }
 0xb8a   :  { %v19301_v59 = vpop.permute.xlu0 %9510  ;;  %v19303_v17 = vpop.permute.xlu1 %9462 }
 0xb8c   :  { %9274 = vrot.lane.b32.xlu0 %v19294_v48, %s12102_s1  ;;  %9272 = vrot.lane.b32.xlu1 %v19275_v7, %s12102_s1 }
 0xb8e   :  { %v19309_v60 = vpop.permute.xlu0 %9558  ;;  %v19311_v28 = vpop.permute.xlu1 %9606 }
 0xb8f   :  { %v12047_v40 = vpop.eup %12046 }
 0xb90   :  { %9322 = vrot.lane.b32.xlu0 %v19294_v48, %s12103_s0  ;;  %9320 = vrot.lane.b32.xlu1 %v19275_v7, %s12103_s0  ;;  %v9223_v16 = vadd.f32 1.0, %v12047_v40 }
 0xb92   :  { %12048 = vrcp.f32 %v9223_v16 }
 0xb94   :  { %9370 = vrot.lane.b32.xlu0 %v19294_v48, %s12104_s2  ;;  %9368 = vrot.lane.b32.xlu1 %v19275_v7, %s12104_s2 }
 0xb96   :  { %v19317_v14 = vpop.permute.xlu0 %9468  ;;  %v19319_v23 = vpop.permute.xlu1 %9276 }
 0xb98   :  { %9418 = vrot.lane.b32.xlu0 %v19294_v48, %s12105_s25  ;;  %9416 = vrot.lane.b32.xlu1 %v19275_v7, %s12105_s25 }
 0xb9a   :  { %v19327_v2 = vpop.permute.xlu0 %9516  ;;  %v19329_v58 = vpop.permute.xlu1 %9324 }
 0xb9b   :  { %21356 = vst [vmem:[#allocation100_spill] sm:$0xff] %v19327_v2 }
 0xb9c   :  { %9472 = vrot.lane.b32.xlu0 %v19325_v42, %s12106_s26  ;;  %9466 = vrot.lane.b32.xlu1 %v19294_v48, %s12106_s26  ;;  %v12049_v16 = vpop.eup %12048 }
 0xb9d   :  { %v19375_v49 = vmul.f32 %v12049_v16, %v9175_v10 }
 0xb9e   :  { %v19335_v32 = vpop.permute.xlu0 %9564  ;;  %v19337_v3 = vpop.permute.xlu1 %9372 }
 0xb9f   :  { %21357 = vst [vmem:[#allocation155_spill] sm:$0xff] %v19335_v32  ;;  %21361 = vst [vmem:[#allocation18_spill] sm:$0xff] %v19375_v49  ;;  %v21365_v32 = vld [vmem:[#allocation65_spill] sm:$0xff] }
 0xba0   :  { %9520 = vrot.lane.b32.xlu0 %v19325_v42, %s20523_s22  ;;  %9514 = vrot.lane.b32.xlu1 %v19294_v48, %s20523_s22 }
 0xba2   :  { %v19343_v5 = vpop.permute.xlu0 %9612  ;;  %v19345_v50 = vpop.permute.xlu1 %9420 }
 0xba3   :  { %21358 = vst [vmem:[#allocation184_spill] sm:$0xff] %v19343_v5 }
 0xba4   :  { %9568 = vrot.lane.b32.xlu0 %v19325_v42, %s20526_s24  ;;  %9562 = vrot.lane.b32.xlu1 %v19294_v48, %s20526_s24 }
 0xba6   :  { %v19351_v20 = vpop.permute.xlu0 %9278  ;;  %v19353_v61 = vpop.permute.xlu1 %9470 }
 0xba8   :  { %9616 = vrot.lane.b32.xlu0 %v19325_v42, %s20760_s8  ;;  %9610 = vrot.lane.b32.xlu1 %v19294_v48, %s20760_s8 }
 0xbaa   :  { %v19359_v40 = vpop.permute.xlu0 %9326  ;;  %v19361_v1 = vpop.permute.xlu1 %9518 }
 0xbab   :  { %21359 = vst [vmem:[#allocation106_spill] sm:$0xff] %v19361_v1 }
 0xbac   :  { %9328 = vrot.lane.b32.xlu0 %v19325_v42, %s12103_s0  ;;  %9280 = vrot.lane.b32.xlu1 %v19325_v42, %s12102_s1 }
 0xbae   :  { %v19367_v47 = vpop.permute.xlu0 %9374  ;;  %v19369_v31 = vpop.permute.xlu1 %9566 }
 0xbaf   :  { %21360 = vst [vmem:[#allocation107_spill] sm:$0xff] %v19369_v31 }
 0xbb0   :  { %9424 = vrot.lane.b32.xlu0 %v19325_v42, %s12105_s25  ;;  %9376 = vrot.lane.b32.xlu1 %v19325_v42, %s12104_s2 }
 0xbb2   :  { %v19377_v8 = vpop.permute.xlu0 %9422  ;;  %v19379_v33 = vpop.permute.xlu1 %9614 }
 0xbb3   :  { %21362 = vst [vmem:[#allocation4_spill] sm:$0xff] %v19379_v33 }
 0xbb4   :  { %9282 = vrot.lane.b32.xlu0 %v19375_v49, %s12102_s1  ;;  %9330 = vrot.lane.b32.xlu1 %v19375_v49, %s12103_s0 }
 0xbb6   :  { %v19385_v52 = vpop.permute.xlu0 %9504  ;;  %v9265_v13 = vpop.permute.xlu1 %9264 }
 0xbb8   :  { %9378 = vrot.lane.b32.xlu0 %v19375_v49, %s12104_s2  ;;  %9426 = vrot.lane.b32.xlu1 %v19375_v49, %s12105_s25 }
 0xbba   :  { %v19391_v10 = vpop.permute.xlu0 %9600  ;;  %v9313_v16 = vpop.permute.xlu1 %9312 }
 0xbbc   :  { %9522 = vrot.lane.b32.xlu0 %v19375_v49, %s20523_s22  ;;  %9474 = vrot.lane.b32.xlu1 %v19375_v49, %s12106_s26 }
 0xbbe   :  { %v9267_v42 = vpop.permute.xlu0 %9266  ;;  %v19397_v51 = vpop.permute.xlu1 %9360 }
 0xbbf   :  { %v9297_v2 = vsel %vm720_vm3, %v9267_v42, %v19234_v36  ;;  %v9298_v1 = vsel %vm720_vm3, %v9265_v13, %v9267_v42  ;;  %v21364_v36 = vld [vmem:[#allocation47_spill] sm:$0xff] }
 0xbc0   :  { %9618 = vrot.lane.b32.xlu0 %v19375_v49, %s20760_s8  ;;  %9570 = vrot.lane.b32.xlu1 %v19375_v49, %s20526_s24  ;;  %v21363_v49 = vld [vmem:[#allocation71_spill] sm:$0xff]  ;;  %v9301_v42 = vmul.f32 %v9298_v1, %v21364_v36  ;;  %v9302_v31 = vmul.f32 %v9297_v2, %v21365_v32 }
 0xbc1   :  { %v9447_v7 = vmul.f32 %v9440_v34, %v21363_v49  ;;  %v21367_v34 = vld [vmem:[#allocation68_spill] sm:$0xff] }
 0xbc2   :  { %v9315_v26 = vpop.permute.xlu0 %9314  ;;  %v9409_v48 = vpop.permute.xlu1 %9408 }
 0xbc3   :  { %v9345_v5 = vsel %vm817_vm4, %v9315_v26, %v19243_v39  ;;  %v9346_v33 = vsel %vm817_vm4, %v9313_v16, %v9315_v26  ;;  %v9263_v39 = vld [vmem:[%s19960_s13] sm:$0x3]  ;;  %v9399_v26 = vmul.f32 %v9392_v37, %v21368_v12  ;;  %v21371_v37 = vld [vmem:[#allocation13_spill] sm:$0xff] }
 0xbc4   :  { %9622 = vrot.lane.b32.xlu0 %v19230_v54, %s20760_s8  ;;  %9620 = vrot.lane.b32.xlu1 %v19214_v56, %s20760_s8  ;;  %v9349_v44 = vmul.f32 %v9346_v33, %v21366_v9  ;;  %v9350_v49 = vmul.f32 %v9345_v5, %v21367_v34 }
 0xbc5   :  { %v9663_v56 = vpack.c.bf16 %v9447_v7, %v9399_v26 }
 0xbc6   :  { %v9650_v15 = vpack.c.bf16 %v9350_v49, %v9302_v31  ;;  %v9363_v35 = vpop.permute.xlu0 %9362  ;;  %v19434_v54 = vpop.permute.xlu1 %9456  ;;  %v9649_v43 = vpack.c.bf16 %v9349_v44, %v9301_v42  ;;  %v21370_v31 = vld [vmem:[#allocation2_spill] sm:$0xff] }
 0xbc7   :  { %21369 = vst [vmem:[#allocation67_spill] sm:$0xff] %v19434_v54  ;;  %v9393_v33 = vsel %vm914_vm6, %v9363_v35, %v19251_v30 }
 0xbc8   :  { %9710 = vperm.xlu1 %11056, %v9263_v39   ;;  %9794 = vmatpush1.bf16.msra.mxu1 %v9650_v15  ;;  %v9398_v32 = vmul.f32 %v9393_v33, %v21370_v31 }
 0xbc9   :  { %9752 = vmatprep.subr.bf16.mxu0 %v9649_v43  ;;  %9795 = vmatprep.subr.bf16.mxu1 %v9663_v56 }
 0xbca   :  { %v9411_v9 = vpop.permute.xlu0 %9410  ;;  %v9553_v1 = vpop.permute.xlu1 %9552 }
 0xbcb   :  { %v9441_v12 = vsel %vm1011_vm7, %v9411_v9, %v19263_v18  ;;  %v9442_v26 = vsel %vm1011_vm7, %v9409_v48, %v9411_v9 }
 0xbcc   :  { %v9446_v2 = vmul.f32 %v9441_v12, %v21371_v37  ;;  %v9394_v12 = vsel %vm914_vm6, %v19397_v51, %v9363_v35  ;;  %v9488_v35 = vsel %vm1108_vm8, %v19232_v6, %v19303_v17 }
 0xbce   :  { %v9662_v44 = vpack.c.bf16 %v9446_v2, %v9398_v32  ;;  %v9507_v5 = vpop.permute.xlu0 %9506  ;;  %v9459_v7 = vpop.permute.xlu1 %9458  ;;  %v21378_v2 = vld [vmem:[#allocation54_spill] sm:$0xff] }
 0xbcf   :  { %v9489_v31 = vsel %vm1108_vm8, %v9459_v7, %v19232_v6 }
 0xbd0   :  { %9796 = vmatpush1.bf16.msra.mxu1 %v9662_v44  ;;  %v9445_v44 = vmul.f32 %v9442_v26, %v21378_v2 }
 0xbd2   :  { %v9555_v15 = vpop.permute.xlu0 %9554  ;;  %v9603_v43 = vpop.permute.xlu1 %9602 }
 0xbd3   :  { %v9585_v6 = vsel %vm1302_vm10, %v9555_v15, %v19287_v27 }
 0xbda   :  { %v19444_v36 = vpop.permute.xlu0 %9332  ;;  %v19446_v30 = vpop.permute.xlu1 %9284 }
 0xbdb   :  { %21372 = vst [vmem:[#allocation112_spill] sm:$0xff] %v19444_v36  ;;  %21373 = vst [vmem:[#allocation110_spill] sm:$0xff] %v19446_v30  ;;  %v21381_v30 = vld [vmem:[#allocation53_spill] sm:$0xff]  ;;  %v21382_v36 = vld [vmem:[#allocation59_spill] sm:$0xff] }
 0xbdc   :  { %v9493_v62 = vmul.f32 %v9489_v31, %v21382_v36  ;;  %v21385_v31 = vld [vmem:[#allocation57_spill] sm:$0xff] }
 0xbde   :  { %v19448_v56 = vpop.permute.xlu0 %9428  ;;  %v19450_v42 = vpop.permute.xlu1 %9380 }
 0xbdf   :  { %21374 = vst [vmem:[#allocation117_spill] sm:$0xff] %v19448_v56  ;;  %21375 = vst [vmem:[#allocation186_spill] sm:$0xff] %v19450_v42  ;;  %v21380_v42 = vld [vmem:[#allocation49_spill] sm:$0xff] }
 0xbe2   :  { %v19452_v34 = vpop.permute.xlu0 %9476  ;;  %v19454_v18 = vpop.permute.xlu1 %9524 }
 0xbe3   :  { %21376 = vst [vmem:[#allocation159_spill] sm:$0xff] %v19452_v34  ;;  %v21379_v34 = vld [vmem:[#allocation50_spill] sm:$0xff] }
 0xbe6   :  { %v19456_v49 = vpop.permute.xlu0 %9572  ;;  %v19458_v39 = vpop.permute.xlu1 %9286 }
 0xbe7   :  { %21377 = vst [vmem:[#allocation166_spill] sm:$0xff] %v19458_v39  ;;  %v9299_v33 = vsel %vm720_vm3, %v19458_v39, %v9265_v13  ;;  %v9397_v39 = vmul.f32 %v9394_v12, %v21381_v30  ;;  %v21384_v12 = vld [vmem:[#allocation58_spill] sm:$0xff] }
 0xbe8   :  { %v9300_v13 = vmul.f32 %v9299_v33, %v21379_v34 }
 0xbe9   :  { %v9661_v30 = vpack.c.bf16 %v9445_v44, %v9397_v39  ;;  %v21388_v39 = vld [vmem:[#allocation63_spill] sm:$0xff] }
 0xbea   :  { %v19471_v32 = vpop.permute.xlu0 %9334  ;;  %v19473_v37 = vpop.permute.xlu1 %9382  ;;  %v9589_v44 = vmul.f32 %v9585_v6, %v21388_v39 }
 0xbeb   :  { %v9347_v9 = vsel %vm817_vm4, %v19471_v32, %v9313_v16  ;;  %v9395_v26 = vsel %vm914_vm6, %v19473_v37, %v19397_v51  ;;  %v9490_v16 = vsel %vm1108_vm8, %v19434_v54, %v9459_v7  ;;  %v19505_v51 = vmul.f32 %v9488_v35, %v21384_v12  ;;  %v21386_v7 = vld [vmem:[#allocation56_spill] sm:$0xff] }
 0xbec   :  { %v9348_v56 = vmul.f32 %v9347_v9, %v21380_v42  ;;  %v9396_v2 = vmul.f32 %v9395_v26, %v21385_v31  ;;  %v9537_v9 = vsel %vm1205_vm9, %v9507_v5, %v19279_v24  ;;  %v9586_v54 = vsel %vm1302_vm10, %v9553_v1, %v9555_v15 }
 0xbed   :  { %v9633_v35 = vsel %vm1399_vm11, %v9603_v43, %v19241_v21  ;;  %v9634_v26 = vsel %vm1399_vm11, %v19391_v10, %v9603_v43 }
 0xbee   :  { %v9648_v34 = vpack.c.bf16 %v9348_v56, %v9300_v13  ;;  %v19494_v42 = vpop.permute.xlu0 %9430  ;;  %v19496_v33 = vpop.permute.xlu1 %9478  ;;  %v21387_v13 = vld [vmem:[#allocation60_spill] sm:$0xff] }
 0xbef   :  { %21383 = vst [vmem:[#allocation163_spill] sm:$0xff] %v19496_v33  ;;  %v9443_v36 = vsel %vm1011_vm7, %v19494_v42, %v9409_v48  ;;  %v9492_v33 = vmul.f32 %v9490_v16, %v21387_v13  ;;  %v9673_v48 = vpack.c.bf16 %v9493_v62, %v19182_v45 }
 0xbf0   :  { %v9444_v56 = vmul.f32 %v9443_v36, %v21386_v7  ;;  %9753 = vmatpush1.bf16.msra.mxu0 %v9648_v34  ;;  %v21390_v7 = vld [vmem:[#allocation64_spill] sm:$0xff] }
 0xbf1   :  { %9754 = vmatprep.subr.bf16.mxu0 %v9661_v30 }
 0xbf2   :  { %v9660_v34 = vpack.c.bf16 %v9444_v56, %v9396_v2  ;;  %v9527_v36 = vpop.permute.xlu0 %9526  ;;  %v9575_v12 = vpop.permute.xlu1 %9574  ;;  %v9584_v2 = vsel %vm1302_vm10, %v19287_v27, %v19309_v60  ;;  %v9588_v56 = vmul.f32 %v9586_v54, %v21390_v7  ;;  %v12090_v7 = vld [vmem:[%s19949_s18 + $0x78] ss:$0 sm:$0xff] }
 0xbf3   :  { %v9528_v15 = vsel %vm1205_vm9, %v19454_v18, %v9527_v36  ;;  %v9539_v62 = vsel %vm1205_vm9, %v9527_v36, %v19385_v52  ;;  %v9576_v45 = vsel %vm1302_vm10, %v19456_v49, %v9575_v12  ;;  %v9587_v16 = vsel %vm1302_vm10, %v9575_v12, %v9553_v1  ;;  %v21392_v36 = vld [vmem:[#allocation11_spill] sm:$0xff] }
 0xbf4   :  { %v19535_v43 = vmul.f32 %v9528_v15, %v21296_v53  ;;  %v19538_v6 = vmul.f32 %v9539_v62, %v21291_v29  ;;  %v19541_v30 = vmul.f32 %v9576_v45, %v21302_v57  ;;  %v19544_v31 = vmul.f32 %v9587_v16, %v21297_v46  ;;  %9755 = vmatpush1.bf16.msra.mxu0 %v9660_v34  ;;  %v21389_v57 = vld [vmem:[#allocation61_spill] sm:$0xff] }
 0xbf5   :  { %v9632_v53 = vsel %vm1399_vm11, %v19241_v21, %v19311_v28  ;;  %v9538_v29 = vsel %vm1205_vm9, %v19385_v52, %v9507_v5  ;;  %v9541_v1 = vmul.f32 %v9537_v9, %v21389_v57  ;;  %9756 = vmatprep.subr.bf16.mxu0 %v9673_v48  ;;  %v9672_v46 = vpack.c.bf16 %v9492_v33, %v19169_v63  ;;  %v12087_v52 = vld [vmem:[%s19949_s18 + $0x60] ss:$0 sm:$0xff]  ;;  %v12088_v63 = vld [vmem:[%s19949_s18 + $0x68] ss:$0 sm:$0xff] }
 0xbf6   :  { %v9694_v13 = vpack.c.bf16 %v19541_v30, %v19535_v43  ;;  %v19562_v27 = vpop.permute.xlu0 %9464  ;;  %v19564_v39 = vpop.permute.xlu1 %9512  ;;  %v9695_v21 = vpack.c.bf16 %v19544_v31, %v19538_v6  ;;  %v9636_v5 = vmul.f32 %v12087_v52, %v9634_v26  ;;  %v9637_v54 = vmul.f32 %v12088_v63, %v9633_v35  ;;  %v21391_v48 = vld [vmem:[#allocation62_spill] sm:$0xff]  ;;  %v12089_v35 = vld [vmem:[%s19949_s18 + $0x70] ss:$0 sm:$0xff]  ;;  %v12097_v31 = vld [vmem:[%s19949_s18 + $0xa8] ss:$0 sm:$0xff] }
 0xbf7   :  { %v9487_v33 = vsel %vm1108_vm8, %v19303_v17, %v19562_v27  ;;  %v9685_v9 = vpack.c.bf16 %v9589_v44, %v9541_v1  ;;  %v9540_v34 = vmul.f32 %v9538_v29, %v21391_v48  ;;  %v9536_v26 = vsel %vm1205_vm9, %v19279_v24, %v19301_v59  ;;  %v21393_v44 = vld [vmem:[#allocation19_spill] sm:$0xff]  ;;  %v21394_v1 = vld [vmem:[#allocation17_spill] sm:$0xff] }
 0xbf8   :  { %v9495_v12 = vmul.f32 %v9487_v33, %v21392_v36  ;;  %9757 = vmatpush1.bf16.msra.mxu0 %v9672_v46  ;;  %v9674_v15 = vpack.c.bf16 %v19505_v51, %v19087_v19  ;;  %v9638_v62 = vmul.f32 %v12089_v35, %v9632_v53  ;;  %v9535_v17 = vsel %vm1205_vm9, %v19301_v59, %v19564_v39 }
 0xbf9   :  { %9758 = vmatprep.subr.bf16.mxu0 %v9685_v9  ;;  %v9590_v45 = vmul.f32 %v9584_v2, %v21393_v44  ;;  %v9340_v24 = vsel %vm817_vm4, %v19329_v58, %v19359_v40  ;;  %v9684_v16 = vpack.c.bf16 %v9588_v56, %v9540_v34  ;;  %v9696_v29 = vpack.c.bf16 %v9636_v5, %v9636_v5  ;;  %v21396_v5 = vld [vmem:[#allocation15_spill] sm:$0xff] }
 0xbfa   :  { %v19598_v19 = vpop.permute.xlu0 %9608  ;;  %v19600_v51 = vpop.permute.xlu1 %9560  ;;  %v9675_v53 = vpack.c.bf16 %v9495_v12, %v19099_v22  ;;  %v9697_v57 = vpack.c.bf16 %v9637_v54, %v9637_v54  ;;  %v9543_v46 = vmul.f32 %v9535_v17, %v21394_v1  ;;  %v21395_v22 = vld [vmem:[#allocation14_spill] sm:$0xff]  ;;  %v9542_v63 = vmul.f32 %v9536_v26, %v21396_v5  ;;  %v21403_v5 = vld [vmem:[#allocation73_spill] sm:$0xff] }
 0xbfb   :  { %v9631_v59 = vsel %vm1399_vm11, %v19311_v28, %v19598_v19  ;;  %v9583_v2 = vsel %vm1302_vm10, %v19309_v60, %v19600_v51  ;;  %v9698_v54 = vpack.c.bf16 %v9638_v62, %v9638_v62  ;;  %v9292_v28 = vsel %vm720_vm3, %v19319_v23, %v19351_v20  ;;  %v21397_v60 = vld [vmem:[#allocation22_spill] sm:$0xff]  ;;  %v21398_v62 = vld [vmem:[#allocation16_spill] sm:$0xff] }
 0xbfc   :  { %v9639_v56 = vmul.f32 %v12090_v7, %v9631_v59  ;;  %v9591_v52 = vmul.f32 %v9583_v2, %v21395_v22  ;;  %9759 = vmatpush1.bf16.msra.mxu0 %v9684_v16  ;;  %9797 = vmatprep.subr.bf16.mxu1 %v9675_v53  ;;  %v9355_v33 = vmul.f32 %v9340_v24, %v21397_v60  ;;  %v9717_v35 = vsel %vm1536_vm12, %v9696_v29, 0  ;;  %v21399_v53 = vld [vmem:[#allocation25_spill] sm:$0xff]  ;;  %v21400_v29 = vld [vmem:[#allocation23_spill] sm:$0xff] }
 0xbfd   :  { %10774 = vmatprep.subr.msk.bf16.mxu0 %vm1536_vm12, %v9697_v57  ;;  %9798 = vmatpush1.bf16.msra.mxu1 %v9674_v15  ;;  %v9686_v36 = vpack.c.bf16 %v9590_v45, %v9542_v63  ;;  %v9436_v12 = vsel %vm1011_vm7, %v19345_v50, %v19377_v8  ;;  %v9307_v17 = vmul.f32 %v9292_v28, %v21398_v62  ;;  %v19638_v45 = vld [vmem:[%s19961_s12] sm:$0x1]  ;;  %v12116_v43 = vmov 1983009808  }
 0xbfe   :  { %v9275_v9 = vpop.permute.xlu0 %9274  ;;  %v9273_v48 = vpop.permute.xlu1 %9272  ;;  %v9687_v34 = vpack.c.bf16 %v9591_v52, %v9543_v46  ;;  %v9699_v15 = vpack.c.bf16 %v9639_v56, %v9639_v56  ;;  %v9388_v16 = vsel %vm914_vm6, %v19337_v3, %v19367_v47  ;;  %v21401_v46 = vld [vmem:[#allocation72_spill] sm:$0xff]  ;;  %v9484_v62 = vsel %vm1108_vm8, %v19317_v14, %v19353_v61 }
 0xbff   :  { %v9293_v26 = vsel %vm720_vm3, %v9275_v9, %v19319_v23  ;;  %v9295_v44 = vsel %vm720_vm3, %v19249_v38, %v9273_v48  ;;  %v9294_v24 = vsel %vm720_vm3, %v9273_v48, %v9275_v9  ;;  %v9723_v23 = vsel %vm1536_vm12, %v9698_v54, 0  ;;  %v21404_v54 = vld [vmem:[#allocation24_spill] sm:$0xff] }
 0xc00   :  { %9761 = vmatpush1.bf16.msra.mxu0 %v9717_v35  ;;  %9799 = vmatprep.subr.bf16.mxu1 %v9687_v34  ;;  %v9451_v38 = vmul.f32 %v9436_v12, %v21399_v53  ;;  %v9306_v57 = vmul.f32 %v9293_v26, %v21400_v29  ;;  %v9655_v1 = vpack.c.bf16 %v9355_v33, %v9307_v17  ;;  %v21409_v53 = vld [vmem:[#allocation119_spill] sm:$0xff]  ;;  %v21410_v29 = vld [vmem:[#allocation77_spill] sm:$0xff]  ;;  %v10013_v30 = vunpack.c.l.s4 %v12116_v43 }
 0xc01   :  { %9800 = vmatpush1.bf16.msra.mxu1 %v9686_v36  ;;  %v9304_v7 = vmul.f32 %v9295_v44, %v21401_v46  ;;  %v9305_v63 = vmul.f32 %v9294_v24, %v21403_v5  ;;  %v21408_v44 = vld [vmem:[#allocation76_spill] sm:$0xff] }
 0xc02   :  { %v9323_v59 = vpop.permute.xlu0 %9322  ;;  %10776 = vmatprep.subr.msk.bf16.mxu1 %vm1536_vm12, %v9699_v15  ;;  %v9321_v2 = vpop.permute.xlu1 %9320 }
 0xc03   :  { %v9341_v56 = vsel %vm817_vm4, %v9323_v59, %v19329_v58  ;;  %v9342_v22 = vsel %vm817_vm4, %v9321_v2, %v9323_v59  ;;  %v9343_v52 = vsel %vm817_vm4, %v19261_v11, %v9321_v2  ;;  %10775 = vmatmul.mubr.msk.bf16.vlgmr.msra.gmra.mrb[52].mxu0 %vm21402_vm13, %v19638_v45  ;;  %v21405_v58 = vld [vmem:[#allocation26_spill] sm:$0xff]  ;;  %v21411_v59 = vld [vmem:[#allocation27_spill] sm:$0xff] }
 0xc04   :  { %v9354_v28 = vmul.f32 %v9341_v56, %v21404_v54  ;;  %v9352_v60 = vmul.f32 %v9343_v52, %v21232_v4  ;;  %v9353_v33 = vmul.f32 %v9342_v22, %v21238_v41  ;;  %9866 = vmatprep.mubr.bf16.mxu0 %v21315_v55  ;;  %v9403_v9 = vmul.f32 %v9388_v16, %v21405_v58  ;;  %v21414_v54 = vld [vmem:[#allocation52_spill] sm:$0xff] }
 0xc05   :  { %9802 = vmatpush1.bf16.msra.mxu1 %v9723_v23 }
 0xc06   :  { %v9654_v48 = vpack.c.bf16 %v9354_v28, %v9306_v57  ;;  %v9652_v34 = vpack.c.bf16 %v9352_v60, %v9304_v7  ;;  %v9371_v36 = vpop.permute.xlu0 %9370  ;;  %9875 = vmatprep.subr.bf16.mxu1 %v9655_v1  ;;  %v9369_v11 = vpop.permute.xlu1 %9368  ;;  %v9653_v12 = vpack.c.bf16 %v9353_v33, %v9305_v63  ;;  %v9667_v41 = vpack.c.bf16 %v9451_v38, %v9403_v9  ;;  %v21412_v1 = vld [vmem:[#allocation80_spill] sm:$0xff]  ;;  %v21413_v7 = vld [vmem:[#allocation81_spill] sm:$0xff] }
 0xc07   :  { %v9389_v26 = vsel %vm914_vm6, %v9371_v36, %v19337_v3  ;;  %v9391_v4 = vsel %vm914_vm6, %v19277_v25, %v9369_v11  ;;  %v9390_v35 = vsel %vm914_vm6, %v9369_v11, %v9371_v36  ;;  %v21407_v3 = vld [vmem:[#allocation28_spill] sm:$0xff]  ;;  %v9498_v28 = vmul.f32 %v9484_v62, %v21414_v54  ;;  %v21415_v9 = vld [vmem:[#allocation29_spill] sm:$0xff]  ;;  %v21417_v11 = vld [vmem:[#allocation83_spill] sm:$0xff] }
 0xc08   :  { %10777 = vmatmul.mubr.msk.bf16.vlgmr.msra.gmra.mrb[96].mxu1 %vm21406_vm14, %v19638_v45  ;;  %9834 = vmatprep.subr.bf16.mxu0 %v9653_v12  ;;  %v9402_v17 = vmul.f32 %v9389_v26, %v21407_v3  ;;  %v9400_v24 = vmul.f32 %v9391_v4, %v21408_v44  ;;  %v9401_v57 = vmul.f32 %v9390_v35, %v21410_v29  ;;  %v21418_v26 = vld [vmem:[#allocation107_spill] sm:$0xff]  ;;  %v21424_v44 = vld [vmem:[#allocation156_spill] sm:$0xff] }
 0xc09   :  { %9835 = vmatpush1.bf16.msra.mxu0 %v9652_v34  ;;  %9876 = vmatpush1.bf16.msra.mxu1 %v9654_v48  ;;  %v21416_v34 = vld [vmem:[#allocation82_spill] sm:$0xff]  ;;  %v21419_v4 = vld [vmem:[#allocation155_spill] sm:$0xff] }
 0xc0a   :  { %v9419_v15 = vpop.permute.xlu0 %9418  ;;  %9877 = vmatprep.subr.bf16.mxu1 %v9667_v41  ;;  %v9417_v25 = vpop.permute.xlu1 %9416  ;;  %9907 = vmatprep.mubr.bf16.mxu1 %v21315_v55  ;;  %v21420_v41 = vld [vmem:[#allocation4_spill] sm:$0xff] }
 0xc0b   :  { %v9437_v23 = vsel %vm1011_vm7, %v9419_v15, %v19345_v50  ;;  %v9438_v16 = vsel %vm1011_vm7, %v9417_v25, %v9419_v15  ;;  %v9439_v38 = vsel %vm1011_vm7, %v21409_v53, %v9417_v25  ;;  %v21423_v15 = vld [vmem:[#allocation154_spill] sm:$0xff] }
 0xc0c   :  { %v9450_v2 = vmul.f32 %v9437_v23, %v21411_v59  ;;  %v9448_v46 = vmul.f32 %v9439_v38, %v21412_v1  ;;  %v9449_v56 = vmul.f32 %v9438_v16, %v21413_v7  ;;  %v21425_v23 = vld [vmem:[#allocation115_spill] sm:$0xff]  ;;  %v21426_v53 = vld [vmem:[#allocation106_spill] sm:$0xff]  ;;  %v21427_v38 = vld [vmem:[#allocation100_spill] sm:$0xff] }
 0xc0d   :  { %v9678_v16 = vpack.c.bf16 %v9498_v28, %v21425_v23  ;;  %v9532_v29 = vsel %vm1205_vm9, %v21427_v38, %v21426_v53 }
 0xc0e   :  { %v9666_v22 = vpack.c.bf16 %v9450_v2, %v9402_v17  ;;  %v9664_v52 = vpack.c.bf16 %v9448_v46, %v9400_v24  ;;  %v19696_v5 = vpop.permute.xlu0 %9472  ;;  %v9467_v50 = vpop.permute.xlu1 %9466  ;;  %v9665_v63 = vpack.c.bf16 %v9449_v56, %v9401_v57  ;;  %v21428_v2 = vld [vmem:[#allocation6_spill] sm:$0xff]  ;;  %v12091_v46 = vld [vmem:[%s19949_s18 + $0x90] ss:$0 sm:$0xff] }
 0xc0f   :  { %v9483_v60 = vsel %vm1108_vm8, %v19353_v61, %v19696_v5  ;;  %v9485_v33 = vsel %vm1108_vm8, %v9467_v50, %v19317_v14  ;;  %v9486_v58 = vsel %vm1108_vm8, %v19562_v27, %v9467_v50  ;;  %v9580_v61 = vsel %vm1302_vm10, %v21419_v4, %v21418_v26  ;;  %v21421_v14 = vld [vmem:[#allocation184_spill] sm:$0xff]  ;;  %v21422_v27 = vld [vmem:[#allocation111_spill] sm:$0xff] }
 0xc10   :  { %v9499_v48 = vmul.f32 %v9483_v60, %v21415_v9  ;;  %v9496_v36 = vmul.f32 %v9486_v58, %v21416_v34  ;;  %v9497_v12 = vmul.f32 %v9485_v33, %v21417_v11  ;;  %9836 = vmatprep.subr.bf16.mxu0 %v9665_v63  ;;  %9878 = vmatpush1.bf16.msra.mxu1 %v9666_v22  ;;  %v21429_v22 = vld [vmem:[#allocation31_spill] sm:$0xff]  ;;  %v21430_v50 = vld [vmem:[#allocation112_spill] sm:$0xff]  ;;  %v21433_v34 = vld [vmem:[#allocation85_spill] sm:$0xff] }
 0xc11   :  { %9837 = vmatpush1.bf16.msra.mxu0 %v9664_v52  ;;  %v9628_v35 = vsel %vm1399_vm11, %v21421_v14, %v21420_v41  ;;  %v9594_v1 = vmul.f32 %v9580_v61, %v21428_v2  ;;  %v9546_v52 = vmul.f32 %v9532_v29, %v21429_v22  ;;  %v21431_v63 = vld [vmem:[#allocation51_spill] sm:$0xff]  ;;  %v21432_v33 = vld [vmem:[#allocation84_spill] sm:$0xff]  ;;  %v21434_v11 = vld [vmem:[#allocation30_spill] sm:$0xff] }
 0xc12   :  { %v9676_v62 = vpack.c.bf16 %v9496_v36, %v21422_v27  ;;  %v19721_v3 = vpop.permute.xlu0 %9520  ;;  %v9515_v17 = vpop.permute.xlu1 %9514  ;;  %v9677_v25 = vpack.c.bf16 %v9497_v12, %v21423_v15  ;;  %v9679_v24 = vpack.c.bf16 %v9499_v48, %v21424_v44  ;;  %v9642_v7 = vmul.f32 %v12091_v46, %v9628_v35  ;;  %v21435_v61 = vld [vmem:[#allocation86_spill] sm:$0xff]  ;;  %v21436_v27 = vld [vmem:[#allocation87_spill] sm:$0xff]  ;;  %v12092_v2 = vld [vmem:[%s19949_s18 + $0x98] ss:$0 sm:$0xff] }
 0xc13   :  { %v9531_v57 = vsel %vm1205_vm9, %v21426_v53, %v19721_v3  ;;  %v9534_v59 = vsel %vm1205_vm9, %v19564_v39, %v9515_v17  ;;  %v9533_v56 = vsel %vm1205_vm9, %v9515_v17, %v21427_v38  ;;  %v9336_v39 = vsel %vm817_vm4, %v21430_v50, %v19471_v32  ;;  %v21439_v53 = vld [vmem:[#allocation32_spill] sm:$0xff]  ;;  %v12093_v46 = vld [vmem:[%s19949_s18 + $0x80] ss:$0 sm:$0xff] }
 0xc14   :  { %9838 = vmatprep.subr.bf16.mxu0 %v9677_v25  ;;  %9879 = vmatprep.subr.bf16.mxu1 %v9679_v24  ;;  %v9547_v54 = vmul.f32 %v9531_v57, %v21431_v63  ;;  %v9544_v58 = vmul.f32 %v9534_v59, %v21432_v33  ;;  %v9545_v36 = vmul.f32 %v9533_v56, %v21433_v34  ;;  %v21437_v25 = vld [vmem:[#allocation166_spill] sm:$0xff] }
 0xc15   :  { %9839 = vmatpush1.bf16.msra.mxu0 %v9676_v62  ;;  %9880 = vmatpush1.bf16.msra.mxu1 %v9678_v16  ;;  %v9690_v17 = vpack.c.bf16 %v9594_v1, %v9546_v52  ;;  %v9702_v15 = vpack.c.bf16 %v9642_v7, %v9642_v7  ;;  %v9359_v38 = vmul.f32 %v9336_v39, %v21439_v53 }
 0xc16   :  { %v19750_v28 = vpop.permute.xlu0 %9568  ;;  %v9563_v60 = vpop.permute.xlu1 %9562 }
 0xc17   :  { %v9579_v9 = vsel %vm1302_vm10, %v21418_v26, %v19750_v28  ;;  %v9581_v48 = vsel %vm1302_vm10, %v9563_v60, %v21419_v4  ;;  %v9582_v32 = vsel %vm1302_vm10, %v19600_v51, %v9563_v60  ;;  %v21438_v26 = vld [vmem:[#allocation110_spill] sm:$0xff]  ;;  %v9735_v33 = vsel %vm1536_vm12, %v9702_v15, 0 }
 0xc18   :  { %v9595_v12 = vmul.f32 %v9579_v9, %v21434_v11  ;;  %v9592_v35 = vmul.f32 %v9582_v32, %v21435_v61  ;;  %v9593_v62 = vmul.f32 %v9581_v48, %v21436_v27  ;;  %v9288_v44 = vsel %vm720_vm3, %v21438_v26, %v21437_v25  ;;  %v21441_v9 = vld [vmem:[#allocation117_spill] sm:$0xff]  ;;  %v21448_v25 = vld [vmem:[#allocation67_spill] sm:$0xff] }
 0xc19   :  { %v9432_v48 = vsel %vm1011_vm7, %v21441_v9, %v19494_v42  ;;  %v21444_v42 = vld [vmem:[#allocation36_spill] sm:$0xff] }
 0xc1a   :  { %v9688_v4 = vpack.c.bf16 %v9592_v35, %v9544_v58  ;;  %v19771_v24 = vpop.permute.xlu0 %9616  ;;  %v9611_v23 = vpop.permute.xlu1 %9610  ;;  %v9689_v51 = vpack.c.bf16 %v9593_v62, %v9545_v36  ;;  %v9691_v16 = vpack.c.bf16 %v9595_v12, %v9547_v54  ;;  %v21442_v12 = vld [vmem:[#allocation186_spill] sm:$0xff]  ;;  %v21446_v62 = vld [vmem:[#allocation91_spill] sm:$0xff] }
 0xc1b   :  { %v9627_v29 = vsel %vm1399_vm11, %v21420_v41, %v19771_v24  ;;  %v9629_v57 = vsel %vm1399_vm11, %v9611_v23, %v21421_v14  ;;  %v9630_v59 = vsel %vm1399_vm11, %v19598_v19, %v9611_v23  ;;  %v12094_v41 = vld [vmem:[%s19949_s18 + $0x88] ss:$0 sm:$0xff]  ;;  %v21440_v19 = vld [vmem:[#allocation34_spill] sm:$0xff]  ;;  %v9384_v61 = vsel %vm914_vm6, %v21442_v12, %v19473_v37 }
 0xc1c   :  { %v9643_v1 = vmul.f32 %v12092_v2, %v9627_v29  ;;  %v9640_v7 = vmul.f32 %v12093_v46, %v9630_v59  ;;  %v9641_v56 = vmul.f32 %v12094_v41, %v9629_v57  ;;  %9840 = vmatprep.subr.bf16.mxu0 %v9689_v51  ;;  %9881 = vmatprep.subr.bf16.mxu1 %v9691_v16  ;;  %v21445_v35 = vld [vmem:[#allocation90_spill] sm:$0xff]  ;;  %v21449_v37 = vld [vmem:[#allocation163_spill] sm:$0xff]  ;;  %v21450_v29 = vld [vmem:[#allocation88_spill] sm:$0xff] }
 0xc1d   :  { %9841 = vmatpush1.bf16.msra.mxu0 %v9688_v4  ;;  %9882 = vmatpush1.bf16.msra.mxu1 %v9690_v17  ;;  %v9311_v14 = vmul.f32 %v9288_v44, %v21440_v19  ;;  %v21447_v17 = vld [vmem:[#allocation43_spill] sm:$0xff]  ;;  %v9491_v44 = vsel %vm1108_vm8, %v21449_v37, %v21448_v25  ;;  %v21451_v59 = vld [vmem:[#allocation33_spill] sm:$0xff] }
 0xc1e   :  { %v9703_v22 = vpack.c.bf16 %v9643_v1, %v9643_v1  ;;  %v9700_v52 = vpack.c.bf16 %v9640_v7, %v9640_v7  ;;  %v9701_v39 = vpack.c.bf16 %v9641_v56, %v9641_v56  ;;  %v9329_v63 = vpop.permute.xlu0 %9328  ;;  %v9281_v54 = vpop.permute.xlu1 %9280  ;;  %v9407_v15 = vmul.f32 %v9384_v61, %v21447_v17  ;;  %v21452_v2 = vld [vmem:[#allocation89_spill] sm:$0xff]  ;;  %v21455_v56 = vld [vmem:[#allocation38_spill] sm:$0xff]  ;;  %v21461_v17 = vld [vmem:[#allocation35_spill] sm:$0xff] }
 0xc1f   :  { %v9659_v58 = vpack.c.bf16 %v9359_v38, %v9311_v14  ;;  %v9339_v32 = vsel %vm817_vm4, %v19359_v40, %v9329_v63  ;;  %v9291_v34 = vsel %vm720_vm3, %v19351_v20, %v9281_v54  ;;  %v9455_v40 = vmul.f32 %v9432_v48, %v21444_v42  ;;  %v21453_v46 = vld [vmem:[#allocation45_spill] sm:$0xff]  ;;  %v21458_v42 = vld [vmem:[#allocation92_spill] sm:$0xff] }
 0xc20   :  { %10778 = vmatprep.subr.msk.bf16.mxu0 %vm1536_vm12, %v9701_v39  ;;  %10780 = vmatprep.subr.msk.bf16.mxu1 %vm1536_vm12, %v9703_v22  ;;  %v9729_v60 = vsel %vm1536_vm12, %v9700_v52, 0  ;;  %v9356_v27 = vmul.f32 %v9339_v32, %v21445_v35  ;;  %v9308_v20 = vmul.f32 %v9291_v34, %v21446_v62  ;;  %v9503_v19 = vmul.f32 %v9491_v44, %v21455_v56  ;;  %v21456_v22 = vld [vmem:[#allocation94_spill] sm:$0xff]  ;;  %v21457_v39 = vld [vmem:[#allocation95_spill] sm:$0xff]  ;;  %v21459_v35 = vld [vmem:[#allocation37_spill] sm:$0xff] }
 0xc21   :  { %9843 = vmatpush1.bf16.msra.mxu0 %v9729_v60  ;;  %9884 = vmatpush1.bf16.msra.mxu1 %v9735_v33  ;;  %v21460_v62 = vld [vmem:[#allocation93_spill] sm:$0xff] }
 0xc22   :  { %v9425_v36 = vpop.permute.xlu0 %9424  ;;  %9957 = vmatprep.subr.bf16.mxu1 %v9659_v58  ;;  %v9377_v11 = vpop.permute.xlu1 %9376  ;;  %v9656_v14 = vpack.c.bf16 %v9356_v27, %v9308_v20 }
 0xc23   :  { %v9435_v4 = vsel %vm1011_vm7, %v19377_v8, %v9425_v36  ;;  %v9387_v23 = vsel %vm914_vm6, %v19367_v47, %v9377_v11 }
 0xc24   :  { %10779 = vmatmul.mubr.msk.bf16.vlgmr.msra.gmra.mrb[56].mxu0 %vm21443_vm15, %v19638_v45  ;;  %10781 = vmatmul.mubr.msk.bf16.vlgmr.msra.gmra.mrb[100].mxu1 %vm20922_vm0, %v19638_v45  ;;  %v9452_v52 = vmul.f32 %v9435_v4, %v21456_v22  ;;  %v12095_v22 = vld [vmem:[%s19949_s18 + $0xa0] ss:$0 sm:$0xff] }
 0xc25   :  { %9948 = vmatprep.mubr.bf16.mxu0 %v21315_v55  ;;  %9989 = vmatprep.mubr.bf16.mxu1 %v21315_v55 }
 0xc26   :  { %v9283_v51 = vpop.permute.xlu0 %9282  ;;  %v9331_v16 = vpop.permute.xlu1 %9330 }
 0xc27   :  { %v9289_v55 = vsel %vm720_vm3, %v9283_v51, %v21438_v26  ;;  %v9290_v53 = vsel %vm720_vm3, %v9281_v54, %v9283_v51  ;;  %v9337_v38 = vsel %vm817_vm4, %v9331_v16, %v21430_v50  ;;  %v9338_v8 = vsel %vm817_vm4, %v9329_v63, %v9331_v16  ;;  %v21454_v26 = vld [vmem:[#allocation159_spill] sm:$0xff]  ;;  %vm21473_vm3 = vmmov %vm20922_vm0 }
 0xc28   :  { %v9309_v57 = vmul.f32 %v9290_v53, %v21450_v29  ;;  %v9310_v47 = vmul.f32 %v9289_v55, %v21451_v59  ;;  %v9357_v1 = vmul.f32 %v9338_v8, %v21452_v2  ;;  %v9358_v7 = vmul.f32 %v9337_v38, %v21453_v46  ;;  %v21463_v16 = vld [vmem:[#allocation7_spill] sm:$0xff]  ;;  %v21465_v8 = vld [vmem:[#allocation182_spill] sm:$0xff]  ;;  %v21466_v59 = vld [vmem:[#allocation185_spill] sm:$0xff] }
 0xc29   :  { %v9480_v41 = vsel %vm1108_vm8, %v21454_v26, %v21449_v37  ;;  %v9671_v50 = vpack.c.bf16 %v9455_v40, %v9407_v15  ;;  %v9404_v63 = vmul.f32 %v9387_v23, %v21457_v39  ;;  %v21464_v53 = vld [vmem:[#allocation3_spill] sm:$0xff]  ;;  %v9683_v29 = vpack.c.bf16 %v9503_v19, %v21465_v8  ;;  %v21468_v46 = vld [vmem:[#allocation18_spill] sm:$0xff]  ;;  %v21471_v39 = vld [vmem:[#allocation12_spill] sm:$0xff] }
 0xc2a   :  { %v9658_v54 = vpack.c.bf16 %v9358_v7, %v9310_v47  ;;  %v9379_v60 = vpop.permute.xlu0 %9378  ;;  %v9427_v33 = vpop.permute.xlu1 %9426  ;;  %v9657_v58 = vpack.c.bf16 %v9357_v1, %v9309_v57  ;;  %vm21474_vm4 = vmmov %vm20922_vm0 }
 0xc2b   :  { %v9385_v48 = vsel %vm914_vm6, %v9379_v60, %v21442_v12  ;;  %v9386_v32 = vsel %vm914_vm6, %v9377_v11, %v9379_v60  ;;  %v9433_v34 = vsel %vm1011_vm7, %v9427_v33, %v21441_v9  ;;  %v9434_v61 = vsel %vm1011_vm7, %v9425_v36, %v9427_v33  ;;  %v21462_v12 = vld [vmem:[#allocation44_spill] sm:$0xff] }
 0xc2c   :  { %v9405_v40 = vmul.f32 %v9386_v32, %v21458_v42  ;;  %v9406_v27 = vmul.f32 %v9385_v48, %v21459_v35  ;;  %v9453_v20 = vmul.f32 %v9434_v61, %v21460_v62  ;;  %v9454_v15 = vmul.f32 %v9433_v34, %v21461_v17  ;;  %9916 = vmatprep.subr.bf16.mxu0 %v9657_v58  ;;  %v12096_v61 = vld [vmem:[%s19949_s18 + $0xb8] ss:$0 sm:$0xff] }
 0xc2d   :  { %9958 = vmatpush1.bf16.msra.mxu1 %v9658_v54  ;;  %9917 = vmatpush1.bf16.msra.mxu0 %v9656_v14  ;;  %v9502_v11 = vmul.f32 %v9480_v41, %v21462_v12  ;;  %v9668_v4 = vpack.c.bf16 %v9452_v52, %v9404_v63  ;;  %v21470_v14 = vld [vmem:[#allocation8_spill] sm:$0xff]  ;;  %v21472_v54 = vld [vmem:[#allocation9_spill] sm:$0xff] }
 0xc2e   :  { %v9670_v25 = vpack.c.bf16 %v9454_v15, %v9406_v27  ;;  %9959 = vmatprep.subr.bf16.mxu1 %v9671_v50  ;;  %v9523_v37 = vpop.permute.xlu0 %9522  ;;  %v9475_v9 = vpop.permute.xlu1 %9474  ;;  %v9669_v44 = vpack.c.bf16 %v9453_v20, %v9405_v40 }
 0xc2f   :  { %v9481_v36 = vsel %vm1108_vm8, %v9475_v9, %v21454_v26  ;;  %v9482_v23 = vsel %vm1108_vm8, %v19696_v5, %v9475_v9  ;;  %v9530_v51 = vsel %vm1205_vm9, %v19721_v3, %v9523_v37  ;;  %v9529_v57 = vsel %vm1205_vm9, %v9523_v37, %v19454_v18  ;;  %v21467_v5 = vld [vmem:[#allocation114_spill] sm:$0xff] }
 0xc30   :  { %v9500_v55 = vmul.f32 %v9482_v23, %v21463_v16  ;;  %v9501_v38 = vmul.f32 %v9481_v36, %v21464_v53  ;;  %9918 = vmatprep.subr.bf16.mxu0 %v9669_v44  ;;  %v9682_v47 = vpack.c.bf16 %v9502_v11, %v21466_v59  ;;  %v21469_v26 = vld [vmem:[#allocation10_spill] sm:$0xff]  ;;  %v9549_v50 = vmul.f32 %v9529_v57, %v21470_v14  ;;  %v21475_v23 = vld [vmem:[#allocation41_spill] sm:$0xff] }
 0xc31   :  { %9960 = vmatpush1.bf16.msra.mxu1 %v9670_v25  ;;  %9919 = vmatpush1.bf16.msra.mxu0 %v9668_v4  ;;  %v9548_v41 = vmul.f32 %v9530_v51, %v21469_v26  ;;  %v10014_v25 = vunpack.c.0.s8 %v10013_v30 }
 0xc32   :  { %v9680_v2 = vpack.c.bf16 %v9500_v55, %v21467_v5  ;;  %9961 = vmatprep.subr.bf16.mxu1 %v9683_v29  ;;  %v9619_v1 = vpop.permute.xlu0 %9618  ;;  %v9571_v3 = vpop.permute.xlu1 %9570  ;;  %v9681_v7 = vpack.c.bf16 %v9501_v38, %v21468_v46 }
 0xc33   :  { %v9626_v56 = vsel %vm1399_vm11, %v19771_v24, %v9619_v1  ;;  %v9577_v18 = vsel %vm1302_vm10, %v9571_v3, %v19456_v49  ;;  %v9578_v19 = vsel %vm1302_vm10, %v19750_v28, %v9571_v3  ;;  %v10017_v51 = vsub.s32 %v10014_v25, %v21475_v23 }
 0xc34   :  { %v9644_v52 = vmul.f32 %v12095_v22, %v9626_v56  ;;  %v9596_v63 = vmul.f32 %v9578_v19, %v21471_v39  ;;  %v9597_v60 = vmul.f32 %v9577_v18, %v21472_v54  ;;  %9920 = vmatprep.subr.bf16.mxu0 %v9681_v7 }
 0xc35   :  { %9962 = vmatpush1.bf16.msra.mxu1 %v9682_v47  ;;  %9921 = vmatpush1.bf16.msra.mxu0 %v9680_v2 }
 0xc36   :  { %v9692_v24 = vpack.c.bf16 %v9596_v63, %v9548_v41  ;;  %9963 = vmatprep.subr.bf16.mxu1 %v9695_v21  ;;  %v9623_v49 = vpop.permute.xlu0 %9622  ;;  %v9621_v28 = vpop.permute.xlu1 %9620  ;;  %v9693_v33 = vpack.c.bf16 %v9597_v60, %v9549_v50  ;;  %v9704_v34 = vpack.c.bf16 %v9644_v52, %v9644_v52 }
 0xc37   :  { %v9635_v58 = vsel %vm1399_vm11, %v9623_v49, %v19391_v10  ;;  %v9624_v48 = vsel %vm1399_vm11, %v9621_v28, %v9623_v49  ;;  %v9625_v32 = vsel %vm1399_vm11, %v9619_v1, %v9621_v28  ;;  %v12098_v10 = vld [vmem:[%s19949_s18 + $0xb0] ss:$0 sm:$0xff] }
 0xc38   :  { %v9647_v6 = vmul.f32 %v12096_v61, %v9635_v58  ;;  %v9645_v21 = vmul.f32 %v12097_v31, %v9625_v32  ;;  %v9646_v42 = vmul.f32 %v12098_v10, %v9624_v48  ;;  %9922 = vmatprep.subr.bf16.mxu0 %v9693_v33  ;;  %v9741_v27 = vsel %vm1536_vm12, %v9704_v34, 0 }
 0xc39   :  { %9964 = vmatpush1.bf16.msra.mxu1 %v9694_v13  ;;  %9923 = vmatpush1.bf16.msra.mxu0 %v9692_v24 }
 0xc3a   :  { %v9707_v0 = vpack.c.bf16 %v9647_v6, %v9647_v6  ;;  %v9705_v40 = vpack.c.bf16 %v9645_v21, %v9645_v21  ;;  %v9706_v35 = vpack.c.bf16 %v9646_v42, %v9646_v42 }
 0xc3c   :  { %10782 = vmatprep.subr.msk.bf16.mxu0 %vm1536_vm12, %v9705_v40  ;;  %10784 = vmatprep.subr.msk.bf16.mxu1 %vm1536_vm12, %v9707_v0  ;;  %v9747_v62 = vsel %vm1536_vm12, %v9706_v35, 0 }
 0xc3d   :  { %9925 = vmatpush1.bf16.msra.mxu0 %v9741_v27  ;;  %9966 = vmatpush1.bf16.msra.mxu1 %v9747_v62 }
 0xc40   :  { %10783 = vmatmul.mubr.msk.bf16.vlgmr.msra.gmra.mrb[60].mxu0 %vm21473_vm3, %v19638_v45  ;;  %10785 = vmatmul.mubr.msk.bf16.vlgmr.msra.gmra.mrb[104].mxu1 %vm21474_vm4, %v19638_v45 }
 0xc47   :  { %v9711_v13 = vpop.permute.xlu1 %9710 }
 0xcd6   :  { %v9786_v20 = vpop.f32.mrb[52].mxu0 }
 0xcd7   :  { %v9787_v17 = vadd.f32 %v9786_v20, %v9711_v13  ;;  %v9788_v15 = vpop.f32.mrb[53].mxu0 }
 0xcd8   :  { %v9789_v12 = vadd.f32 %v9788_v15, %v9711_v13  ;;  %v9790_v11 = vpop.f32.mrb[54].mxu0 }
 0xcd9   :  { %v9791_v37 = vpop.f32.mrb[55].mxu0 }
 0xcda   :  { %v10010_v9 = vcombine.low %v9787_v17, %v9789_v12 }
 0xcdb   :  { %v9827_v44 = vpop.f32.mrb[96].mxu1 }
 0xcdc   :  { %v9828_v4 = vadd.f32 %v9827_v44, %v9711_v13  ;;  %v9829_v36 = vpop.f32.mrb[97].mxu1  ;;  %v10018_v38 = vrot.slane %v10010_v9, %v10017_v51 }
 0xcdd   :  { %v9830_v16 = vadd.f32 %v9829_v36, %v9711_v13  ;;  %v9831_v55 = vpop.f32.mrb[98].mxu1 }
 0xcde   :  { %v9832_v53 = vpop.f32.mrb[99].mxu1 }
 0xcdf   :  { %v10011_v45 = vcombine.low %v9828_v4, %v9830_v16 }
 0xce1   :  { %v10025_v8 = vrot.slane %v10011_v45, %v10017_v51 }
 0xce3   :  { %v10026_v29 = vcombine.low %v10018_v38, %v10025_v8 }
 0xce5   :  { %10064 = vst [vmem:[%s19962_s20] sm:$0xff] %v10026_v29 }
 0xcf7   :  { %v9868_v57 = vpop.f32.mrb[56].mxu0  ;;  %v9909_v59 = vpop.f32.mrb[100].mxu1 }
 0xcf8   :  { %v9869_v47 = vadd.f32 %v9868_v57, %v9711_v13  ;;  %v9910_v5 = vadd.f32 %v9909_v59, %v9711_v13  ;;  %v9870_v2 = vpop.f32.mrb[57].mxu0  ;;  %v9911_v1 = vpop.f32.mrb[101].mxu1 }
 0xcf9   :  { %v9871_v3 = vadd.f32 %v9870_v2, %v9711_v13  ;;  %v9912_v46 = vadd.f32 %v9911_v1, %v9711_v13  ;;  %v9872_v7 = vpop.f32.mrb[58].mxu0  ;;  %v9913_v26 = vpop.f32.mrb[102].mxu1 }
 0xcfa   :  { %v9873_v41 = vpop.f32.mrb[59].mxu0  ;;  %v9914_v56 = vpop.f32.mrb[103].mxu1 }
 0xcfb   :  { %v10027_v18 = vcombine.low %v9869_v47, %v9871_v3  ;;  %v10028_v19 = vcombine.low %v9910_v5, %v9912_v46 }
 0xcfd   :  { %v10035_v14 = vrot.slane %v10027_v18, %v10017_v51  ;;  %v10042_v50 = vrot.slane %v10028_v19, %v10017_v51 }
 0xcff   :  { %v10043_v22 = vcombine.low %v10035_v14, %v10042_v50 }
 0xd01   :  { %10065 = vst [vmem:[%s19962_s20 + $0x8] sm:$0xff] %v10043_v22 }
 0xd13   :  { %v9950_v52 = vpop.f32.mrb[60].mxu0  ;;  %v9991_v39 = vpop.f32.mrb[104].mxu1 }
 0xd14   :  { %v9951_v63 = vadd.f32 %v9950_v52, %v9711_v13  ;;  %v9992_v54 = vadd.f32 %v9991_v39, %v9711_v13  ;;  %v9952_v60 = vpop.f32.mrb[61].mxu0  ;;  %v9993_v24 = vpop.f32.mrb[105].mxu1 }
 0xd15   :  { %v9953_v49 = vadd.f32 %v9952_v60, %v9711_v13  ;;  %v9994_v28 = vadd.f32 %v9993_v24, %v9711_v13  ;;  %v9954_v33 = vpop.f32.mrb[62].mxu0  ;;  %v9995_v58 = vpop.f32.mrb[106].mxu1 }
 0xd16   :  { %v9955_v48 = vpop.f32.mrb[63].mxu0  ;;  %v9996_v32 = vpop.f32.mrb[107].mxu1 }
 0xd17   :  { %v10044_v34 = vcombine.low %v9951_v63, %v9953_v49  ;;  %v10045_v61 = vcombine.low %v9992_v54, %v9994_v28 }
 0xd19   :  { %v10052_v6 = vrot.slane %v10044_v34, %v10017_v51  ;;  %v10059_v31 = vrot.slane %v10045_v61, %v10017_v51 }
 0xd1b   :  { %v10060_v21 = vcombine.low %v10052_v6, %v10059_v31 }
 0xd1d   :  { %10066 = vst [vmem:[%s19962_s20 + $0x10] sm:$0xff] %v10060_v21 }

</bundles_post_ra>
